<compile_context>
chip_gen: v7x
topology: tpu7x:2x2x1
jax: 0.10.0
libtpu: 0.0.40
codegen_flags: <defaults>
</compile_context>

<pallas_src>
import functools

import jax
import jax.numpy as jnp
from jax.experimental import pallas as pl
from jax.experimental.pallas import tpu as pltpu

CPAD = 128  # all post-stem activations are stored channel-padded to 128 lanes


def _full_spec(shape):
    """Single block covering the whole (tiny) array."""
    return pl.BlockSpec(shape, lambda i, _n=len(shape): (0,) * _n)


# ---------------------------------------------------------------------------
# Kernel 1: b1 = Conv2d(3,32,k=7,s=2) + BN + ReLU + MaxPool2d(2), fully fused.
# Input is width-unrolled ((kw, Cin) folded into K=21) and row-phase split for
# the stride-2, then flattened to (2, B*Hq*Wc, 21).  Conv = 7 shifted matmuls.
# ---------------------------------------------------------------------------
def _b1_kernel(x_ref, w_ref, scale_ref, shift_ref, o_ref, *, B, S, Wc, Hc, kh):
    C = o_ref.shape[1]
    Rv = (B - 1) * S + (Hc - 1) * Wc + Wc
    acc = jnp.zeros((Rv, C), jnp.float32)
    for i in range(kh):                       # 7 row taps, K = kw*Cin = 21
        phase = i % 2
        off = (i // 2) * Wc
        lhs = x_ref[phase, off:off + Rv, :].astype(jnp.bfloat16)
        acc = acc + jnp.dot(lhs, w_ref[i], preferred_element_type=jnp.float32)
    # folded BN (scale/shift already include the conv bias) + ReLU
    y = jnp.maximum(acc * scale_ref[...] + shift_ref[...], 0.0)
    # fused MaxPool2d(2): max of the 4 row-shifted copies.  Output stays in the
    # padded flattened layout; the wrapper compacts it with 3 cheap XLA ops.
    Rp = o_ref.shape[0]
    o_ref[...] = jnp.maximum(
        jnp.maximum(y[0:Rp, :], y[1:Rp + 1, :]),
        jnp.maximum(y[Wc:Wc + Rp, :], y[Wc + 1:Wc + 1 + Rp, :]))


# ---------------------------------------------------------------------------
# Residual block core: conv1(3x3,s2,p1)+BN1+ReLU, conv2(3x3,s1,p1)+BN2 and the
# fused 1x1/s2 shortcut projection, all on flattened 2-D slabs in VMEM.
# ---------------------------------------------------------------------------
def _res_core(xp_ref, w1_ref, s1_ref, t1_ref, w2_ref, s2_ref, t2_ref,
              w3_ref, b3_ref, ypad_ref, B, Hq, Wq, Ho, Wo):
    C = ypad_ref.shape[1]
    S = Hq * Wq
    Wp2 = Wo + 2
    P = (Ho + 2) * Wp2

    # conv1: 9 shifted matmuls over the 2x2 phase-split input, fused BN1+ReLU.
    Rv1 = (B - 1) * S + (Ho - 1) * Wq + Wo
    acc1 = jnp.zeros((Rv1, C), jnp.float32)
    for i in range(3):
        for j in range(3):
            p = (i % 2) * 2 + (j % 2)
            off = (i // 2) * Wq + (j // 2)
            lhs = xp_ref[p, off:off + Rv1, :].astype(jnp.bfloat16)
            acc1 = acc1 + jnp.dot(lhs, w1_ref[i * 3 + j],
                                  preferred_element_type=jnp.float32)
    y1 = jnp.maximum(acc1 * s1_ref[...] + t1_ref[...], 0.0)

    # Embed y1 into a zero-padded (Ho+2, Wo+2) grid kept in VMEM scratch so
    # conv2's taps are again plain row-offset slices (no HBM round trip).
    ypad_ref[...] = jnp.zeros_like(ypad_ref)
    for b in range(B):
        for h in range(Ho):
            src = b * S + h * Wq
            dst = b * P + (h + 1) * Wp2 + 1
            ypad_ref[dst:dst + Wo, :] = y1[src:src + Wo, :]

    # conv2: 9 shifted matmuls, fused BN2 (ReLU applied after the residual add).
    Rv2 = (B - 1) * P + (Ho - 1) * Wp2 + Wo
    acc2 = jnp.zeros((Rv2, C), jnp.float32)
    for i in range(3):
        for j in range(3):
            off = i * Wp2 + j
            lhs = ypad_ref[off:off + Rv2, :].astype(jnp.bfloat16)
            acc2 = acc2 + jnp.dot(lhs, w2_ref[i * 3 + j],
                                  preferred_element_type=jnp.float32)
    y2 = acc2 * s2_ref[...] + t2_ref[...]

    # conv3: fused 1x1 stride-2 shortcut (+ bias). Stride-2 sampling of the
    # original (padded) input is exactly phase (1, 1).
    lhs3 = xp_ref[3, 0:Rv1, :].astype(jnp.bfloat16)
    acc3 = jnp.dot(lhs3, w3_ref[...],
                   preferred_element_type=jnp.float32) + b3_ref[...]
    return y2, acc3, S, P, Wp2


def _res_block_kernel(xp_ref, w1_ref, s1_ref, t1_ref, w2_ref, s2_ref, t2_ref,
                      w3_ref, b3_ref, o_ref, ypad_ref, *, B, Hq, Wq, Ho, Wo):
    y2, acc3, S, P, Wp2 = _res_core(xp_ref, w1_ref, s1_ref, t1_ref, w2_ref,
                                    s2_ref, t2_ref, w3_ref, b3_ref, ypad_ref,
                                    B, Hq, Wq, Ho, Wo)
    # epilogue: residual add + ReLU, stored compact & lane-dense (B*Ho*Wo, 128)
    for b in range(B):
        for h in range(Ho):
            r2 = b * P + h * Wp2
            r1 = b * S + h * Wq
            y = jnp.maximum(y2[r2:r2 + Wo, :] + acc3[r1:r1 + Wo, :], 0.0)
            o = (b * Ho + h) * Wo
            o_ref[o:o + Wo, :] = y


def _res_block_head_kernel(xp_ref, w1_ref, s1_ref, t1_ref, w2_ref, s2_ref,
                           t2_ref, w3_ref, b3_ref, fcw_ref, fcb_ref, o_ref,
                           ypad_ref, *, B, Hq, Wq, Ho, Wo):
    # Same residual block, but fused with AdaptiveAvgPool2d((1,1)) + Linear.
    y2, acc3, S, P, Wp2 = _res_core(xp_ref, w1_ref, s1_ref, t1_ref, w2_ref,
                                    s2_ref, t2_ref, w3_ref, b3_ref, ypad_ref,
                                    B, Hq, Wq, Ho, Wo)
    inv = 1.0 / float(Ho * Wo)
    for b in range(B):
        tot = jnp.zeros((1, y2.shape[1]), jnp.float32)
        for h in range(Ho):
            r2 = b * P + h * Wp2
            r1 = b * S + h * Wq
            y = jnp.maximum(y2[r2:r2 + Wo, :] + acc3[r1:r1 + Wo, :], 0.0)
            tot = tot + jnp.sum(y, axis=0, keepdims=True)
        pooled = (tot * inv).astype(jnp.bfloat16)
        logits = jnp.dot(pooled, fcw_ref[...],
                         preferred_element_type=jnp.float32) + fcb_ref[...]
        o_ref[b:b + 1, :] = logits


# ---------------------------------------------------------------------------
# Wrappers (parameter folding + cheap layout permutations in XLA)
# ---------------------------------------------------------------------------
def _fold_bn(conv_bias, bn, cpad):
    gamma, beta, mean, var, eps = bn
    scale = gamma * jax.lax.rsqrt(var + eps)
    shift = (conv_bias - mean) * scale + beta
    c = scale.shape[0]
    scale = jnp.pad(scale, (0, cpad - c), constant_values=1.0)
    shift = jnp.pad(shift, (0, cpad - c))
    return (scale.reshape(1, cpad).astype(jnp.float32),
            shift.reshape(1, cpad).astype(jnp.float32))


def _prep_conv3x3_w(w, cpad):
    cout, cin = w.shape[0], w.shape[1]
    wt = jnp.transpose(w, (2, 3, 1, 0))                      # (3,3,cin,cout)
    wt = jnp.pad(wt, ((0, 0), (0, 0), (0, cpad - cin), (0, cpad - cout)))
    return wt.reshape(9, cpad, cpad).astype(jnp.bfloat16)


def b1_forward(x_nhwc, params):
    """Conv2d(3,32,7,stride=2) + BN + ReLU + MaxPool2d(2), one pallas_call."""
    B, H, W, Cin = x_nhwc.shape
    kh = kw = 7
    s = 2
    Hc = (H - kh) // s + 1
    Wc = (W - kw) // s + 1
    Hp, Wp = Hc // 2, Wc // 2
    Hq = H // s
    S = Hq * Wc
    # width-unroll (kw, Cin) into the K dimension (no kh*kw im2col blowup)
    xcol = jnp.concatenate(
        [x_nhwc[:, :, j:j + s * (Wc - 1) + 1:s, :] for j in range(kw)], axis=-1)
    # stride-2 row-phase split, then flatten (b, row, col) -> rows
    xph = jnp.stack([xcol[:, p::s] for p in range(s)], axis=0)
    x_flat = xph.reshape(s, B * S, kw * Cin)

    w = params["b1_conv_w"]
    cout = w.shape[0]
    wt = jnp.transpose(w, (2, 3, 1, 0)).reshape(kh, kw * Cin, cout)
    wt = jnp.pad(wt, ((0, 0), (0, 0), (0, CPAD - cout))).astype(jnp.bfloat16)
    scale, shift = _fold_bn(params["b1_conv_b"], params["b1_bn"], CPAD)

    Rp = (B - 1) * S + 2 * (Hp - 1) * Wc + 2 * (Wp - 1) + 1
    pooled = pl.pallas_call(
        functools.partial(_b1_kernel, B=B, S=S, Wc=Wc, Hc=Hc, kh=kh),
        out_shape=jax.ShapeDtypeStruct((Rp, CPAD), jnp.float32),
        grid=(1,),
        in_specs=[_full_spec(x_flat.shape), _full_spec(wt.shape),
                  _full_spec(scale.shape), _full_spec(shift.shape)],
        out_specs=_full_spec((Rp, CPAD)),
        compiler_params=pltpu.CompilerParams(
            dimension_semantics=("arbitrary",)),
    )(x_flat, wt, scale, shift)
    # compact the pooled padded-flat layout back to NHWC (3 cheap XLA ops)
    pooled = jnp.pad(pooled, ((0, B * S - Rp), (0, 0)))
    pooled = pooled.reshape(B, Hq, Wc, CPAD)
    return pooled[:, 0:2 * Hp:2, 0:2 * Wp:2, :]        # (B, Hp, Wp, 128)


def residual_forward(x_nhwc, p, head=None):
    """Residual(cin, cout, strides=2, use_1x1conv=True); one pallas_call.

    If `head` is given, AdaptiveAvgPool2d + Flatten + Linear are fused in too.
    """
    B, Hin, Win, C = x_nhwc.shape             # C == CPAD (zero-padded channels)
    Ho, Wo = (Hin + 1) // 2, (Win + 1) // 2
    Hq, Wq = (Hin + 2) // 2, (Win + 2) // 2
    xpad = jnp.pad(x_nhwc, ((0, 0), (1, 1), (1, 1), (0, 0)))
    phases = [xpad[:, pi::2, pj::2, :] for pi in range(2) for pj in range(2)]
    xp = jnp.stack(phases, axis=0).reshape(4, B * Hq * Wq, C)

    w1 = _prep_conv3x3_w(p["conv1_w"], C)
    w2 = _prep_conv3x3_w(p["conv2_w"], C)
    s1, t1 = _fold_bn(p["conv1_b"], p["bn1"], C)
    s2, t2 = _fold_bn(p["conv2_b"], p["bn2"], C)
    cout3, cin3 = p["conv3_w"].shape[0], p["conv3_w"].shape[1]
    w3 = jnp.pad(p["conv3_w"][:, :, 0, 0].T,
                 ((0, C - cin3), (0, C - cout3))).astype(jnp.bfloat16)
    b3b = jnp.pad(p["conv3_b"], (0, C - cout3)).reshape(1, C).astype(jnp.float32)

    args = [xp, w1, s1, t1, w2, s2, t2, w3, b3b]
    scratch = [pltpu.VMEM((B * (Ho + 2) * (Wo + 2), C), jnp.float32)]
    static = dict(B=B, Hq=Hq, Wq=Wq, Ho=Ho, Wo=Wo)
    if head is None:
        kern = functools.partial(_res_block_kernel, **static)
        out_shape = jax.ShapeDtypeStruct((B * Ho * Wo, C), jnp.float32)
    else:
        fc_w, fc_b = head
        ncls = fc_w.shape[0]
        args += [fc_w.T.astype(jnp.bfloat16),
                 fc_b.reshape(1, ncls).astype(jnp.float32)]
        kern = functools.partial(_res_block_head_kernel, **static)
        out_shape = jax.ShapeDtypeStruct((B, ncls), jnp.float32)

    out = pl.pallas_call(
        kern,
        out_shape=out_shape,
        grid=(1,),
        in_specs=[_full_spec(a.shape) for a in args],
        out_specs=_full_spec(out_shape.shape),
        scratch_shapes=scratch,
        compiler_params=pltpu.CompilerParams(
            dimension_semantics=("arbitrary",)),
    )(*args)
    if head is None:
        return out.reshape(B, Ho, Wo, C)
    return out


# ---------------------------------------------------------------------------
# Parameters (deterministic init, PyTorch layout conventions) & full forward
# ---------------------------------------------------------------------------
def init_params(key):
    keys = iter(jax.random.split(key, 64))

    def conv(cin, cout, k):
        w = 0.05 * jax.random.normal(next(keys), (cout, cin, k, k), jnp.float32)
        b = 0.05 * jax.random.normal(next(keys), (cout,), jnp.float32)
        return w, b

    def bn(c):
        gamma = jax.random.uniform(next(keys), (c,), jnp.float32, 0.5, 1.5)
        beta = 0.05 * jax.random.normal(next(keys), (c,), jnp.float32)
        mean = 0.05 * jax.random.normal(next(keys), (c,), jnp.float32)
        var = jax.random.uniform(next(keys), (c,), jnp.float32, 0.5, 1.5)
        return (gamma, beta, mean, var, 1e-5)

    def res_params(cin, cout):
        c1w, c1b = conv(cin, cout, 3)
        c2w, c2b = conv(cout, cout, 3)
        c3w, c3b = conv(cin, cout, 1)
        return dict(conv1_w=c1w, conv1_b=c1b, conv2_w=c2w, conv2_b=c2b,
                    conv3_w=c3w, conv3_b=c3b, bn1=bn(cout), bn2=bn(cout))

    b1_w, b1_b = conv(3, 32, 7)
    fc_w = 0.05 * jax.random.normal(next(keys), (2, 128), jnp.float32)
    fc_b = 0.05 * jax.random.normal(next(keys), (2,), jnp.float32)
    return dict(
        b1_conv_w=b1_w, b1_conv_b=b1_b, b1_bn=bn(32),
        b2=res_params(32, 64), b3=res_params(64, 128),
        fc_w=fc_w, fc_b=fc_b,
    )


def rescnn_forward(x_nchw, params):
    x = jnp.transpose(x_nchw, (0, 2, 3, 1)).astype(jnp.float32)  # NCHW -> NHWC
    x = b1_forward(x, params)                       # (B, 8, 8, 128) [32 real]
    x = residual_forward(x, params["b2"])           # (B, 4, 4, 128) [64 real]
    # b3 residual block fused with AdaptiveAvgPool2d + Flatten + Linear(128,2)
    return residual_forward(x, params["b3"],
                            head=(params["fc_w"], params["fc_b"]))


if __name__ == "__main__":
    key = jax.random.PRNGKey(0)
    k_x, k_p = jax.random.split(key)
    # Input in PyTorch NCHW convention: batch=2, channels=3, spatial=40x40.
    x = jax.random.normal(k_x, (2, 3, 40, 40), jnp.float32)
    params = init_params(k_p)

    out = jax.jit(rescnn_forward)(x, params)
    out = jax.block_until_ready(out)
    assert out.shape == (2, 2) and out.dtype == jnp.float32
    print("KERNEL_OK")
</pallas_src>

<mosaic_0001>
module attributes {stable_mosaic.version = 11 : i64} {
  func.func @_b1_kernel(%arg0: i32, %arg1: memref<2x680x21xf32, #tpu.memory_space<vmem>>, %arg2: memref<7x21x128xbf16, #tpu.memory_space<vmem>>, %arg3: memref<1x128xf32, #tpu.memory_space<vmem>>, %arg4: memref<1x128xf32, #tpu.memory_space<vmem>>, %arg5: memref<593x128xf32, #tpu.memory_space<vmem>>) attributes {dimension_semantics = [#tpu.dimension_semantics<arbitrary>], iteration_bounds = array<i64: 1>, scalar_prefetch = 0 : i64, scratch_operands = 0 : i64, tpu.core_type = #tpu.core_type<tc>, window_params = [{pipeline_mode = #tpu.pipeline_mode<synchronous>, transform_indices = @transform_0, window_bounds = array<i64: 2, 680, 21>}, {pipeline_mode = #tpu.pipeline_mode<synchronous>, transform_indices = @transform_1, window_bounds = array<i64: 7, 21, 128>}, {pipeline_mode = #tpu.pipeline_mode<synchronous>, transform_indices = @transform_2, window_bounds = array<i64: 1, 128>}, {pipeline_mode = #tpu.pipeline_mode<synchronous>, transform_indices = @transform_3, window_bounds = array<i64: 1, 128>}, {pipeline_mode = #tpu.pipeline_mode<synchronous>, transform_indices = @transform_4, window_bounds = array<i64: 593, 128>}]} {
    %cst = arith.constant 0.000000e+00 : f32
    %0 = vector.broadcast %cst : f32 to vector<629x128xf32>
    %c0 = arith.constant 0 : index
    %c0_0 = arith.constant 0 : index
    %c0_1 = arith.constant 0 : index
    %1 = vector.load %arg1[%c0, %c0_0, %c0_1] : memref<2x680x21xf32, #tpu.memory_space<vmem>>, vector<1x629x21xf32>
    %2 = vector.shape_cast %1 : vector<1x629x21xf32> to vector<629x21xf32>
    %3 = arith.truncf %2 : vector<629x21xf32> to vector<629x21xbf16>
    %c0_2 = arith.constant 0 : index
    %c0_3 = arith.constant 0 : index
    %c0_4 = arith.constant 0 : index
    %4 = vector.load %arg2[%c0_2, %c0_3, %c0_4] : memref<7x21x128xbf16, #tpu.memory_space<vmem>>, vector<1x21x128xbf16>
    %5 = vector.shape_cast %4 : vector<1x21x128xbf16> to vector<21x128xbf16>
    %cst_5 = arith.constant dense<0.000000e+00> : vector<629x128xf32>
    %6 = tpu.matmul %3, %5, %cst_5 {dimension_numbers = #tpu.dot_dimension_numbers<[1], [0], [0], [1], [0, 0, 1, 1], [], []>} : vector<629x21xbf16>, vector<21x128xbf16>, vector<629x128xf32> -> vector<629x128xf32>
    %7 = arith.addf %0, %6 : vector<629x128xf32>
    %c1 = arith.constant 1 : index
    %c0_6 = arith.constant 0 : index
    %c0_7 = arith.constant 0 : index
    %8 = vector.load %arg1[%c1, %c0_6, %c0_7] : memref<2x680x21xf32, #tpu.memory_space<vmem>>, vector<1x629x21xf32>
    %9 = vector.shape_cast %8 : vector<1x629x21xf32> to vector<629x21xf32>
    %10 = arith.truncf %9 : vector<629x21xf32> to vector<629x21xbf16>
    %c1_8 = arith.constant 1 : index
    %c0_9 = arith.constant 0 : index
    %c0_10 = arith.constant 0 : index
    %11 = vector.load %arg2[%c1_8, %c0_9, %c0_10] : memref<7x21x128xbf16, #tpu.memory_space<vmem>>, vector<1x21x128xbf16>
    %12 = vector.shape_cast %11 : vector<1x21x128xbf16> to vector<21x128xbf16>
    %cst_11 = arith.constant dense<0.000000e+00> : vector<629x128xf32>
    %13 = tpu.matmul %10, %12, %cst_11 {dimension_numbers = #tpu.dot_dimension_numbers<[1], [0], [0], [1], [0, 0, 1, 1], [], []>} : vector<629x21xbf16>, vector<21x128xbf16>, vector<629x128xf32> -> vector<629x128xf32>
    %14 = arith.addf %7, %13 : vector<629x128xf32>
    %c0_12 = arith.constant 0 : index
    %c17 = arith.constant 17 : index
    %c0_13 = arith.constant 0 : index
    %15 = vector.load %arg1[%c0_12, %c17, %c0_13] : memref<2x680x21xf32, #tpu.memory_space<vmem>>, vector<1x629x21xf32>
    %16 = vector.shape_cast %15 : vector<1x629x21xf32> to vector<629x21xf32>
    %17 = arith.truncf %16 : vector<629x21xf32> to vector<629x21xbf16>
    %c2 = arith.constant 2 : index
    %c0_14 = arith.constant 0 : index
    %c0_15 = arith.constant 0 : index
    %18 = vector.load %arg2[%c2, %c0_14, %c0_15] : memref<7x21x128xbf16, #tpu.memory_space<vmem>>, vector<1x21x128xbf16>
    %19 = vector.shape_cast %18 : vector<1x21x128xbf16> to vector<21x128xbf16>
    %cst_16 = arith.constant dense<0.000000e+00> : vector<629x128xf32>
    %20 = tpu.matmul %17, %19, %cst_16 {dimension_numbers = #tpu.dot_dimension_numbers<[1], [0], [0], [1], [0, 0, 1, 1], [], []>} : vector<629x21xbf16>, vector<21x128xbf16>, vector<629x128xf32> -> vector<629x128xf32>
    %21 = arith.addf %14, %20 : vector<629x128xf32>
    %c1_17 = arith.constant 1 : index
    %c17_18 = arith.constant 17 : index
    %c0_19 = arith.constant 0 : index
    %22 = vector.load %arg1[%c1_17, %c17_18, %c0_19] : memref<2x680x21xf32, #tpu.memory_space<vmem>>, vector<1x629x21xf32>
    %23 = vector.shape_cast %22 : vector<1x629x21xf32> to vector<629x21xf32>
    %24 = arith.truncf %23 : vector<629x21xf32> to vector<629x21xbf16>
    %c3 = arith.constant 3 : index
    %c0_20 = arith.constant 0 : index
    %c0_21 = arith.constant 0 : index
    %25 = vector.load %arg2[%c3, %c0_20, %c0_21] : memref<7x21x128xbf16, #tpu.memory_space<vmem>>, vector<1x21x128xbf16>
    %26 = vector.shape_cast %25 : vector<1x21x128xbf16> to vector<21x128xbf16>
    %cst_22 = arith.constant dense<0.000000e+00> : vector<629x128xf32>
    %27 = tpu.matmul %24, %26, %cst_22 {dimension_numbers = #tpu.dot_dimension_numbers<[1], [0], [0], [1], [0, 0, 1, 1], [], []>} : vector<629x21xbf16>, vector<21x128xbf16>, vector<629x128xf32> -> vector<629x128xf32>
    %28 = arith.addf %21, %27 : vector<629x128xf32>
    %c0_23 = arith.constant 0 : index
    %c34 = arith.constant 34 : index
    %c0_24 = arith.constant 0 : index
    %29 = vector.load %arg1[%c0_23, %c34, %c0_24] : memref<2x680x21xf32, #tpu.memory_space<vmem>>, vector<1x629x21xf32>
    %30 = vector.shape_cast %29 : vector<1x629x21xf32> to vector<629x21xf32>
    %31 = arith.truncf %30 : vector<629x21xf32> to vector<629x21xbf16>
    %c4 = arith.constant 4 : index
    %c0_25 = arith.constant 0 : index
    %c0_26 = arith.constant 0 : index
    %32 = vector.load %arg2[%c4, %c0_25, %c0_26] : memref<7x21x128xbf16, #tpu.memory_space<vmem>>, vector<1x21x128xbf16>
    %33 = vector.shape_cast %32 : vector<1x21x128xbf16> to vector<21x128xbf16>
    %cst_27 = arith.constant dense<0.000000e+00> : vector<629x128xf32>
    %34 = tpu.matmul %31, %33, %cst_27 {dimension_numbers = #tpu.dot_dimension_numbers<[1], [0], [0], [1], [0, 0, 1, 1], [], []>} : vector<629x21xbf16>, vector<21x128xbf16>, vector<629x128xf32> -> vector<629x128xf32>
    %35 = arith.addf %28, %34 : vector<629x128xf32>
    %c1_28 = arith.constant 1 : index
    %c34_29 = arith.constant 34 : index
    %c0_30 = arith.constant 0 : index
    %36 = vector.load %arg1[%c1_28, %c34_29, %c0_30] : memref<2x680x21xf32, #tpu.memory_space<vmem>>, vector<1x629x21xf32>
    %37 = vector.shape_cast %36 : vector<1x629x21xf32> to vector<629x21xf32>
    %38 = arith.truncf %37 : vector<629x21xf32> to vector<629x21xbf16>
    %c5 = arith.constant 5 : index
    %c0_31 = arith.constant 0 : index
    %c0_32 = arith.constant 0 : index
    %39 = vector.load %arg2[%c5, %c0_31, %c0_32] : memref<7x21x128xbf16, #tpu.memory_space<vmem>>, vector<1x21x128xbf16>
    %40 = vector.shape_cast %39 : vector<1x21x128xbf16> to vector<21x128xbf16>
    %cst_33 = arith.constant dense<0.000000e+00> : vector<629x128xf32>
    %41 = tpu.matmul %38, %40, %cst_33 {dimension_numbers = #tpu.dot_dimension_numbers<[1], [0], [0], [1], [0, 0, 1, 1], [], []>} : vector<629x21xbf16>, vector<21x128xbf16>, vector<629x128xf32> -> vector<629x128xf32>
    %42 = arith.addf %35, %41 : vector<629x128xf32>
    %c0_34 = arith.constant 0 : index
    %c51 = arith.constant 51 : index
    %c0_35 = arith.constant 0 : index
    %43 = vector.load %arg1[%c0_34, %c51, %c0_35] : memref<2x680x21xf32, #tpu.memory_space<vmem>>, vector<1x629x21xf32>
    %44 = vector.shape_cast %43 : vector<1x629x21xf32> to vector<629x21xf32>
    %45 = arith.truncf %44 : vector<629x21xf32> to vector<629x21xbf16>
    %c6 = arith.constant 6 : index
    %c0_36 = arith.constant 0 : index
    %c0_37 = arith.constant 0 : index
    %46 = vector.load %arg2[%c6, %c0_36, %c0_37] : memref<7x21x128xbf16, #tpu.memory_space<vmem>>, vector<1x21x128xbf16>
    %47 = vector.shape_cast %46 : vector<1x21x128xbf16> to vector<21x128xbf16>
    %cst_38 = arith.constant dense<0.000000e+00> : vector<629x128xf32>
    %48 = tpu.matmul %45, %47, %cst_38 {dimension_numbers = #tpu.dot_dimension_numbers<[1], [0], [0], [1], [0, 0, 1, 1], [], []>} : vector<629x21xbf16>, vector<21x128xbf16>, vector<629x128xf32> -> vector<629x128xf32>
    %49 = arith.addf %42, %48 : vector<629x128xf32>
    %c0_39 = arith.constant 0 : index
    %c0_40 = arith.constant 0 : index
    %50 = vector.load %arg3[%c0_39, %c0_40] : memref<1x128xf32, #tpu.memory_space<vmem>>, vector<1x128xf32>
    %51 = vector.broadcast %50 : vector<1x128xf32> to vector<629x128xf32>
    %52 = arith.mulf %49, %51 : vector<629x128xf32>
    %c0_41 = arith.constant 0 : index
    %c0_42 = arith.constant 0 : index
    %53 = vector.load %arg4[%c0_41, %c0_42] : memref<1x128xf32, #tpu.memory_space<vmem>>, vector<1x128xf32>
    %54 = vector.broadcast %53 : vector<1x128xf32> to vector<629x128xf32>
    %55 = arith.addf %52, %54 : vector<629x128xf32>
    %cst_43 = arith.constant 0.000000e+00 : f32
    %56 = vector.broadcast %cst_43 : f32 to vector<629x128xf32>
    %57 = arith.maximumf %55, %56 : vector<629x128xf32>
    %58 = vector.extract_strided_slice %57 {offsets = [0, 0], sizes = [593, 128], strides = [1, 1]} : vector<629x128xf32> to vector<593x128xf32>
    %59 = vector.extract_strided_slice %57 {offsets = [1, 0], sizes = [593, 128], strides = [1, 1]} : vector<629x128xf32> to vector<593x128xf32>
    %60 = arith.maximumf %58, %59 : vector<593x128xf32>
    %61 = vector.extract_strided_slice %57 {offsets = [17, 0], sizes = [593, 128], strides = [1, 1]} : vector<629x128xf32> to vector<593x128xf32>
    %62 = vector.extract_strided_slice %57 {offsets = [18, 0], sizes = [593, 128], strides = [1, 1]} : vector<629x128xf32> to vector<593x128xf32>
    %63 = arith.maximumf %61, %62 : vector<593x128xf32>
    %64 = arith.maximumf %60, %63 : vector<593x128xf32>
    %c0_44 = arith.constant 0 : index
    %c0_45 = arith.constant 0 : index
    %65 = vector.load %arg5[%c0_44, %c0_45] : memref<593x128xf32, #tpu.memory_space<vmem>>, vector<593x128xf32>
    tpu.vector_store %arg5[%c0_44, %c0_45], %64 {strides = array<i32>} : memref<593x128xf32, #tpu.memory_space<vmem>>, vector<593x128xf32>,
    return
  }
  func.func @transform_0(%arg0: i32) -> (i32, i32, i32) {
    %c0_i32 = arith.constant 0 : i32
    %c0_i32_0 = arith.constant 0 : i32
    %c0_i32_1 = arith.constant 0 : i32
    %c0_i32_2 = arith.constant 0 : i32
    return %c0_i32, %c0_i32_0, %c0_i32_1 : i32, i32, i32
  }
  func.func @transform_1(%arg0: i32) -> (i32, i32, i32) {
    %c0_i32 = arith.constant 0 : i32
    %c0_i32_0 = arith.constant 0 : i32
    %c0_i32_1 = arith.constant 0 : i32
    %c0_i32_2 = arith.constant 0 : i32
    return %c0_i32, %c0_i32_0, %c0_i32_1 : i32, i32, i32
  }
  func.func @transform_2(%arg0: i32) -> (i32, i32) {
    %c0_i32 = arith.constant 0 : i32
    %c0_i32_0 = arith.constant 0 : i32
    %c0_i32_1 = arith.constant 0 : i32
    return %c0_i32, %c0_i32_0 : i32, i32
  }
  func.func @transform_3(%arg0: i32) -> (i32, i32) {
    %c0_i32 = arith.constant 0 : i32
    %c0_i32_0 = arith.constant 0 : i32
    %c0_i32_1 = arith.constant 0 : i32
    return %c0_i32, %c0_i32_0 : i32, i32
  }
  func.func @transform_4(%arg0: i32) -> (i32, i32) {
    %c0_i32 = arith.constant 0 : i32
    %c0_i32_0 = arith.constant 0 : i32
    %c0_i32_1 = arith.constant 0 : i32
    return %c0_i32, %c0_i32_0 : i32, i32
  }
}

module attributes {stable_mosaic.version = 11 : i64} {
  func.func @_res_block_kernel(%arg0: i32, %arg1: memref<4x50x128xf32, #tpu.memory_space<vmem>>, %arg2: memref<9x128x128xbf16, #tpu.memory_space<vmem>>, %arg3: memref<1x128xf32, #tpu.memory_space<vmem>>, %arg4: memref<1x128xf32, #tpu.memory_space<vmem>>, %arg5: memref<9x128x128xbf16, #tpu.memory_space<vmem>>, %arg6: memref<1x128xf32, #tpu.memory_space<vmem>>, %arg7: memref<1x128xf32, #tpu.memory_space<vmem>>, %arg8: memref<128x128xbf16, #tpu.memory_space<vmem>>, %arg9: memref<1x128xf32, #tpu.memory_space<vmem>>, %arg10: memref<32x128xf32, #tpu.memory_space<vmem>>, %arg11: memref<72x128xf32, #tpu.memory_space<vmem>>) attributes {dimension_semantics = [#tpu.dimension_semantics<arbitrary>], iteration_bounds = array<i64: 1>, scalar_prefetch = 0 : i64, scratch_operands = 1 : i64, tpu.core_type = #tpu.core_type<tc>, window_params = [{pipeline_mode = #tpu.pipeline_mode<synchronous>, transform_indices = @transform_0, window_bounds = array<i64: 4, 50, 128>}, {pipeline_mode = #tpu.pipeline_mode<synchronous>, transform_indices = @transform_1, window_bounds = array<i64: 9, 128, 128>}, {pipeline_mode = #tpu.pipeline_mode<synchronous>, transform_indices = @transform_2, window_bounds = array<i64: 1, 128>}, {pipeline_mode = #tpu.pipeline_mode<synchronous>, transform_indices = @transform_3, window_bounds = array<i64: 1, 128>}, {pipeline_mode = #tpu.pipeline_mode<synchronous>, transform_indices = @transform_4, window_bounds = array<i64: 9, 128, 128>}, {pipeline_mode = #tpu.pipeline_mode<synchronous>, transform_indices = @transform_5, window_bounds = array<i64: 1, 128>}, {pipeline_mode = #tpu.pipeline_mode<synchronous>, transform_indices = @transform_6, window_bounds = array<i64: 1, 128>}, {pipeline_mode = #tpu.pipeline_mode<synchronous>, transform_indices = @transform_7, window_bounds = array<i64: 128, 128>}, {pipeline_mode = #tpu.pipeline_mode<synchronous>, transform_indices = @transform_8, window_bounds = array<i64: 1, 128>}, {pipeline_mode = #tpu.pipeline_mode<synchronous>, transform_indices = @transform_9, window_bounds = array<i64: 32, 128>}]} {
    %cst = arith.constant 0.000000e+00 : f32
    %0 = vector.broadcast %cst : f32 to vector<44x128xf32>
    %c0 = arith.constant 0 : index
    %c0_0 = arith.constant 0 : index
    %c0_1 = arith.constant 0 : index
    %1 = vector.load %arg1[%c0, %c0_0, %c0_1] : memref<4x50x128xf32, #tpu.memory_space<vmem>>, vector<1x44x128xf32>
    %2 = vector.shape_cast %1 : vector<1x44x128xf32> to vector<44x128xf32>
    %3 = arith.truncf %2 : vector<44x128xf32> to vector<44x128xbf16>
    %c0_2 = arith.constant 0 : index
    %c0_3 = arith.constant 0 : index
    %c0_4 = arith.constant 0 : index
    %4 = vector.load %arg2[%c0_2, %c0_3, %c0_4] : memref<9x128x128xbf16, #tpu.memory_space<vmem>>, vector<1x128x128xbf16>
    %5 = vector.shape_cast %4 : vector<1x128x128xbf16> to vector<128x128xbf16>
    %cst_5 = arith.constant dense<0.000000e+00> : vector<44x128xf32>
    %6 = tpu.matmul %3, %5, %cst_5 {dimension_numbers = #tpu.dot_dimension_numbers<[1], [0], [0], [1], [0, 0, 1, 1], [], []>} : vector<44x128xbf16>, vector<128x128xbf16>, vector<44x128xf32> -> vector<44x128xf32>
    %7 = arith.addf %0, %6 : vector<44x128xf32>
    %c1 = arith.constant 1 : index
    %c0_6 = arith.constant 0 : index
    %c0_7 = arith.constant 0 : index
    %8 = vector.load %arg1[%c1, %c0_6, %c0_7] : memref<4x50x128xf32, #tpu.memory_space<vmem>>, vector<1x44x128xf32>
    %9 = vector.shape_cast %8 : vector<1x44x128xf32> to vector<44x128xf32>
    %10 = arith.truncf %9 : vector<44x128xf32> to vector<44x128xbf16>
    %c1_8 = arith.constant 1 : index
    %c0_9 = arith.constant 0 : index
    %c0_10 = arith.constant 0 : index
    %11 = vector.load %arg2[%c1_8, %c0_9, %c0_10] : memref<9x128x128xbf16, #tpu.memory_space<vmem>>, vector<1x128x128xbf16>
    %12 = vector.shape_cast %11 : vector<1x128x128xbf16> to vector<128x128xbf16>
    %cst_11 = arith.constant dense<0.000000e+00> : vector<44x128xf32>
    %13 = tpu.matmul %10, %12, %cst_11 {dimension_numbers = #tpu.dot_dimension_numbers<[1], [0], [0], [1], [0, 0, 1, 1], [], []>} : vector<44x128xbf16>, vector<128x128xbf16>, vector<44x128xf32> -> vector<44x128xf32>
    %14 = arith.addf %7, %13 : vector<44x128xf32>
    %c0_12 = arith.constant 0 : index
    %c1_13 = arith.constant 1 : index
    %c0_14 = arith.constant 0 : index
    %15 = vector.load %arg1[%c0_12, %c1_13, %c0_14] : memref<4x50x128xf32, #tpu.memory_space<vmem>>, vector<1x44x128xf32>
    %16 = vector.shape_cast %15 : vector<1x44x128xf32> to vector<44x128xf32>
    %17 = arith.truncf %16 : vector<44x128xf32> to vector<44x128xbf16>
    %c2 = arith.constant 2 : index
    %c0_15 = arith.constant 0 : index
    %c0_16 = arith.constant 0 : index
    %18 = vector.load %arg2[%c2, %c0_15, %c0_16] : memref<9x128x128xbf16, #tpu.memory_space<vmem>>, vector<1x128x128xbf16>
    %19 = vector.shape_cast %18 : vector<1x128x128xbf16> to vector<128x128xbf16>
    %cst_17 = arith.constant dense<0.000000e+00> : vector<44x128xf32>
    %20 = tpu.matmul %17, %19, %cst_17 {dimension_numbers = #tpu.dot_dimension_numbers<[1], [0], [0], [1], [0, 0, 1, 1], [], []>} : vector<44x128xbf16>, vector<128x128xbf16>, vector<44x128xf32> -> vector<44x128xf32>
    %21 = arith.addf %14, %20 : vector<44x128xf32>
    %c2_18 = arith.constant 2 : index
    %c0_19 = arith.constant 0 : index
    %c0_20 = arith.constant 0 : index
    %22 = vector.load %arg1[%c2_18, %c0_19, %c0_20] : memref<4x50x128xf32, #tpu.memory_space<vmem>>, vector<1x44x128xf32>
    %23 = vector.shape_cast %22 : vector<1x44x128xf32> to vector<44x128xf32>
    %24 = arith.truncf %23 : vector<44x128xf32> to vector<44x128xbf16>
    %c3 = arith.constant 3 : index
    %c0_21 = arith.constant 0 : index
    %c0_22 = arith.constant 0 : index
    %25 = vector.load %arg2[%c3, %c0_21, %c0_22] : memref<9x128x128xbf16, #tpu.memory_space<vmem>>, vector<1x128x128xbf16>
    %26 = vector.shape_cast %25 : vector<1x128x128xbf16> to vector<128x128xbf16>
    %cst_23 = arith.constant dense<0.000000e+00> : vector<44x128xf32>
    %27 = tpu.matmul %24, %26, %cst_23 {dimension_numbers = #tpu.dot_dimension_numbers<[1], [0], [0], [1], [0, 0, 1, 1], [], []>} : vector<44x128xbf16>, vector<128x128xbf16>, vector<44x128xf32> -> vector<44x128xf32>
    %28 = arith.addf %21, %27 : vector<44x128xf32>
    %c3_24 = arith.constant 3 : index
    %c0_25 = arith.constant 0 : index
    %c0_26 = arith.constant 0 : index
    %29 = vector.load %arg1[%c3_24, %c0_25, %c0_26] : memref<4x50x128xf32, #tpu.memory_space<vmem>>, vector<1x44x128xf32>
    %30 = vector.shape_cast %29 : vector<1x44x128xf32> to vector<44x128xf32>
    %31 = arith.truncf %30 : vector<44x128xf32> to vector<44x128xbf16>
    %c4 = arith.constant 4 : index
    %c0_27 = arith.constant 0 : index
    %c0_28 = arith.constant 0 : index
    %32 = vector.load %arg2[%c4, %c0_27, %c0_28] : memref<9x128x128xbf16, #tpu.memory_space<vmem>>, vector<1x128x128xbf16>
    %33 = vector.shape_cast %32 : vector<1x128x128xbf16> to vector<128x128xbf16>
    %cst_29 = arith.constant dense<0.000000e+00> : vector<44x128xf32>
    %34 = tpu.matmul %31, %33, %cst_29 {dimension_numbers = #tpu.dot_dimension_numbers<[1], [0], [0], [1], [0, 0, 1, 1], [], []>} : vector<44x128xbf16>, vector<128x128xbf16>, vector<44x128xf32> -> vector<44x128xf32>
    %35 = arith.addf %28, %34 : vector<44x128xf32>
    %c2_30 = arith.constant 2 : index
    %c1_31 = arith.constant 1 : index
    %c0_32 = arith.constant 0 : index
    %36 = vector.load %arg1[%c2_30, %c1_31, %c0_32] : memref<4x50x128xf32, #tpu.memory_space<vmem>>, vector<1x44x128xf32>
    %37 = vector.shape_cast %36 : vector<1x44x128xf32> to vector<44x128xf32>
    %38 = arith.truncf %37 : vector<44x128xf32> to vector<44x128xbf16>
    %c5 = arith.constant 5 : index
    %c0_33 = arith.constant 0 : index
    %c0_34 = arith.constant 0 : index
    %39 = vector.load %arg2[%c5, %c0_33, %c0_34] : memref<9x128x128xbf16, #tpu.memory_space<vmem>>, vector<1x128x128xbf16>
    %40 = vector.shape_cast %39 : vector<1x128x128xbf16> to vector<128x128xbf16>
    %cst_35 = arith.constant dense<0.000000e+00> : vector<44x128xf32>
    %41 = tpu.matmul %38, %40, %cst_35 {dimension_numbers = #tpu.dot_dimension_numbers<[1], [0], [0], [1], [0, 0, 1, 1], [], []>} : vector<44x128xbf16>, vector<128x128xbf16>, vector<44x128xf32> -> vector<44x128xf32>
    %42 = arith.addf %35, %41 : vector<44x128xf32>
    %c0_36 = arith.constant 0 : index
    %c5_37 = arith.constant 5 : index
    %c0_38 = arith.constant 0 : index
    %43 = vector.load %arg1[%c0_36, %c5_37, %c0_38] : memref<4x50x128xf32, #tpu.memory_space<vmem>>, vector<1x44x128xf32>
    %44 = vector.shape_cast %43 : vector<1x44x128xf32> to vector<44x128xf32>
    %45 = arith.truncf %44 : vector<44x128xf32> to vector<44x128xbf16>
    %c6 = arith.constant 6 : index
    %c0_39 = arith.constant 0 : index
    %c0_40 = arith.constant 0 : index
    %46 = vector.load %arg2[%c6, %c0_39, %c0_40] : memref<9x128x128xbf16, #tpu.memory_space<vmem>>, vector<1x128x128xbf16>
    %47 = vector.shape_cast %46 : vector<1x128x128xbf16> to vector<128x128xbf16>
    %cst_41 = arith.constant dense<0.000000e+00> : vector<44x128xf32>
    %48 = tpu.matmul %45, %47, %cst_41 {dimension_numbers = #tpu.dot_dimension_numbers<[1], [0], [0], [1], [0, 0, 1, 1], [], []>} : vector<44x128xbf16>, vector<128x128xbf16>, vector<44x128xf32> -> vector<44x128xf32>
    %49 = arith.addf %42, %48 : vector<44x128xf32>
    %c1_42 = arith.constant 1 : index
    %c5_43 = arith.constant 5 : index
    %c0_44 = arith.constant 0 : index
    %50 = vector.load %arg1[%c1_42, %c5_43, %c0_44] : memref<4x50x128xf32, #tpu.memory_space<vmem>>, vector<1x44x128xf32>
    %51 = vector.shape_cast %50 : vector<1x44x128xf32> to vector<44x128xf32>
    %52 = arith.truncf %51 : vector<44x128xf32> to vector<44x128xbf16>
    %c7 = arith.constant 7 : index
    %c0_45 = arith.constant 0 : index
    %c0_46 = arith.constant 0 : index
    %53 = vector.load %arg2[%c7, %c0_45, %c0_46] : memref<9x128x128xbf16, #tpu.memory_space<vmem>>, vector<1x128x128xbf16>
    %54 = vector.shape_cast %53 : vector<1x128x128xbf16> to vector<128x128xbf16>
    %cst_47 = arith.constant dense<0.000000e+00> : vector<44x128xf32>
    %55 = tpu.matmul %52, %54, %cst_47 {dimension_numbers = #tpu.dot_dimension_numbers<[1], [0], [0], [1], [0, 0, 1, 1], [], []>} : vector<44x128xbf16>, vector<128x128xbf16>, vector<44x128xf32> -> vector<44x128xf32>
    %56 = arith.addf %49, %55 : vector<44x128xf32>
    %c0_48 = arith.constant 0 : index
    %c6_49 = arith.constant 6 : index
    %c0_50 = arith.constant 0 : index
    %57 = vector.load %arg1[%c0_48, %c6_49, %c0_50] : memref<4x50x128xf32, #tpu.memory_space<vmem>>, vector<1x44x128xf32>
    %58 = vector.shape_cast %57 : vector<1x44x128xf32> to vector<44x128xf32>
    %59 = arith.truncf %58 : vector<44x128xf32> to vector<44x128xbf16>
    %c8 = arith.constant 8 : index
    %c0_51 = arith.constant 0 : index
    %c0_52 = arith.constant 0 : index
    %60 = vector.load %arg2[%c8, %c0_51, %c0_52] : memref<9x128x128xbf16, #tpu.memory_space<vmem>>, vector<1x128x128xbf16>
    %61 = vector.shape_cast %60 : vector<1x128x128xbf16> to vector<128x128xbf16>
    %cst_53 = arith.constant dense<0.000000e+00> : vector<44x128xf32>
    %62 = tpu.matmul %59, %61, %cst_53 {dimension_numbers = #tpu.dot_dimension_numbers<[1], [0], [0], [1], [0, 0, 1, 1], [], []>} : vector<44x128xbf16>, vector<128x128xbf16>, vector<44x128xf32> -> vector<44x128xf32>
    %63 = arith.addf %56, %62 : vector<44x128xf32>
    %c0_54 = arith.constant 0 : index
    %c0_55 = arith.constant 0 : index
    %64 = vector.load %arg3[%c0_54, %c0_55] : memref<1x128xf32, #tpu.memory_space<vmem>>, vector<1x128xf32>
    %65 = vector.broadcast %64 : vector<1x128xf32> to vector<44x128xf32>
    %66 = arith.mulf %63, %65 : vector<44x128xf32>
    %c0_56 = arith.constant 0 : index
    %c0_57 = arith.constant 0 : index
    %67 = vector.load %arg4[%c0_56, %c0_57] : memref<1x128xf32, #tpu.memory_space<vmem>>, vector<1x128xf32>
    %68 = vector.broadcast %67 : vector<1x128xf32> to vector<44x128xf32>
    %69 = arith.addf %66, %68 : vector<44x128xf32>
    %cst_58 = arith.constant 0.000000e+00 : f32
    %70 = vector.broadcast %cst_58 : f32 to vector<44x128xf32>
    %71 = arith.maximumf %69, %70 : vector<44x128xf32>
    %cst_59 = arith.constant 0.000000e+00 : f32
    %72 = vector.broadcast %cst_59 : f32 to vector<72x128xf32>
    %c0_60 = arith.constant 0 : index
    %c0_61 = arith.constant 0 : index
    %73 = vector.load %arg11[%c0_60, %c0_61] : memref<72x128xf32, #tpu.memory_space<vmem>>, vector<72x128xf32>
    tpu.vector_store %arg11[%c0_60, %c0_61], %72 {strides = array<i32>} : memref<72x128xf32, #tpu.memory_space<vmem>>, vector<72x128xf32>,
    %74 = vector.extract_strided_slice %71 {offsets = [0, 0], sizes = [4, 128], strides = [1, 1]} : vector<44x128xf32> to vector<4x128xf32>
    %c7_62 = arith.constant 7 : index
    %c0_63 = arith.constant 0 : index
    %75 = vector.load %arg11[%c7_62, %c0_63] : memref<72x128xf32, #tpu.memory_space<vmem>>, vector<4x128xf32>
    tpu.vector_store %arg11[%c7_62, %c0_63], %74 {strides = array<i32>} : memref<72x128xf32, #tpu.memory_space<vmem>>, vector<4x128xf32>,
    %76 = vector.extract_strided_slice %71 {offsets = [5, 0], sizes = [4, 128], strides = [1, 1]} : vector<44x128xf32> to vector<4x128xf32>
    %c13 = arith.constant 13 : index
    %c0_64 = arith.constant 0 : index
    %77 = vector.load %arg11[%c13, %c0_64] : memref<72x128xf32, #tpu.memory_space<vmem>>, vector<4x128xf32>
    tpu.vector_store %arg11[%c13, %c0_64], %76 {strides = array<i32>} : memref<72x128xf32, #tpu.memory_space<vmem>>, vector<4x128xf32>,
    %78 = vector.extract_strided_slice %71 {offsets = [10, 0], sizes = [4, 128], strides = [1, 1]} : vector<44x128xf32> to vector<4x128xf32>
    %c19 = arith.constant 19 : index
    %c0_65 = arith.constant 0 : index
    %79 = vector.load %arg11[%c19, %c0_65] : memref<72x128xf32, #tpu.memory_space<vmem>>, vector<4x128xf32>
    tpu.vector_store %arg11[%c19, %c0_65], %78 {strides = array<i32>} : memref<72x128xf32, #tpu.memory_space<vmem>>, vector<4x128xf32>,
    %80 = vector.extract_strided_slice %71 {offsets = [15, 0], sizes = [4, 128], strides = [1, 1]} : vector<44x128xf32> to vector<4x128xf32>
    %c25 = arith.constant 25 : index
    %c0_66 = arith.constant 0 : index
    %81 = vector.load %arg11[%c25, %c0_66] : memref<72x128xf32, #tpu.memory_space<vmem>>, vector<4x128xf32>
    tpu.vector_store %arg11[%c25, %c0_66], %80 {strides = array<i32>} : memref<72x128xf32, #tpu.memory_space<vmem>>, vector<4x128xf32>,
    %82 = vector.extract_strided_slice %71 {offsets = [25, 0], sizes = [4, 128], strides = [1, 1]} : vector<44x128xf32> to vector<4x128xf32>
    %c43 = arith.constant 43 : index
    %c0_67 = arith.constant 0 : index
    %83 = vector.load %arg11[%c43, %c0_67] : memref<72x128xf32, #tpu.memory_space<vmem>>, vector<4x128xf32>
    tpu.vector_store %arg11[%c43, %c0_67], %82 {strides = array<i32>} : memref<72x128xf32, #tpu.memory_space<vmem>>, vector<4x128xf32>,
    %84 = vector.extract_strided_slice %71 {offsets = [30, 0], sizes = [4, 128], strides = [1, 1]} : vector<44x128xf32> to vector<4x128xf32>
    %c49 = arith.constant 49 : index
    %c0_68 = arith.constant 0 : index
    %85 = vector.load %arg11[%c49, %c0_68] : memref<72x128xf32, #tpu.memory_space<vmem>>, vector<4x128xf32>
    tpu.vector_store %arg11[%c49, %c0_68], %84 {strides = array<i32>} : memref<72x128xf32, #tpu.memory_space<vmem>>, vector<4x128xf32>,
    %86 = vector.extract_strided_slice %71 {offsets = [35, 0], sizes = [4, 128], strides = [1, 1]} : vector<44x128xf32> to vector<4x128xf32>
    %c55 = arith.constant 55 : index
    %c0_69 = arith.constant 0 : index
    %87 = vector.load %arg11[%c55, %c0_69] : memref<72x128xf32, #tpu.memory_space<vmem>>, vector<4x128xf32>
    tpu.vector_store %arg11[%c55, %c0_69], %86 {strides = array<i32>} : memref<72x128xf32, #tpu.memory_space<vmem>>, vector<4x128xf32>,
    %88 = vector.extract_strided_slice %71 {offsets = [40, 0], sizes = [4, 128], strides = [1, 1]} : vector<44x128xf32> to vector<4x128xf32>
    %c61 = arith.constant 61 : index
    %c0_70 = arith.constant 0 : index
    %89 = vector.load %arg11[%c61, %c0_70] : memref<72x128xf32, #tpu.memory_space<vmem>>, vector<4x128xf32>
    tpu.vector_store %arg11[%c61, %c0_70], %88 {strides = array<i32>} : memref<72x128xf32, #tpu.memory_space<vmem>>, vector<4x128xf32>,
    %cst_71 = arith.constant 0.000000e+00 : f32
    %90 = vector.broadcast %cst_71 : f32 to vector<58x128xf32>
    %c0_72 = arith.constant 0 : index
    %c0_73 = arith.constant 0 : index
    %91 = vector.load %arg11[%c0_72, %c0_73] : memref<72x128xf32, #tpu.memory_space<vmem>>, vector<58x128xf32>
    %92 = arith.truncf %91 : vector<58x128xf32> to vector<58x128xbf16>
    %c0_74 = arith.constant 0 : index
    %c0_75 = arith.constant 0 : index
    %c0_76 = arith.constant 0 : index
    %93 = vector.load %arg5[%c0_74, %c0_75, %c0_76] : memref<9x128x128xbf16, #tpu.memory_space<vmem>>, vector<1x128x128xbf16>
    %94 = vector.shape_cast %93 : vector<1x128x128xbf16> to vector<128x128xbf16>
    %cst_77 = arith.constant dense<0.000000e+00> : vector<58x128xf32>
    %95 = tpu.matmul %92, %94, %cst_77 {dimension_numbers = #tpu.dot_dimension_numbers<[1], [0], [0], [1], [0, 0, 1, 1], [], []>} : vector<58x128xbf16>, vector<128x128xbf16>, vector<58x128xf32> -> vector<58x128xf32>
    %96 = arith.addf %90, %95 : vector<58x128xf32>
    %c1_78 = arith.constant 1 : index
    %c0_79 = arith.constant 0 : index
    %97 = vector.load %arg11[%c1_78, %c0_79] : memref<72x128xf32, #tpu.memory_space<vmem>>, vector<58x128xf32>
    %98 = arith.truncf %97 : vector<58x128xf32> to vector<58x128xbf16>
    %c1_80 = arith.constant 1 : index
    %c0_81 = arith.constant 0 : index
    %c0_82 = arith.constant 0 : index
    %99 = vector.load %arg5[%c1_80, %c0_81, %c0_82] : memref<9x128x128xbf16, #tpu.memory_space<vmem>>, vector<1x128x128xbf16>
    %100 = vector.shape_cast %99 : vector<1x128x128xbf16> to vector<128x128xbf16>
    %cst_83 = arith.constant dense<0.000000e+00> : vector<58x128xf32>
    %101 = tpu.matmul %98, %100, %cst_83 {dimension_numbers = #tpu.dot_dimension_numbers<[1], [0], [0], [1], [0, 0, 1, 1], [], []>} : vector<58x128xbf16>, vector<128x128xbf16>, vector<58x128xf32> -> vector<58x128xf32>
    %102 = arith.addf %96, %101 : vector<58x128xf32>
    %c2_84 = arith.constant 2 : index
    %c0_85 = arith.constant 0 : index
    %103 = vector.load %arg11[%c2_84, %c0_85] : memref<72x128xf32, #tpu.memory_space<vmem>>, vector<58x128xf32>
    %104 = arith.truncf %103 : vector<58x128xf32> to vector<58x128xbf16>
    %c2_86 = arith.constant 2 : index
    %c0_87 = arith.constant 0 : index
    %c0_88 = arith.constant 0 : index
    %105 = vector.load %arg5[%c2_86, %c0_87, %c0_88] : memref<9x128x128xbf16, #tpu.memory_space<vmem>>, vector<1x128x128xbf16>
    %106 = vector.shape_cast %105 : vector<1x128x128xbf16> to vector<128x128xbf16>
    %cst_89 = arith.constant dense<0.000000e+00> : vector<58x128xf32>
    %107 = tpu.matmul %104, %106, %cst_89 {dimension_numbers = #tpu.dot_dimension_numbers<[1], [0], [0], [1], [0, 0, 1, 1], [], []>} : vector<58x128xbf16>, vector<128x128xbf16>, vector<58x128xf32> -> vector<58x128xf32>
    %108 = arith.addf %102, %107 : vector<58x128xf32>
    %c6_90 = arith.constant 6 : index
    %c0_91 = arith.constant 0 : index
    %109 = vector.load %arg11[%c6_90, %c0_91] : memref<72x128xf32, #tpu.memory_space<vmem>>, vector<58x128xf32>
    %110 = arith.truncf %109 : vector<58x128xf32> to vector<58x128xbf16>
    %c3_92 = arith.constant 3 : index
    %c0_93 = arith.constant 0 : index
    %c0_94 = arith.constant 0 : index
    %111 = vector.load %arg5[%c3_92, %c0_93, %c0_94] : memref<9x128x128xbf16, #tpu.memory_space<vmem>>, vector<1x128x128xbf16>
    %112 = vector.shape_cast %111 : vector<1x128x128xbf16> to vector<128x128xbf16>
    %cst_95 = arith.constant dense<0.000000e+00> : vector<58x128xf32>
    %113 = tpu.matmul %110, %112, %cst_95 {dimension_numbers = #tpu.dot_dimension_numbers<[1], [0], [0], [1], [0, 0, 1, 1], [], []>} : vector<58x128xbf16>, vector<128x128xbf16>, vector<58x128xf32> -> vector<58x128xf32>
    %114 = arith.addf %108, %113 : vector<58x128xf32>
    %c7_96 = arith.constant 7 : index
    %c0_97 = arith.constant 0 : index
    %115 = vector.load %arg11[%c7_96, %c0_97] : memref<72x128xf32, #tpu.memory_space<vmem>>, vector<58x128xf32>
    %116 = arith.truncf %115 : vector<58x128xf32> to vector<58x128xbf16>
    %c4_98 = arith.constant 4 : index
    %c0_99 = arith.constant 0 : index
    %c0_100 = arith.constant 0 : index
    %117 = vector.load %arg5[%c4_98, %c0_99, %c0_100] : memref<9x128x128xbf16, #tpu.memory_space<vmem>>, vector<1x128x128xbf16>
    %118 = vector.shape_cast %117 : vector<1x128x128xbf16> to vector<128x128xbf16>
    %cst_101 = arith.constant dense<0.000000e+00> : vector<58x128xf32>
    %119 = tpu.matmul %116, %118, %cst_101 {dimension_numbers = #tpu.dot_dimension_numbers<[1], [0], [0], [1], [0, 0, 1, 1], [], []>} : vector<58x128xbf16>, vector<128x128xbf16>, vector<58x128xf32> -> vector<58x128xf32>
    %120 = arith.addf %114, %119 : vector<58x128xf32>
    %c8_102 = arith.constant 8 : index
    %c0_103 = arith.constant 0 : index
    %121 = vector.load %arg11[%c8_102, %c0_103] : memref<72x128xf32, #tpu.memory_space<vmem>>, vector<58x128xf32>
    %122 = arith.truncf %121 : vector<58x128xf32> to vector<58x128xbf16>
    %c5_104 = arith.constant 5 : index
    %c0_105 = arith.constant 0 : index
    %c0_106 = arith.constant 0 : index
    %123 = vector.load %arg5[%c5_104, %c0_105, %c0_106] : memref<9x128x128xbf16, #tpu.memory_space<vmem>>, vector<1x128x128xbf16>
    %124 = vector.shape_cast %123 : vector<1x128x128xbf16> to vector<128x128xbf16>
    %cst_107 = arith.constant dense<0.000000e+00> : vector<58x128xf32>
    %125 = tpu.matmul %122, %124, %cst_107 {dimension_numbers = #tpu.dot_dimension_numbers<[1], [0], [0], [1], [0, 0, 1, 1], [], []>} : vector<58x128xbf16>, vector<128x128xbf16>, vector<58x128xf32> -> vector<58x128xf32>
    %126 = arith.addf %120, %125 : vector<58x128xf32>
    %c12 = arith.constant 12 : index
    %c0_108 = arith.constant 0 : index
    %127 = vector.load %arg11[%c12, %c0_108] : memref<72x128xf32, #tpu.memory_space<vmem>>, vector<58x128xf32>
    %128 = arith.truncf %127 : vector<58x128xf32> to vector<58x128xbf16>
    %c6_109 = arith.constant 6 : index
    %c0_110 = arith.constant 0 : index
    %c0_111 = arith.constant 0 : index
    %129 = vector.load %arg5[%c6_109, %c0_110, %c0_111] : memref<9x128x128xbf16, #tpu.memory_space<vmem>>, vector<1x128x128xbf16>
    %130 = vector.shape_cast %129 : vector<1x128x128xbf16> to vector<128x128xbf16>
    %cst_112 = arith.constant dense<0.000000e+00> : vector<58x128xf32>
    %131 = tpu.matmul %128, %130, %cst_112 {dimension_numbers = #tpu.dot_dimension_numbers<[1], [0], [0], [1], [0, 0, 1, 1], [], []>} : vector<58x128xbf16>, vector<128x128xbf16>, vector<58x128xf32> -> vector<58x128xf32>
    %132 = arith.addf %126, %131 : vector<58x128xf32>
    %c13_113 = arith.constant 13 : index
    %c0_114 = arith.constant 0 : index
    %133 = vector.load %arg11[%c13_113, %c0_114] : memref<72x128xf32, #tpu.memory_space<vmem>>, vector<58x128xf32>
    %134 = arith.truncf %133 : vector<58x128xf32> to vector<58x128xbf16>
    %c7_115 = arith.constant 7 : index
    %c0_116 = arith.constant 0 : index
    %c0_117 = arith.constant 0 : index
    %135 = vector.load %arg5[%c7_115, %c0_116, %c0_117] : memref<9x128x128xbf16, #tpu.memory_space<vmem>>, vector<1x128x128xbf16>
    %136 = vector.shape_cast %135 : vector<1x128x128xbf16> to vector<128x128xbf16>
    %cst_118 = arith.constant dense<0.000000e+00> : vector<58x128xf32>
    %137 = tpu.matmul %134, %136, %cst_118 {dimension_numbers = #tpu.dot_dimension_numbers<[1], [0], [0], [1], [0, 0, 1, 1], [], []>} : vector<58x128xbf16>, vector<128x128xbf16>, vector<58x128xf32> -> vector<58x128xf32>
    %138 = arith.addf %132, %137 : vector<58x128xf32>
    %c14 = arith.constant 14 : index
    %c0_119 = arith.constant 0 : index
    %139 = vector.load %arg11[%c14, %c0_119] : memref<72x128xf32, #tpu.memory_space<vmem>>, vector<58x128xf32>
    %140 = arith.truncf %139 : vector<58x128xf32> to vector<58x128xbf16>
    %c8_120 = arith.constant 8 : index
    %c0_121 = arith.constant 0 : index
    %c0_122 = arith.constant 0 : index
    %141 = vector.load %arg5[%c8_120, %c0_121, %c0_122] : memref<9x128x128xbf16, #tpu.memory_space<vmem>>, vector<1x128x128xbf16>
    %142 = vector.shape_cast %141 : vector<1x128x128xbf16> to vector<128x128xbf16>
    %cst_123 = arith.constant dense<0.000000e+00> : vector<58x128xf32>
    %143 = tpu.matmul %140, %142, %cst_123 {dimension_numbers = #tpu.dot_dimension_numbers<[1], [0], [0], [1], [0, 0, 1, 1], [], []>} : vector<58x128xbf16>, vector<128x128xbf16>, vector<58x128xf32> -> vector<58x128xf32>
    %144 = arith.addf %138, %143 : vector<58x128xf32>
    %c0_124 = arith.constant 0 : index
    %c0_125 = arith.constant 0 : index
    %145 = vector.load %arg6[%c0_124, %c0_125] : memref<1x128xf32, #tpu.memory_space<vmem>>, vector<1x128xf32>
    %146 = vector.broadcast %145 : vector<1x128xf32> to vector<58x128xf32>
    %147 = arith.mulf %144, %146 : vector<58x128xf32>
    %c0_126 = arith.constant 0 : index
    %c0_127 = arith.constant 0 : index
    %148 = vector.load %arg7[%c0_126, %c0_127] : memref<1x128xf32, #tpu.memory_space<vmem>>, vector<1x128xf32>
    %149 = vector.broadcast %148 : vector<1x128xf32> to vector<58x128xf32>
    %150 = arith.addf %147, %149 : vector<58x128xf32>
    %c3_128 = arith.constant 3 : index
    %c0_129 = arith.constant 0 : index
    %c0_130 = arith.constant 0 : index
    %151 = vector.load %arg1[%c3_128, %c0_129, %c0_130] : memref<4x50x128xf32, #tpu.memory_space<vmem>>, vector<1x44x128xf32>
    %152 = vector.shape_cast %151 : vector<1x44x128xf32> to vector<44x128xf32>
    %153 = arith.truncf %152 : vector<44x128xf32> to vector<44x128xbf16>
    %c0_131 = arith.constant 0 : index
    %c0_132 = arith.constant 0 : index
    %154 = vector.load %arg8[%c0_131, %c0_132] : memref<128x128xbf16, #tpu.memory_space<vmem>>, vector<128x128xbf16>
    %cst_133 = arith.constant dense<0.000000e+00> : vector<44x128xf32>
    %155 = tpu.matmul %153, %154, %cst_133 {dimension_numbers = #tpu.dot_dimension_numbers<[1], [0], [0], [1], [0, 0, 1, 1], [], []>} : vector<44x128xbf16>, vector<128x128xbf16>, vector<44x128xf32> -> vector<44x128xf32>
    %c0_134 = arith.constant 0 : index
    %c0_135 = arith.constant 0 : index
    %156 = vector.load %arg9[%c0_134, %c0_135] : memref<1x128xf32, #tpu.memory_space<vmem>>, vector<1x128xf32>
    %157 = vector.broadcast %156 : vector<1x128xf32> to vector<44x128xf32>
    %158 = arith.addf %155, %157 : vector<44x128xf32>
    %159 = vector.extract_strided_slice %150 {offsets = [0, 0], sizes = [4, 128], strides = [1, 1]} : vector<58x128xf32> to vector<4x128xf32>
    %160 = vector.extract_strided_slice %158 {offsets = [0, 0], sizes = [4, 128], strides = [1, 1]} : vector<44x128xf32> to vector<4x128xf32>
    %161 = arith.addf %159, %160 : vector<4x128xf32>
    %cst_136 = arith.constant 0.000000e+00 : f32
    %162 = vector.broadcast %cst_136 : f32 to vector<4x128xf32>
    %163 = arith.maximumf %161, %162 : vector<4x128xf32>
    %c0_137 = arith.constant 0 : index
    %c0_138 = arith.constant 0 : index
    %164 = vector.load %arg10[%c0_137, %c0_138] : memref<32x128xf32, #tpu.memory_space<vmem>>, vector<4x128xf32>
    tpu.vector_store %arg10[%c0_137, %c0_138], %163 {strides = array<i32>} : memref<32x128xf32, #tpu.memory_space<vmem>>, vector<4x128xf32>,
    %165 = vector.extract_strided_slice %150 {offsets = [6, 0], sizes = [4, 128], strides = [1, 1]} : vector<58x128xf32> to vector<4x128xf32>
    %166 = vector.extract_strided_slice %158 {offsets = [5, 0], sizes = [4, 128], strides = [1, 1]} : vector<44x128xf32> to vector<4x128xf32>
    %167 = arith.addf %165, %166 : vector<4x128xf32>
    %cst_139 = arith.constant 0.000000e+00 : f32
    %168 = vector.broadcast %cst_139 : f32 to vector<4x128xf32>
    %169 = arith.maximumf %167, %168 : vector<4x128xf32>
    %c4_140 = arith.constant 4 : index
    %c0_141 = arith.constant 0 : index
    %170 = vector.load %arg10[%c4_140, %c0_141] : memref<32x128xf32, #tpu.memory_space<vmem>>, vector<4x128xf32>
    tpu.vector_store %arg10[%c4_140, %c0_141], %169 {strides = array<i32>} : memref<32x128xf32, #tpu.memory_space<vmem>>, vector<4x128xf32>,
    %171 = vector.extract_strided_slice %150 {offsets = [12, 0], sizes = [4, 128], strides = [1, 1]} : vector<58x128xf32> to vector<4x128xf32>
    %172 = vector.extract_strided_slice %158 {offsets = [10, 0], sizes = [4, 128], strides = [1, 1]} : vector<44x128xf32> to vector<4x128xf32>
    %173 = arith.addf %171, %172 : vector<4x128xf32>
    %cst_142 = arith.constant 0.000000e+00 : f32
    %174 = vector.broadcast %cst_142 : f32 to vector<4x128xf32>
    %175 = arith.maximumf %173, %174 : vector<4x128xf32>
    %c8_143 = arith.constant 8 : index
    %c0_144 = arith.constant 0 : index
    %176 = vector.load %arg10[%c8_143, %c0_144] : memref<32x128xf32, #tpu.memory_space<vmem>>, vector<4x128xf32>
    tpu.vector_store %arg10[%c8_143, %c0_144], %175 {strides = array<i32>} : memref<32x128xf32, #tpu.memory_space<vmem>>, vector<4x128xf32>,
    %177 = vector.extract_strided_slice %150 {offsets = [18, 0], sizes = [4, 128], strides = [1, 1]} : vector<58x128xf32> to vector<4x128xf32>
    %178 = vector.extract_strided_slice %158 {offsets = [15, 0], sizes = [4, 128], strides = [1, 1]} : vector<44x128xf32> to vector<4x128xf32>
    %179 = arith.addf %177, %178 : vector<4x128xf32>
    %cst_145 = arith.constant 0.000000e+00 : f32
    %180 = vector.broadcast %cst_145 : f32 to vector<4x128xf32>
    %181 = arith.maximumf %179, %180 : vector<4x128xf32>
    %c12_146 = arith.constant 12 : index
    %c0_147 = arith.constant 0 : index
    %182 = vector.load %arg10[%c12_146, %c0_147] : memref<32x128xf32, #tpu.memory_space<vmem>>, vector<4x128xf32>
    tpu.vector_store %arg10[%c12_146, %c0_147], %181 {strides = array<i32>} : memref<32x128xf32, #tpu.memory_space<vmem>>, vector<4x128xf32>,
    %183 = vector.extract_strided_slice %150 {offsets = [36, 0], sizes = [4, 128], strides = [1, 1]} : vector<58x128xf32> to vector<4x128xf32>
    %184 = vector.extract_strided_slice %158 {offsets = [25, 0], sizes = [4, 128], strides = [1, 1]} : vector<44x128xf32> to vector<4x128xf32>
    %185 = arith.addf %183, %184 : vector<4x128xf32>
    %cst_148 = arith.constant 0.000000e+00 : f32
    %186 = vector.broadcast %cst_148 : f32 to vector<4x128xf32>
    %187 = arith.maximumf %185, %186 : vector<4x128xf32>
    %c16 = arith.constant 16 : index
    %c0_149 = arith.constant 0 : index
    %188 = vector.load %arg10[%c16, %c0_149] : memref<32x128xf32, #tpu.memory_space<vmem>>, vector<4x128xf32>
    tpu.vector_store %arg10[%c16, %c0_149], %187 {strides = array<i32>} : memref<32x128xf32, #tpu.memory_space<vmem>>, vector<4x128xf32>,
    %189 = vector.extract_strided_slice %150 {offsets = [42, 0], sizes = [4, 128], strides = [1, 1]} : vector<58x128xf32> to vector<4x128xf32>
    %190 = vector.extract_strided_slice %158 {offsets = [30, 0], sizes = [4, 128], strides = [1, 1]} : vector<44x128xf32> to vector<4x128xf32>
    %191 = arith.addf %189, %190 : vector<4x128xf32>
    %cst_150 = arith.constant 0.000000e+00 : f32
    %192 = vector.broadcast %cst_150 : f32 to vector<4x128xf32>
    %193 = arith.maximumf %191, %192 : vector<4x128xf32>
    %c20 = arith.constant 20 : index
    %c0_151 = arith.constant 0 : index
    %194 = vector.load %arg10[%c20, %c0_151] : memref<32x128xf32, #tpu.memory_space<vmem>>, vector<4x128xf32>
    tpu.vector_store %arg10[%c20, %c0_151], %193 {strides = array<i32>} : memref<32x128xf32, #tpu.memory_space<vmem>>, vector<4x128xf32>,
    %195 = vector.extract_strided_slice %150 {offsets = [48, 0], sizes = [4, 128], strides = [1, 1]} : vector<58x128xf32> to vector<4x128xf32>
    %196 = vector.extract_strided_slice %158 {offsets = [35, 0], sizes = [4, 128], strides = [1, 1]} : vector<44x128xf32> to vector<4x128xf32>
    %197 = arith.addf %195, %196 : vector<4x128xf32>
    %cst_152 = arith.constant 0.000000e+00 : f32
    %198 = vector.broadcast %cst_152 : f32 to vector<4x128xf32>
    %199 = arith.maximumf %197, %198 : vector<4x128xf32>
    %c24 = arith.constant 24 : index
    %c0_153 = arith.constant 0 : index
    %200 = vector.load %arg10[%c24, %c0_153] : memref<32x128xf32, #tpu.memory_space<vmem>>, vector<4x128xf32>
    tpu.vector_store %arg10[%c24, %c0_153], %199 {strides = array<i32>} : memref<32x128xf32, #tpu.memory_space<vmem>>, vector<4x128xf32>,
    %201 = vector.extract_strided_slice %150 {offsets = [54, 0], sizes = [4, 128], strides = [1, 1]} : vector<58x128xf32> to vector<4x128xf32>
    %202 = vector.extract_strided_slice %158 {offsets = [40, 0], sizes = [4, 128], strides = [1, 1]} : vector<44x128xf32> to vector<4x128xf32>
    %203 = arith.addf %201, %202 : vector<4x128xf32>
    %cst_154 = arith.constant 0.000000e+00 : f32
    %204 = vector.broadcast %cst_154 : f32 to vector<4x128xf32>
    %205 = arith.maximumf %203, %204 : vector<4x128xf32>
    %c28 = arith.constant 28 : index
    %c0_155 = arith.constant 0 : index
    %206 = vector.load %arg10[%c28, %c0_155] : memref<32x128xf32, #tpu.memory_space<vmem>>, vector<4x128xf32>
    tpu.vector_store %arg10[%c28, %c0_155], %205 {strides = array<i32>} : memref<32x128xf32, #tpu.memory_space<vmem>>, vector<4x128xf32>,
    return
  }
  func.func @transform_0(%arg0: i32) -> (i32, i32, i32) {
    %c0_i32 = arith.constant 0 : i32
    %c0_i32_0 = arith.constant 0 : i32
    %c0_i32_1 = arith.constant 0 : i32
    %c0_i32_2 = arith.constant 0 : i32
    return %c0_i32, %c0_i32_0, %c0_i32_1 : i32, i32, i32
  }
  func.func @transform_1(%arg0: i32) -> (i32, i32, i32) {
    %c0_i32 = arith.constant 0 : i32
    %c0_i32_0 = arith.constant 0 : i32
    %c0_i32_1 = arith.constant 0 : i32
    %c0_i32_2 = arith.constant 0 : i32
    return %c0_i32, %c0_i32_0, %c0_i32_1 : i32, i32, i32
  }
  func.func @transform_2(%arg0: i32) -> (i32, i32) {
    %c0_i32 = arith.constant 0 : i32
    %c0_i32_0 = arith.constant 0 : i32
    %c0_i32_1 = arith.constant 0 : i32
    return %c0_i32, %c0_i32_0 : i32, i32
  }
  func.func @transform_3(%arg0: i32) -> (i32, i32) {
    %c0_i32 = arith.constant 0 : i32
    %c0_i32_0 = arith.constant 0 : i32
    %c0_i32_1 = arith.constant 0 : i32
    return %c0_i32, %c0_i32_0 : i32, i32
  }
  func.func @transform_4(%arg0: i32) -> (i32, i32, i32) {
    %c0_i32 = arith.constant 0 : i32
    %c0_i32_0 = arith.constant 0 : i32
    %c0_i32_1 = arith.constant 0 : i32
    %c0_i32_2 = arith.constant 0 : i32
    return %c0_i32, %c0_i32_0, %c0_i32_1 : i32, i32, i32
  }
  func.func @transform_5(%arg0: i32) -> (i32, i32) {
    %c0_i32 = arith.constant 0 : i32
    %c0_i32_0 = arith.constant 0 : i32
    %c0_i32_1 = arith.constant 0 : i32
    return %c0_i32, %c0_i32_0 : i32, i32
  }
  func.func @transform_6(%arg0: i32) -> (i32, i32) {
    %c0_i32 = arith.constant 0 : i32
    %c0_i32_0 = arith.constant 0 : i32
    %c0_i32_1 = arith.constant 0 : i32
    return %c0_i32, %c0_i32_0 : i32, i32
  }
  func.func @transform_7(%arg0: i32) -> (i32, i32) {
    %c0_i32 = arith.constant 0 : i32
    %c0_i32_0 = arith.constant 0 : i32
    %c0_i32_1 = arith.constant 0 : i32
    return %c0_i32, %c0_i32_0 : i32, i32
  }
  func.func @transform_8(%arg0: i32) -> (i32, i32) {
    %c0_i32 = arith.constant 0 : i32
    %c0_i32_0 = arith.constant 0 : i32
    %c0_i32_1 = arith.constant 0 : i32
    return %c0_i32, %c0_i32_0 : i32, i32
  }
  func.func @transform_9(%arg0: i32) -> (i32, i32) {
    %c0_i32 = arith.constant 0 : i32
    %c0_i32_0 = arith.constant 0 : i32
    %c0_i32_1 = arith.constant 0 : i32
    return %c0_i32, %c0_i32_0 : i32, i32
  }
}

module attributes {stable_mosaic.version = 11 : i64} {
  func.func @_res_block_head_kernel(%arg0: i32, %arg1: memref<4x18x128xf32, #tpu.memory_space<vmem>>, %arg2: memref<9x128x128xbf16, #tpu.memory_space<vmem>>, %arg3: memref<1x128xf32, #tpu.memory_space<vmem>>, %arg4: memref<1x128xf32, #tpu.memory_space<vmem>>, %arg5: memref<9x128x128xbf16, #tpu.memory_space<vmem>>, %arg6: memref<1x128xf32, #tpu.memory_space<vmem>>, %arg7: memref<1x128xf32, #tpu.memory_space<vmem>>, %arg8: memref<128x128xbf16, #tpu.memory_space<vmem>>, %arg9: memref<1x128xf32, #tpu.memory_space<vmem>>, %arg10: memref<128x2xbf16, #tpu.memory_space<vmem>>, %arg11: memref<1x2xf32, #tpu.memory_space<vmem>>, %arg12: memref<2x2xf32, #tpu.memory_space<vmem>>, %arg13: memref<32x128xf32, #tpu.memory_space<vmem>>) attributes {dimension_semantics = [#tpu.dimension_semantics<arbitrary>], iteration_bounds = array<i64: 1>, scalar_prefetch = 0 : i64, scratch_operands = 1 : i64, tpu.core_type = #tpu.core_type<tc>, window_params = [{pipeline_mode = #tpu.pipeline_mode<synchronous>, transform_indices = @transform_0, window_bounds = array<i64: 4, 18, 128>}, {pipeline_mode = #tpu.pipeline_mode<synchronous>, transform_indices = @transform_1, window_bounds = array<i64: 9, 128, 128>}, {pipeline_mode = #tpu.pipeline_mode<synchronous>, transform_indices = @transform_2, window_bounds = array<i64: 1, 128>}, {pipeline_mode = #tpu.pipeline_mode<synchronous>, transform_indices = @transform_3, window_bounds = array<i64: 1, 128>}, {pipeline_mode = #tpu.pipeline_mode<synchronous>, transform_indices = @transform_4, window_bounds = array<i64: 9, 128, 128>}, {pipeline_mode = #tpu.pipeline_mode<synchronous>, transform_indices = @transform_5, window_bounds = array<i64: 1, 128>}, {pipeline_mode = #tpu.pipeline_mode<synchronous>, transform_indices = @transform_6, window_bounds = array<i64: 1, 128>}, {pipeline_mode = #tpu.pipeline_mode<synchronous>, transform_indices = @transform_7, window_bounds = array<i64: 128, 128>}, {pipeline_mode = #tpu.pipeline_mode<synchronous>, transform_indices = @transform_8, window_bounds = array<i64: 1, 128>}, {pipeline_mode = #tpu.pipeline_mode<synchronous>, transform_indices = @transform_9, window_bounds = array<i64: 128, 2>}, {pipeline_mode = #tpu.pipeline_mode<synchronous>, transform_indices = @transform_10, window_bounds = array<i64: 1, 2>}, {pipeline_mode = #tpu.pipeline_mode<synchronous>, transform_indices = @transform_11, window_bounds = array<i64: 2, 2>}]} {
    %cst = arith.constant 0.000000e+00 : f32
    %0 = vector.broadcast %cst : f32 to vector<14x128xf32>
    %c0 = arith.constant 0 : index
    %c0_0 = arith.constant 0 : index
    %c0_1 = arith.constant 0 : index
    %1 = vector.load %arg1[%c0, %c0_0, %c0_1] : memref<4x18x128xf32, #tpu.memory_space<vmem>>, vector<1x14x128xf32>
    %2 = vector.shape_cast %1 : vector<1x14x128xf32> to vector<14x128xf32>
    %3 = arith.truncf %2 : vector<14x128xf32> to vector<14x128xbf16>
    %c0_2 = arith.constant 0 : index
    %c0_3 = arith.constant 0 : index
    %c0_4 = arith.constant 0 : index
    %4 = vector.load %arg2[%c0_2, %c0_3, %c0_4] : memref<9x128x128xbf16, #tpu.memory_space<vmem>>, vector<1x128x128xbf16>
    %5 = vector.shape_cast %4 : vector<1x128x128xbf16> to vector<128x128xbf16>
    %cst_5 = arith.constant dense<0.000000e+00> : vector<14x128xf32>
    %6 = tpu.matmul %3, %5, %cst_5 {dimension_numbers = #tpu.dot_dimension_numbers<[1], [0], [0], [1], [0, 0, 1, 1], [], []>} : vector<14x128xbf16>, vector<128x128xbf16>, vector<14x128xf32> -> vector<14x128xf32>
    %7 = arith.addf %0, %6 : vector<14x128xf32>
    %c1 = arith.constant 1 : index
    %c0_6 = arith.constant 0 : index
    %c0_7 = arith.constant 0 : index
    %8 = vector.load %arg1[%c1, %c0_6, %c0_7] : memref<4x18x128xf32, #tpu.memory_space<vmem>>, vector<1x14x128xf32>
    %9 = vector.shape_cast %8 : vector<1x14x128xf32> to vector<14x128xf32>
    %10 = arith.truncf %9 : vector<14x128xf32> to vector<14x128xbf16>
    %c1_8 = arith.constant 1 : index
    %c0_9 = arith.constant 0 : index
    %c0_10 = arith.constant 0 : index
    %11 = vector.load %arg2[%c1_8, %c0_9, %c0_10] : memref<9x128x128xbf16, #tpu.memory_space<vmem>>, vector<1x128x128xbf16>
    %12 = vector.shape_cast %11 : vector<1x128x128xbf16> to vector<128x128xbf16>
    %cst_11 = arith.constant dense<0.000000e+00> : vector<14x128xf32>
    %13 = tpu.matmul %10, %12, %cst_11 {dimension_numbers = #tpu.dot_dimension_numbers<[1], [0], [0], [1], [0, 0, 1, 1], [], []>} : vector<14x128xbf16>, vector<128x128xbf16>, vector<14x128xf32> -> vector<14x128xf32>
    %14 = arith.addf %7, %13 : vector<14x128xf32>
    %c0_12 = arith.constant 0 : index
    %c1_13 = arith.constant 1 : index
    %c0_14 = arith.constant 0 : index
    %15 = vector.load %arg1[%c0_12, %c1_13, %c0_14] : memref<4x18x128xf32, #tpu.memory_space<vmem>>, vector<1x14x128xf32>
    %16 = vector.shape_cast %15 : vector<1x14x128xf32> to vector<14x128xf32>
    %17 = arith.truncf %16 : vector<14x128xf32> to vector<14x128xbf16>
    %c2 = arith.constant 2 : index
    %c0_15 = arith.constant 0 : index
    %c0_16 = arith.constant 0 : index
    %18 = vector.load %arg2[%c2, %c0_15, %c0_16] : memref<9x128x128xbf16, #tpu.memory_space<vmem>>, vector<1x128x128xbf16>
    %19 = vector.shape_cast %18 : vector<1x128x128xbf16> to vector<128x128xbf16>
    %cst_17 = arith.constant dense<0.000000e+00> : vector<14x128xf32>
    %20 = tpu.matmul %17, %19, %cst_17 {dimension_numbers = #tpu.dot_dimension_numbers<[1], [0], [0], [1], [0, 0, 1, 1], [], []>} : vector<14x128xbf16>, vector<128x128xbf16>, vector<14x128xf32> -> vector<14x128xf32>
    %21 = arith.addf %14, %20 : vector<14x128xf32>
    %c2_18 = arith.constant 2 : index
    %c0_19 = arith.constant 0 : index
    %c0_20 = arith.constant 0 : index
    %22 = vector.load %arg1[%c2_18, %c0_19, %c0_20] : memref<4x18x128xf32, #tpu.memory_space<vmem>>, vector<1x14x128xf32>
    %23 = vector.shape_cast %22 : vector<1x14x128xf32> to vector<14x128xf32>
    %24 = arith.truncf %23 : vector<14x128xf32> to vector<14x128xbf16>
    %c3 = arith.constant 3 : index
    %c0_21 = arith.constant 0 : index
    %c0_22 = arith.constant 0 : index
    %25 = vector.load %arg2[%c3, %c0_21, %c0_22] : memref<9x128x128xbf16, #tpu.memory_space<vmem>>, vector<1x128x128xbf16>
    %26 = vector.shape_cast %25 : vector<1x128x128xbf16> to vector<128x128xbf16>
    %cst_23 = arith.constant dense<0.000000e+00> : vector<14x128xf32>
    %27 = tpu.matmul %24, %26, %cst_23 {dimension_numbers = #tpu.dot_dimension_numbers<[1], [0], [0], [1], [0, 0, 1, 1], [], []>} : vector<14x128xbf16>, vector<128x128xbf16>, vector<14x128xf32> -> vector<14x128xf32>
    %28 = arith.addf %21, %27 : vector<14x128xf32>
    %c3_24 = arith.constant 3 : index
    %c0_25 = arith.constant 0 : index
    %c0_26 = arith.constant 0 : index
    %29 = vector.load %arg1[%c3_24, %c0_25, %c0_26] : memref<4x18x128xf32, #tpu.memory_space<vmem>>, vector<1x14x128xf32>
    %30 = vector.shape_cast %29 : vector<1x14x128xf32> to vector<14x128xf32>
    %31 = arith.truncf %30 : vector<14x128xf32> to vector<14x128xbf16>
    %c4 = arith.constant 4 : index
    %c0_27 = arith.constant 0 : index
    %c0_28 = arith.constant 0 : index
    %32 = vector.load %arg2[%c4, %c0_27, %c0_28] : memref<9x128x128xbf16, #tpu.memory_space<vmem>>, vector<1x128x128xbf16>
    %33 = vector.shape_cast %32 : vector<1x128x128xbf16> to vector<128x128xbf16>
    %cst_29 = arith.constant dense<0.000000e+00> : vector<14x128xf32>
    %34 = tpu.matmul %31, %33, %cst_29 {dimension_numbers = #tpu.dot_dimension_numbers<[1], [0], [0], [1], [0, 0, 1, 1], [], []>} : vector<14x128xbf16>, vector<128x128xbf16>, vector<14x128xf32> -> vector<14x128xf32>
    %35 = arith.addf %28, %34 : vector<14x128xf32>
    %c2_30 = arith.constant 2 : index
    %c1_31 = arith.constant 1 : index
    %c0_32 = arith.constant 0 : index
    %36 = vector.load %arg1[%c2_30, %c1_31, %c0_32] : memref<4x18x128xf32, #tpu.memory_space<vmem>>, vector<1x14x128xf32>
    %37 = vector.shape_cast %36 : vector<1x14x128xf32> to vector<14x128xf32>
    %38 = arith.truncf %37 : vector<14x128xf32> to vector<14x128xbf16>
    %c5 = arith.constant 5 : index
    %c0_33 = arith.constant 0 : index
    %c0_34 = arith.constant 0 : index
    %39 = vector.load %arg2[%c5, %c0_33, %c0_34] : memref<9x128x128xbf16, #tpu.memory_space<vmem>>, vector<1x128x128xbf16>
    %40 = vector.shape_cast %39 : vector<1x128x128xbf16> to vector<128x128xbf16>
    %cst_35 = arith.constant dense<0.000000e+00> : vector<14x128xf32>
    %41 = tpu.matmul %38, %40, %cst_35 {dimension_numbers = #tpu.dot_dimension_numbers<[1], [0], [0], [1], [0, 0, 1, 1], [], []>} : vector<14x128xbf16>, vector<128x128xbf16>, vector<14x128xf32> -> vector<14x128xf32>
    %42 = arith.addf %35, %41 : vector<14x128xf32>
    %c0_36 = arith.constant 0 : index
    %c3_37 = arith.constant 3 : index
    %c0_38 = arith.constant 0 : index
    %43 = vector.load %arg1[%c0_36, %c3_37, %c0_38] : memref<4x18x128xf32, #tpu.memory_space<vmem>>, vector<1x14x128xf32>
    %44 = vector.shape_cast %43 : vector<1x14x128xf32> to vector<14x128xf32>
    %45 = arith.truncf %44 : vector<14x128xf32> to vector<14x128xbf16>
    %c6 = arith.constant 6 : index
    %c0_39 = arith.constant 0 : index
    %c0_40 = arith.constant 0 : index
    %46 = vector.load %arg2[%c6, %c0_39, %c0_40] : memref<9x128x128xbf16, #tpu.memory_space<vmem>>, vector<1x128x128xbf16>
    %47 = vector.shape_cast %46 : vector<1x128x128xbf16> to vector<128x128xbf16>
    %cst_41 = arith.constant dense<0.000000e+00> : vector<14x128xf32>
    %48 = tpu.matmul %45, %47, %cst_41 {dimension_numbers = #tpu.dot_dimension_numbers<[1], [0], [0], [1], [0, 0, 1, 1], [], []>} : vector<14x128xbf16>, vector<128x128xbf16>, vector<14x128xf32> -> vector<14x128xf32>
    %49 = arith.addf %42, %48 : vector<14x128xf32>
    %c1_42 = arith.constant 1 : index
    %c3_43 = arith.constant 3 : index
    %c0_44 = arith.constant 0 : index
    %50 = vector.load %arg1[%c1_42, %c3_43, %c0_44] : memref<4x18x128xf32, #tpu.memory_space<vmem>>, vector<1x14x128xf32>
    %51 = vector.shape_cast %50 : vector<1x14x128xf32> to vector<14x128xf32>
    %52 = arith.truncf %51 : vector<14x128xf32> to vector<14x128xbf16>
    %c7 = arith.constant 7 : index
    %c0_45 = arith.constant 0 : index
    %c0_46 = arith.constant 0 : index
    %53 = vector.load %arg2[%c7, %c0_45, %c0_46] : memref<9x128x128xbf16, #tpu.memory_space<vmem>>, vector<1x128x128xbf16>
    %54 = vector.shape_cast %53 : vector<1x128x128xbf16> to vector<128x128xbf16>
    %cst_47 = arith.constant dense<0.000000e+00> : vector<14x128xf32>
    %55 = tpu.matmul %52, %54, %cst_47 {dimension_numbers = #tpu.dot_dimension_numbers<[1], [0], [0], [1], [0, 0, 1, 1], [], []>} : vector<14x128xbf16>, vector<128x128xbf16>, vector<14x128xf32> -> vector<14x128xf32>
    %56 = arith.addf %49, %55 : vector<14x128xf32>
    %c0_48 = arith.constant 0 : index
    %c4_49 = arith.constant 4 : index
    %c0_50 = arith.constant 0 : index
    %57 = vector.load %arg1[%c0_48, %c4_49, %c0_50] : memref<4x18x128xf32, #tpu.memory_space<vmem>>, vector<1x14x128xf32>
    %58 = vector.shape_cast %57 : vector<1x14x128xf32> to vector<14x128xf32>
    %59 = arith.truncf %58 : vector<14x128xf32> to vector<14x128xbf16>
    %c8 = arith.constant 8 : index
    %c0_51 = arith.constant 0 : index
    %c0_52 = arith.constant 0 : index
    %60 = vector.load %arg2[%c8, %c0_51, %c0_52] : memref<9x128x128xbf16, #tpu.memory_space<vmem>>, vector<1x128x128xbf16>
    %61 = vector.shape_cast %60 : vector<1x128x128xbf16> to vector<128x128xbf16>
    %cst_53 = arith.constant dense<0.000000e+00> : vector<14x128xf32>
    %62 = tpu.matmul %59, %61, %cst_53 {dimension_numbers = #tpu.dot_dimension_numbers<[1], [0], [0], [1], [0, 0, 1, 1], [], []>} : vector<14x128xbf16>, vector<128x128xbf16>, vector<14x128xf32> -> vector<14x128xf32>
    %63 = arith.addf %56, %62 : vector<14x128xf32>
    %c0_54 = arith.constant 0 : index
    %c0_55 = arith.constant 0 : index
    %64 = vector.load %arg3[%c0_54, %c0_55] : memref<1x128xf32, #tpu.memory_space<vmem>>, vector<1x128xf32>
    %65 = vector.broadcast %64 : vector<1x128xf32> to vector<14x128xf32>
    %66 = arith.mulf %63, %65 : vector<14x128xf32>
    %c0_56 = arith.constant 0 : index
    %c0_57 = arith.constant 0 : index
    %67 = vector.load %arg4[%c0_56, %c0_57] : memref<1x128xf32, #tpu.memory_space<vmem>>, vector<1x128xf32>
    %68 = vector.broadcast %67 : vector<1x128xf32> to vector<14x128xf32>
    %69 = arith.addf %66, %68 : vector<14x128xf32>
    %cst_58 = arith.constant 0.000000e+00 : f32
    %70 = vector.broadcast %cst_58 : f32 to vector<14x128xf32>
    %71 = arith.maximumf %69, %70 : vector<14x128xf32>
    %cst_59 = arith.constant 0.000000e+00 : f32
    %72 = vector.broadcast %cst_59 : f32 to vector<32x128xf32>
    %c0_60 = arith.constant 0 : index
    %c0_61 = arith.constant 0 : index
    %73 = vector.load %arg13[%c0_60, %c0_61] : memref<32x128xf32, #tpu.memory_space<vmem>>, vector<32x128xf32>
    tpu.vector_store %arg13[%c0_60, %c0_61], %72 {strides = array<i32>} : memref<32x128xf32, #tpu.memory_space<vmem>>, vector<32x128xf32>,
    %74 = vector.extract_strided_slice %71 {offsets = [0, 0], sizes = [2, 128], strides = [1, 1]} : vector<14x128xf32> to vector<2x128xf32>
    %c5_62 = arith.constant 5 : index
    %c0_63 = arith.constant 0 : index
    %75 = vector.load %arg13[%c5_62, %c0_63] : memref<32x128xf32, #tpu.memory_space<vmem>>, vector<2x128xf32>
    tpu.vector_store %arg13[%c5_62, %c0_63], %74 {strides = array<i32>} : memref<32x128xf32, #tpu.memory_space<vmem>>, vector<2x128xf32>,
    %76 = vector.extract_strided_slice %71 {offsets = [3, 0], sizes = [2, 128], strides = [1, 1]} : vector<14x128xf32> to vector<2x128xf32>
    %c9 = arith.constant 9 : index
    %c0_64 = arith.constant 0 : index
    %77 = vector.load %arg13[%c9, %c0_64] : memref<32x128xf32, #tpu.memory_space<vmem>>, vector<2x128xf32>
    tpu.vector_store %arg13[%c9, %c0_64], %76 {strides = array<i32>} : memref<32x128xf32, #tpu.memory_space<vmem>>, vector<2x128xf32>,
    %78 = vector.extract_strided_slice %71 {offsets = [9, 0], sizes = [2, 128], strides = [1, 1]} : vector<14x128xf32> to vector<2x128xf32>
    %c21 = arith.constant 21 : index
    %c0_65 = arith.constant 0 : index
    %79 = vector.load %arg13[%c21, %c0_65] : memref<32x128xf32, #tpu.memory_space<vmem>>, vector<2x128xf32>
    tpu.vector_store %arg13[%c21, %c0_65], %78 {strides = array<i32>} : memref<32x128xf32, #tpu.memory_space<vmem>>, vector<2x128xf32>,
    %80 = vector.extract_strided_slice %71 {offsets = [12, 0], sizes = [2, 128], strides = [1, 1]} : vector<14x128xf32> to vector<2x128xf32>
    %c25 = arith.constant 25 : index
    %c0_66 = arith.constant 0 : index
    %81 = vector.load %arg13[%c25, %c0_66] : memref<32x128xf32, #tpu.memory_space<vmem>>, vector<2x128xf32>
    tpu.vector_store %arg13[%c25, %c0_66], %80 {strides = array<i32>} : memref<32x128xf32, #tpu.memory_space<vmem>>, vector<2x128xf32>,
    %cst_67 = arith.constant 0.000000e+00 : f32
    %82 = vector.broadcast %cst_67 : f32 to vector<22x128xf32>
    %c0_68 = arith.constant 0 : index
    %c0_69 = arith.constant 0 : index
    %83 = vector.load %arg13[%c0_68, %c0_69] : memref<32x128xf32, #tpu.memory_space<vmem>>, vector<22x128xf32>
    %84 = arith.truncf %83 : vector<22x128xf32> to vector<22x128xbf16>
    %c0_70 = arith.constant 0 : index
    %c0_71 = arith.constant 0 : index
    %c0_72 = arith.constant 0 : index
    %85 = vector.load %arg5[%c0_70, %c0_71, %c0_72] : memref<9x128x128xbf16, #tpu.memory_space<vmem>>, vector<1x128x128xbf16>
    %86 = vector.shape_cast %85 : vector<1x128x128xbf16> to vector<128x128xbf16>
    %cst_73 = arith.constant dense<0.000000e+00> : vector<22x128xf32>
    %87 = tpu.matmul %84, %86, %cst_73 {dimension_numbers = #tpu.dot_dimension_numbers<[1], [0], [0], [1], [0, 0, 1, 1], [], []>} : vector<22x128xbf16>, vector<128x128xbf16>, vector<22x128xf32> -> vector<22x128xf32>
    %88 = arith.addf %82, %87 : vector<22x128xf32>
    %c1_74 = arith.constant 1 : index
    %c0_75 = arith.constant 0 : index
    %89 = vector.load %arg13[%c1_74, %c0_75] : memref<32x128xf32, #tpu.memory_space<vmem>>, vector<22x128xf32>
    %90 = arith.truncf %89 : vector<22x128xf32> to vector<22x128xbf16>
    %c1_76 = arith.constant 1 : index
    %c0_77 = arith.constant 0 : index
    %c0_78 = arith.constant 0 : index
    %91 = vector.load %arg5[%c1_76, %c0_77, %c0_78] : memref<9x128x128xbf16, #tpu.memory_space<vmem>>, vector<1x128x128xbf16>
    %92 = vector.shape_cast %91 : vector<1x128x128xbf16> to vector<128x128xbf16>
    %cst_79 = arith.constant dense<0.000000e+00> : vector<22x128xf32>
    %93 = tpu.matmul %90, %92, %cst_79 {dimension_numbers = #tpu.dot_dimension_numbers<[1], [0], [0], [1], [0, 0, 1, 1], [], []>} : vector<22x128xbf16>, vector<128x128xbf16>, vector<22x128xf32> -> vector<22x128xf32>
    %94 = arith.addf %88, %93 : vector<22x128xf32>
    %c2_80 = arith.constant 2 : index
    %c0_81 = arith.constant 0 : index
    %95 = vector.load %arg13[%c2_80, %c0_81] : memref<32x128xf32, #tpu.memory_space<vmem>>, vector<22x128xf32>
    %96 = arith.truncf %95 : vector<22x128xf32> to vector<22x128xbf16>
    %c2_82 = arith.constant 2 : index
    %c0_83 = arith.constant 0 : index
    %c0_84 = arith.constant 0 : index
    %97 = vector.load %arg5[%c2_82, %c0_83, %c0_84] : memref<9x128x128xbf16, #tpu.memory_space<vmem>>, vector<1x128x128xbf16>
    %98 = vector.shape_cast %97 : vector<1x128x128xbf16> to vector<128x128xbf16>
    %cst_85 = arith.constant dense<0.000000e+00> : vector<22x128xf32>
    %99 = tpu.matmul %96, %98, %cst_85 {dimension_numbers = #tpu.dot_dimension_numbers<[1], [0], [0], [1], [0, 0, 1, 1], [], []>} : vector<22x128xbf16>, vector<128x128xbf16>, vector<22x128xf32> -> vector<22x128xf32>
    %100 = arith.addf %94, %99 : vector<22x128xf32>
    %c4_86 = arith.constant 4 : index
    %c0_87 = arith.constant 0 : index
    %101 = vector.load %arg13[%c4_86, %c0_87] : memref<32x128xf32, #tpu.memory_space<vmem>>, vector<22x128xf32>
    %102 = arith.truncf %101 : vector<22x128xf32> to vector<22x128xbf16>
    %c3_88 = arith.constant 3 : index
    %c0_89 = arith.constant 0 : index
    %c0_90 = arith.constant 0 : index
    %103 = vector.load %arg5[%c3_88, %c0_89, %c0_90] : memref<9x128x128xbf16, #tpu.memory_space<vmem>>, vector<1x128x128xbf16>
    %104 = vector.shape_cast %103 : vector<1x128x128xbf16> to vector<128x128xbf16>
    %cst_91 = arith.constant dense<0.000000e+00> : vector<22x128xf32>
    %105 = tpu.matmul %102, %104, %cst_91 {dimension_numbers = #tpu.dot_dimension_numbers<[1], [0], [0], [1], [0, 0, 1, 1], [], []>} : vector<22x128xbf16>, vector<128x128xbf16>, vector<22x128xf32> -> vector<22x128xf32>
    %106 = arith.addf %100, %105 : vector<22x128xf32>
    %c5_92 = arith.constant 5 : index
    %c0_93 = arith.constant 0 : index
    %107 = vector.load %arg13[%c5_92, %c0_93] : memref<32x128xf32, #tpu.memory_space<vmem>>, vector<22x128xf32>
    %108 = arith.truncf %107 : vector<22x128xf32> to vector<22x128xbf16>
    %c4_94 = arith.constant 4 : index
    %c0_95 = arith.constant 0 : index
    %c0_96 = arith.constant 0 : index
    %109 = vector.load %arg5[%c4_94, %c0_95, %c0_96] : memref<9x128x128xbf16, #tpu.memory_space<vmem>>, vector<1x128x128xbf16>
    %110 = vector.shape_cast %109 : vector<1x128x128xbf16> to vector<128x128xbf16>
    %cst_97 = arith.constant dense<0.000000e+00> : vector<22x128xf32>
    %111 = tpu.matmul %108, %110, %cst_97 {dimension_numbers = #tpu.dot_dimension_numbers<[1], [0], [0], [1], [0, 0, 1, 1], [], []>} : vector<22x128xbf16>, vector<128x128xbf16>, vector<22x128xf32> -> vector<22x128xf32>
    %112 = arith.addf %106, %111 : vector<22x128xf32>
    %c6_98 = arith.constant 6 : index
    %c0_99 = arith.constant 0 : index
    %113 = vector.load %arg13[%c6_98, %c0_99] : memref<32x128xf32, #tpu.memory_space<vmem>>, vector<22x128xf32>
    %114 = arith.truncf %113 : vector<22x128xf32> to vector<22x128xbf16>
    %c5_100 = arith.constant 5 : index
    %c0_101 = arith.constant 0 : index
    %c0_102 = arith.constant 0 : index
    %115 = vector.load %arg5[%c5_100, %c0_101, %c0_102] : memref<9x128x128xbf16, #tpu.memory_space<vmem>>, vector<1x128x128xbf16>
    %116 = vector.shape_cast %115 : vector<1x128x128xbf16> to vector<128x128xbf16>
    %cst_103 = arith.constant dense<0.000000e+00> : vector<22x128xf32>
    %117 = tpu.matmul %114, %116, %cst_103 {dimension_numbers = #tpu.dot_dimension_numbers<[1], [0], [0], [1], [0, 0, 1, 1], [], []>} : vector<22x128xbf16>, vector<128x128xbf16>, vector<22x128xf32> -> vector<22x128xf32>
    %118 = arith.addf %112, %117 : vector<22x128xf32>
    %c8_104 = arith.constant 8 : index
    %c0_105 = arith.constant 0 : index
    %119 = vector.load %arg13[%c8_104, %c0_105] : memref<32x128xf32, #tpu.memory_space<vmem>>, vector<22x128xf32>
    %120 = arith.truncf %119 : vector<22x128xf32> to vector<22x128xbf16>
    %c6_106 = arith.constant 6 : index
    %c0_107 = arith.constant 0 : index
    %c0_108 = arith.constant 0 : index
    %121 = vector.load %arg5[%c6_106, %c0_107, %c0_108] : memref<9x128x128xbf16, #tpu.memory_space<vmem>>, vector<1x128x128xbf16>
    %122 = vector.shape_cast %121 : vector<1x128x128xbf16> to vector<128x128xbf16>
    %cst_109 = arith.constant dense<0.000000e+00> : vector<22x128xf32>
    %123 = tpu.matmul %120, %122, %cst_109 {dimension_numbers = #tpu.dot_dimension_numbers<[1], [0], [0], [1], [0, 0, 1, 1], [], []>} : vector<22x128xbf16>, vector<128x128xbf16>, vector<22x128xf32> -> vector<22x128xf32>
    %124 = arith.addf %118, %123 : vector<22x128xf32>
    %c9_110 = arith.constant 9 : index
    %c0_111 = arith.constant 0 : index
    %125 = vector.load %arg13[%c9_110, %c0_111] : memref<32x128xf32, #tpu.memory_space<vmem>>, vector<22x128xf32>
    %126 = arith.truncf %125 : vector<22x128xf32> to vector<22x128xbf16>
    %c7_112 = arith.constant 7 : index
    %c0_113 = arith.constant 0 : index
    %c0_114 = arith.constant 0 : index
    %127 = vector.load %arg5[%c7_112, %c0_113, %c0_114] : memref<9x128x128xbf16, #tpu.memory_space<vmem>>, vector<1x128x128xbf16>
    %128 = vector.shape_cast %127 : vector<1x128x128xbf16> to vector<128x128xbf16>
    %cst_115 = arith.constant dense<0.000000e+00> : vector<22x128xf32>
    %129 = tpu.matmul %126, %128, %cst_115 {dimension_numbers = #tpu.dot_dimension_numbers<[1], [0], [0], [1], [0, 0, 1, 1], [], []>} : vector<22x128xbf16>, vector<128x128xbf16>, vector<22x128xf32> -> vector<22x128xf32>
    %130 = arith.addf %124, %129 : vector<22x128xf32>
    %c10 = arith.constant 10 : index
    %c0_116 = arith.constant 0 : index
    %131 = vector.load %arg13[%c10, %c0_116] : memref<32x128xf32, #tpu.memory_space<vmem>>, vector<22x128xf32>
    %132 = arith.truncf %131 : vector<22x128xf32> to vector<22x128xbf16>
    %c8_117 = arith.constant 8 : index
    %c0_118 = arith.constant 0 : index
    %c0_119 = arith.constant 0 : index
    %133 = vector.load %arg5[%c8_117, %c0_118, %c0_119] : memref<9x128x128xbf16, #tpu.memory_space<vmem>>, vector<1x128x128xbf16>
    %134 = vector.shape_cast %133 : vector<1x128x128xbf16> to vector<128x128xbf16>
    %cst_120 = arith.constant dense<0.000000e+00> : vector<22x128xf32>
    %135 = tpu.matmul %132, %134, %cst_120 {dimension_numbers = #tpu.dot_dimension_numbers<[1], [0], [0], [1], [0, 0, 1, 1], [], []>} : vector<22x128xbf16>, vector<128x128xbf16>, vector<22x128xf32> -> vector<22x128xf32>
    %136 = arith.addf %130, %135 : vector<22x128xf32>
    %c0_121 = arith.constant 0 : index
    %c0_122 = arith.constant 0 : index
    %137 = vector.load %arg6[%c0_121, %c0_122] : memref<1x128xf32, #tpu.memory_space<vmem>>, vector<1x128xf32>
    %138 = vector.broadcast %137 : vector<1x128xf32> to vector<22x128xf32>
    %139 = arith.mulf %136, %138 : vector<22x128xf32>
    %c0_123 = arith.constant 0 : index
    %c0_124 = arith.constant 0 : index
    %140 = vector.load %arg7[%c0_123, %c0_124] : memref<1x128xf32, #tpu.memory_space<vmem>>, vector<1x128xf32>
    %141 = vector.broadcast %140 : vector<1x128xf32> to vector<22x128xf32>
    %142 = arith.addf %139, %141 : vector<22x128xf32>
    %c3_125 = arith.constant 3 : index
    %c0_126 = arith.constant 0 : index
    %c0_127 = arith.constant 0 : index
    %143 = vector.load %arg1[%c3_125, %c0_126, %c0_127] : memref<4x18x128xf32, #tpu.memory_space<vmem>>, vector<1x14x128xf32>
    %144 = vector.shape_cast %143 : vector<1x14x128xf32> to vector<14x128xf32>
    %145 = arith.truncf %144 : vector<14x128xf32> to vector<14x128xbf16>
    %c0_128 = arith.constant 0 : index
    %c0_129 = arith.constant 0 : index
    %146 = vector.load %arg8[%c0_128, %c0_129] : memref<128x128xbf16, #tpu.memory_space<vmem>>, vector<128x128xbf16>
    %cst_130 = arith.constant dense<0.000000e+00> : vector<14x128xf32>
    %147 = tpu.matmul %145, %146, %cst_130 {dimension_numbers = #tpu.dot_dimension_numbers<[1], [0], [0], [1], [0, 0, 1, 1], [], []>} : vector<14x128xbf16>, vector<128x128xbf16>, vector<14x128xf32> -> vector<14x128xf32>
    %c0_131 = arith.constant 0 : index
    %c0_132 = arith.constant 0 : index
    %148 = vector.load %arg9[%c0_131, %c0_132] : memref<1x128xf32, #tpu.memory_space<vmem>>, vector<1x128xf32>
    %149 = vector.broadcast %148 : vector<1x128xf32> to vector<14x128xf32>
    %150 = arith.addf %147, %149 : vector<14x128xf32>
    %cst_133 = arith.constant 0.000000e+00 : f32
    %151 = vector.broadcast %cst_133 : f32 to vector<1x128xf32>
    %152 = vector.extract_strided_slice %142 {offsets = [0, 0], sizes = [2, 128], strides = [1, 1]} : vector<22x128xf32> to vector<2x128xf32>
    %153 = vector.extract_strided_slice %150 {offsets = [0, 0], sizes = [2, 128], strides = [1, 1]} : vector<14x128xf32> to vector<2x128xf32>
    %154 = arith.addf %152, %153 : vector<2x128xf32>
    %cst_134 = arith.constant 0.000000e+00 : f32
    %155 = vector.broadcast %cst_134 : f32 to vector<2x128xf32>
    %156 = arith.maximumf %154, %155 : vector<2x128xf32>
    %cst_135 = arith.constant dense<0.000000e+00> : vector<128xf32>
    %157 = vector.multi_reduction <add>, %156, %cst_135 [0] : vector<2x128xf32> to vector<128xf32>
    %158 = vector.shape_cast %157 : vector<128xf32> to vector<1x128xf32>
    %159 = arith.addf %151, %158 : vector<1x128xf32>
    %160 = vector.extract_strided_slice %142 {offsets = [4, 0], sizes = [2, 128], strides = [1, 1]} : vector<22x128xf32> to vector<2x128xf32>
    %161 = vector.extract_strided_slice %150 {offsets = [3, 0], sizes = [2, 128], strides = [1, 1]} : vector<14x128xf32> to vector<2x128xf32>
    %162 = arith.addf %160, %161 : vector<2x128xf32>
    %cst_136 = arith.constant 0.000000e+00 : f32
    %163 = vector.broadcast %cst_136 : f32 to vector<2x128xf32>
    %164 = arith.maximumf %162, %163 : vector<2x128xf32>
    %cst_137 = arith.constant dense<0.000000e+00> : vector<128xf32>
    %165 = vector.multi_reduction <add>, %164, %cst_137 [0] : vector<2x128xf32> to vector<128xf32>
    %166 = vector.shape_cast %165 : vector<128xf32> to vector<1x128xf32>
    %167 = arith.addf %159, %166 : vector<1x128xf32>
    %cst_138 = arith.constant 2.500000e-01 : f32
    %168 = vector.broadcast %cst_138 : f32 to vector<1x128xf32>
    %169 = arith.mulf %167, %168 : vector<1x128xf32>
    %170 = arith.truncf %169 : vector<1x128xf32> to vector<1x128xbf16>
    %c0_139 = arith.constant 0 : index
    %c0_140 = arith.constant 0 : index
    %171 = vector.load %arg10[%c0_139, %c0_140] : memref<128x2xbf16, #tpu.memory_space<vmem>>, vector<128x2xbf16>
    %cst_141 = arith.constant dense<0.000000e+00> : vector<1x2xf32>
    %172 = tpu.matmul %170, %171, %cst_141 {dimension_numbers = #tpu.dot_dimension_numbers<[1], [0], [0], [1], [0, 0, 1, 1], [], []>} : vector<1x128xbf16>, vector<128x2xbf16>, vector<1x2xf32> -> vector<1x2xf32>
    %c0_142 = arith.constant 0 : index
    %c0_143 = arith.constant 0 : index
    %173 = vector.load %arg11[%c0_142, %c0_143] : memref<1x2xf32, #tpu.memory_space<vmem>>, vector<1x2xf32>
    %174 = arith.addf %172, %173 : vector<1x2xf32>
    %c0_144 = arith.constant 0 : index
    %c0_145 = arith.constant 0 : index
    %175 = vector.load %arg12[%c0_144, %c0_145] : memref<2x2xf32, #tpu.memory_space<vmem>>, vector<1x2xf32>
    tpu.vector_store %arg12[%c0_144, %c0_145], %174 {strides = array<i32>} : memref<2x2xf32, #tpu.memory_space<vmem>>, vector<1x2xf32>,
    %cst_146 = arith.constant 0.000000e+00 : f32
    %176 = vector.broadcast %cst_146 : f32 to vector<1x128xf32>
    %177 = vector.extract_strided_slice %142 {offsets = [16, 0], sizes = [2, 128], strides = [1, 1]} : vector<22x128xf32> to vector<2x128xf32>
    %178 = vector.extract_strided_slice %150 {offsets = [9, 0], sizes = [2, 128], strides = [1, 1]} : vector<14x128xf32> to vector<2x128xf32>
    %179 = arith.addf %177, %178 : vector<2x128xf32>
    %cst_147 = arith.constant 0.000000e+00 : f32
    %180 = vector.broadcast %cst_147 : f32 to vector<2x128xf32>
    %181 = arith.maximumf %179, %180 : vector<2x128xf32>
    %cst_148 = arith.constant dense<0.000000e+00> : vector<128xf32>
    %182 = vector.multi_reduction <add>, %181, %cst_148 [0] : vector<2x128xf32> to vector<128xf32>
    %183 = vector.shape_cast %182 : vector<128xf32> to vector<1x128xf32>
    %184 = arith.addf %176, %183 : vector<1x128xf32>
    %185 = vector.extract_strided_slice %142 {offsets = [20, 0], sizes = [2, 128], strides = [1, 1]} : vector<22x128xf32> to vector<2x128xf32>
    %186 = vector.extract_strided_slice %150 {offsets = [12, 0], sizes = [2, 128], strides = [1, 1]} : vector<14x128xf32> to vector<2x128xf32>
    %187 = arith.addf %185, %186 : vector<2x128xf32>
    %cst_149 = arith.constant 0.000000e+00 : f32
    %188 = vector.broadcast %cst_149 : f32 to vector<2x128xf32>
    %189 = arith.maximumf %187, %188 : vector<2x128xf32>
    %cst_150 = arith.constant dense<0.000000e+00> : vector<128xf32>
    %190 = vector.multi_reduction <add>, %189, %cst_150 [0] : vector<2x128xf32> to vector<128xf32>
    %191 = vector.shape_cast %190 : vector<128xf32> to vector<1x128xf32>
    %192 = arith.addf %184, %191 : vector<1x128xf32>
    %cst_151 = arith.constant 2.500000e-01 : f32
    %193 = vector.broadcast %cst_151 : f32 to vector<1x128xf32>
    %194 = arith.mulf %192, %193 : vector<1x128xf32>
    %195 = arith.truncf %194 : vector<1x128xf32> to vector<1x128xbf16>
    %c0_152 = arith.constant 0 : index
    %c0_153 = arith.constant 0 : index
    %196 = vector.load %arg10[%c0_152, %c0_153] : memref<128x2xbf16, #tpu.memory_space<vmem>>, vector<128x2xbf16>
    %cst_154 = arith.constant dense<0.000000e+00> : vector<1x2xf32>
    %197 = tpu.matmul %195, %196, %cst_154 {dimension_numbers = #tpu.dot_dimension_numbers<[1], [0], [0], [1], [0, 0, 1, 1], [], []>} : vector<1x128xbf16>, vector<128x2xbf16>, vector<1x2xf32> -> vector<1x2xf32>
    %c0_155 = arith.constant 0 : index
    %c0_156 = arith.constant 0 : index
    %198 = vector.load %arg11[%c0_155, %c0_156] : memref<1x2xf32, #tpu.memory_space<vmem>>, vector<1x2xf32>
    %199 = arith.addf %197, %198 : vector<1x2xf32>
    %c1_157 = arith.constant 1 : index
    %c0_158 = arith.constant 0 : index
    %200 = vector.load %arg12[%c1_157, %c0_158] : memref<2x2xf32, #tpu.memory_space<vmem>>, vector<1x2xf32>
    tpu.vector_store %arg12[%c1_157, %c0_158], %199 {strides = array<i32>} : memref<2x2xf32, #tpu.memory_space<vmem>>, vector<1x2xf32>,
    return
  }
  func.func @transform_0(%arg0: i32) -> (i32, i32, i32) {
    %c0_i32 = arith.constant 0 : i32
    %c0_i32_0 = arith.constant 0 : i32
    %c0_i32_1 = arith.constant 0 : i32
    %c0_i32_2 = arith.constant 0 : i32
    return %c0_i32, %c0_i32_0, %c0_i32_1 : i32, i32, i32
  }
  func.func @transform_1(%arg0: i32) -> (i32, i32, i32) {
    %c0_i32 = arith.constant 0 : i32
    %c0_i32_0 = arith.constant 0 : i32
    %c0_i32_1 = arith.constant 0 : i32
    %c0_i32_2 = arith.constant 0 : i32
    return %c0_i32, %c0_i32_0, %c0_i32_1 : i32, i32, i32
  }
  func.func @transform_2(%arg0: i32) -> (i32, i32) {
    %c0_i32 = arith.constant 0 : i32
    %c0_i32_0 = arith.constant 0 : i32
    %c0_i32_1 = arith.constant 0 : i32
    return %c0_i32, %c0_i32_0 : i32, i32
  }
  func.func @transform_3(%arg0: i32) -> (i32, i32) {
    %c0_i32 = arith.constant 0 : i32
    %c0_i32_0 = arith.constant 0 : i32
    %c0_i32_1 = arith.constant 0 : i32
    return %c0_i32, %c0_i32_0 : i32, i32
  }
  func.func @transform_4(%arg0: i32) -> (i32, i32, i32) {
    %c0_i32 = arith.constant 0 : i32
    %c0_i32_0 = arith.constant 0 : i32
    %c0_i32_1 = arith.constant 0 : i32
    %c0_i32_2 = arith.constant 0 : i32
    return %c0_i32, %c0_i32_0, %c0_i32_1 : i32, i32, i32
  }
  func.func @transform_5(%arg0: i32) -> (i32, i32) {
    %c0_i32 = arith.constant 0 : i32
    %c0_i32_0 = arith.constant 0 : i32
    %c0_i32_1 = arith.constant 0 : i32
    return %c0_i32, %c0_i32_0 : i32, i32
  }
  func.func @transform_6(%arg0: i32) -> (i32, i32) {
    %c0_i32 = arith.constant 0 : i32
    %c0_i32_0 = arith.constant 0 : i32
    %c0_i32_1 = arith.constant 0 : i32
    return %c0_i32, %c0_i32_0 : i32, i32
  }
  func.func @transform_7(%arg0: i32) -> (i32, i32) {
    %c0_i32 = arith.constant 0 : i32
    %c0_i32_0 = arith.constant 0 : i32
    %c0_i32_1 = arith.constant 0 : i32
    return %c0_i32, %c0_i32_0 : i32, i32
  }
  func.func @transform_8(%arg0: i32) -> (i32, i32) {
    %c0_i32 = arith.constant 0 : i32
    %c0_i32_0 = arith.constant 0 : i32
    %c0_i32_1 = arith.constant 0 : i32
    return %c0_i32, %c0_i32_0 : i32, i32
  }
  func.func @transform_9(%arg0: i32) -> (i32, i32) {
    %c0_i32 = arith.constant 0 : i32
    %c0_i32_0 = arith.constant 0 : i32
    %c0_i32_1 = arith.constant 0 : i32
    return %c0_i32, %c0_i32_0 : i32, i32
  }
  func.func @transform_10(%arg0: i32) -> (i32, i32) {
    %c0_i32 = arith.constant 0 : i32
    %c0_i32_0 = arith.constant 0 : i32
    %c0_i32_1 = arith.constant 0 : i32
    return %c0_i32, %c0_i32_0 : i32, i32
  }
  func.func @transform_11(%arg0: i32) -> (i32, i32) {
    %c0_i32 = arith.constant 0 : i32
    %c0_i32_0 = arith.constant 0 : i32
    %c0_i32_1 = arith.constant 0 : i32
    return %c0_i32, %c0_i32_0 : i32, i32
  }
}

</mosaic_0001>

<bundles_post_ra>
// kernel: rescnn_forward.4
= control target key start
LH: loop header
LB: loop body
LE: loop exit
PB: predicated region body
PF: predicated region fallthrough
CT: control target
= control target key end

     0   :  { %v4326_v0 = vmov 0.0   ;;  %vm4327_vm0 = vmmov 0   ;;  %vm2813_vm1 = vcmask 1042432   ;;  %vm2795_vm2 = vcmask 1040384   ;;  %s5275_s1 = inlined_call_operand.vmem [shape: bf16[9,128,128], index: 1, kind: input, shape index: {}]   ;;  %s5276_s0 = inlined_call_operand.vmem [shape: f32[4,50,128], index: 0, kind: input, shape index: {}]   ;;  %s5277_s4 = inlined_call_operand.vmem [shape: bf16[9,128,128], index: 4, kind: input, shape index: {}]   ;;  %s5278_s2 = inlined_call_operand.vmem [shape: f32[1,128], index: 2, kind: input, shape index: {}]   ;;  %s5279_s3 = inlined_call_operand.vmem [shape: f32[1,128], index: 3, kind: input, shape index: {}]   ;;  %s5280_s7 = inlined_call_operand.vmem [shape: bf16[128,128], index: 7, kind: input, shape index: {}]   ;;  %s5281_s8 = inlined_call_operand.vmem [shape: f32[1,128], index: 8, kind: input, shape index: {}]   ;;  %s5282_s5 = inlined_call_operand.vmem [shape: f32[1,128], index: 5, kind: input, shape index: {}]   ;;  %s5283_s6 = inlined_call_operand.vmem [shape: f32[1,128], index: 6, kind: input, shape index: {}]   ;;  %s5284_s9 = inlined_call_operand.vmem [shape: f32[32,128], index: 9, kind: output, shape index: {}]  }
   0x1   :  { %3549 = vmatprep.subr.bf16.mxu0 %v4326_v0  ;;  %1288 = vst [vmem:[#allocation2] sm:$0xff] %v4326_v0  ;;  %1289 = vst [vmem:[#allocation2 + $0x8] sm:$0xff] %v4326_v0  ;;  %v4173_v1 = vld [vmem:[%s5275_s1] sm:$0xff]   ;;  %3565 = vmatprep.mubr.msk.bf16.mxu0 %vm4327_vm0, %v4326_v0  ;;  %v4174_v2 = vld [vmem:[%s5275_s1 + $0x8] sm:$0xff]   ;;  %vm2828_vm3 = vcmask 1043456  }
   0x2   :  { %1290 = vst [vmem:[#allocation2 + $0x10] sm:$0xff] %v4326_v0  ;;  %1291 = vst [vmem:[#allocation2 + $0x18] sm:$0xff] %v4326_v0  ;;  %3521 = vmatprep.subr.bf16.mxu1 %v4326_v0  ;;  %3537 = vmatprep.mubr.msk.bf16.mxu1 %vm4327_vm0, %v4326_v0  ;;  %v4175_v3 = vld [vmem:[%s5275_s1 + $0x10] sm:$0xff]   ;;  %v4176_v4 = vld [vmem:[%s5275_s1 + $0x18] sm:$0xff]  }
   0x3   :  { %1292 = vst [vmem:[#allocation2 + $0x20] sm:$0xff] %v4326_v0  ;;  %1293 = vst [vmem:[#allocation2 + $0x28] sm:$0xff] %v4326_v0  ;;  %3550 = vmatpush3.bf16.msra.mxu0 %v4173_v1  ;;  %v4177_v5 = vld [vmem:[%s5275_s1 + $0x20] sm:$0xff]   ;;  %v4178_v6 = vld [vmem:[%s5275_s1 + $0x28] sm:$0xff]  }
   0x4   :  { %1294 = vst [vmem:[#allocation2 + $0x30] sm:$0xff] %v4326_v0  ;;  %1295 = vst [vmem:[#allocation2 + $0x38] sm:$0xff] %v4326_v0  ;;  %3551 = vmatprep.subr.bf16.mxu0 %v4326_v0  ;;  %v4179_v7 = vld [vmem:[%s5275_s1 + $0x30] sm:$0xff]   ;;  %v4180_v8 = vld [vmem:[%s5275_s1 + $0x38] sm:$0xff]  }
   0x5   :  { %1296 = vst [vmem:[#allocation2 + $0x40] sm:$0xff] %v4326_v0  ;;  %v33_v9 = vld [vmem:[%s5276_s0] sm:$0xff]  ;;  %v34_v10 = vld [vmem:[%s5276_s0 + $0x8] sm:$0xff]  ;;  %v35_v14 = vld [vmem:[%s5276_s0 + $0x10] sm:$0xff] }
   0x6   :  { %v39_v11 = vpack.c.bf16 %v34_v10, %v33_v9  ;;  %v4181_v12 = vld [vmem:[%s5275_s1 + $0x80] sm:$0xff]   ;;  %v4182_v13 = vld [vmem:[%s5275_s1 + $0x88] sm:$0xff]   ;;  %v36_v15 = vld [vmem:[%s5276_s0 + $0x18] sm:$0xff] }
   0x7   :  { %3552 = vmatpush3.bf16.msra.mxu0 %v4174_v2  ;;  %v40_v16 = vpack.c.bf16 %v36_v15, %v35_v14  ;;  %v4183_v17 = vld [vmem:[%s5275_s1 + $0x90] sm:$0xff]   ;;  %v4184_v18 = vld [vmem:[%s5275_s1 + $0x98] sm:$0xff]   ;;  %v37_v19 = vld [vmem:[%s5276_s0 + $0x20] sm:$0xff] }
   0x8   :  { %3553 = vmatprep.subr.bf16.mxu0 %v4326_v0  ;;  %v38_v20 = vld [vmem:[%s5276_s0 + $0x28] sm:$0xf]  ;;  %v4185_v22 = vld [vmem:[%s5275_s1 + $0xa0] sm:$0xff]   ;;  %v4187_v24 = vld [vmem:[%s5275_s1 + $0xb0] sm:$0xff]  }
   0x9   :  { %v41_v21 = vpack.c.bf16 %v38_v20, %v37_v19  ;;  %v4186_v23 = vld [vmem:[%s5275_s1 + $0xa8] sm:$0xff]   ;;  %v4188_v25 = vld [vmem:[%s5275_s1 + $0xb8] sm:$0xff]   ;;  %v4189_v28 = vld [vmem:[%s5275_s1 + $0xc0] sm:$0xff]  }
   0xa   :  { %v295_v26 = vld [vmem:[%s5276_s0 + $0x1] sm:$0xff]  ;;  %v296_v27 = vld [vmem:[%s5276_s0 + $0x9] sm:$0xff]  ;;  %v297_v31 = vld [vmem:[%s5276_s0 + $0x11] sm:$0xff] }
   0xb   :  { %3554 = vmatpush3.bf16.msra.mxu0 %v4175_v3  ;;  %v301_v29 = vpack.c.bf16 %v296_v27, %v295_v26  ;;  %v4190_v30 = vld [vmem:[%s5275_s1 + $0xc8] sm:$0xff]   ;;  %v298_v32 = vld [vmem:[%s5276_s0 + $0x19] sm:$0xff]  ;;  %v4191_v33 = vld [vmem:[%s5275_s1 + $0xd0] sm:$0xff]  }
   0xc   :  { %3555 = vmatprep.subr.bf16.mxu0 %v4326_v0  ;;  %v302_v34 = vpack.c.bf16 %v298_v32, %v297_v31  ;;  %v4192_v35 = vld [vmem:[%s5275_s1 + $0xd8] sm:$0xff]   ;;  %v299_v36 = vld [vmem:[%s5276_s0 + $0x21] sm:$0xff]  ;;  %v300_v37 = vld [vmem:[%s5276_s0 + $0x29] sm:$0xf] }
   0xd   :  { %v303_v38 = vpack.c.bf16 %v300_v37, %v299_v36  ;;  %v4193_v39 = vld [vmem:[%s5275_s1 + $0xe0] sm:$0xff]   ;;  %v4194_v40 = vld [vmem:[%s5275_s1 + $0xe8] sm:$0xff]   ;;  %v4195_v41 = vld [vmem:[%s5275_s1 + $0xf0] sm:$0xff]  }
   0xe   :  { %v4196_v42 = vld [vmem:[%s5275_s1 + $0xf8] sm:$0xff]   ;;  %v2916_v43 = vld [vmem:[%s5276_s0 + $0x70] sm:$0xff]  ;;  %v4229_v46 = vld [vmem:[%s5275_s1 + $0x40] sm:$0xff]  }
   0xf   :  { %3556 = vmatpush3.bf16.msra.mxu0 %v4176_v4  ;;  %v2917_v44 = vld [vmem:[%s5276_s0 + $0x78] sm:$0xff]  ;;  %v4197_v47 = vld [vmem:[%s5275_s1 + $0x100] sm:$0xff]   ;;  %3522 = vmatpush3.bf16.msra.mxu1 %v4229_v46  ;;  %v4231_v48 = vld [vmem:[%s5275_s1 + $0x48] sm:$0xff]  }
  0x10   :  { %3557 = vmatprep.subr.bf16.mxu0 %v4326_v0  ;;  %v439_v45 = vpack.c.bf16 %v2917_v44, %v2916_v43  ;;  %3523 = vmatprep.subr.bf16.mxu1 %v4326_v0  ;;  %v4198_v49 = vld [vmem:[%s5275_s1 + $0x108] sm:$0xff]   ;;  %v2918_v50 = vld [vmem:[%s5276_s0 + $0x80] sm:$0xff]  ;;  %v4233_v53 = vld [vmem:[%s5275_s1 + $0x50] sm:$0xff]  }
  0x11   :  { %v2919_v51 = vld [vmem:[%s5276_s0 + $0x88] sm:$0xff]  ;;  %v4199_v54 = vld [vmem:[%s5275_s1 + $0x110] sm:$0xff]   ;;  %v4235_v55 = vld [vmem:[%s5275_s1 + $0x58] sm:$0xff]  }
  0x12   :  { %v440_v52 = vpack.c.bf16 %v2919_v51, %v2918_v50  ;;  %v4200_v56 = vld [vmem:[%s5275_s1 + $0x118] sm:$0xff]   ;;  %v2920_v57 = vld [vmem:[%s5276_s0 + $0x90] sm:$0xff]  ;;  %v4237_v60 = vld [vmem:[%s5275_s1 + $0x60] sm:$0xff]  }
  0x13   :  { %3558 = vmatpush3.bf16.msra.mxu0 %v4177_v5  ;;  %3524 = vmatpush3.bf16.msra.mxu1 %v4231_v48  ;;  %v2921_v58 = vld [vmem:[%s5276_s0 + $0x98] sm:$0xf]  ;;  %v4201_v61 = vld [vmem:[%s5275_s1 + $0x120] sm:$0xff]   ;;  %v4239_v62 = vld [vmem:[%s5275_s1 + $0x68] sm:$0xff]  }
  0x14   :  { %3559 = vmatprep.subr.bf16.mxu0 %v4326_v0  ;;  %3525 = vmatprep.subr.bf16.mxu1 %v4326_v0  ;;  %v441_v59 = vpack.c.bf16 %v2921_v58, %v2920_v57  ;;  %v4202_v63 = vld [vmem:[%s5275_s1 + $0x128] sm:$0xff]   ;;  %v4241_v1 = vld [vmem:[%s5275_s1 + $0x70] sm:$0xff]   ;;  %v4243_v3 = vld [vmem:[%s5275_s1 + $0x78] sm:$0xff]  }
  0x15   :  { %v4203_v2 = vld [vmem:[%s5275_s1 + $0x130] sm:$0xff]   ;;  %v4204_v4 = vld [vmem:[%s5275_s1 + $0x138] sm:$0xff]   ;;  %v2946_v5 = vld [vmem:[%s5276_s0 + $0xa8] sm:$0xff] }
  0x16   :  { %v4206_v14 = vld [vmem:[%s5275_s1 + $0x148] sm:$0xff]   ;;  %v2948_v15 = vld [vmem:[%s5276_s0 + $0xb8] sm:$0xff]  ;;  %v4207_v19 = vld [vmem:[%s5275_s1 + $0x150] sm:$0xff]  }
  0x17   :  { %3560 = vmatpush3.bf16.msra.mxu0 %v4178_v6  ;;  %3526 = vmatpush3.bf16.msra.mxu1 %v4233_v53  ;;  %v2947_v6 = vld [vmem:[%s5276_s0 + $0xb0] sm:$0xff]  ;;  %v4208_v20 = vld [vmem:[%s5275_s1 + $0x158] sm:$0xff]   ;;  %v4209_v27 = vld [vmem:[%s5275_s1 + $0x160] sm:$0xff]  }
  0x18   :  { %3561 = vmatprep.subr.bf16.mxu0 %v4326_v0  ;;  %3527 = vmatprep.subr.bf16.mxu1 %v4326_v0  ;;  %v577_v10 = vpack.c.bf16 %v2947_v6, %v2946_v5  ;;  %v4212_v31 = vld [vmem:[%s5275_s1 + $0x178] sm:$0xff]   ;;  %v4214_v36 = vld [vmem:[%s5275_s1 + $0x188] sm:$0xff]   ;;  %v4217_v44 = vld [vmem:[%s5275_s1 + $0x1a0] sm:$0xff]  }
  0x19   :  { %v2976_v32 = vld [vmem:[%s5276_s0 + $0x71] sm:$0xff]  ;;  %v2978_v37 = vld [vmem:[%s5276_s0 + $0x81] sm:$0xff]  ;;  %v2981_v43 = vld [vmem:[%s5276_s0 + $0x99] sm:$0xf] }
  0x1a   :  { %v4218_v46 = vld [vmem:[%s5275_s1 + $0x1a8] sm:$0xff]   ;;  %v4755_v48 = vld [vmem:[#allocation2] sm:$0xff]  ;;  %v4223_v57 = vld [vmem:[%s5275_s1 + $0x1d0] sm:$0xff]  }
  0x1b   :  { %3562 = vmatpush3.bf16.msra.mxu0 %v4179_v7  ;;  %3528 = vmatpush3.bf16.msra.mxu1 %v4235_v55  ;;  %v2854_v7 = vld [vmem:[%s5276_s0 + $0x38] sm:$0xff]  ;;  %v845_v50 = vld [vmem:[%s5276_s0 + $0x5] sm:$0xff] }
  0x1c   :  { %3563 = vmatprep.subr.bf16.mxu0 %v4326_v0  ;;  %3529 = vmatprep.subr.bf16.mxu1 %v4326_v0  ;;  %v4221_v51 = vld [vmem:[%s5275_s1 + $0x1c0] sm:$0xff]   ;;  %v4222_v53 = vld [vmem:[%s5275_s1 + $0x1c8] sm:$0xff]   ;;  %v4224_v58 = vld [vmem:[%s5275_s1 + $0x1d8] sm:$0xff]  }
  0x1d   :  { %v848_v55 = vld [vmem:[%s5276_s0 + $0x1d] sm:$0xff]  ;;  %v3031_v5 = vld [vmem:[%s5276_s0 + $0x45] sm:$0xff] }
  0x1f   :  { %3564 = vmatpush3.bf16.msra.mxu0 %v4180_v8  ;;  %3530 = vmatpush3.bf16.msra.mxu1 %v4237_v60  ;;  %v2855_v8 = vld [vmem:[%s5276_s0 + $0x40] sm:$0xff]  ;;  %v850_v60 = vld [vmem:[%s5276_s0 + $0x2d] sm:$0xf] }
  0x20   :  { %3577 = vmatprep.subr.bf16.mxu0 %v4326_v0  ;;  %3531 = vmatprep.subr.bf16.mxu1 %v4326_v0  ;;  %v65_v9 = vpack.c.bf16 %v2855_v8, %v2854_v7  ;;  %v4230_v7 = vld [vmem:[%s5275_s1 + $0x200] sm:$0xff]   ;;  %v4232_v8 = vld [vmem:[%s5275_s1 + $0x208] sm:$0xff]  }
  0x22   :  { %3566 = vmatmul.mubr.bf16.vlgmr.msra.gmra.mrb[0].mxu0 %v39_v11  ;;  %v4205_v11 = vld [vmem:[%s5275_s1 + $0x140] sm:$0xff]  }
  0x23   :  { %3578 = vmatpush3.bf16.msra.mxu0 %v4181_v12  ;;  %3569 = vmatprep.mubr.msk.bf16.mxu0 %vm4327_vm0, %v4326_v0  ;;  %v2856_v12 = vld [vmem:[%s5276_s0 + $0x48] sm:$0xff] }
  0x24   :  { %3579 = vmatprep.subr.bf16.mxu0 %v4326_v0  ;;  %3532 = vmatpush3.bf16.msra.mxu1 %v4239_v62  ;;  %v4225_v62 = vld [vmem:[%s5275_s1 + $0x1e0] sm:$0xff]  }
  0x25   :  { %3533 = vmatprep.subr.bf16.mxu1 %v4326_v0 }
  0x27   :  { %3580 = vmatpush3.bf16.msra.mxu0 %v4182_v13  ;;  %v2857_v13 = vld [vmem:[%s5276_s0 + $0x50] sm:$0xff] }
  0x28   :  { %3581 = vmatprep.subr.bf16.mxu0 %v4326_v0  ;;  %3534 = vmatpush3.bf16.msra.mxu1 %v4241_v1  ;;  %v4246_v1 = vld [vmem:[%s5277_s4 + $0x48] sm:$0xff]  }
  0x29   :  { %3535 = vmatprep.subr.bf16.mxu1 %v4326_v0 }
  0x2a   :  { %3570 = vmatmul.mubr.bf16.gmra.mrb[4].mxu0 %v40_v16  ;;  %v2949_v16 = vld [vmem:[%s5276_s0 + $0xc0] sm:$0xff] }
  0x2b   :  { %3582 = vmatpush3.bf16.msra.mxu0 %v4183_v17  ;;  %3573 = vmatprep.mubr.msk.bf16.mxu0 %vm4327_vm0, %v4326_v0  ;;  %v66_v17 = vpack.c.bf16 %v2857_v13, %v2856_v12  ;;  %v4234_v12 = vld [vmem:[%s5275_s1 + $0x210] sm:$0xff]   ;;  %v4236_v13 = vld [vmem:[%s5275_s1 + $0x218] sm:$0xff]  }
  0x2c   :  { %3583 = vmatprep.subr.bf16.mxu0 %v4326_v0  ;;  %3536 = vmatpush3.bf16.msra.mxu1 %v4243_v3  ;;  %v4228_v3 = vld [vmem:[%s5275_s1 + $0x1f8] sm:$0xff]  }
  0x2f   :  { %3584 = vmatpush3.bf16.msra.mxu0 %v4184_v18  ;;  %3538 = vmatmul.mubr.bf16.vlgmr.msra.gmra.mrb[0].mxu1 %v65_v9  ;;  %v578_v18 = vpack.c.bf16 %v2949_v16, %v2948_v15  ;;  %v3032_v9 = vld [vmem:[%s5276_s0 + $0x4d] sm:$0xff]  ;;  %v3035_v15 = vld [vmem:[%s5276_s0 + $0x65] sm:$0xf] }
  0x30   :  { %3585 = vmatprep.subr.bf16.mxu0 %v4326_v0  ;;  %3541 = vmatprep.mubr.msk.bf16.mxu1 %vm4327_vm0, %v4326_v0 }
  0x32   :  { %3574 = vmatmul.mubr.bf16.gmra.mrb[8].mxu0 %v41_v21  ;;  %v2950_v21 = vld [vmem:[%s5276_s0 + $0xc8] sm:$0xff] }
  0x33   :  { %3586 = vmatpush3.bf16.msra.mxu0 %v4185_v22  ;;  %3593 = vmatprep.mubr.msk.bf16.mxu0 %vm4327_vm0, %v4326_v0  ;;  %v2951_v22 = vld [vmem:[%s5276_s0 + $0xd0] sm:$0xf] }
  0x34   :  { %3587 = vmatprep.subr.bf16.mxu0 %v4326_v0  ;;  %v579_v26 = vpack.c.bf16 %v2951_v22, %v2950_v21  ;;  %v1119_v21 = vld [vmem:[%s5276_s0 + $0x6] sm:$0xff]  ;;  %v1120_v22 = vld [vmem:[%s5276_s0 + $0xe] sm:$0xff] }
  0x37   :  { %3588 = vmatpush3.bf16.msra.mxu0 %v4186_v23  ;;  %3542 = vmatmul.mubr.bf16.gmra.mrb[4].mxu1 %v66_v17  ;;  %v2858_v23 = vld [vmem:[%s5276_s0 + $0x58] sm:$0xff]  ;;  %v4238_v17 = vld [vmem:[%s5275_s1 + $0x220] sm:$0xff]  }
  0x38   :  { %3589 = vmatprep.subr.bf16.mxu0 %v4326_v0  ;;  %3545 = vmatprep.mubr.msk.bf16.mxu1 %vm4327_vm0, %v4326_v0 }
  0x3b   :  { %3590 = vmatpush3.bf16.msra.mxu0 %v4187_v24  ;;  %v2859_v24 = vld [vmem:[%s5276_s0 + $0x60] sm:$0xf] }
  0x3c   :  { %3591 = vmatprep.subr.bf16.mxu0 %v4326_v0 }
  0x3f   :  { %3592 = vmatpush3.bf16.msra.mxu0 %v4188_v25  ;;  %v67_v25 = vpack.c.bf16 %v2859_v24, %v2858_v23  ;;  %v1125_v23 = vpack.c.bf16 %v1120_v22, %v1119_v21  ;;  %v1121_v24 = vld [vmem:[%s5276_s0 + $0x16] sm:$0xff] }
  0x40   :  { %3605 = vmatprep.subr.bf16.mxu0 %v4326_v0 }
  0x41   :  { %3546 = vmatmul.mubr.bf16.gmra.mrb[8].mxu1 %v67_v25  ;;  %v1122_v25 = vld [vmem:[%s5276_s0 + $0x1e] sm:$0xff] }
  0x42   :  { %3594 = vmatmul.mubr.bf16.vlgmr.msra.gmra.mrb[0].mxu0 %v301_v29  ;;  %v4245_v29 = vld [vmem:[%s5277_s4 + $0x40] sm:$0xff]  }
  0x43   :  { %3606 = vmatpush3.bf16.msra.mxu0 %v4189_v28  ;;  %3597 = vmatprep.mubr.msk.bf16.mxu0 %vm4327_vm0, %v4326_v0  ;;  %v4210_v28 = vld [vmem:[%s5275_s1 + $0x168] sm:$0xff]  }
  0x44   :  { %3607 = vmatprep.subr.bf16.mxu0 %v4326_v0  ;;  %3773 = vmatprep.subr.bf16.mxu1 %v4245_v29 }
  0x45   :  { %3774 = vmatpush3.bf16.msra.mxu1 %v4245_v29 }
  0x46   :  { %3775 = vmatprep.subr.bf16.mxu1 %v4246_v1 }
  0x47   :  { %3608 = vmatpush3.bf16.msra.mxu0 %v4190_v30  ;;  %v4211_v30 = vld [vmem:[%s5275_s1 + $0x170] sm:$0xff]  }
  0x48   :  { %3609 = vmatprep.subr.bf16.mxu0 %v4326_v0 }
  0x49   :  { %3776 = vmatpush3.bf16.msra.mxu1 %v4246_v1 }
  0x4a   :  { %3598 = vmatmul.mubr.bf16.gmra.mrb[4].mxu0 %v302_v34  ;;  %v4213_v34 = vld [vmem:[%s5275_s1 + $0x180] sm:$0xff]  }
  0x4b   :  { %3610 = vmatpush3.bf16.msra.mxu0 %v4191_v33  ;;  %3601 = vmatprep.mubr.msk.bf16.mxu0 %vm4327_vm0, %v4326_v0  ;;  %v2977_v33 = vld [vmem:[%s5276_s0 + $0x79] sm:$0xff] }
  0x4c   :  { %3611 = vmatprep.subr.bf16.mxu0 %v4326_v0 }
  0x4f   :  { %3612 = vmatpush3.bf16.msra.mxu0 %v4192_v35  ;;  %v714_v35 = vpack.c.bf16 %v2977_v33, %v2976_v32 }
  0x50   :  { %3613 = vmatprep.subr.bf16.mxu0 %v4326_v0 }
  0x52   :  { %3602 = vmatmul.mubr.bf16.gmra.mrb[8].mxu0 %v303_v38  ;;  %v2979_v38 = vld [vmem:[%s5276_s0 + $0x89] sm:$0xff] }
  0x53   :  { %3614 = vmatpush3.bf16.msra.mxu0 %v4193_v39  ;;  %3621 = vmatprep.mubr.msk.bf16.mxu0 %vm4327_vm0, %v4326_v0  ;;  %v4215_v39 = vld [vmem:[%s5275_s1 + $0x190] sm:$0xff]  }
  0x54   :  { %3615 = vmatprep.subr.bf16.mxu0 %v4326_v0 }
  0x57   :  { %3616 = vmatpush3.bf16.msra.mxu0 %v4194_v40  ;;  %v715_v40 = vpack.c.bf16 %v2979_v38, %v2978_v37 }
  0x58   :  { %3617 = vmatprep.subr.bf16.mxu0 %v4326_v0 }
  0x5b   :  { %3618 = vmatpush3.bf16.msra.mxu0 %v4195_v41  ;;  %v4216_v41 = vld [vmem:[%s5275_s1 + $0x198] sm:$0xff]  }
  0x5c   :  { %3619 = vmatprep.subr.bf16.mxu0 %v4326_v0 }
  0x5f   :  { %3620 = vmatpush3.bf16.msra.mxu0 %v4196_v42  ;;  %v2980_v42 = vld [vmem:[%s5276_s0 + $0x91] sm:$0xff] }
  0x60   :  { %3633 = vmatprep.subr.bf16.mxu0 %v4326_v0 }
  0x62   :  { %3622 = vmatmul.mubr.bf16.vlgmr.msra.gmra.mrb[0].mxu0 %v439_v45  ;;  %v716_v45 = vpack.c.bf16 %v2981_v43, %v2980_v42  ;;  %v4251_v43 = vld [vmem:[%s5277_s4 + $0x70] sm:$0xff]  }
  0x63   :  { %3634 = vmatpush3.bf16.msra.mxu0 %v4197_v47  ;;  %3625 = vmatprep.mubr.msk.bf16.mxu0 %vm4327_vm0, %v4326_v0  ;;  %v4219_v47 = vld [vmem:[%s5275_s1 + $0x1b0] sm:$0xff]  }
  0x64   :  { %3635 = vmatprep.subr.bf16.mxu0 %v4326_v0 }
  0x67   :  { %3636 = vmatpush3.bf16.msra.mxu0 %v4198_v49  ;;  %v4220_v49 = vld [vmem:[%s5275_s1 + $0x1b8] sm:$0xff]  }
  0x68   :  { %3637 = vmatprep.subr.bf16.mxu0 %v4326_v0 }
  0x6a   :  { %3626 = vmatmul.mubr.bf16.gmra.mrb[4].mxu0 %v440_v52 }
  0x6b   :  { %3638 = vmatpush3.bf16.msra.mxu0 %v4199_v54  ;;  %3629 = vmatprep.mubr.msk.bf16.mxu0 %vm4327_vm0, %v4326_v0  ;;  %v847_v54 = vld [vmem:[%s5276_s0 + $0x15] sm:$0xff] }
  0x6c   :  { %3639 = vmatprep.subr.bf16.mxu0 %v4326_v0 }
  0x6f   :  { %3640 = vmatpush3.bf16.msra.mxu0 %v4200_v56  ;;  %v852_v56 = vpack.c.bf16 %v848_v55, %v847_v54 }
  0x70   :  { %3641 = vmatprep.subr.bf16.mxu0 %v4326_v0 }
  0x72   :  { %3630 = vmatmul.mubr.bf16.gmra.mrb[8].mxu0 %v441_v59  ;;  %v849_v59 = vld [vmem:[%s5276_s0 + $0x25] sm:$0xff] }
  0x73   :  { %3642 = vmatpush3.bf16.msra.mxu0 %v4201_v61  ;;  %3649 = vmatprep.mubr.msk.bf16.mxu0 %vm4327_vm0, %v4326_v0  ;;  %v853_v61 = vpack.c.bf16 %v850_v60, %v849_v59 }
  0x74   :  { %3643 = vmatprep.subr.bf16.mxu0 %v4326_v0 }
  0x77   :  { %3644 = vmatpush3.bf16.msra.mxu0 %v4202_v63  ;;  %v4226_v63 = vld [vmem:[%s5275_s1 + $0x1e8] sm:$0xff]  }
  0x78   :  { %3645 = vmatprep.subr.bf16.mxu0 %v4326_v0 }
  0x7b   :  { %3646 = vmatpush3.bf16.msra.mxu0 %v4203_v2  ;;  %v4227_v2 = vld [vmem:[%s5275_s1 + $0x1f0] sm:$0xff]  }
  0x7c   :  { %3647 = vmatprep.subr.bf16.mxu0 %v4326_v0 }
  0x7f   :  { %3648 = vmatpush3.bf16.msra.mxu0 %v4204_v4  ;;  %v3030_v4 = vld [vmem:[%s5276_s0 + $0x3d] sm:$0xff] }
  0x80   :  { %3661 = vmatprep.subr.bf16.mxu0 %v4326_v0  ;;  %v988_v6 = vpack.c.bf16 %v3031_v5, %v3030_v4 }
  0x82   :  { %3650 = vmatmul.mubr.bf16.vlgmr.msra.gmra.mrb[0].mxu0 %v577_v10  ;;  %v3033_v10 = vld [vmem:[%s5276_s0 + $0x55] sm:$0xff] }
  0x83   :  { %3662 = vmatpush3.bf16.msra.mxu0 %v4205_v11  ;;  %3653 = vmatprep.mubr.msk.bf16.mxu0 %vm4327_vm0, %v4326_v0  ;;  %v989_v11 = vpack.c.bf16 %v3033_v10, %v3032_v9 }
  0x84   :  { %3663 = vmatprep.subr.bf16.mxu0 %v4326_v0 }
  0x87   :  { %3664 = vmatpush3.bf16.msra.mxu0 %v4206_v14  ;;  %v3034_v14 = vld [vmem:[%s5276_s0 + $0x5d] sm:$0xff] }
  0x88   :  { %3665 = vmatprep.subr.bf16.mxu0 %v4326_v0  ;;  %v990_v16 = vpack.c.bf16 %v3035_v15, %v3034_v14 }
  0x8a   :  { %3654 = vmatmul.mubr.bf16.gmra.mrb[4].mxu0 %v578_v18  ;;  %v4240_v18 = vld [vmem:[%s5275_s1 + $0x228] sm:$0xff]  }
  0x8b   :  { %3666 = vmatpush3.bf16.msra.mxu0 %v4207_v19  ;;  %3657 = vmatprep.mubr.msk.bf16.mxu0 %vm4327_vm0, %v4326_v0  ;;  %v4242_v19 = vld [vmem:[%s5275_s1 + $0x230] sm:$0xff]  }
  0x8c   :  { %3667 = vmatprep.subr.bf16.mxu0 %v4326_v0 }
  0x8f   :  { %3668 = vmatpush3.bf16.msra.mxu0 %v4208_v20  ;;  %v4244_v20 = vld [vmem:[%s5275_s1 + $0x238] sm:$0xff]  }
  0x90   :  { %3669 = vmatprep.subr.bf16.mxu0 %v4326_v0 }
  0x92   :  { %3658 = vmatmul.mubr.bf16.gmra.mrb[8].mxu0 %v579_v26  ;;  %v1126_v26 = vpack.c.bf16 %v1122_v25, %v1121_v24 }
  0x93   :  { %3670 = vmatpush3.bf16.msra.mxu0 %v4209_v27  ;;  %3677 = vmatprep.mubr.msk.bf16.mxu0 %vm4327_vm0, %v4326_v0  ;;  %v1123_v27 = vld [vmem:[%s5276_s0 + $0x26] sm:$0xff] }
  0x94   :  { %3671 = vmatprep.subr.bf16.mxu0 %v4326_v0 }
  0x97   :  { %3672 = vmatpush3.bf16.msra.mxu0 %v4210_v28  ;;  %v1124_v28 = vld [vmem:[%s5276_s0 + $0x2e] sm:$0xf] }
  0x98   :  { %3673 = vmatprep.subr.bf16.mxu0 %v4326_v0  ;;  %v1127_v29 = vpack.c.bf16 %v1124_v28, %v1123_v27 }
  0x9b   :  { %3674 = vmatpush3.bf16.msra.mxu0 %v4211_v30 }
  0x9c   :  { %3675 = vmatprep.subr.bf16.mxu0 %v4326_v0 }
  0x9f   :  { %3676 = vmatpush3.bf16.msra.mxu0 %v4212_v31 }
  0xa0   :  { %3689 = vmatprep.subr.bf16.mxu0 %v4326_v0 }
  0xa2   :  { %3678 = vmatmul.mubr.bf16.vlgmr.msra.gmra.mrb[0].mxu0 %v714_v35  ;;  %v4248_v35 = vld [vmem:[%s5277_s4 + $0x58] sm:$0xff]  }
  0xa3   :  { %3690 = vmatpush3.bf16.msra.mxu0 %v4213_v34  ;;  %3681 = vmatprep.mubr.msk.bf16.mxu0 %vm4327_vm0, %v4326_v0  ;;  %v4247_v34 = vld [vmem:[%s5277_s4 + $0x50] sm:$0xff]  }
  0xa4   :  { %3691 = vmatprep.subr.bf16.mxu0 %v4326_v0  ;;  %3777 = vmatprep.subr.bf16.mxu1 %v4247_v34 }
  0xa5   :  { %3778 = vmatpush3.bf16.msra.mxu1 %v4247_v34  ;;  %v4254_v34 = vld [vmem:[%s5277_s4 + $0x8] sm:$0xff]  }
  0xa6   :  { %3779 = vmatprep.subr.bf16.mxu1 %v4248_v35 }
  0xa7   :  { %3692 = vmatpush3.bf16.msra.mxu0 %v4214_v36 }
  0xa8   :  { %3693 = vmatprep.subr.bf16.mxu0 %v4326_v0 }
  0xa9   :  { %3780 = vmatpush3.bf16.msra.mxu1 %v4248_v35 }
  0xaa   :  { %3682 = vmatmul.mubr.bf16.gmra.mrb[4].mxu0 %v715_v40  ;;  %v4249_v40 = vld [vmem:[%s5277_s4 + $0x60] sm:$0xff]  }
  0xab   :  { %3694 = vmatpush3.bf16.msra.mxu0 %v4215_v39  ;;  %3685 = vmatprep.mubr.msk.bf16.mxu0 %vm4327_vm0, %v4326_v0 }
  0xac   :  { %3695 = vmatprep.subr.bf16.mxu0 %v4326_v0  ;;  %3781 = vmatprep.subr.bf16.mxu1 %v4249_v40 }
  0xad   :  { %3782 = vmatpush3.bf16.msra.mxu1 %v4249_v40 }
  0xaf   :  { %3696 = vmatpush3.bf16.msra.mxu0 %v4216_v41  ;;  %v4250_v41 = vld [vmem:[%s5277_s4 + $0x68] sm:$0xff]  }
  0xb0   :  { %3697 = vmatprep.subr.bf16.mxu0 %v4326_v0  ;;  %3783 = vmatprep.subr.bf16.mxu1 %v4250_v41 }
  0xb1   :  { %3784 = vmatpush3.bf16.msra.mxu1 %v4250_v41 }
  0xb2   :  { %3686 = vmatmul.mubr.bf16.gmra.mrb[8].mxu0 %v716_v45  ;;  %3785 = vmatprep.subr.bf16.mxu1 %v4251_v43 }
  0xb3   :  { %3698 = vmatpush3.bf16.msra.mxu0 %v4217_v44  ;;  %3705 = vmatprep.mubr.msk.bf16.mxu0 %vm4327_vm0, %v4326_v0 }
  0xb4   :  { %3699 = vmatprep.subr.bf16.mxu0 %v4326_v0  ;;  %v846_v0 = vld [vmem:[%s5276_s0 + $0xd] sm:$0xff] }
  0xb5   :  { %v851_v52 = vpack.c.bf16 %v846_v0, %v845_v50  ;;  %3786 = vmatpush3.bf16.msra.mxu1 %v4251_v43  ;;  %v3084_v0 = vld [vmem:[%s5278_s2] ss:$0 sm:$0xff]  ;;  %v4255_v43 = vld [vmem:[%s5277_s4 + $0x10] sm:$0xff]  }
  0xb7   :  { %3700 = vmatpush3.bf16.msra.mxu0 %v4218_v46 }
  0xb8   :  { %3701 = vmatprep.subr.bf16.mxu0 %v4755_v48 }
  0xbb   :  { %3702 = vmatpush3.bf16.msra.mxu0 %v4219_v47  ;;  %v4252_v47 = vld [vmem:[%s5277_s4 + $0x78] sm:$0xff]  }
  0xbc   :  { %3703 = vmatprep.subr.bf16.mxu0 %v4755_v48  ;;  %3787 = vmatprep.subr.bf16.mxu1 %v4252_v47 }
  0xbd   :  { %3788 = vmatpush3.bf16.msra.mxu1 %v4252_v47 }
  0xbf   :  { %3704 = vmatpush3.bf16.msra.mxu0 %v4220_v49  ;;  %v4923_v49 = vld [vmem:[%s5277_s4] sm:$0xff]  }
  0xc0   :  { %3717 = vmatprep.subr.bf16.mxu0 %v4755_v48  ;;  %3797 = vmatprep.subr.bf16.mxu1 %v4923_v49 }
  0xc2   :  { %3706 = vmatmul.mubr.bf16.vlgmr.msra.gmra.mrb[0].mxu0 %v851_v52 }
  0xc3   :  { %3718 = vmatpush3.bf16.msra.mxu0 %v4221_v51  ;;  %3709 = vmatprep.mubr.msk.bf16.mxu0 %vm4327_vm0, %v4755_v48 }
  0xc4   :  { %3719 = vmatprep.subr.bf16.mxu0 %v4755_v48 }
  0xc7   :  { %3720 = vmatpush3.bf16.msra.mxu0 %v4222_v53  ;;  %v3085_v53 = vld [vmem:[%s5279_s3] ss:$0 sm:$0xff] }
  0xc8   :  { %3721 = vmatprep.subr.bf16.mxu0 %v4755_v48 }
  0xca   :  { %3710 = vmatmul.mubr.bf16.gmra.mrb[4].mxu0 %v852_v56 }
  0xcb   :  { %3722 = vmatpush3.bf16.msra.mxu0 %v4223_v57  ;;  %3713 = vmatprep.mubr.msk.bf16.mxu0 %vm4327_vm0, %v4755_v48 }
  0xcc   :  { %3723 = vmatprep.subr.bf16.mxu0 %v4755_v48 }
  0xcf   :  { %3724 = vmatpush3.bf16.msra.mxu0 %v4224_v58 }
  0xd0   :  { %3725 = vmatprep.subr.bf16.mxu0 %v4755_v48 }
  0xd2   :  { %3714 = vmatmul.mubr.bf16.gmra.mrb[8].mxu0 %v853_v61 }
  0xd3   :  { %3726 = vmatpush3.bf16.msra.mxu0 %v4225_v62  ;;  %3733 = vmatprep.mubr.msk.bf16.mxu0 %vm4327_vm0, %v4755_v48 }
  0xd4   :  { %3727 = vmatprep.subr.bf16.mxu0 %v4755_v48 }
  0xd7   :  { %3728 = vmatpush3.bf16.msra.mxu0 %v4226_v63 }
  0xd8   :  { %3729 = vmatprep.subr.bf16.mxu0 %v4755_v48 }
  0xdb   :  { %3730 = vmatpush3.bf16.msra.mxu0 %v4227_v2 }
  0xdc   :  { %3731 = vmatprep.subr.bf16.mxu0 %v4755_v48 }
  0xdf   :  { %3732 = vmatpush3.bf16.msra.mxu0 %v4228_v3 }
  0xe0   :  { %3745 = vmatprep.subr.bf16.mxu0 %v4755_v48 }
  0xe2   :  { %3734 = vmatmul.mubr.bf16.vlgmr.msra.gmra.mrb[0].mxu0 %v988_v6 }
  0xe3   :  { %3746 = vmatpush3.bf16.msra.mxu0 %v4230_v7  ;;  %3737 = vmatprep.mubr.msk.bf16.mxu0 %vm4327_vm0, %v4755_v48 }
  0xe4   :  { %3747 = vmatprep.subr.bf16.mxu0 %v4755_v48 }
  0xe7   :  { %3748 = vmatpush3.bf16.msra.mxu0 %v4232_v8 }
  0xe8   :  { %3749 = vmatprep.subr.bf16.mxu0 %v4755_v48 }
  0xea   :  { %3738 = vmatmul.mubr.bf16.gmra.mrb[4].mxu0 %v989_v11 }
  0xeb   :  { %3750 = vmatpush3.bf16.msra.mxu0 %v4234_v12  ;;  %3741 = vmatprep.mubr.msk.bf16.mxu0 %vm4327_vm0, %v4755_v48 }
  0xec   :  { %3751 = vmatprep.subr.bf16.mxu0 %v4755_v48 }
  0xef   :  { %3752 = vmatpush3.bf16.msra.mxu0 %v4236_v13 }
  0xf0   :  { %3753 = vmatprep.subr.bf16.mxu0 %v4755_v48 }
  0xf2   :  { %3742 = vmatmul.mubr.bf16.gmra.mrb[8].mxu0 %v990_v16 }
  0xf3   :  { %3754 = vmatpush3.bf16.msra.mxu0 %v4238_v17  ;;  %3761 = vmatprep.mubr.msk.bf16.mxu0 %vm4327_vm0, %v4755_v48 }
  0xf4   :  { %3755 = vmatprep.subr.bf16.mxu0 %v4755_v48 }
  0xf7   :  { %3756 = vmatpush3.bf16.msra.mxu0 %v4240_v18 }
  0xf8   :  { %3757 = vmatprep.subr.bf16.mxu0 %v4755_v48 }
  0xfb   :  { %3758 = vmatpush3.bf16.msra.mxu0 %v4242_v19 }
  0xfc   :  { %3759 = vmatprep.subr.bf16.mxu0 %v4755_v48 }
  0xff   :  { %3760 = vmatpush3.bf16.msra.mxu0 %v4244_v20 }
 0x100   :  { %3989 = vmatprep.subr.bf16.mxu0 %v4755_v48 }
 0x102   :  { %3762 = vmatmul.mubr.bf16.vlgmr.msra.gmra.mrb[0].mxu0 %v1125_v23  ;;  %v167_v30 = vpop.f32.mrb[0].mxu1 }
 0x103   :  { %3765 = vmatprep.mubr.msk.bf16.mxu0 %vm4327_vm0, %v4755_v48  ;;  %v3539_v31 = vpop.f32.mrb[1].mxu1 }
 0x104   :  { %v170_v32 = vpop.f32.mrb[2].mxu1  ;;  %v1340_v31 = vld [vmem:[#allocation2 + $0x21] sm:$0xff] }
 0x105   :  { %v3540_v33 = vpop.f32.mrb[3].mxu1 }
 0x10a   :  { %3766 = vmatmul.mubr.bf16.gmra.mrb[4].mxu0 %v1126_v26  ;;  %v175_v36 = vpop.f32.mrb[4].mxu1 }
 0x10b   :  { %3769 = vmatprep.mubr.msk.bf16.mxu0 %vm4327_vm0, %v4755_v48  ;;  %v3543_v37 = vpop.f32.mrb[5].mxu1 }
 0x10c   :  { %v178_v38 = vpop.f32.mrb[6].mxu1 }
 0x10d   :  { %v3544_v39 = vpop.f32.mrb[7].mxu1 }
 0x10e   :  { %v4945_v39 = vld [vmem:[#allocation2 + $0x1e] sm:$0xff] }
 0x112   :  { %3770 = vmatmul.mubr.bf16.gmra.mrb[8].mxu0 %v1127_v29 }
 0x113   :  { %4005 = vmatprep.mubr.msk.bf16.mxu0 %vm4327_vm0, %v4755_v48 }
 0x114   :  { %v183_v42 = vpop.f32.mrb[8].mxu1 }
 0x115   :  { %v3547_v44 = vpop.f32.mrb[9].mxu1 }
 0x116   :  { %v186_v45 = vpop.f32.mrb[10].mxu1 }
 0x117   :  { %v3548_v46 = vpop.f32.mrb[11].mxu1 }
 0x1d5   :  { %v1227_v50 = vpop.f32.mrb[0].mxu0 }
 0x1d6   :  { %v4017_v51 = vadd.f32 %v1227_v50, %v167_v30  ;;  %v3763_v52 = vpop.f32.mrb[1].mxu0 }
 0x1d7   :  { %v1230_v54 = vpop.f32.mrb[2].mxu0 }
 0x1d8   :  { %v1263_v55 = vmul.f32 %v4017_v51, %v3084_v0  ;;  %v4018_v56 = vadd.f32 %v1230_v54, %v170_v32  ;;  %v3764_v57 = vpop.f32.mrb[3].mxu0 }
 0x1d9   :  { %v4258_v57 = vld [vmem:[%s5277_s4 + $0x28] sm:$0xff]  }
 0x1da   :  { %v1276_v58 = vadd.f32 %v3085_v53, %v1263_v55  ;;  %v1264_v59 = vmul.f32 %v4018_v56, %v3084_v0  ;;  %v4257_v56 = vld [vmem:[%s5277_s4 + $0x20] sm:$0xff]  }
 0x1dc   :  { %v1282_v60 = vmax.f32 %v1276_v58, 0.0  ;;  %v1277_v61 = vadd.f32 %v3085_v53, %v1264_v59  ;;  %v4259_v58 = vld [vmem:[%s5277_s4 + $0x30] sm:$0xff]   ;;  %v4260_v59 = vld [vmem:[%s5277_s4 + $0x38] sm:$0xff]  }
 0x1dd   :  { %v1235_v62 = vpop.f32.mrb[4].mxu0 }
 0x1de   :  { %1297 = vst [vmem:[#allocation2 + $0x7] ss:$5 sps:$4 sm:$0xef] %v1282_v60   ;;  %v1283_v63 = vmax.f32 %v1277_v61, 0.0  ;;  %v4019_v1 = vadd.f32 %v1235_v62, %v175_v36  ;;  %v3767_v2 = vpop.f32.mrb[5].mxu0  ;;  %v4261_v60 = vld [vmem:[%s5277_s4 + $0x80] sm:$0xff]  }
 0x1df   :  { %v1238_v3 = vpop.f32.mrb[6].mxu0  ;;  %v4263_v2 = vld [vmem:[%s5277_s4 + $0x90] sm:$0xff]  }
 0x1e0   :  { %1299 = vst [vmem:[#allocation2 + $0x10] ss:$6 sps:$4 sm:$0x81] %v1283_v63   ;;  %1300 = vst [vmem:[#allocation2 + $0x11] sm:$0x3c] %v1283_v63  ;;  %v1265_v4 = vmul.f32 %v4019_v1, %v3084_v0  ;;  %v4020_v5 = vadd.f32 %v1238_v3, %v178_v38  ;;  %v3768_v6 = vpop.f32.mrb[7].mxu0 }
 0x1e1   :  { %v4262_v63 = vld [vmem:[%s5277_s4 + $0x88] sm:$0xff]  }
 0x1e2   :  { %v1278_v7 = vadd.f32 %v3085_v53, %v1265_v4  ;;  %v1266_v8 = vmul.f32 %v4020_v5, %v3084_v0 }
 0x1e4   :  { %v1284_v9 = vmax.f32 %v1278_v7, 0.0  ;;  %v1279_v10 = vadd.f32 %v3085_v53, %v1266_v8  ;;  %v4264_v7 = vld [vmem:[%s5277_s4 + $0x98] sm:$0xff]  }
 0x1e5   :  { %v1243_v11 = vpop.f32.mrb[8].mxu0  ;;  %v1336_v15 = vld [vmem:[#allocation2 + $0x1] sm:$0xff] }
 0x1e6   :  { %1302 = vst [vmem:[#allocation2 + $0x1a] sm:$0x7] %v1284_v9  ;;  %v1285_v12 = vmax.f32 %v1279_v10, 0.0  ;;  %v4021_v13 = vadd.f32 %v1243_v11, %v183_v42  ;;  %v3771_v14 = vpop.f32.mrb[9].mxu0  ;;  %v4932_v18 = vld [vmem:[#allocation2 + $0x8] sm:$0xff]  ;;  %v1308_v44 = vld [vmem:[#allocation2] sm:$0xff] }
 0x1e7   :  { %v1246_v16 = vpop.f32.mrb[10].mxu0  ;;  %v1337_v17 = vld [vmem:[#allocation2 + $0x9] sm:$0xff]  ;;  %v1338_v29 = vld [vmem:[#allocation2 + $0x11] sm:$0xff]  ;;  %v1316_v52 = vpack.c.bf16 %v4932_v18, %v1308_v44  ;;  %v4265_v9 = vld [vmem:[%s5277_s4 + $0xa0] sm:$0xff]  }
 0x1e8   :  { %v4934_v19 = vld [vmem:[#allocation2 + $0x10] sm:$0xff]  ;;  %1303 = vst [vmem:[#allocation2 + $0x2a] sm:$0x1e] %v1285_v12  ;;  %1304 = vst [vmem:[#allocation2 + $0x2b] sm:$0xc0] %v1285_v12  ;;  %v1267_v20 = vmul.f32 %v4021_v13, %v3084_v0  ;;  %v4022_v21 = vadd.f32 %v1246_v16, %v186_v45  ;;  %v3772_v22 = vpop.f32.mrb[11].mxu0  ;;  %v1344_v23 = vpack.c.bf16 %v1337_v17, %v1336_v15 }
 0x1e9   :  { %v2041_v24 = vpack.c.bf16 %v4934_v19, %v4932_v18  ;;  %v4943_v37 = vld [vmem:[#allocation2 + $0xe] sm:$0xff]  ;;  %v1589_v6 = vld [vmem:[#allocation2 + $0x2] sm:$0xff]  ;;  %v4268_v12 = vld [vmem:[%s5277_s4 + $0xb8] sm:$0xff]  }
 0x1ea   :  { %v1280_v25 = vadd.f32 %v3085_v53, %v1267_v20  ;;  %v1268_v26 = vmul.f32 %v4022_v21, %v3084_v0  ;;  %3789 = vmatprep.mubr.bf16.mxu1 %v1344_v23  ;;  %v1590_v4 = vld [vmem:[#allocation2 + $0xa] sm:$0xff]  ;;  %v4269_v13 = vld [vmem:[%s5277_s4 + $0xc0] sm:$0xff]   ;;  %v1591_v17 = vld [vmem:[#allocation2 + $0x12] sm:$0xff] }
 0x1eb   :  { %v1597_v8 = vpack.c.bf16 %v1590_v4, %v1589_v6  ;;  %v4266_v10 = vld [vmem:[%s5277_s4 + $0xa8] sm:$0xff]   ;;  %v4267_v11 = vld [vmem:[%s5277_s4 + $0xb0] sm:$0xff]   ;;  %v4277_v44 = vld [vmem:[%s5277_s4 + $0x100] sm:$0xff]  }
 0x1ec   :  { %v1286_v27 = vmax.f32 %v1280_v25, 0.0  ;;  %v1281_v28 = vadd.f32 %v3085_v53, %v1268_v26  ;;  %v1593_v15 = vld [vmem:[#allocation2 + $0x22] sm:$0xff]  ;;  %v4271_v23 = vld [vmem:[%s5277_s4 + $0xd0] sm:$0xff]   ;;  %v4320_v4 = vld [vmem:[%s5280_s7 + $0x38] sm:$0xff]  }
 0x1ed   :  { %v1339_v30 = vld [vmem:[#allocation2 + $0x19] sm:$0xff]  ;;  %v4270_v21 = vld [vmem:[%s5277_s4 + $0xc8] sm:$0xff]  }
 0x1ee   :  { %1305 = vst [vmem:[#allocation2 + $0x33] sm:$0x3] %v1286_v27  ;;  %1306 = vst [vmem:[#allocation2 + $0x34] sm:$0x78] %v1286_v27  ;;  %v1287_v32 = vmax.f32 %v1281_v28, 0.0  ;;  %v1345_v33 = vpack.c.bf16 %v1339_v30, %v1338_v29  ;;  %v4941_v35 = vld [vmem:[#allocation2 + $0x16] sm:$0xff] }
 0x1ef   :  { %v1341_v36 = vld [vmem:[#allocation2 + $0x29] sm:$0xff]  ;;  %v2485_v41 = vpack.c.bf16 %v4941_v35, %v4943_v37  ;;  %v4988_v61 = vld [vmem:[#allocation2 + $0x18] sm:$0xff] }
 0x1f0   :  { %1307 = vst [vmem:[#allocation2 + $0x3d] sm:$0xf] %v1287_v32  ;;  %3790 = vmatmul.mubr.bf16.vlgmr.msra.gmra.mrb[12].mxu1 %v1345_v33  ;;  %v1346_v38 = vpack.c.bf16 %v1341_v36, %v1340_v31  ;;  %v4947_v40 = vld [vmem:[#allocation2 + $0x26] sm:$0xff]  ;;  %v1317_v62 = vpack.c.bf16 %v4988_v61, %v4934_v19  ;;  %v1592_v14 = vld [vmem:[#allocation2 + $0x1a] sm:$0xff]  ;;  %v4275_v33 = vld [vmem:[%s5277_s4 + $0xf0] sm:$0xff]  }
 0x1f1   :  { %3798 = vmatpush3.bf16.msra.mxu1 %v4923_v49  ;;  %v2486_v42 = vpack.c.bf16 %v4947_v40, %v4945_v39  ;;  %v4957_v45 = vld [vmem:[#allocation2 + $0x28] sm:$0xff]  ;;  %v4256_v49 = vld [vmem:[%s5277_s4 + $0x18] sm:$0xff]   ;;  %v1598_v20 = vpack.c.bf16 %v1592_v14, %v1591_v17  ;;  %v4273_v31 = vld [vmem:[%s5277_s4 + $0xe0] sm:$0xff]  }
 0x1f2   :  { %3793 = vmatprep.mubr.bf16.mxu1 %v1346_v38  ;;  %3799 = vmatprep.subr.bf16.mxu1 %v4254_v34  ;;  %v1318_v1 = vpack.c.bf16 %v4957_v45, %v4755_v48  ;;  %v1594_v16 = vld [vmem:[#allocation2 + $0x2a] sm:$0xff]  ;;  %v4272_v29 = vld [vmem:[%s5277_s4 + $0xd8] sm:$0xff]   ;;  %v4293_v19 = vld [vmem:[%s5277_s4 + $0x180] sm:$0xff]  }
 0x1f3   :  { %v1599_v22 = vpack.c.bf16 %v1594_v16, %v1593_v15  ;;  %v1737_v28 = vld [vmem:[#allocation2 + $0x6] sm:$0xff]  ;;  %v4276_v36 = vld [vmem:[%s5277_s4 + $0xf8] sm:$0xff]  }
 0x1f4   :  { %v1745_v30 = vpack.c.bf16 %v4943_v37, %v1737_v28  ;;  %v4274_v32 = vld [vmem:[%s5277_s4 + $0xe8] sm:$0xff]   ;;  %v1887_v15 = vld [vmem:[#allocation2 + $0x17] sm:$0xff]  ;;  %v1888_v16 = vld [vmem:[#allocation2 + $0x1f] sm:$0xff] }
 0x1f5   :  { %3800 = vmatpush3.bf16.msra.mxu1 %v4254_v34  ;;  %v1342_v46 = vld [vmem:[#allocation2 + $0x31] sm:$0xff]  ;;  %v1343_v47 = vld [vmem:[#allocation2 + $0x39] sm:$0x3]  ;;  %v4306_v34 = vld [vmem:[%s5280_s7] sm:$0xff]  }
 0x1f6   :  { %v4959_v50 = vld [vmem:[#allocation2 + $0x30] sm:$0xff]  ;;  %3801 = vmatprep.subr.bf16.mxu1 %v4255_v43  ;;  %v1347_v0 = vpack.c.bf16 %v1343_v47, %v1342_v46  ;;  %v1315_v3 = vld [vmem:[#allocation2 + $0x38] sm:$0x3]  ;;  %v1596_v26 = vld [vmem:[#allocation2 + $0x3a] sm:$0x3]  ;;  %3990 = vmatpush3.bf16.msra.mxu0 %v4306_v34  ;;  %v1746_v47 = vpack.c.bf16 %v4945_v39, %v4941_v35 }
 0x1f7   :  { %v2043_v51 = vpack.c.bf16 %v4959_v50, %v4957_v45  ;;  %v4967_v53 = vld [vmem:[#allocation2 + $0x2e] sm:$0xff]  ;;  %v4969_v54 = vld [vmem:[#allocation2 + $0x36] sm:$0xff]  ;;  %v1319_v5 = vpack.c.bf16 %v1315_v3, %v4959_v50  ;;  %3991 = vmatprep.subr.bf16.mxu0 %v4755_v48  ;;  %v4281_v3 = vld [vmem:[%s5277_s4 + $0x120] sm:$0xff]  }
 0x1f8   :  { %3794 = vmatmul.mubr.bf16.gmra.mrb[16].mxu1 %v1347_v0  ;;  %v2487_v55 = vpack.c.bf16 %v4969_v54, %v4967_v53  ;;  %v1595_v25 = vld [vmem:[#allocation2 + $0x32] sm:$0xff]  ;;  %v4308_v38 = vld [vmem:[%s5280_s7 + $0x8] sm:$0xff]   ;;  %v4297_v45 = vld [vmem:[%s5277_s4 + $0x1a0] sm:$0xff]  }
 0x1f9   :  { %3802 = vmatpush3.bf16.msra.mxu1 %v4255_v43  ;;  %3813 = vmatprep.mubr.bf16.mxu1 %v1316_v52  ;;  %v1600_v27 = vpack.c.bf16 %v1596_v26, %v1595_v25  ;;  %v4310_v43 = vld [vmem:[%s5280_s7 + $0x10] sm:$0xff]   ;;  %v4312_v46 = vld [vmem:[%s5280_s7 + $0x18] sm:$0xff]   ;;  %v4278_v0 = vld [vmem:[%s5277_s4 + $0x108] sm:$0xff]  }
 0x1fa   :  { %3803 = vmatprep.subr.bf16.mxu1 %v4256_v49  ;;  %3992 = vmatpush3.bf16.msra.mxu0 %v4308_v38  ;;  %v4314_v52 = vld [vmem:[%s5280_s7 + $0x20] sm:$0xff]   ;;  %v3288_v6 = vld [vmem:[%s5276_s0 + $0xa8] sm:$0xff]  ;;  %v3293_v26 = vld [vmem:[%s5276_s0 + $0xd0] sm:$0xf] }
 0x1fb   :  { %3993 = vmatprep.subr.bf16.mxu0 %v4755_v48  ;;  %v1890_v17 = vld [vmem:[#allocation2 + $0x2f] sm:$0xff]  ;;  %v4292_v18 = vld [vmem:[%s5277_s4 + $0x178] sm:$0xff]  }
 0x1fc   :  { %v3292_v25 = vld [vmem:[%s5276_s0 + $0xc8] sm:$0xff]  ;;  %v4324_v35 = vld [vmem:[%s5277_s4 + $0x238] sm:$0xff]  }
 0x1fd   :  { %3804 = vmatpush3.bf16.msra.mxu1 %v4256_v49  ;;  %v1747_v49 = vpack.c.bf16 %v4967_v53, %v4947_v40  ;;  %v2661_v28 = vpack.c.bf16 %v3293_v26, %v3292_v25  ;;  %v4290_v34 = vld [vmem:[%s5277_s4 + $0x168] sm:$0xff]   ;;  %v4317_v25 = vld [vmem:[%s5277_s4 + $0x210] sm:$0xff]   ;;  %v2335_v26 = vld [vmem:[#allocation2 + $0x3d] sm:$0xff] }
 0x1fe   :  { %3805 = vmatprep.subr.bf16.mxu1 %v4257_v56  ;;  %3994 = vmatpush3.bf16.msra.mxu0 %v4310_v43  ;;  %v4294_v38 = vld [vmem:[%s5277_s4 + $0x188] sm:$0xff]   ;;  %v4295_v43 = vld [vmem:[%s5277_s4 + $0x190] sm:$0xff]   ;;  %v2483_v37 = vld [vmem:[#allocation2 + $0x3e] sm:$0xff] }
 0x1ff   :  { %3995 = vmatprep.subr.bf16.mxu0 %v4755_v48  ;;  %v4298_v50 = vld [vmem:[%s5277_s4 + $0x1a8] sm:$0xff]  }
 0x201   :  { %3806 = vmatpush3.bf16.msra.mxu1 %v4257_v56  ;;  %v4279_v56 = vld [vmem:[%s5277_s4 + $0x110] sm:$0xff]  }
 0x202   :  { %3807 = vmatprep.subr.bf16.mxu1 %v4258_v57  ;;  %3996 = vmatpush3.bf16.msra.mxu0 %v4312_v46  ;;  %v2040_v46 = vld [vmem:[#allocation2 + $0x40] sm:$0x3] }
 0x203   :  { %3997 = vmatprep.subr.bf16.mxu0 %v4755_v48 }
 0x205   :  { %3808 = vmatpush3.bf16.msra.mxu1 %v4258_v57  ;;  %v1744_v57 = vld [vmem:[#allocation2 + $0x3e] sm:$0x3] }
 0x206   :  { %3809 = vmatprep.subr.bf16.mxu1 %v4259_v58  ;;  %3998 = vmatpush3.bf16.msra.mxu0 %v4314_v52  ;;  %v4300_v52 = vld [vmem:[%s5277_s4 + $0x1b8] sm:$0xff]  }
 0x207   :  { %3999 = vmatprep.subr.bf16.mxu0 %v4755_v48 }
 0x209   :  { %3810 = vmatpush3.bf16.msra.mxu1 %v4259_v58  ;;  %v1886_v58 = vld [vmem:[#allocation2 + $0xf] sm:$0xff] }
 0x20a   :  { %3811 = vmatprep.subr.bf16.mxu1 %v4260_v59 }
 0x20d   :  { %3812 = vmatpush3.bf16.msra.mxu1 %v4260_v59  ;;  %v4316_v59 = vld [vmem:[%s5280_s7 + $0x28] sm:$0xff]  }
 0x20e   :  { %3821 = vmatprep.subr.bf16.mxu1 %v4261_v60  ;;  %4000 = vmatpush3.bf16.msra.mxu0 %v4316_v59  ;;  %v2186_v59 = vld [vmem:[#allocation2 + $0x34] sm:$0xff] }
 0x20f   :  { %4001 = vmatprep.subr.bf16.mxu0 %v4755_v48 }
 0x210   :  { %3814 = vmatmul.mubr.bf16.vlgmr.msra.gmra.mrb[12].mxu1 %v1317_v62  ;;  %v1885_v62 = vld [vmem:[#allocation2 + $0x7] sm:$0xff] }
 0x211   :  { %3817 = vmatprep.mubr.bf16.mxu1 %v1318_v1  ;;  %3822 = vmatpush3.bf16.msra.mxu1 %v4261_v60  ;;  %v1748_v60 = vpack.c.bf16 %v1744_v57, %v4969_v54  ;;  %v1893_v1 = vpack.c.bf16 %v1886_v58, %v1885_v62  ;;  %v2184_v57 = vld [vmem:[#allocation2 + $0x24] sm:$0xff]  ;;  %v2185_v58 = vld [vmem:[#allocation2 + $0x2c] sm:$0xff] }
 0x212   :  { %3823 = vmatprep.subr.bf16.mxu1 %v4262_v63 }
 0x215   :  { %3824 = vmatpush3.bf16.msra.mxu1 %v4262_v63  ;;  %v4280_v63 = vld [vmem:[%s5277_s4 + $0x118] sm:$0xff]  }
 0x216   :  { %3825 = vmatprep.subr.bf16.mxu1 %v4263_v2 }
 0x218   :  { %3818 = vmatmul.mubr.bf16.gmra.mrb[16].mxu1 %v1319_v5  ;;  %v4282_v5 = vld [vmem:[%s5277_s4 + $0x128] sm:$0xff]  }
 0x219   :  { %3826 = vmatpush3.bf16.msra.mxu1 %v4263_v2  ;;  %3837 = vmatprep.mubr.bf16.mxu1 %v1597_v8  ;;  %v4318_v2 = vld [vmem:[%s5280_s7 + $0x30] sm:$0xff]  }
 0x21a   :  { %3827 = vmatprep.subr.bf16.mxu1 %v4264_v7  ;;  %4002 = vmatpush3.bf16.msra.mxu0 %v4318_v2  ;;  %v4283_v8 = vld [vmem:[%s5277_s4 + $0x130] sm:$0xff]  }
 0x21b   :  { %4003 = vmatprep.subr.bf16.mxu0 %v4755_v48  ;;  %v4303_v2 = vld [vmem:[%s5277_s4 + $0x1d0] sm:$0xff]  }
 0x21d   :  { %3828 = vmatpush3.bf16.msra.mxu1 %v4264_v7  ;;  %v3289_v7 = vld [vmem:[%s5276_s0 + $0xb0] sm:$0xff] }
 0x21e   :  { %3829 = vmatprep.subr.bf16.mxu1 %v4265_v9  ;;  %4004 = vmatpush3.bf16.msra.mxu0 %v4320_v4  ;;  %v2188_v4 = vld [vmem:[#allocation2 + $0x44] sm:$0x3] }
 0x221   :  { %3830 = vmatpush3.bf16.msra.mxu1 %v4265_v9  ;;  %v2659_v9 = vpack.c.bf16 %v3289_v7, %v3288_v6  ;;  %v2329_v7 = vld [vmem:[#allocation2 + $0xd] sm:$0xff] }
 0x222   :  { %3831 = vmatprep.subr.bf16.mxu1 %v4266_v10 }
 0x223   :  { %4006 = vmatmul.mubr.bf16.vlgmr.msra.gmra.mrb[12].mxu0 %v2659_v9 }
 0x224   :  { %4009 = vmatprep.mubr.msk.bf16.mxu0 %vm4327_vm0, %v4755_v48 }
 0x225   :  { %3832 = vmatpush3.bf16.msra.mxu1 %v4266_v10  ;;  %v4284_v10 = vld [vmem:[%s5277_s4 + $0x138] sm:$0xff]  }
 0x226   :  { %3833 = vmatprep.subr.bf16.mxu1 %v4267_v11 }
 0x229   :  { %3834 = vmatpush3.bf16.msra.mxu1 %v4267_v11  ;;  %v3290_v11 = vld [vmem:[%s5276_s0 + $0xb8] sm:$0xff] }
 0x22a   :  { %3835 = vmatprep.subr.bf16.mxu1 %v4268_v12 }
 0x22d   :  { %3836 = vmatpush3.bf16.msra.mxu1 %v4268_v12  ;;  %v3291_v12 = vld [vmem:[%s5276_s0 + $0xc0] sm:$0xff] }
 0x22e   :  { %3845 = vmatprep.subr.bf16.mxu1 %v4269_v13  ;;  %v2660_v14 = vpack.c.bf16 %v3291_v12, %v3290_v11  ;;  %v4307_v11 = vld [vmem:[%s5277_s4 + $0x1e8] sm:$0xff]   ;;  %v4309_v12 = vld [vmem:[%s5277_s4 + $0x1f0] sm:$0xff]  }
 0x230   :  { %3838 = vmatmul.mubr.bf16.vlgmr.msra.gmra.mrb[12].mxu1 %v1598_v20  ;;  %4010 = vmatmul.mubr.bf16.gmra.mrb[16].mxu0 %v2660_v14  ;;  %v1894_v20 = vpack.c.bf16 %v1888_v16, %v1887_v15  ;;  %v4313_v14 = vld [vmem:[%s5277_s4 + $0x200] sm:$0xff]  }
 0x231   :  { %3841 = vmatprep.mubr.bf16.mxu1 %v1599_v22  ;;  %3846 = vmatpush3.bf16.msra.mxu1 %v4269_v13  ;;  %v4285_v13 = vld [vmem:[%s5277_s4 + $0x140] sm:$0xff]   ;;  %v4286_v22 = vld [vmem:[%s5277_s4 + $0x148] sm:$0xff]  }
 0x232   :  { %3847 = vmatprep.subr.bf16.mxu1 %v4270_v21  ;;  %4013 = vmatprep.mubr.msk.bf16.mxu0 %vm4327_vm0, %v4755_v48  ;;  %v2331_v15 = vld [vmem:[#allocation2 + $0x1d] sm:$0xff]  ;;  %v2332_v16 = vld [vmem:[#allocation2 + $0x25] sm:$0xff] }
 0x235   :  { %3848 = vmatpush3.bf16.msra.mxu1 %v4270_v21  ;;  %v1889_v21 = vld [vmem:[#allocation2 + $0x27] sm:$0xff] }
 0x236   :  { %3849 = vmatprep.subr.bf16.mxu1 %v4271_v23 }
 0x238   :  { %3842 = vmatmul.mubr.bf16.gmra.mrb[16].mxu1 %v1600_v27  ;;  %v4287_v27 = vld [vmem:[%s5277_s4 + $0x150] sm:$0xff]   ;;  %4014 = vmatmul.mubr.bf16.gmra.mrb[20].mxu0 %v2661_v28 }
 0x239   :  { %3850 = vmatpush3.bf16.msra.mxu1 %v4271_v23  ;;  %3861 = vmatprep.mubr.bf16.mxu1 %v1745_v30  ;;  %v1895_v23 = vpack.c.bf16 %v1890_v17, %v1889_v21  ;;  %v1892_v30 = vld [vmem:[#allocation2 + $0x3f] sm:$0x3]  ;;  %v2333_v17 = vld [vmem:[#allocation2 + $0x2d] sm:$0xff]  ;;  %v2338_v21 = vpack.c.bf16 %v2332_v16, %v2331_v15 }
 0x23a   :  { %3851 = vmatprep.subr.bf16.mxu1 %v4272_v29 }
 0x23d   :  { %3852 = vmatpush3.bf16.msra.mxu1 %v4272_v29  ;;  %v1891_v29 = vld [vmem:[#allocation2 + $0x37] sm:$0xff] }
 0x23e   :  { %3853 = vmatprep.subr.bf16.mxu1 %v4273_v31 }
 0x241   :  { %3854 = vmatpush3.bf16.msra.mxu1 %v4273_v31  ;;  %v1896_v31 = vpack.c.bf16 %v1892_v30, %v1891_v29  ;;  %v4319_v29 = vld [vmem:[%s5277_s4 + $0x218] sm:$0xff]   ;;  %v4321_v30 = vld [vmem:[%s5277_s4 + $0x220] sm:$0xff]  }
 0x242   :  { %3855 = vmatprep.subr.bf16.mxu1 %v4274_v32 }
 0x245   :  { %3856 = vmatpush3.bf16.msra.mxu1 %v4274_v32  ;;  %v4288_v32 = vld [vmem:[%s5277_s4 + $0x158] sm:$0xff]  }
 0x246   :  { %3857 = vmatprep.subr.bf16.mxu1 %v4275_v33 }
 0x249   :  { %3858 = vmatpush3.bf16.msra.mxu1 %v4275_v33  ;;  %v4289_v33 = vld [vmem:[%s5277_s4 + $0x160] sm:$0xff]  }
 0x24a   :  { %3859 = vmatprep.subr.bf16.mxu1 %v4276_v36 }
 0x24d   :  { %3860 = vmatpush3.bf16.msra.mxu1 %v4276_v36  ;;  %v4291_v36 = vld [vmem:[%s5277_s4 + $0x170] sm:$0xff]  }
 0x24e   :  { %3869 = vmatprep.subr.bf16.mxu1 %v4277_v44 }
 0x250   :  { %3862 = vmatmul.mubr.bf16.vlgmr.msra.gmra.mrb[12].mxu1 %v1746_v47  ;;  %v2182_v47 = vld [vmem:[#allocation2 + $0x14] sm:$0xff] }
 0x251   :  { %3865 = vmatprep.mubr.bf16.mxu1 %v1747_v49  ;;  %3870 = vmatpush3.bf16.msra.mxu1 %v4277_v44  ;;  %v2039_v44 = vld [vmem:[#allocation2 + $0x38] sm:$0xff] }
 0x252   :  { %3871 = vmatprep.subr.bf16.mxu1 %v4278_v0 }
 0x255   :  { %3872 = vmatpush3.bf16.msra.mxu1 %v4278_v0  ;;  %v4296_v0 = vld [vmem:[%s5277_s4 + $0x198] sm:$0xff]  }
 0x256   :  { %3873 = vmatprep.subr.bf16.mxu1 %v4279_v56 }
 0x258   :  { %3866 = vmatmul.mubr.bf16.gmra.mrb[16].mxu1 %v1748_v60  ;;  %v2183_v60 = vld [vmem:[#allocation2 + $0x1c] sm:$0xff] }
 0x259   :  { %3874 = vmatpush3.bf16.msra.mxu1 %v4279_v56  ;;  %3885 = vmatprep.mubr.bf16.mxu1 %v1893_v1  ;;  %v4301_v56 = vld [vmem:[%s5277_s4 + $0x1c0] sm:$0xff]   ;;  %v2190_v62 = vpack.c.bf16 %v2184_v57, %v2183_v60  ;;  %v2191_v1 = vpack.c.bf16 %v2186_v59, %v2185_v58 }
 0x25a   :  { %3875 = vmatprep.subr.bf16.mxu1 %v4280_v63  ;;  %v3286_v59 = vld [vmem:[%s5282_s5] ss:$0 sm:$0xff] }
 0x25d   :  { %3876 = vmatpush3.bf16.msra.mxu1 %v4280_v63  ;;  %v4302_v63 = vld [vmem:[%s5277_s4 + $0x1c8] sm:$0xff]  }
 0x25e   :  { %3877 = vmatprep.subr.bf16.mxu1 %v4281_v3 }
 0x261   :  { %3878 = vmatpush3.bf16.msra.mxu1 %v4281_v3  ;;  %v2187_v3 = vld [vmem:[#allocation2 + $0x3c] sm:$0xff] }
 0x262   :  { %3879 = vmatprep.subr.bf16.mxu1 %v4282_v5  ;;  %v2192_v6 = vpack.c.bf16 %v2188_v4, %v2187_v3 }
 0x265   :  { %3880 = vmatpush3.bf16.msra.mxu1 %v4282_v5  ;;  %v2330_v5 = vld [vmem:[#allocation2 + $0x15] sm:$0xff] }
 0x266   :  { %3881 = vmatprep.subr.bf16.mxu1 %v4283_v8  ;;  %v2337_v9 = vpack.c.bf16 %v2330_v5, %v2329_v7 }
 0x269   :  { %3882 = vmatpush3.bf16.msra.mxu1 %v4283_v8  ;;  %v4304_v8 = vld [vmem:[%s5277_s4 + $0x1d8] sm:$0xff]  }
 0x26a   :  { %3883 = vmatprep.subr.bf16.mxu1 %v4284_v10 }
 0x26d   :  { %3884 = vmatpush3.bf16.msra.mxu1 %v4284_v10  ;;  %v4305_v10 = vld [vmem:[%s5277_s4 + $0x1e0] sm:$0xff]  }
 0x26e   :  { %3893 = vmatprep.subr.bf16.mxu1 %v4285_v13 }
 0x270   :  { %3886 = vmatmul.mubr.bf16.vlgmr.msra.gmra.mrb[12].mxu1 %v1894_v20  ;;  %v2334_v20 = vld [vmem:[#allocation2 + $0x35] sm:$0xff] }
 0x271   :  { %3889 = vmatprep.mubr.bf16.mxu1 %v1895_v23  ;;  %3894 = vmatpush3.bf16.msra.mxu1 %v4285_v13  ;;  %v4311_v13 = vld [vmem:[%s5277_s4 + $0x1f8] sm:$0xff]   ;;  %v2339_v23 = vpack.c.bf16 %v2334_v20, %v2333_v17 }
 0x272   :  { %3895 = vmatprep.subr.bf16.mxu1 %v4286_v22 }
 0x275   :  { %3896 = vmatpush3.bf16.msra.mxu1 %v4286_v22  ;;  %v4315_v22 = vld [vmem:[%s5277_s4 + $0x208] sm:$0xff]  }
 0x276   :  { %3897 = vmatprep.subr.bf16.mxu1 %v4287_v27 }
 0x278   :  { %3890 = vmatmul.mubr.bf16.gmra.mrb[16].mxu1 %v1896_v31  ;;  %v4322_v31 = vld [vmem:[%s5277_s4 + $0x228] sm:$0xff]  }
 0x279   :  { %3898 = vmatpush3.bf16.msra.mxu1 %v4287_v27  ;;  %3909 = vmatprep.mubr.bf16.mxu1 %v2041_v24  ;;  %v2042_v24 = vpack.c.bf16 %v4755_v48, %v4988_v61  ;;  %v2044_v48 = vpack.c.bf16 %v2040_v46, %v2039_v44  ;;  %v2181_v61 = vld [vmem:[#allocation2 + $0xc] sm:$0xff]  ;;  %v2336_v27 = vld [vmem:[#allocation2 + $0x45] sm:$0x3] }
 0x27a   :  { %3899 = vmatprep.subr.bf16.mxu1 %v4288_v32  ;;  %v2189_v49 = vpack.c.bf16 %v2182_v47, %v2181_v61  ;;  %v2340_v28 = vpack.c.bf16 %v2336_v27, %v2335_v26 }
 0x27d   :  { %3900 = vmatpush3.bf16.msra.mxu1 %v4288_v32  ;;  %v4323_v32 = vld [vmem:[%s5277_s4 + $0x230] sm:$0xff]  }
 0x27e   :  { %3901 = vmatprep.subr.bf16.mxu1 %v4289_v33 }
 0x281   :  { %3902 = vmatpush3.bf16.msra.mxu1 %v4289_v33 }
 0x282   :  { %3903 = vmatprep.subr.bf16.mxu1 %v4290_v34 }
 0x285   :  { %3904 = vmatpush3.bf16.msra.mxu1 %v4290_v34 }
 0x286   :  { %3905 = vmatprep.subr.bf16.mxu1 %v4291_v36 }
 0x289   :  { %3906 = vmatpush3.bf16.msra.mxu1 %v4291_v36 }
 0x28a   :  { %3907 = vmatprep.subr.bf16.mxu1 %v4292_v18 }
 0x28d   :  { %3908 = vmatpush3.bf16.msra.mxu1 %v4292_v18 }
 0x28e   :  { %3917 = vmatprep.subr.bf16.mxu1 %v4293_v19 }
 0x290   :  { %3910 = vmatmul.mubr.bf16.vlgmr.msra.gmra.mrb[12].mxu1 %v2042_v24  ;;  %v3294_v24 = vld [vmem:[%s5281_s8] ss:$0 sm:$0xff] }
 0x291   :  { %3913 = vmatprep.mubr.bf16.mxu1 %v2043_v51  ;;  %3918 = vmatpush3.bf16.msra.mxu1 %v4293_v19  ;;  %v4299_v51 = vld [vmem:[%s5277_s4 + $0x1b0] sm:$0xff]  }
 0x292   :  { %3919 = vmatprep.subr.bf16.mxu1 %v4294_v38 }
 0x295   :  { %3920 = vmatpush3.bf16.msra.mxu1 %v4294_v38 }
 0x296   :  { %3921 = vmatprep.subr.bf16.mxu1 %v4295_v43 }
 0x298   :  { %3914 = vmatmul.mubr.bf16.gmra.mrb[16].mxu1 %v2044_v48 }
 0x299   :  { %3922 = vmatpush3.bf16.msra.mxu1 %v4295_v43  ;;  %3933 = vmatprep.mubr.bf16.mxu1 %v2189_v49 }
 0x29a   :  { %3923 = vmatprep.subr.bf16.mxu1 %v4296_v0 }
 0x29d   :  { %3924 = vmatpush3.bf16.msra.mxu1 %v4296_v0 }
 0x29e   :  { %3925 = vmatprep.subr.bf16.mxu1 %v4297_v45 }
 0x2a1   :  { %3926 = vmatpush3.bf16.msra.mxu1 %v4297_v45 }
 0x2a2   :  { %3927 = vmatprep.subr.bf16.mxu1 %v4298_v50 }
 0x2a5   :  { %3928 = vmatpush3.bf16.msra.mxu1 %v4298_v50 }
 0x2a6   :  { %3929 = vmatprep.subr.bf16.mxu1 %v4299_v51 }
 0x2a9   :  { %3930 = vmatpush3.bf16.msra.mxu1 %v4299_v51 }
 0x2aa   :  { %3931 = vmatprep.subr.bf16.mxu1 %v4300_v52 }
 0x2ad   :  { %3932 = vmatpush3.bf16.msra.mxu1 %v4300_v52 }
 0x2ae   :  { %3941 = vmatprep.subr.bf16.mxu1 %v4301_v56 }
 0x2b0   :  { %3934 = vmatmul.mubr.bf16.vlgmr.msra.gmra.mrb[12].mxu1 %v2190_v62  ;;  %v3287_v62 = vld [vmem:[%s5283_s6] ss:$0 sm:$0xff] }
 0x2b1   :  { %3937 = vmatprep.mubr.bf16.mxu1 %v2191_v1  ;;  %3942 = vmatpush3.bf16.msra.mxu1 %v4301_v56 }
 0x2b2   :  { %3943 = vmatprep.subr.bf16.mxu1 %v4302_v63 }
 0x2b5   :  { %3944 = vmatpush3.bf16.msra.mxu1 %v4302_v63 }
 0x2b6   :  { %3945 = vmatprep.subr.bf16.mxu1 %v4303_v2 }
 0x2b8   :  { %3938 = vmatmul.mubr.bf16.gmra.mrb[16].mxu1 %v2192_v6 }
 0x2b9   :  { %3946 = vmatpush3.bf16.msra.mxu1 %v4303_v2  ;;  %3957 = vmatprep.mubr.bf16.mxu1 %v2337_v9 }
 0x2ba   :  { %3947 = vmatprep.subr.bf16.mxu1 %v4304_v8 }
 0x2bd   :  { %3948 = vmatpush3.bf16.msra.mxu1 %v4304_v8 }
 0x2be   :  { %3949 = vmatprep.subr.bf16.mxu1 %v4305_v10 }
 0x2c1   :  { %3950 = vmatpush3.bf16.msra.mxu1 %v4305_v10 }
 0x2c2   :  { %3951 = vmatprep.subr.bf16.mxu1 %v4307_v11 }
 0x2c5   :  { %3952 = vmatpush3.bf16.msra.mxu1 %v4307_v11 }
 0x2c6   :  { %3953 = vmatprep.subr.bf16.mxu1 %v4309_v12 }
 0x2c9   :  { %3954 = vmatpush3.bf16.msra.mxu1 %v4309_v12 }
 0x2ca   :  { %3955 = vmatprep.subr.bf16.mxu1 %v4311_v13 }
 0x2cd   :  { %3956 = vmatpush3.bf16.msra.mxu1 %v4311_v13 }
 0x2ce   :  { %3965 = vmatprep.subr.bf16.mxu1 %v4313_v14 }
 0x2d0   :  { %3958 = vmatmul.mubr.bf16.vlgmr.msra.gmra.mrb[12].mxu1 %v2338_v21 }
 0x2d1   :  { %3961 = vmatprep.mubr.bf16.mxu1 %v2339_v23  ;;  %3966 = vmatpush3.bf16.msra.mxu1 %v4313_v14 }
 0x2d2   :  { %3967 = vmatprep.subr.bf16.mxu1 %v4315_v22 }
 0x2d5   :  { %3968 = vmatpush3.bf16.msra.mxu1 %v4315_v22 }
 0x2d6   :  { %3969 = vmatprep.subr.bf16.mxu1 %v4317_v25 }
 0x2d8   :  { %3962 = vmatmul.mubr.bf16.gmra.mrb[16].mxu1 %v2340_v28 }
 0x2d9   :  { %3970 = vmatpush3.bf16.msra.mxu1 %v4317_v25  ;;  %3981 = vmatprep.mubr.bf16.mxu1 %v2485_v41  ;;  %v2484_v41 = vld [vmem:[#allocation2 + $0x46] sm:$0x3] }
 0x2da   :  { %3971 = vmatprep.subr.bf16.mxu1 %v4319_v29  ;;  %v2488_v33 = vpack.c.bf16 %v2484_v41, %v2483_v37 }
 0x2dd   :  { %3972 = vmatpush3.bf16.msra.mxu1 %v4319_v29 }
 0x2de   :  { %3973 = vmatprep.subr.bf16.mxu1 %v4321_v30 }
 0x2e1   :  { %3974 = vmatpush3.bf16.msra.mxu1 %v4321_v30 }
 0x2e2   :  { %3975 = vmatprep.subr.bf16.mxu1 %v4322_v31 }
 0x2e5   :  { %3976 = vmatpush3.bf16.msra.mxu1 %v4322_v31 }
 0x2e6   :  { %3977 = vmatprep.subr.bf16.mxu1 %v4323_v32 }
 0x2e9   :  { %3978 = vmatpush3.bf16.msra.mxu1 %v4323_v32 }
 0x2ea   :  { %3979 = vmatprep.subr.bf16.mxu1 %v4324_v35 }
 0x2ed   :  { %3980 = vmatpush3.bf16.msra.mxu1 %v4324_v35 }
 0x2f0   :  { %3982 = vmatmul.mubr.bf16.vlgmr.msra.gmra.mrb[12].mxu1 %v2486_v42 }
 0x2f1   :  { %3985 = vmatprep.mubr.bf16.mxu1 %v2487_v55 }
 0x2f6   :  { %v2767_v34 = vpop.f32.mrb[12].mxu0 }
 0x2f7   :  { %v4007_v36 = vpop.f32.mrb[13].mxu0  ;;  %v2768_v38 = vadd.f32 %v3294_v24, %v2767_v34 }
 0x2f8   :  { %3986 = vmatmul.mubr.bf16.gmra.mrb[16].mxu1 %v2488_v33  ;;  %v2770_v18 = vpop.f32.mrb[14].mxu0 }
 0x2f9   :  { %v4008_v19 = vpop.f32.mrb[15].mxu0  ;;  %v2771_v43 = vadd.f32 %v3294_v24, %v2770_v18  ;;  %v2796_v53 = vrot.slane %v2768_v38, 7 }
 0x2fb   :  { %v2797_v54 = vrot.slane %v2771_v43, 7  ;;  %v2814_v55 = vrot.slane %v2771_v43, 5  ;;  %v2807_v10 = vrot.slane %v2771_v43, 6 }
 0x2fd   :  { %v2798_v0 = vsel %vm2795_vm2, %v2796_v53, %v2797_v54 }
 0x303   :  { %v2775_v39 = vpop.f32.mrb[16].mxu0 }
 0x304   :  { %v2776_v40 = vadd.f32 %v3294_v24, %v2775_v39  ;;  %v4011_v42 = vpop.f32.mrb[17].mxu0 }
 0x305   :  { %v2778_v44 = vpop.f32.mrb[18].mxu0 }
 0x306   :  { %v2815_v46 = vrot.slane %v2776_v40, 5  ;;  %v4012_v47 = vpop.f32.mrb[19].mxu0  ;;  %v2779_v48 = vadd.f32 %v3294_v24, %v2778_v44 }
 0x308   :  { %v2816_v61 = vsel %vm2813_vm1, %v2814_v55, %v2815_v46  ;;  %v2829_v45 = vrot.slane %v2779_v48, 4  ;;  %v2822_v37 = vrot.slane %v2779_v48, 5 }
 0x30b   :  { %v2783_v49 = vpop.f32.mrb[20].mxu0 }
 0x30c   :  { %v2784_v50 = vadd.f32 %v3294_v24, %v2783_v49  ;;  %v4015_v51 = vpop.f32.mrb[21].mxu0 }
 0x30d   :  { %v2786_v57 = vpop.f32.mrb[22].mxu0 }
 0x30e   :  { %v2830_v52 = vrot.slane %v2784_v50, 4  ;;  %v4016_v58 = vpop.f32.mrb[23].mxu0  ;;  %v2787_v9 = vadd.f32 %v3294_v24, %v2786_v57  ;;  %v2836_v22 = vrot.slane %v2784_v50, 3 }
 0x310   :  { %v2831_v56 = vsel %vm2828_vm3, %v2829_v45, %v2830_v52  ;;  %v2842_v25 = vrot.slane %v2787_v9, 2 }
 0x3c3   :  { %v3983_v60 = vpop.f32.mrb[12].mxu1 }
 0x3c4   :  { %v2634_v63 = vmul.f32 %v3983_v60, %v3286_v59  ;;  %v2588_v1 = vpop.f32.mrb[13].mxu1 }
 0x3c5   :  { %v2632_v2 = vmul.f32 %v3286_v59, %v2588_v1  ;;  %v3984_v3 = vpop.f32.mrb[14].mxu1 }
 0x3c6   :  { %v2648_v4 = vadd.f32 %v3287_v62, %v2634_v63  ;;  %v2591_v5 = vpop.f32.mrb[15].mxu1 }
 0x3c7   :  { %v2646_v6 = vadd.f32 %v3287_v62, %v2632_v2  ;;  %v2633_v7 = vmul.f32 %v3286_v59, %v2591_v5 }
 0x3c8   :  { %v2818_v8 = vadd.f32 %v2816_v61, %v2648_v4 }
 0x3c9   :  { %v2790_v11 = vadd.f32 %v2768_v38, %v2646_v6  ;;  %v2801_v12 = vadd.f32 %v2796_v53, %v2646_v6  ;;  %v2647_v13 = vadd.f32 %v3287_v62, %v2633_v7 }
 0x3ca   :  { %v2819_v14 = vmax.f32 %v2818_v8, 0.0 }
 0x3cb   :  { %v2791_v15 = vmax.f32 %v2790_v11, 0.0  ;;  %v2803_v16 = vmax.f32 %v2801_v12, 0.0  ;;  %v2802_v17 = vadd.f32 %v2798_v0, %v2647_v13  ;;  %v2809_v20 = vadd.f32 %v2807_v10, %v2647_v13  ;;  %v3987_v21 = vpop.f32.mrb[16].mxu1 }
 0x3cc   :  { %2820 = vst [vmem:[%s5284_s9 + $0xa] sm:$0x3c] %v2819_v14  ;;  %v2637_v23 = vmul.f32 %v3987_v21, %v3286_v59  ;;  %v2603_v26 = vpop.f32.mrb[17].mxu1 }
 0x3cd   :  { %2792 = vst [vmem:[%s5284_s9] sm:$0xf] %v2791_v15  ;;  %2805 = vst [vmem:[%s5284_s9 - $0x2] sm:$0xc0] %v2803_v16  ;;  %v2804_v27 = vmax.f32 %v2802_v17, 0.0  ;;  %v2810_v28 = vmax.f32 %v2809_v20, 0.0  ;;  %v2635_v29 = vmul.f32 %v3286_v59, %v2603_v26  ;;  %v3988_v30 = vpop.f32.mrb[18].mxu1 }
 0x3ce   :  { %v2651_v31 = vadd.f32 %v3287_v62, %v2637_v23  ;;  %v2638_v32 = vmul.f32 %v3988_v30, %v3286_v59  ;;  %v2606_v35 = vpop.f32.mrb[19].mxu1 }
 0x3cf   :  { %2806 = vst [vmem:[%s5284_s9 + $0x6] sm:$0x3] %v2804_v27  ;;  %2811 = vst [vmem:[%s5284_s9 + $0x4] sm:$0xf0] %v2810_v28  ;;  %v2649_v41 = vadd.f32 %v3287_v62, %v2635_v29  ;;  %v2636_v33 = vmul.f32 %v3286_v59, %v2606_v35 }
 0x3d0   :  { %v2838_v34 = vadd.f32 %v2836_v22, %v2651_v31  ;;  %v2844_v36 = vadd.f32 %v2842_v25, %v2651_v31  ;;  %v2652_v18 = vadd.f32 %v3287_v62, %v2638_v32 }
 0x3d1   :  { %v2824_v19 = vadd.f32 %v2822_v37, %v2649_v41  ;;  %v2650_v24 = vadd.f32 %v3287_v62, %v2636_v33 }
 0x3d2   :  { %v2839_v38 = vmax.f32 %v2838_v34, 0.0  ;;  %v2846_v43 = vmax.f32 %v2844_v36, 0.0  ;;  %v2845_v39 = vadd.f32 %v2842_v25, %v2652_v18 }
 0x3d3   :  { %v2825_v40 = vmax.f32 %v2824_v19, 0.0  ;;  %v2833_v42 = vadd.f32 %v2831_v56, %v2650_v24 }
 0x3d4   :  { %2840 = vst [vmem:[%s5284_s9 + $0x18] sm:$0xf] %v2839_v38  ;;  %2848 = vst [vmem:[%s5284_s9 + $0x16] sm:$0xc0] %v2846_v43  ;;  %v2847_v44 = vmax.f32 %v2845_v39, 0.0 }
 0x3d5   :  { %2826 = vst [vmem:[%s5284_s9 + $0xc] sm:$0xf0] %v2825_v40  ;;  %v2834_v53 = vmax.f32 %v2833_v42, 0.0 }
 0x3d6   :  { %2849 = vst [vmem:[%s5284_s9 + $0x1e] sm:$0x3] %v2847_v44 }
 0x3d7   :  { %2835 = vst [vmem:[%s5284_s9 + $0x12] sm:$0x3c] %v2834_v53 }

// kernel: rescnn_forward.3
= control target key start
LH: loop header
LB: loop body
LE: loop exit
PB: predicated region body
PF: predicated region fallthrough
CT: control target
= control target key end

     0   :  { %vm394_vm0 = vcmask 1041408   ;;  %vm395_vm1 = vcmask 1042432   ;;  %vm273_vm2 = vcmask 171008   ;;  %v7660_v1 = vmov 65535   ;;  %s10948_s1 = inlined_call_operand.vmem [shape: bf16[7,21,128], index: 1, kind: input, shape index: {}]   ;;  %s10949_s0 = inlined_call_operand.vmem [shape: f32[2,680,21], index: 0, kind: input, shape index: {}]   ;;  %s10950_s2 = inlined_call_operand.vmem [shape: f32[1,128], index: 2, kind: input, shape index: {}]   ;;  %s10951_s3 = inlined_call_operand.vmem [shape: f32[1,128], index: 3, kind: input, shape index: {}]   ;;  %s10952_s4 = inlined_call_operand.vmem [shape: f32[593,128], index: 4, kind: output, shape index: {}]  }
   0x1   :  { %v7643_v0 = vld [vmem:[%s10948_s1 + $0xc] sm:$0xff]   ;;  %v396_v2 = vsel %vm394_vm0, 4294967295, %v7660_v1  ;;  %v7692_v3 = vld [vmem:[%s10948_s1 + $0x24] sm:$0xff]   ;;  %v7645_v5 = vld [vmem:[%s10948_s1 + $0x14] ss:$0 sps:$4 sm:$0x77]  }
   0x2   :  { %v7694_v4 = vsel %vm395_vm1, %v396_v2, 0  ;;  %6573 = vmatprep.subr.bf16.mxu1 %v7643_v0  ;;  %v5728_v6 = vld [vmem:[%s10949_s0 + $0x2a8] sm:$0xff]  ;;  %6825 = vmatprep.subr.bf16.mxu0 %v7692_v3  ;;  %v5729_v8 = vld [vmem:[%s10949_s0 + $0x2b0] sm:$0xff]  ;;  %v5939_v11 = vld [vmem:[%s10949_s0 + $0x2b9] sm:$0xff]  ;;  %vm4963_vm3 = vcmask 1046528  }
   0x3   :  { %6574 = vmatpush3.bf16.msra.mxu1 %v7643_v0  ;;  %v7646_v7 = vld [vmem:[%s10948_s1 + $0x2c] ss:$0 sps:$4 sm:$0x77]   ;;  %6826 = vmatpush3.bf16.msra.mxu0 %v7692_v3  ;;  %v399_v9 = vand.u32 %v7645_v5, %v7694_v4  ;;  %v220_v10 = vpack.c.bf16 %v5729_v8, %v5728_v6  ;;  %v5940_v12 = vld [vmem:[%s10949_s0 + $0x2c1] sm:$0xff]  ;;  %v5730_v13 = vld [vmem:[%s10949_s0 + $0x2b8] sm:$0xff] }
   0x4   :  { %v7721_v14 = vand.u32 %v7646_v7, %v7694_v4  ;;  %v1994_v15 = vpack.c.bf16 %v5940_v12, %v5939_v11  ;;  %v5731_v16 = vld [vmem:[%s10949_s0 + $0x2c0] sm:$0xff]  ;;  %v5941_v19 = vld [vmem:[%s10949_s0 + $0x2c9] sm:$0xff]  ;;  %v5942_v20 = vld [vmem:[%s10949_s0 + $0x2d1] sm:$0xff] }
   0x5   :  { %6575 = vmatprep.subr.bf16.mxu1 %v399_v9  ;;  %6577 = vmatprep.mubr.msk.bf16.mxu1 %vm273_vm2, %v220_v10  ;;  %v221_v17 = vpack.c.bf16 %v5731_v16, %v5730_v13  ;;  %v7647_v18 = vld [vmem:[%s10948_s1] sm:$0xff]   ;;  %v1995_v21 = vpack.c.bf16 %v5942_v20, %v5941_v19  ;;  %v7648_v22 = vld [vmem:[%s10948_s1 + $0x30] sm:$0xff]   ;;  %v5732_v23 = vld [vmem:[%s10949_s0 + $0x2c8] sm:$0xff] }
   0x6   :  { %6827 = vmatprep.subr.bf16.mxu0 %v7721_v14  ;;  %6829 = vmatprep.mubr.msk.bf16.mxu0 %vm273_vm2, %v1994_v15  ;;  %v5733_v24 = vld [vmem:[%s10949_s0 + $0x2d0] sm:$0xff]  ;;  %v5943_v25 = vld [vmem:[%s10949_s0 + $0x2d9] sm:$0xff]  ;;  %v5944_v27 = vld [vmem:[%s10949_s0 + $0x2e1] sm:$0xff] }
   0x7   :  { %6576 = vmatpush3.bf16.msra.mxu1 %v399_v9  ;;  %6828 = vmatpush3.bf16.msra.mxu0 %v7721_v14  ;;  %v222_v26 = vpack.c.bf16 %v5733_v24, %v5732_v23  ;;  %v1996_v28 = vpack.c.bf16 %v5944_v27, %v5943_v25  ;;  %v5734_v29 = vld [vmem:[%s10949_s0 + $0x2d8] sm:$0xff]  ;;  %v5735_v30 = vld [vmem:[%s10949_s0 + $0x2e0] sm:$0xff]  ;;  %v5945_v31 = vld [vmem:[%s10949_s0 + $0x2e9] sm:$0xff] }
   0x8   :  { %6657 = vmatprep.subr.bf16.mxu1 %v7647_v18  ;;  %6909 = vmatprep.subr.bf16.mxu0 %v7648_v22  ;;  %v5946_v32 = vld [vmem:[%s10949_s0 + $0x2f1] sm:$0xff]  ;;  %v5736_v33 = vld [vmem:[%s10949_s0 + $0x2e8] sm:$0xff]  ;;  %v5947_v35 = vld [vmem:[%s10949_s0 + $0x2f9] sm:$0xff]  ;;  %v223_v37 = vpack.c.bf16 %v5735_v30, %v5734_v29 }
   0x9   :  { %v5737_v34 = vld [vmem:[%s10949_s0 + $0x2f0] sm:$0xff]  ;;  %v5948_v36 = vld [vmem:[%s10949_s0 + $0x301] sm:$0xff]  ;;  %v1997_v38 = vpack.c.bf16 %v5946_v32, %v5945_v31  ;;  %v5738_v41 = vld [vmem:[%s10949_s0 + $0x2f8] sm:$0xff] }
   0xa   :  { %6578 = vmatmul.mubr.msk.bf16.vlgmr.msra.gmra.mrb[0].mxu1 %vm273_vm2, %v221_v17  ;;  %6830 = vmatmul.mubr.msk.bf16.vlgmr.msra.gmra.mrb[0].mxu0 %vm273_vm2, %v1995_v21  ;;  %v224_v39 = vpack.c.bf16 %v5737_v34, %v5736_v33  ;;  %v1998_v40 = vpack.c.bf16 %v5948_v36, %v5947_v35  ;;  %v5739_v42 = vld [vmem:[%s10949_s0 + $0x300] sm:$0xff]  ;;  %v5949_v43 = vld [vmem:[%s10949_s0 + $0x309] sm:$0xff]  ;;  %v5950_v44 = vld [vmem:[%s10949_s0 + $0x311] sm:$0xff] }
   0xb   :  { %6658 = vmatpush3.bf16.msra.mxu1 %v7647_v18  ;;  %6910 = vmatpush3.bf16.msra.mxu0 %v7648_v22  ;;  %v5740_v45 = vld [vmem:[%s10949_s0 + $0x308] sm:$0xff]  ;;  %v5741_v46 = vld [vmem:[%s10949_s0 + $0x310] sm:$0xff]  ;;  %v5951_v47 = vld [vmem:[%s10949_s0 + $0x319] sm:$0xff]  ;;  %v225_v50 = vpack.c.bf16 %v5739_v42, %v5738_v41  ;;  %v1999_v51 = vpack.c.bf16 %v5950_v44, %v5949_v43 }
   0xc   :  { %6581 = vmatprep.mubr.msk.bf16.mxu1 %vm273_vm2, %v222_v26  ;;  %6833 = vmatprep.mubr.msk.bf16.mxu0 %vm273_vm2, %v1996_v28  ;;  %v5952_v48 = vld [vmem:[%s10949_s0 + $0x321] sm:$0xff]  ;;  %v7649_v49 = vld [vmem:[%s10948_s1 + $0x38] ss:$0 sps:$4 sm:$0x77]   ;;  %v226_v52 = vpack.c.bf16 %v5741_v46, %v5740_v45  ;;  %v5953_v57 = vld [vmem:[%s10949_s0 + $0x329] sm:$0xff] }
   0xd   :  { %v2850_v53 = vand.u32 %v7649_v49, %v7694_v4  ;;  %v2000_v54 = vpack.c.bf16 %v5952_v48, %v5951_v47  ;;  %v5742_v55 = vld [vmem:[%s10949_s0 + $0x318] sm:$0xff]  ;;  %v5743_v56 = vld [vmem:[%s10949_s0 + $0x320] sm:$0xff]  ;;  %v5744_v59 = vld [vmem:[%s10949_s0 + $0x328] sm:$0xff] }
   0xe   :  { %v5954_v58 = vld [vmem:[%s10949_s0 + $0x331] sm:$0xff]  ;;  %v5955_v61 = vld [vmem:[%s10949_s0 + $0x339] sm:$0xff]  ;;  %v5956_v62 = vld [vmem:[%s10949_s0 + $0x341] sm:$0xff]  ;;  %v227_v63 = vpack.c.bf16 %v5743_v56, %v5742_v55 }
   0xf   :  { %6911 = vmatprep.subr.bf16.mxu0 %v2850_v53  ;;  %v5745_v60 = vld [vmem:[%s10949_s0 + $0x330] sm:$0xff]  ;;  %v2001_v0 = vpack.c.bf16 %v5954_v58, %v5953_v57  ;;  %v2002_v2 = vpack.c.bf16 %v5956_v62, %v5955_v61  ;;  %v5746_v5 = vld [vmem:[%s10949_s0 + $0x338] sm:$0xff]  ;;  %v5747_v6 = vld [vmem:[%s10949_s0 + $0x340] sm:$0xff] }
  0x10   :  { %6912 = vmatpush3.bf16.msra.mxu0 %v2850_v53  ;;  %v228_v1 = vpack.c.bf16 %v5745_v60, %v5744_v59  ;;  %v5957_v7 = vld [vmem:[%s10949_s0 + $0x349] sm:$0xff]  ;;  %v5958_v8 = vld [vmem:[%s10949_s0 + $0x351] sm:$0xff]  ;;  %v7650_v11 = vld [vmem:[%s10948_s1 + $0x8] ss:$0 sps:$4 sm:$0x77]   ;;  %v229_v17 = vpack.c.bf16 %v5747_v6, %v5746_v5 }
  0x11   :  { %v5748_v9 = vld [vmem:[%s10949_s0 + $0x348] sm:$0xff]  ;;  %v5749_v10 = vld [vmem:[%s10949_s0 + $0x350] sm:$0xff]  ;;  %v7870_v12 = vld [vmem:[%s10948_s1 + $0x3c] sm:$0xff]   ;;  %v881_v16 = vand.u32 %v7650_v11, %v7694_v4  ;;  %v2003_v18 = vpack.c.bf16 %v5958_v8, %v5957_v7 }
  0x12   :  { %6582 = vmatmul.mubr.msk.bf16.gmra.mrb[4].mxu1 %vm273_vm2, %v223_v37  ;;  %6834 = vmatmul.mubr.msk.bf16.gmra.mrb[4].mxu0 %vm273_vm2, %v1997_v38  ;;  %v5959_v13 = vld [vmem:[%s10949_s0 + $0x359] sm:$0xff]  ;;  %v5960_v15 = vld [vmem:[%s10949_s0 + $0x361] sm:$0xff]  ;;  %v230_v19 = vpack.c.bf16 %v5749_v10, %v5748_v9  ;;  %v5961_v23 = vld [vmem:[%s10949_s0 + $0x369] sm:$0xff] }
  0x13   :  { %6585 = vmatprep.mubr.msk.bf16.mxu1 %vm273_vm2, %v224_v39  ;;  %6837 = vmatprep.mubr.msk.bf16.mxu0 %vm273_vm2, %v1998_v40  ;;  %v2004_v20 = vpack.c.bf16 %v5960_v15, %v5959_v13  ;;  %v5750_v21 = vld [vmem:[%s10949_s0 + $0x358] sm:$0xff]  ;;  %v5751_v22 = vld [vmem:[%s10949_s0 + $0x360] sm:$0xff]  ;;  %v5752_v25 = vld [vmem:[%s10949_s0 + $0x368] sm:$0xff] }
  0x14   :  { %6993 = vmatprep.subr.bf16.mxu0 %v7870_v12  ;;  %6659 = vmatprep.subr.bf16.mxu1 %v881_v16  ;;  %v5962_v24 = vld [vmem:[%s10949_s0 + $0x371] sm:$0xff]  ;;  %v5963_v27 = vld [vmem:[%s10949_s0 + $0x379] sm:$0xff]  ;;  %v5964_v28 = vld [vmem:[%s10949_s0 + $0x381] sm:$0xff]  ;;  %v231_v29 = vpack.c.bf16 %v5751_v22, %v5750_v21 }
  0x15   :  { %6660 = vmatpush3.bf16.msra.mxu1 %v881_v16  ;;  %v5753_v26 = vld [vmem:[%s10949_s0 + $0x370] sm:$0xff]  ;;  %v2005_v30 = vpack.c.bf16 %v5962_v24, %v5961_v23  ;;  %v2006_v32 = vpack.c.bf16 %v5964_v28, %v5963_v27  ;;  %v5754_v33 = vld [vmem:[%s10949_s0 + $0x378] sm:$0xff]  ;;  %v5755_v34 = vld [vmem:[%s10949_s0 + $0x380] sm:$0xff] }
  0x16   :  { %v232_v31 = vpack.c.bf16 %v5753_v26, %v5752_v25  ;;  %v5965_v35 = vld [vmem:[%s10949_s0 + $0x389] sm:$0xff]  ;;  %v5966_v36 = vld [vmem:[%s10949_s0 + $0x391] sm:$0xff]  ;;  %v5967_v39 = vld [vmem:[%s10949_s0 + $0x399] sm:$0xff]  ;;  %v233_v41 = vpack.c.bf16 %v5755_v34, %v5754_v33 }
  0x17   :  { %v5756_v37 = vld [vmem:[%s10949_s0 + $0x388] sm:$0xff]  ;;  %v5757_v38 = vld [vmem:[%s10949_s0 + $0x390] sm:$0xff]  ;;  %v2007_v42 = vpack.c.bf16 %v5966_v36, %v5965_v35  ;;  %v5758_v45 = vld [vmem:[%s10949_s0 + $0x398] sm:$0xff] }
  0x18   :  { %v5968_v40 = vld [vmem:[%s10949_s0 + $0x3a1] sm:$0xff]  ;;  %v234_v43 = vpack.c.bf16 %v5757_v38, %v5756_v37  ;;  %v5969_v47 = vld [vmem:[%s10949_s0 + $0x3a9] sm:$0xff]  ;;  %v5970_v48 = vld [vmem:[%s10949_s0 + $0x3b1] sm:$0xff] }
  0x19   :  { %v2008_v44 = vpack.c.bf16 %v5968_v40, %v5967_v39  ;;  %v5759_v46 = vld [vmem:[%s10949_s0 + $0x3a0] sm:$0xff]  ;;  %v5760_v49 = vld [vmem:[%s10949_s0 + $0x3a8] sm:$0xff]  ;;  %v7967_v56 = vld [vmem:[%s10948_s1 + $0x18] sm:$0xff]  }
  0x1a   :  { %6586 = vmatmul.mubr.msk.bf16.gmra.mrb[8].mxu1 %vm273_vm2, %v225_v50  ;;  %6838 = vmatmul.mubr.msk.bf16.gmra.mrb[8].mxu0 %vm273_vm2, %v1999_v51  ;;  %v5761_v50 = vld [vmem:[%s10949_s0 + $0x3b0] sm:$0xff]  ;;  %v5971_v51 = vld [vmem:[%s10949_s0 + $0x3b9] sm:$0xff]  ;;  %v235_v53 = vpack.c.bf16 %v5759_v46, %v5758_v45  ;;  %v5764_v62 = vld [vmem:[%s10949_s0 + $0x3c8] sm:$0xff] }
  0x1b   :  { %6589 = vmatprep.mubr.msk.bf16.mxu1 %vm273_vm2, %v226_v52  ;;  %6841 = vmatprep.mubr.msk.bf16.mxu0 %vm273_vm2, %v2000_v54  ;;  %v5972_v52 = vld [vmem:[%s10949_s0 + $0x3c1] sm:$0xff]  ;;  %v2009_v54 = vpack.c.bf16 %v5970_v48, %v5969_v47  ;;  %v236_v55 = vpack.c.bf16 %v5761_v50, %v5760_v49  ;;  %v5762_v58 = vld [vmem:[%s10949_s0 + $0x3b8] sm:$0xff]  ;;  %v5973_v60 = vld [vmem:[%s10949_s0 + $0x3c9] sm:$0xff] }
  0x1c   :  { %v2010_v57 = vpack.c.bf16 %v5972_v52, %v5971_v51  ;;  %6741 = vmatprep.subr.bf16.mxu1 %v7967_v56  ;;  %v5763_v59 = vld [vmem:[%s10949_s0 + $0x3c0] sm:$0xff]  ;;  %v5974_v61 = vld [vmem:[%s10949_s0 + $0x3d1] sm:$0xff]  ;;  %v5977_v10 = vld [vmem:[%s10949_s0 + $0x3e9] sm:$0xff] }
  0x1d   :  { %v2011_v5 = vpack.c.bf16 %v5974_v61, %v5973_v60  ;;  %v5766_v8 = vld [vmem:[%s10949_s0 + $0x3d8] sm:$0xff]  ;;  %v5767_v9 = vld [vmem:[%s10949_s0 + $0x3e0] sm:$0xff]  ;;  %v5768_v13 = vld [vmem:[%s10949_s0 + $0x3e8] sm:$0xff] }
  0x1e   :  { %v5978_v11 = vld [vmem:[%s10949_s0 + $0x3f1] sm:$0xff]  ;;  %v2597_v16 = vld [vmem:[%s10949_s0 + $0x22] sm:$0xff]  ;;  %v2600_v25 = vld [vmem:[%s10949_s0 + $0x3a] sm:$0xff] }
  0x1f   :  { %v5769_v15 = vld [vmem:[%s10949_s0 + $0x3f0] sm:$0xff]  ;;  %v5770_v22 = vld [vmem:[%s10949_s0 + $0x3f8] sm:$0xff]  ;;  %v5771_v23 = vld [vmem:[%s10949_s0 + $0x400] sm:$0xff] }
  0x20   :  { %v2599_v24 = vld [vmem:[%s10949_s0 + $0x32] sm:$0xff]  ;;  %v5772_v26 = vld [vmem:[%s10949_s0 + $0x408] sm:$0xff]  ;;  %v5775_v37 = vld [vmem:[%s10949_s0 + $0x420] sm:$0xff] }
  0x21   :  { %v5773_v27 = vld [vmem:[%s10949_s0 + $0x410] sm:$0xff]  ;;  %v2601_v28 = vld [vmem:[%s10949_s0 + $0x42] sm:$0xff]  ;;  %v5774_v36 = vld [vmem:[%s10949_s0 + $0x418] sm:$0xff] }
  0x22   :  { %6590 = vmatmul.mubr.msk.bf16.gmra.mrb[12].mxu1 %vm273_vm2, %v227_v63  ;;  %6842 = vmatmul.mubr.msk.bf16.gmra.mrb[12].mxu0 %vm273_vm2, %v2001_v0  ;;  %v5765_v63 = vld [vmem:[%s10949_s0 + $0x3d0] sm:$0xff]  ;;  %v5975_v0 = vld [vmem:[%s10949_s0 + $0x3d9] sm:$0xff]  ;;  %v242_v33 = vpack.c.bf16 %v5773_v27, %v5772_v26  ;;  %v5776_v40 = vld [vmem:[%s10949_s0 + $0x428] sm:$0xff] }
  0x23   :  { %6593 = vmatprep.mubr.msk.bf16.mxu1 %vm273_vm2, %v228_v1  ;;  %6845 = vmatprep.mubr.msk.bf16.mxu0 %vm273_vm2, %v2002_v2  ;;  %v5976_v1 = vld [vmem:[%s10949_s0 + $0x3e1] sm:$0xff]  ;;  %v237_v2 = vpack.c.bf16 %v5763_v59, %v5762_v58  ;;  %v238_v6 = vpack.c.bf16 %v5765_v63, %v5764_v62  ;;  %v2603_v38 = vld [vmem:[%s10949_s0 + $0x52] sm:$0xff] }
  0x24   :  { %v2012_v7 = vpack.c.bf16 %v5976_v1, %v5975_v0  ;;  %v2604_v39 = vld [vmem:[%s10949_s0 + $0x5a] sm:$0xff]  ;;  %v2607_v49 = vld [vmem:[%s10949_s0 + $0x72] sm:$0xff]  ;;  %v5780_v51 = vld [vmem:[%s10949_s0 + $0x448] sm:$0xff] }
  0x25   :  { %v5778_v47 = vld [vmem:[%s10949_s0 + $0x438] sm:$0xff]  ;;  %v5779_v48 = vld [vmem:[%s10949_s0 + $0x440] sm:$0xff]  ;;  %v5781_v52 = vld [vmem:[%s10949_s0 + $0x450] sm:$0xff] }
  0x26   :  { %v2608_v50 = vld [vmem:[%s10949_s0 + $0x7a] sm:$0xff]  ;;  %v246_v58 = vpack.c.bf16 %v5781_v52, %v5780_v51  ;;  %v2611_v62 = vld [vmem:[%s10949_s0 + $0x92] sm:$0xff]  ;;  %v5784_v0 = vld [vmem:[%s10949_s0 + $0x468] sm:$0xff] }
  0x27   :  { %v5782_v60 = vld [vmem:[%s10949_s0 + $0x458] sm:$0xff]  ;;  %v5783_v61 = vld [vmem:[%s10949_s0 + $0x460] sm:$0xff]  ;;  %v5785_v1 = vld [vmem:[%s10949_s0 + $0x470] sm:$0xff] }
  0x28   :  { %v2612_v63 = vld [vmem:[%s10949_s0 + $0x9a] sm:$0xff]  ;;  %v2619_v26 = vld [vmem:[%s10949_s0 + $0xd2] sm:$0xff]  ;;  %v8186_v27 = vld [vmem:[%s10948_s1 + $0x48] sm:$0xff]  }
  0x29   :  { %v2628_v51 = vld [vmem:[%s10949_s0 + $0x11a] sm:$0xff]  ;;  %v5800_v52 = vld [vmem:[%s10949_s0 + $0x4e8] sm:$0xff] }
  0x2a   :  { %6594 = vmatmul.mubr.msk.bf16.gmra.mrb[16].mxu1 %vm273_vm2, %v229_v17  ;;  %6846 = vmatmul.mubr.msk.bf16.gmra.mrb[16].mxu0 %vm273_vm2, %v2003_v18  ;;  %v2598_v17 = vld [vmem:[%s10949_s0 + $0x2a] sm:$0xff]  ;;  %v239_v18 = vpack.c.bf16 %v5767_v9, %v5766_v8  ;;  %v248_v8 = vpack.c.bf16 %v5785_v1, %v5784_v0  ;;  %v2632_v0 = vld [vmem:[%s10949_s0 + $0x13a] sm:$0xff] }
  0x2b   :  { %6597 = vmatprep.mubr.msk.bf16.mxu1 %vm273_vm2, %v230_v19  ;;  %6849 = vmatprep.mubr.msk.bf16.mxu0 %vm273_vm2, %v2004_v20  ;;  %v2013_v19 = vpack.c.bf16 %v5978_v11, %v5977_v10  ;;  %v240_v20 = vpack.c.bf16 %v5769_v15, %v5768_v13  ;;  %v2676_v21 = vpack.c.bf16 %v2598_v17, %v2597_v16  ;;  %v5786_v10 = vld [vmem:[%s10949_s0 + $0x478] sm:$0xff]  ;;  %v5787_v11 = vld [vmem:[%s10949_s0 + $0x480] sm:$0xff]  ;;  %v5788_v16 = vld [vmem:[%s10949_s0 + $0x488] sm:$0xff] }
  0x2c   :  { %v2615_v13 = vld [vmem:[%s10949_s0 + $0xb2] sm:$0xff]  ;;  %v2616_v15 = vld [vmem:[%s10949_s0 + $0xba] sm:$0xff]  ;;  %v5804_v1 = vld [vmem:[%s10949_s0 + $0x508] sm:$0xff] }
  0x2d   :  { %v5789_v17 = vld [vmem:[%s10949_s0 + $0x490] sm:$0xff] }
  0x32   :  { %6598 = vmatmul.mubr.msk.bf16.gmra.mrb[20].mxu1 %vm273_vm2, %v231_v29  ;;  %6850 = vmatmul.mubr.msk.bf16.gmra.mrb[20].mxu0 %vm273_vm2, %v2005_v30  ;;  %v2602_v29 = vld [vmem:[%s10949_s0 + $0x4a] sm:$0xff]  ;;  %v7653_v30 = vld [vmem:[%s10948_s1 + $0x44] ss:$0 sps:$4 sm:$0x77]  }
  0x33   :  { %6601 = vmatprep.mubr.msk.bf16.mxu1 %vm273_vm2, %v232_v31  ;;  %6853 = vmatprep.mubr.msk.bf16.mxu0 %vm273_vm2, %v2006_v32  ;;  %v241_v31 = vpack.c.bf16 %v5771_v23, %v5770_v22  ;;  %v2677_v32 = vpack.c.bf16 %v2600_v25, %v2599_v24  ;;  %v2678_v34 = vpack.c.bf16 %v2602_v29, %v2601_v28  ;;  %v5790_v24 = vld [vmem:[%s10949_s0 + $0x498] sm:$0xff]  ;;  %v5791_v25 = vld [vmem:[%s10949_s0 + $0x4a0] sm:$0xff]  ;;  %v5792_v29 = vld [vmem:[%s10949_s0 + $0x4a8] sm:$0xff] }
  0x34   :  { %v3532_v35 = vand.u32 %v7653_v30, %v7694_v4  ;;  %v250_v22 = vpack.c.bf16 %v5789_v17, %v5788_v16  ;;  %v2620_v28 = vld [vmem:[%s10949_s0 + $0xda] sm:$0xff]  ;;  %v5793_v30 = vld [vmem:[%s10949_s0 + $0x4b0] sm:$0xff]  ;;  %v19_v17 = vld [vmem:[%s10949_s0 + $0x8] sm:$0xff] }
  0x35   :  { %v18_v16 = vld [vmem:[%s10949_s0] sm:$0xff] }
  0x3a   :  { %6602 = vmatmul.mubr.msk.bf16.gmra.mrb[24].mxu1 %vm273_vm2, %v233_v41  ;;  %6854 = vmatmul.mubr.msk.bf16.gmra.mrb[24].mxu0 %vm273_vm2, %v2007_v42  ;;  %v5777_v41 = vld [vmem:[%s10949_s0 + $0x430] sm:$0xff]  ;;  %v2605_v42 = vld [vmem:[%s10949_s0 + $0x62] sm:$0xff] }
  0x3b   :  { %6605 = vmatprep.mubr.msk.bf16.mxu1 %vm273_vm2, %v234_v43  ;;  %6857 = vmatprep.mubr.msk.bf16.mxu0 %vm273_vm2, %v2008_v44  ;;  %v243_v43 = vpack.c.bf16 %v5775_v37, %v5774_v36  ;;  %v2679_v44 = vpack.c.bf16 %v2604_v39, %v2603_v38  ;;  %v244_v45 = vpack.c.bf16 %v5777_v41, %v5776_v40  ;;  %v5794_v37 = vld [vmem:[%s10949_s0 + $0x4b8] sm:$0xff]  ;;  %v5795_v38 = vld [vmem:[%s10949_s0 + $0x4c0] sm:$0xff]  ;;  %v5796_v41 = vld [vmem:[%s10949_s0 + $0x4c8] sm:$0xff] }
  0x3c   :  { %v2623_v39 = vld [vmem:[%s10949_s0 + $0xf2] sm:$0xff]  ;;  %v2624_v40 = vld [vmem:[%s10949_s0 + $0xfa] sm:$0xff] }
  0x42   :  { %6606 = vmatmul.mubr.msk.bf16.gmra.mrb[28].mxu1 %vm273_vm2, %v235_v53  ;;  %6858 = vmatmul.mubr.msk.bf16.gmra.mrb[28].mxu0 %vm273_vm2, %v2009_v54  ;;  %v2609_v53 = vld [vmem:[%s10949_s0 + $0x82] sm:$0xff]  ;;  %v2610_v54 = vld [vmem:[%s10949_s0 + $0x8a] sm:$0xff] }
  0x43   :  { %6609 = vmatprep.mubr.msk.bf16.mxu1 %vm273_vm2, %v236_v55  ;;  %6861 = vmatprep.mubr.msk.bf16.mxu0 %vm273_vm2, %v2010_v57  ;;  %v245_v55 = vpack.c.bf16 %v5779_v48, %v5778_v47  ;;  %v2681_v57 = vpack.c.bf16 %v2608_v50, %v2607_v49  ;;  %v2682_v59 = vpack.c.bf16 %v2610_v54, %v2609_v53  ;;  %v5798_v48 = vld [vmem:[%s10949_s0 + $0x4d8] sm:$0xff]  ;;  %v5799_v49 = vld [vmem:[%s10949_s0 + $0x4e0] sm:$0xff]  ;;  %v5801_v53 = vld [vmem:[%s10949_s0 + $0x4f0] sm:$0xff] }
  0x44   :  { %v2627_v50 = vld [vmem:[%s10949_s0 + $0x112] sm:$0xff]  ;;  %v2629_v54 = vld [vmem:[%s10949_s0 + $0x122] sm:$0xff] }
  0x4a   :  { %6610 = vmatmul.mubr.msk.bf16.gmra.mrb[32].mxu1 %vm273_vm2, %v237_v2  ;;  %6862 = vmatmul.mubr.msk.bf16.gmra.mrb[32].mxu0 %vm273_vm2, %v2011_v5  ;;  %v2613_v2 = vld [vmem:[%s10949_s0 + $0xa2] sm:$0xff]  ;;  %v2614_v5 = vld [vmem:[%s10949_s0 + $0xaa] sm:$0xff] }
  0x4b   :  { %6613 = vmatprep.mubr.msk.bf16.mxu1 %vm273_vm2, %v238_v6  ;;  %6865 = vmatprep.mubr.msk.bf16.mxu0 %vm273_vm2, %v2012_v7  ;;  %v247_v6 = vpack.c.bf16 %v5783_v61, %v5782_v60  ;;  %v2683_v7 = vpack.c.bf16 %v2612_v63, %v2611_v62  ;;  %v2684_v9 = vpack.c.bf16 %v2614_v5, %v2613_v2  ;;  %v5802_v61 = vld [vmem:[%s10949_s0 + $0x4f8] sm:$0xff]  ;;  %v5803_v62 = vld [vmem:[%s10949_s0 + $0x500] sm:$0xff]  ;;  %v5805_v2 = vld [vmem:[%s10949_s0 + $0x510] sm:$0xff] }
  0x4c   :  { %v2631_v63 = vld [vmem:[%s10949_s0 + $0x132] sm:$0xff]  ;;  %v2633_v5 = vld [vmem:[%s10949_s0 + $0x142] sm:$0xff] }
  0x52   :  { %6614 = vmatmul.mubr.msk.bf16.gmra.mrb[36].mxu1 %vm273_vm2, %v239_v18  ;;  %6866 = vmatmul.mubr.msk.bf16.gmra.mrb[36].mxu0 %vm273_vm2, %v2013_v19  ;;  %v2617_v18 = vld [vmem:[%s10949_s0 + $0xc2] sm:$0xff]  ;;  %v2618_v19 = vld [vmem:[%s10949_s0 + $0xca] sm:$0xff] }
  0x53   :  { %6617 = vmatprep.mubr.msk.bf16.mxu1 %vm273_vm2, %v240_v20  ;;  %6913 = vmatprep.mubr.msk.bf16.mxu0 %vm273_vm2, %v2676_v21  ;;  %v249_v20 = vpack.c.bf16 %v5787_v11, %v5786_v10  ;;  %v2685_v21 = vpack.c.bf16 %v2616_v15, %v2615_v13  ;;  %v2686_v23 = vpack.c.bf16 %v2618_v19, %v2617_v18  ;;  %v5806_v11 = vld [vmem:[%s10949_s0 + $0x518] sm:$0x1f]  ;;  %v2637_v18 = vld [vmem:[%s10949_s0 + $0x162] sm:$0xff]  ;;  %v2638_v19 = vld [vmem:[%s10949_s0 + $0x16a] sm:$0xff] }
  0x54   :  { %v2635_v13 = vld [vmem:[%s10949_s0 + $0x152] sm:$0xff]  ;;  %v2636_v15 = vld [vmem:[%s10949_s0 + $0x15a] sm:$0xff] }
  0x5a   :  { %6618 = vmatmul.mubr.msk.bf16.gmra.mrb[40].mxu1 %vm273_vm2, %v241_v31  ;;  %6914 = vmatmul.mubr.msk.bf16.vlgmr.msra.gmra.mrb[0].mxu0 %vm273_vm2, %v2677_v32  ;;  %v2621_v31 = vld [vmem:[%s10949_s0 + $0xe2] sm:$0xff]  ;;  %v2622_v32 = vld [vmem:[%s10949_s0 + $0xea] sm:$0xff] }
  0x5b   :  { %6621 = vmatprep.mubr.msk.bf16.mxu1 %vm273_vm2, %v242_v33  ;;  %6994 = vmatpush3.bf16.msra.mxu0 %v7870_v12  ;;  %v2606_v12 = vld [vmem:[%s10949_s0 + $0x6a] sm:$0xff]  ;;  %v251_v33 = vpack.c.bf16 %v5791_v25, %v5790_v24  ;;  %v2688_v36 = vpack.c.bf16 %v2622_v32, %v2621_v31  ;;  %v21_v25 = vld [vmem:[%s10949_s0 + $0x18] sm:$0xff]  ;;  %v2641_v31 = vld [vmem:[%s10949_s0 + $0x182] sm:$0xff] }
  0x5c   :  { %6917 = vmatprep.mubr.msk.bf16.mxu0 %vm273_vm2, %v2678_v34  ;;  %6995 = vmatprep.subr.bf16.mxu0 %v3532_v35  ;;  %v2680_v46 = vpack.c.bf16 %v2606_v12, %v2605_v42  ;;  %v2687_v34 = vpack.c.bf16 %v2620_v28, %v2619_v26  ;;  %v5797_v42 = vld [vmem:[%s10949_s0 + $0x4d0] sm:$0xff]  ;;  %v2625_v12 = vld [vmem:[%s10949_s0 + $0x102] sm:$0xff]  ;;  %v2640_v28 = vld [vmem:[%s10949_s0 + $0x17a] sm:$0xff] }
  0x5d   :  { %v20_v24 = vld [vmem:[%s10949_s0 + $0x10] sm:$0xff] }
  0x5e   :  { %v2639_v26 = vld [vmem:[%s10949_s0 + $0x172] sm:$0xff]  ;;  %v2642_v32 = vld [vmem:[%s10949_s0 + $0x18a] sm:$0xff] }
  0x5f   :  { %6996 = vmatpush3.bf16.msra.mxu0 %v3532_v35  ;;  %v252_v35 = vpack.c.bf16 %v5793_v30, %v5792_v29  ;;  %v22_v29 = vld [vmem:[%s10949_s0 + $0x20] sm:$0xff]  ;;  %v23_v30 = vld [vmem:[%s10949_s0 + $0x28] sm:$0xff] }
  0x60   :  { %7077 = vmatprep.subr.bf16.mxu0 %v8186_v27 }
  0x62   :  { %6622 = vmatmul.mubr.msk.bf16.gmra.mrb[44].mxu1 %vm273_vm2, %v243_v43  ;;  %6918 = vmatmul.mubr.msk.bf16.gmra.mrb[4].mxu0 %vm273_vm2, %v2679_v44  ;;  %v2626_v43 = vld [vmem:[%s10949_s0 + $0x10a] sm:$0xff]  ;;  %v253_v44 = vpack.c.bf16 %v5795_v38, %v5794_v37  ;;  %v2698_v37 = vpack.c.bf16 %v2642_v32, %v2641_v31  ;;  %v2661_v32 = vld [vmem:[%s10949_s0 + $0x222] sm:$0xff] }
  0x63   :  { %6625 = vmatprep.mubr.msk.bf16.mxu1 %vm273_vm2, %v244_v45  ;;  %6921 = vmatprep.mubr.msk.bf16.mxu0 %vm273_vm2, %v2680_v46  ;;  %v2689_v45 = vpack.c.bf16 %v2624_v40, %v2623_v39  ;;  %v254_v46 = vpack.c.bf16 %v5797_v42, %v5796_v41  ;;  %v2690_v47 = vpack.c.bf16 %v2626_v43, %v2625_v12  ;;  %v24_v39 = vld [vmem:[%s10949_s0 + $0x30] sm:$0xff]  ;;  %v25_v40 = vld [vmem:[%s10949_s0 + $0x38] sm:$0xff]  ;;  %v26_v42 = vld [vmem:[%s10949_s0 + $0x40] sm:$0xff] }
  0x64   :  { %v2643_v41 = vld [vmem:[%s10949_s0 + $0x192] sm:$0xff]  ;;  %v27_v12 = vld [vmem:[%s10949_s0 + $0x48] sm:$0xff] }
  0x65   :  { %v2645_v43 = vld [vmem:[%s10949_s0 + $0x1a2] sm:$0xff] }
  0x66   :  { %v43_v31 = vld [vmem:[%s10949_s0 + $0xc8] sm:$0xff] }
  0x6a   :  { %6626 = vmatmul.mubr.msk.bf16.gmra.mrb[48].mxu1 %vm273_vm2, %v245_v55  ;;  %6922 = vmatmul.mubr.msk.bf16.gmra.mrb[8].mxu0 %vm273_vm2, %v2681_v57  ;;  %v2630_v55 = vld [vmem:[%s10949_s0 + $0x12a] sm:$0xff]  ;;  %v255_v57 = vpack.c.bf16 %v5799_v49, %v5798_v48 }
  0x6b   :  { %6629 = vmatprep.mubr.msk.bf16.mxu1 %vm273_vm2, %v246_v58  ;;  %6925 = vmatprep.mubr.msk.bf16.mxu0 %vm273_vm2, %v2682_v59  ;;  %v2691_v58 = vpack.c.bf16 %v2628_v51, %v2627_v50  ;;  %v256_v59 = vpack.c.bf16 %v5801_v53, %v5800_v52  ;;  %v2692_v60 = vpack.c.bf16 %v2630_v55, %v2629_v54  ;;  %v28_v49 = vld [vmem:[%s10949_s0 + $0x50] sm:$0xff]  ;;  %v29_v50 = vld [vmem:[%s10949_s0 + $0x58] sm:$0xff]  ;;  %v30_v52 = vld [vmem:[%s10949_s0 + $0x60] sm:$0xff] }
  0x6c   :  { %v2647_v51 = vld [vmem:[%s10949_s0 + $0x1b2] sm:$0xff]  ;;  %v31_v53 = vld [vmem:[%s10949_s0 + $0x68] sm:$0xff] }
  0x6d   :  { %v2649_v54 = vld [vmem:[%s10949_s0 + $0x1c2] sm:$0xff]  ;;  %v2650_v55 = vld [vmem:[%s10949_s0 + $0x1ca] sm:$0xff] }
  0x72   :  { %6630 = vmatmul.mubr.msk.bf16.gmra.mrb[52].mxu1 %vm273_vm2, %v247_v6  ;;  %6926 = vmatmul.mubr.msk.bf16.gmra.mrb[12].mxu0 %vm273_vm2, %v2683_v7  ;;  %v2634_v6 = vld [vmem:[%s10949_s0 + $0x14a] sm:$0xff]  ;;  %v257_v7 = vpack.c.bf16 %v5803_v62, %v5802_v61  ;;  %v33_v62 = vld [vmem:[%s10949_s0 + $0x78] sm:$0xff] }
  0x73   :  { %6633 = vmatprep.mubr.msk.bf16.mxu1 %vm273_vm2, %v248_v8  ;;  %6929 = vmatprep.mubr.msk.bf16.mxu0 %vm273_vm2, %v2684_v9  ;;  %v2693_v8 = vpack.c.bf16 %v2632_v0, %v2631_v63  ;;  %v258_v9 = vpack.c.bf16 %v5805_v2, %v5804_v1  ;;  %v2694_v10 = vpack.c.bf16 %v2634_v6, %v2633_v5  ;;  %v32_v61 = vld [vmem:[%s10949_s0 + $0x70] sm:$0xff]  ;;  %v2652_v0 = vld [vmem:[%s10949_s0 + $0x1da] sm:$0xff]  ;;  %v35_v2 = vld [vmem:[%s10949_s0 + $0x88] sm:$0xff] }
  0x74   :  { %v2651_v63 = vld [vmem:[%s10949_s0 + $0x1d2] sm:$0xff]  ;;  %v34_v1 = vld [vmem:[%s10949_s0 + $0x80] sm:$0xff]  ;;  %v2654_v6 = vld [vmem:[%s10949_s0 + $0x1ea] sm:$0xff] }
  0x75   :  { %v2653_v5 = vld [vmem:[%s10949_s0 + $0x1e2] sm:$0xff] }
  0x7a   :  { %6634 = vmatmul.mubr.msk.bf16.gmra.mrb[56].mxu1 %vm273_vm2, %v249_v20  ;;  %6930 = vmatmul.mubr.msk.bf16.gmra.mrb[16].mxu0 %vm273_vm2, %v2685_v21  ;;  %v259_v20 = vpack.c.bf16 %v5806_v11, %v5806_v11  ;;  %v2695_v21 = vpack.c.bf16 %v2636_v15, %v2635_v13  ;;  %v36_v11 = vld [vmem:[%s10949_s0 + $0x90] sm:$0xff]  ;;  %v37_v13 = vld [vmem:[%s10949_s0 + $0x98] sm:$0xff] }
  0x7b   :  { %6637 = vmatprep.mubr.msk.bf16.mxu1 %vm273_vm2, %v250_v22  ;;  %6933 = vmatprep.mubr.msk.bf16.mxu0 %vm273_vm2, %v2686_v23  ;;  %v97_v22 = vpack.c.bf16 %v19_v17, %v18_v16  ;;  %v2696_v23 = vpack.c.bf16 %v2638_v19, %v2637_v18  ;;  %v2655_v15 = vld [vmem:[%s10949_s0 + $0x1f2] sm:$0xff]  ;;  %v2656_v16 = vld [vmem:[%s10949_s0 + $0x1fa] sm:$0xff]  ;;  %v39_v18 = vld [vmem:[%s10949_s0 + $0xa8] sm:$0xff] }
  0x7c   :  { %v38_v17 = vld [vmem:[%s10949_s0 + $0xa0] sm:$0xff] }
  0x7d   :  { %v2657_v19 = vld [vmem:[%s10949_s0 + $0x202] sm:$0xff] }
  0x82   :  { %6638 = vmatmul.mubr.msk.bf16.gmra.mrb[60].mxu1 %vm273_vm2, %v251_v33  ;;  %6934 = vmatmul.mubr.msk.bf16.gmra.mrb[20].mxu0 %vm273_vm2, %v2687_v34  ;;  %v7654_v33 = vld [vmem:[%s10948_s1 + $0x20] ss:$0 sps:$4 sm:$0x77]   ;;  %v98_v34 = vpack.c.bf16 %v21_v25, %v20_v24  ;;  %v40_v25 = vld [vmem:[%s10949_s0 + $0xb0] sm:$0xff] }
  0x83   :  { %6641 = vmatprep.mubr.msk.bf16.mxu1 %vm273_vm2, %v252_v35  ;;  %6937 = vmatprep.mubr.msk.bf16.mxu0 %vm273_vm2, %v2688_v36  ;;  %v2697_v35 = vpack.c.bf16 %v2640_v28, %v2639_v26  ;;  %v99_v36 = vpack.c.bf16 %v23_v30, %v22_v29  ;;  %v1486_v38 = vand.u32 %v7654_v33, %v7694_v4  ;;  %v41_v26 = vld [vmem:[%s10949_s0 + $0xb8] sm:$0xff]  ;;  %v42_v30 = vld [vmem:[%s10949_s0 + $0xc0] sm:$0xff]  ;;  %v2662_v33 = vld [vmem:[%s10949_s0 + $0x22a] sm:$0xff] }
  0x84   :  { %v2659_v28 = vld [vmem:[%s10949_s0 + $0x212] sm:$0xff]  ;;  %v2660_v29 = vld [vmem:[%s10949_s0 + $0x21a] sm:$0xff] }
  0x8a   :  { %6642 = vmatmul.mubr.msk.bf16.gmra.mrb[64].mxu1 %vm273_vm2, %v253_v44  ;;  %6938 = vmatmul.mubr.msk.bf16.gmra.mrb[24].mxu0 %vm273_vm2, %v2689_v45  ;;  %v2646_v44 = vld [vmem:[%s10949_s0 + $0x1aa] sm:$0xff]  ;;  %v100_v45 = vpack.c.bf16 %v25_v40, %v24_v39  ;;  %v45_v39 = vld [vmem:[%s10949_s0 + $0xd8] sm:$0xff] }
  0x8b   :  { %6645 = vmatprep.mubr.msk.bf16.mxu1 %vm273_vm2, %v254_v46  ;;  %6941 = vmatprep.mubr.msk.bf16.mxu0 %vm273_vm2, %v2690_v47  ;;  %v101_v47 = vpack.c.bf16 %v27_v12, %v26_v42  ;;  %v2700_v48 = vpack.c.bf16 %v2646_v44, %v2645_v43  ;;  %v2663_v40 = vld [vmem:[%s10949_s0 + $0x232] sm:$0xff]  ;;  %v47_v42 = vld [vmem:[%s10949_s0 + $0xe8] sm:$0xff] }
  0x8c   :  { %v2665_v12 = vld [vmem:[%s10949_s0 + $0x242] sm:$0xff]  ;;  %v2666_v43 = vld [vmem:[%s10949_s0 + $0x24a] sm:$0xff] }
  0x92   :  { %6646 = vmatmul.mubr.msk.bf16.gmra.mrb[68].mxu1 %vm273_vm2, %v255_v57  ;;  %6942 = vmatmul.mubr.msk.bf16.gmra.mrb[28].mxu0 %vm273_vm2, %v2691_v58  ;;  %v102_v57 = vpack.c.bf16 %v29_v50, %v28_v49  ;;  %v49_v49 = vld [vmem:[%s10949_s0 + $0xf8] sm:$0xff] }
  0x93   :  { %6649 = vmatprep.mubr.msk.bf16.mxu1 %vm273_vm2, %v256_v59  ;;  %6945 = vmatprep.mubr.msk.bf16.mxu0 %vm273_vm2, %v2692_v60  ;;  %v103_v59 = vpack.c.bf16 %v31_v53, %v30_v52  ;;  %v2702_v60 = vpack.c.bf16 %v2650_v55, %v2649_v54  ;;  %v2667_v50 = vld [vmem:[%s10949_s0 + $0x252] sm:$0xff]  ;;  %v51_v52 = vld [vmem:[%s10949_s0 + $0x108] sm:$0xff] }
  0x94   :  { %v2669_v53 = vld [vmem:[%s10949_s0 + $0x262] sm:$0xff]  ;;  %v2670_v54 = vld [vmem:[%s10949_s0 + $0x26a] sm:$0xff] }
  0x9a   :  { %6650 = vmatmul.mubr.msk.bf16.gmra.mrb[72].mxu1 %vm273_vm2, %v257_v7  ;;  %6946 = vmatmul.mubr.msk.bf16.gmra.mrb[32].mxu0 %vm273_vm2, %v2693_v8  ;;  %v104_v7 = vpack.c.bf16 %v33_v62, %v32_v61  ;;  %v2703_v8 = vpack.c.bf16 %v2652_v0, %v2651_v63  ;;  %v53_v61 = vld [vmem:[%s10949_s0 + $0x118] sm:$0xff]  ;;  %v54_v0 = vld [vmem:[%s10949_s0 + $0x120] sm:$0xff] }
  0x9b   :  { %6653 = vmatprep.mubr.msk.bf16.mxu1 %vm273_vm2, %v258_v9  ;;  %6949 = vmatprep.mubr.msk.bf16.mxu0 %vm273_vm2, %v2694_v10  ;;  %v105_v9 = vpack.c.bf16 %v35_v2, %v34_v1  ;;  %v2704_v10 = vpack.c.bf16 %v2654_v6, %v2653_v5  ;;  %v2671_v62 = vld [vmem:[%s10949_s0 + $0x272] sm:$0xff]  ;;  %v2672_v63 = vld [vmem:[%s10949_s0 + $0x27a] sm:$0xff]  ;;  %v55_v1 = vld [vmem:[%s10949_s0 + $0x128] sm:$0xff] }
  0x9c   :  { %v2673_v2 = vld [vmem:[%s10949_s0 + $0x282] sm:$0xff]  ;;  %v2674_v5 = vld [vmem:[%s10949_s0 + $0x28a] sm:$0xff] }
  0xa2   :  { %6654 = vmatmul.mubr.msk.bf16.gmra.mrb[76].mxu1 %vm273_vm2, %v259_v20  ;;  %6950 = vmatmul.mubr.msk.bf16.gmra.mrb[36].mxu0 %vm273_vm2, %v2695_v21  ;;  %v2658_v20 = vld [vmem:[%s10949_s0 + $0x20a] sm:$0xff]  ;;  %v106_v21 = vpack.c.bf16 %v37_v13, %v36_v11  ;;  %v57_v11 = vld [vmem:[%s10949_s0 + $0x138] sm:$0xff]  ;;  %v2675_v13 = vld [vmem:[%s10949_s0 + $0x292] sm:$0x1f] }
  0xa3   :  { %6661 = vmatprep.mubr.msk.bf16.mxu1 %vm273_vm2, %v97_v22  ;;  %6953 = vmatprep.mubr.msk.bf16.mxu0 %vm273_vm2, %v2696_v23  ;;  %v2705_v22 = vpack.c.bf16 %v2656_v16, %v2655_v15  ;;  %v107_v23 = vpack.c.bf16 %v39_v18, %v38_v17  ;;  %v2706_v24 = vpack.c.bf16 %v2658_v20, %v2657_v19  ;;  %v58_v15 = vld [vmem:[%s10949_s0 + $0x140] sm:$0xff]  ;;  %v59_v16 = vld [vmem:[%s10949_s0 + $0x148] sm:$0xff]  ;;  %v6109_v18 = vld [vmem:[%s10949_s0 + $0x2d2] sm:$0xff] }
  0xa4   :  { %v6108_v17 = vld [vmem:[%s10949_s0 + $0x2ca] sm:$0xff]  ;;  %v2715_v20 = vpack.c.bf16 %v2675_v13, %v2675_v13  ;;  %v78_v13 = vld [vmem:[%s10949_s0 + $0x1e0] sm:$0xff] }
  0xaa   :  { %6662 = vmatmul.mubr.msk.bf16.vlgmr.msra.gmra.mrb[0].mxu1 %vm273_vm2, %v98_v34  ;;  %6954 = vmatmul.mubr.msk.bf16.gmra.mrb[40].mxu0 %vm273_vm2, %v2697_v35  ;;  %v108_v34 = vpack.c.bf16 %v41_v26, %v40_v25  ;;  %v2707_v35 = vpack.c.bf16 %v2660_v29, %v2659_v28  ;;  %v6110_v25 = vld [vmem:[%s10949_s0 + $0x2da] sm:$0xff]  ;;  %v6111_v26 = vld [vmem:[%s10949_s0 + $0x2e2] sm:$0xff] }
  0xab   :  { %6742 = vmatpush3.bf16.msra.mxu1 %v7967_v56  ;;  %6665 = vmatprep.mubr.msk.bf16.mxu1 %vm273_vm2, %v99_v36  ;;  %v2644_v56 = vld [vmem:[%s10949_s0 + $0x19a] sm:$0xff]  ;;  %v109_v36 = vpack.c.bf16 %v43_v31, %v42_v30  ;;  %v63_v29 = vld [vmem:[%s10949_s0 + $0x168] sm:$0xff]  ;;  %v6113_v31 = vld [vmem:[%s10949_s0 + $0x2f2] sm:$0xff] }
  0xac   :  { %6957 = vmatprep.mubr.msk.bf16.mxu0 %vm273_vm2, %v2698_v37  ;;  %6743 = vmatprep.subr.bf16.mxu1 %v1486_v38  ;;  %v2699_v46 = vpack.c.bf16 %v2644_v56, %v2643_v41  ;;  %v2708_v37 = vpack.c.bf16 %v2662_v33, %v2661_v32  ;;  %v2664_v41 = vld [vmem:[%s10949_s0 + $0x23a] sm:$0xff]  ;;  %v6112_v30 = vld [vmem:[%s10949_s0 + $0x2ea] sm:$0xff] }
  0xad   :  { %v46_v56 = vld [vmem:[%s10949_s0 + $0xe0] sm:$0xff]  ;;  %v7656_v32 = vld [vmem:[%s10948_s1 + $0x50] ss:$0 sps:$4 sm:$0x77]  }
  0xae   :  { %v62_v28 = vld [vmem:[%s10949_s0 + $0x160] sm:$0xff] }
  0xaf   :  { %6744 = vmatpush3.bf16.msra.mxu1 %v1486_v38  ;;  %v44_v38 = vld [vmem:[%s10949_s0 + $0xd0] sm:$0xff] }
  0xb0   :  { %7161 = vmatprep.subr.bf16.mxu1 %v7692_v3  ;;  %v2648_v3 = vld [vmem:[%s10949_s0 + $0x1ba] sm:$0xff]  ;;  %v110_v44 = vpack.c.bf16 %v45_v39, %v44_v38  ;;  %v64_v38 = vld [vmem:[%s10949_s0 + $0x170] sm:$0xff] }
  0xb1   :  { %v2701_v58 = vpack.c.bf16 %v2648_v3, %v2647_v51  ;;  %v2668_v51 = vld [vmem:[%s10949_s0 + $0x25a] sm:$0xff] }
  0xb2   :  { %6666 = vmatmul.mubr.msk.bf16.gmra.mrb[4].mxu1 %vm273_vm2, %v100_v45  ;;  %6958 = vmatmul.mubr.msk.bf16.gmra.mrb[44].mxu0 %vm273_vm2, %v2699_v46  ;;  %v2709_v45 = vpack.c.bf16 %v2664_v41, %v2663_v40  ;;  %v111_v46 = vpack.c.bf16 %v47_v42, %v46_v56  ;;  %v50_v3 = vld [vmem:[%s10949_s0 + $0x100] sm:$0xff]  ;;  %v65_v39 = vld [vmem:[%s10949_s0 + $0x178] sm:$0xff]  ;;  %v67_v56 = vld [vmem:[%s10949_s0 + $0x188] sm:$0xff] }
  0xb3   :  { %6669 = vmatprep.mubr.msk.bf16.mxu1 %vm273_vm2, %v101_v47  ;;  %6961 = vmatprep.mubr.msk.bf16.mxu0 %vm273_vm2, %v2700_v48  ;;  %v2710_v47 = vpack.c.bf16 %v2666_v43, %v2665_v12  ;;  %v48_v48 = vld [vmem:[%s10949_s0 + $0xf0] sm:$0xff]  ;;  %v6114_v40 = vld [vmem:[%s10949_s0 + $0x2fa] sm:$0xff]  ;;  %v120_v12 = vpack.c.bf16 %v65_v39, %v64_v38  ;;  %v6135_v38 = vld [vmem:[%s10949_s0 + $0x3a2] sm:$0xff] }
  0xb4   :  { %v112_v55 = vpack.c.bf16 %v49_v49, %v48_v48  ;;  %v66_v41 = vld [vmem:[%s10949_s0 + $0x180] sm:$0xff]  ;;  %v6116_v42 = vld [vmem:[%s10949_s0 + $0x30a] sm:$0xff] }
  0xb5   :  { %v6118_v48 = vld [vmem:[%s10949_s0 + $0x31a] sm:$0xff]  ;;  %v6119_v49 = vld [vmem:[%s10949_s0 + $0x322] sm:$0xff] }
  0xb6   :  { %v86_v39 = vld [vmem:[%s10949_s0 + $0x220] sm:$0xff] }
  0xba   :  { %6670 = vmatmul.mubr.msk.bf16.gmra.mrb[8].mxu1 %vm273_vm2, %v102_v57  ;;  %6962 = vmatmul.mubr.msk.bf16.gmra.mrb[48].mxu0 %vm273_vm2, %v2701_v58  ;;  %v2711_v57 = vpack.c.bf16 %v2668_v51, %v2667_v50  ;;  %v113_v58 = vpack.c.bf16 %v51_v52, %v50_v3  ;;  %v70_v50 = vld [vmem:[%s10949_s0 + $0x1a0] sm:$0xff]  ;;  %v71_v51 = vld [vmem:[%s10949_s0 + $0x1a8] sm:$0xff]  ;;  %v6121_v52 = vld [vmem:[%s10949_s0 + $0x332] sm:$0xff] }
  0xbb   :  { %6673 = vmatprep.mubr.msk.bf16.mxu1 %vm273_vm2, %v103_v59  ;;  %6965 = vmatprep.mubr.msk.bf16.mxu0 %vm273_vm2, %v2702_v60  ;;  %v2712_v59 = vpack.c.bf16 %v2670_v54, %v2669_v53  ;;  %v52_v60 = vld [vmem:[%s10949_s0 + $0x110] sm:$0xff]  ;;  %v3363_v54 = vpack.c.bf16 %v6119_v49, %v6118_v48  ;;  %v91_v48 = vld [vmem:[%s10949_s0 + $0x248] sm:$0xff] }
  0xbc   :  { %v114_v6 = vpack.c.bf16 %v53_v61, %v52_v60  ;;  %v6120_v3 = vld [vmem:[%s10949_s0 + $0x32a] sm:$0xff]  ;;  %v6122_v60 = vld [vmem:[%s10949_s0 + $0x33a] sm:$0xff]  ;;  %v6123_v61 = vld [vmem:[%s10949_s0 + $0x342] sm:$0xff] }
  0xbd   :  { %v6140_v49 = vld [vmem:[%s10949_s0 + $0x3ca] sm:$0xff] }
  0xc2   :  { %6674 = vmatmul.mubr.msk.bf16.gmra.mrb[12].mxu1 %vm273_vm2, %v104_v7  ;;  %6966 = vmatmul.mubr.msk.bf16.gmra.mrb[52].mxu0 %vm273_vm2, %v2703_v8  ;;  %v2713_v7 = vpack.c.bf16 %v2672_v63, %v2671_v62  ;;  %v115_v8 = vpack.c.bf16 %v55_v1, %v54_v0  ;;  %v74_v62 = vld [vmem:[%s10949_s0 + $0x1c0] sm:$0xff]  ;;  %v75_v63 = vld [vmem:[%s10949_s0 + $0x1c8] sm:$0xff]  ;;  %v6125_v1 = vld [vmem:[%s10949_s0 + $0x352] sm:$0xff] }
  0xc3   :  { %6677 = vmatprep.mubr.msk.bf16.mxu1 %vm273_vm2, %v105_v9  ;;  %6969 = vmatprep.mubr.msk.bf16.mxu0 %vm273_vm2, %v2704_v10  ;;  %v2714_v9 = vpack.c.bf16 %v2674_v5, %v2673_v2  ;;  %v56_v10 = vld [vmem:[%s10949_s0 + $0x130] sm:$0xff]  ;;  %v3365_v5 = vpack.c.bf16 %v6123_v61, %v6122_v60  ;;  %v95_v60 = vld [vmem:[%s10949_s0 + $0x268] sm:$0xff] }
  0xc4   :  { %v116_v19 = vpack.c.bf16 %v57_v11, %v56_v10  ;;  %v6124_v0 = vld [vmem:[%s10949_s0 + $0x34a] sm:$0xff]  ;;  %v6126_v10 = vld [vmem:[%s10949_s0 + $0x35a] sm:$0xff]  ;;  %v6127_v11 = vld [vmem:[%s10949_s0 + $0x362] sm:$0xff] }
  0xc5   :  { %v6144_v61 = vld [vmem:[%s10949_s0 + $0x3ea] sm:$0xff] }
  0xca   :  { %6678 = vmatmul.mubr.msk.bf16.gmra.mrb[16].mxu1 %vm273_vm2, %v106_v21  ;;  %6970 = vmatmul.mubr.msk.bf16.gmra.mrb[56].mxu0 %vm273_vm2, %v2705_v22  ;;  %v117_v21 = vpack.c.bf16 %v59_v16, %v58_v15  ;;  %v3358_v22 = vpack.c.bf16 %v6109_v18, %v6108_v17  ;;  %v79_v15 = vld [vmem:[%s10949_s0 + $0x1e8] sm:$0xff]  ;;  %v6129_v17 = vld [vmem:[%s10949_s0 + $0x372] sm:$0xff] }
  0xcb   :  { %6681 = vmatprep.mubr.msk.bf16.mxu1 %vm273_vm2, %v107_v23  ;;  %6973 = vmatprep.mubr.msk.bf16.mxu0 %vm273_vm2, %v2706_v24  ;;  %v60_v23 = vld [vmem:[%s10949_s0 + $0x150] sm:$0xff]  ;;  %v61_v24 = vld [vmem:[%s10949_s0 + $0x158] sm:$0xff] }
  0xcc   :  { %v118_v33 = vpack.c.bf16 %v61_v24, %v60_v23  ;;  %v6128_v16 = vld [vmem:[%s10949_s0 + $0x36a] sm:$0xff]  ;;  %v81_v23 = vld [vmem:[%s10949_s0 + $0x1f8] sm:$0xff] }
  0xcd   :  { %v6130_v24 = vld [vmem:[%s10949_s0 + $0x37a] sm:$0xff] }
  0xd2   :  { %6682 = vmatmul.mubr.msk.bf16.gmra.mrb[20].mxu1 %vm273_vm2, %v108_v34  ;;  %6974 = vmatmul.mubr.msk.bf16.gmra.mrb[60].mxu0 %vm273_vm2, %v2707_v35  ;;  %v3359_v34 = vpack.c.bf16 %v6111_v26, %v6110_v25  ;;  %v119_v35 = vpack.c.bf16 %v63_v29, %v62_v28  ;;  %v6131_v25 = vld [vmem:[%s10949_s0 + $0x382] sm:$0xff]  ;;  %v6132_v29 = vld [vmem:[%s10949_s0 + $0x38a] sm:$0xff] }
  0xd3   :  { %6685 = vmatprep.mubr.msk.bf16.mxu1 %vm273_vm2, %v109_v36  ;;  %6977 = vmatprep.mubr.msk.bf16.mxu0 %vm273_vm2, %v2708_v37  ;;  %v3360_v36 = vpack.c.bf16 %v6113_v31, %v6112_v30  ;;  %v4214_v37 = vand.u32 %v7656_v32, %v7694_v4  ;;  %v6115_v4 = vld [vmem:[%s10949_s0 + $0x302] sm:$0xff]  ;;  %v6133_v30 = vld [vmem:[%s10949_s0 + $0x392] sm:$0xff]  ;;  %v3369_v32 = vpack.c.bf16 %v6131_v25, %v6130_v24  ;;  %v6152_v24 = vld [vmem:[%s10949_s0 + $0x42a] sm:$0xff] }
  0xd4   :  { %v3361_v43 = vpack.c.bf16 %v6115_v4, %v6114_v40  ;;  %v82_v26 = vld [vmem:[%s10949_s0 + $0x200] sm:$0xff]  ;;  %v83_v28 = vld [vmem:[%s10949_s0 + $0x208] sm:$0xff]  ;;  %v6153_v25 = vld [vmem:[%s10949_s0 + $0x432] sm:$0xff] }
  0xd5   :  { %v87_v40 = vld [vmem:[%s10949_s0 + $0x228] sm:$0xff] }
  0xd6   :  { %v6136_v4 = vld [vmem:[%s10949_s0 + $0x3aa] sm:$0xff] }
  0xda   :  { %6686 = vmatmul.mubr.msk.bf16.gmra.mrb[24].mxu1 %vm273_vm2, %v110_v44  ;;  %6978 = vmatmul.mubr.msk.bf16.gmra.mrb[64].mxu0 %vm273_vm2, %v2709_v45  ;;  %v121_v44 = vpack.c.bf16 %v67_v56, %v66_v41  ;;  %v6137_v41 = vld [vmem:[%s10949_s0 + $0x3b2] sm:$0xff] }
  0xdb   :  { %6689 = vmatprep.mubr.msk.bf16.mxu1 %vm273_vm2, %v111_v46  ;;  %6981 = vmatprep.mubr.msk.bf16.mxu0 %vm273_vm2, %v2710_v47  ;;  %v68_v46 = vld [vmem:[%s10949_s0 + $0x190] sm:$0xff]  ;;  %v69_v47 = vld [vmem:[%s10949_s0 + $0x198] sm:$0xff] }
  0xdc   :  { %v122_v53 = vpack.c.bf16 %v69_v47, %v68_v46  ;;  %v6139_v46 = vld [vmem:[%s10949_s0 + $0x3c2] sm:$0xff] }
  0xdd   :  { %v90_v47 = vld [vmem:[%s10949_s0 + $0x240] sm:$0xff] }
  0xe2   :  { %6690 = vmatmul.mubr.msk.bf16.gmra.mrb[28].mxu1 %vm273_vm2, %v112_v55  ;;  %6982 = vmatmul.mubr.msk.bf16.gmra.mrb[68].mxu0 %vm273_vm2, %v2711_v57  ;;  %v123_v55 = vpack.c.bf16 %v71_v51, %v70_v50  ;;  %v3364_v57 = vpack.c.bf16 %v6121_v52, %v6120_v3  ;;  %v6141_v50 = vld [vmem:[%s10949_s0 + $0x3d2] sm:$0xff]  ;;  %v133_v52 = vpack.c.bf16 %v91_v48, %v90_v47 }
  0xe3   :  { %6693 = vmatprep.mubr.msk.bf16.mxu1 %vm273_vm2, %v113_v58  ;;  %6985 = vmatprep.mubr.msk.bf16.mxu0 %vm273_vm2, %v2712_v59  ;;  %v72_v58 = vld [vmem:[%s10949_s0 + $0x1b0] sm:$0xff]  ;;  %v73_v59 = vld [vmem:[%s10949_s0 + $0x1b8] sm:$0xff] }
  0xe4   :  { %v124_v2 = vpack.c.bf16 %v73_v59, %v72_v58  ;;  %v6143_v58 = vld [vmem:[%s10949_s0 + $0x3e2] sm:$0xff] }
  0xe5   :  { %v94_v59 = vld [vmem:[%s10949_s0 + $0x260] sm:$0xff] }
  0xea   :  { %6694 = vmatmul.mubr.msk.bf16.gmra.mrb[32].mxu1 %vm273_vm2, %v114_v6  ;;  %6986 = vmatmul.mubr.msk.bf16.gmra.mrb[72].mxu0 %vm273_vm2, %v2713_v7  ;;  %v125_v6 = vpack.c.bf16 %v75_v63, %v74_v62  ;;  %v3366_v7 = vpack.c.bf16 %v6125_v1, %v6124_v0  ;;  %v6145_v62 = vld [vmem:[%s10949_s0 + $0x3f2] sm:$0xff]  ;;  %v135_v1 = vpack.c.bf16 %v95_v60, %v94_v59 }
  0xeb   :  { %6697 = vmatprep.mubr.msk.bf16.mxu1 %vm273_vm2, %v115_v8  ;;  %6989 = vmatprep.mubr.msk.bf16.mxu0 %vm273_vm2, %v2714_v9  ;;  %v76_v8 = vld [vmem:[%s10949_s0 + $0x1d0] sm:$0xff]  ;;  %v77_v9 = vld [vmem:[%s10949_s0 + $0x1d8] sm:$0xff] }
  0xec   :  { %v126_v18 = vpack.c.bf16 %v77_v9, %v76_v8  ;;  %v1233_v8 = vld [vmem:[%s10949_s0 + $0x11] sm:$0xff]  ;;  %v1234_v9 = vld [vmem:[%s10949_s0 + $0x19] sm:$0xff] }
  0xf2   :  { %6698 = vmatmul.mubr.msk.bf16.gmra.mrb[36].mxu1 %vm273_vm2, %v116_v19  ;;  %6990 = vmatmul.mubr.msk.bf16.gmra.mrb[76].mxu0 %vm273_vm2, %v2715_v20  ;;  %v3367_v19 = vpack.c.bf16 %v6127_v11, %v6126_v10  ;;  %v127_v20 = vpack.c.bf16 %v79_v15, %v78_v13  ;;  %v6148_v10 = vld [vmem:[%s10949_s0 + $0x40a] sm:$0xff]  ;;  %v6149_v11 = vld [vmem:[%s10949_s0 + $0x412] sm:$0xff] }
  0xf3   :  { %6701 = vmatprep.mubr.msk.bf16.mxu1 %vm273_vm2, %v117_v21  ;;  %6997 = vmatprep.mubr.msk.bf16.mxu0 %vm273_vm2, %v3358_v22  ;;  %v3368_v21 = vpack.c.bf16 %v6129_v17, %v6128_v16  ;;  %v80_v22 = vld [vmem:[%s10949_s0 + $0x1f0] sm:$0xff]  ;;  %v1312_v16 = vpack.c.bf16 %v1234_v9, %v1233_v8  ;;  %v3378_v17 = vpack.c.bf16 %v6149_v11, %v6148_v10 }
  0xf4   :  { %v128_v31 = vpack.c.bf16 %v81_v23, %v80_v22  ;;  %v1237_v22 = vld [vmem:[%s10949_s0 + $0x31] sm:$0xff]  ;;  %v1238_v23 = vld [vmem:[%s10949_s0 + $0x39] sm:$0xff] }
  0xf5   :  { %v6169_v8 = vld [vmem:[%s10949_s0 + $0x4b2] sm:$0xff] }
  0xfa   :  { %6702 = vmatmul.mubr.msk.bf16.gmra.mrb[40].mxu1 %vm273_vm2, %v118_v33  ;;  %6998 = vmatmul.mubr.msk.bf16.vlgmr.msra.gmra.mrb[0].mxu0 %vm273_vm2, %v3359_v34  ;;  %v129_v33 = vpack.c.bf16 %v83_v28, %v82_v26  ;;  %v3370_v34 = vpack.c.bf16 %v6133_v30, %v6132_v29  ;;  %v1314_v29 = vpack.c.bf16 %v1238_v23, %v1237_v22  ;;  %v6173_v22 = vld [vmem:[%s10949_s0 + $0x4d2] sm:$0xff] }
  0xfb   :  { %6705 = vmatprep.mubr.msk.bf16.mxu1 %vm273_vm2, %v119_v35  ;;  %7078 = vmatpush3.bf16.msra.mxu0 %v8186_v27  ;;  %v6117_v27 = vld [vmem:[%s10949_s0 + $0x312] sm:$0xff]  ;;  %v3380_v30 = vpack.c.bf16 %v6153_v25, %v6152_v24 }
  0xfc   :  { %7001 = vmatprep.mubr.msk.bf16.mxu0 %vm273_vm2, %v3360_v36  ;;  %7079 = vmatprep.subr.bf16.mxu0 %v4214_v37  ;;  %v3362_v45 = vpack.c.bf16 %v6117_v27, %v6116_v42  ;;  %v84_v35 = vld [vmem:[%s10949_s0 + $0x210] sm:$0xff]  ;;  %v85_v36 = vld [vmem:[%s10949_s0 + $0x218] sm:$0xff]  ;;  %v131_v27 = vpack.c.bf16 %v87_v40, %v86_v39 }
  0xfd   :  { %v130_v56 = vpack.c.bf16 %v85_v36, %v84_v35  ;;  %v6155_v35 = vld [vmem:[%s10949_s0 + $0x442] sm:$0xff]  ;;  %v1241_v36 = vld [vmem:[%s10949_s0 + $0x51] sm:$0xff] }
  0xfe   :  { %v6157_v39 = vld [vmem:[%s10949_s0 + $0x452] sm:$0xff] }
  0xff   :  { %7080 = vmatpush3.bf16.msra.mxu0 %v4214_v37  ;;  %v6134_v37 = vld [vmem:[%s10949_s0 + $0x39a] sm:$0xff] }
 0x100   :  { %v3371_v42 = vpack.c.bf16 %v6135_v38, %v6134_v37  ;;  %v1242_v37 = vld [vmem:[%s10949_s0 + $0x59] sm:$0xff]  ;;  %v6156_v38 = vld [vmem:[%s10949_s0 + $0x44a] sm:$0xff] }
 0x102   :  { %6706 = vmatmul.mubr.msk.bf16.gmra.mrb[44].mxu1 %vm273_vm2, %v120_v12  ;;  %7002 = vmatmul.mubr.msk.bf16.gmra.mrb[4].mxu0 %vm273_vm2, %v3361_v43  ;;  %v3372_v12 = vpack.c.bf16 %v6137_v41, %v6136_v4  ;;  %v88_v43 = vld [vmem:[%s10949_s0 + $0x230] sm:$0xff]  ;;  %v1316_v41 = vpack.c.bf16 %v1242_v37, %v1241_v36 }
 0x103   :  { %6709 = vmatprep.mubr.msk.bf16.mxu1 %vm273_vm2, %v121_v44  ;;  %7005 = vmatprep.mubr.msk.bf16.mxu0 %vm273_vm2, %v3362_v45  ;;  %v89_v44 = vld [vmem:[%s10949_s0 + $0x238] sm:$0xff] }
 0x104   :  { %v6138_v45 = vld [vmem:[%s10949_s0 + $0x3ba] sm:$0xff]  ;;  %v132_v51 = vpack.c.bf16 %v89_v44, %v88_v43  ;;  %v1245_v43 = vld [vmem:[%s10949_s0 + $0x71] sm:$0xff] }
 0x105   :  { %v3373_v3 = vpack.c.bf16 %v6139_v46, %v6138_v45  ;;  %v1246_v44 = vld [vmem:[%s10949_s0 + $0x79] sm:$0xff]  ;;  %v6160_v45 = vld [vmem:[%s10949_s0 + $0x46a] sm:$0xff] }
 0x106   :  { %v6161_v46 = vld [vmem:[%s10949_s0 + $0x472] sm:$0xff] }
 0x10a   :  { %6710 = vmatmul.mubr.msk.bf16.gmra.mrb[48].mxu1 %vm273_vm2, %v122_v53  ;;  %7006 = vmatmul.mubr.msk.bf16.gmra.mrb[8].mxu0 %vm273_vm2, %v3363_v54  ;;  %v3374_v53 = vpack.c.bf16 %v6141_v50, %v6140_v49  ;;  %v92_v54 = vld [vmem:[%s10949_s0 + $0x250] sm:$0xff]  ;;  %v1318_v49 = vpack.c.bf16 %v1246_v44, %v1245_v43  ;;  %v3384_v50 = vpack.c.bf16 %v6161_v46, %v6160_v45 }
 0x10b   :  { %6713 = vmatprep.mubr.msk.bf16.mxu1 %vm273_vm2, %v123_v55  ;;  %7009 = vmatprep.mubr.msk.bf16.mxu0 %vm273_vm2, %v3364_v57  ;;  %v93_v55 = vld [vmem:[%s10949_s0 + $0x258] sm:$0xff] }
 0x10c   :  { %v6142_v57 = vld [vmem:[%s10949_s0 + $0x3da] sm:$0xff]  ;;  %v134_v63 = vpack.c.bf16 %v93_v55, %v92_v54  ;;  %v1249_v54 = vld [vmem:[%s10949_s0 + $0x91] sm:$0xff] }
 0x10d   :  { %v3375_v0 = vpack.c.bf16 %v6143_v58, %v6142_v57  ;;  %v1250_v55 = vld [vmem:[%s10949_s0 + $0x99] sm:$0xff]  ;;  %v6164_v57 = vld [vmem:[%s10949_s0 + $0x48a] sm:$0xff] }
 0x10e   :  { %v6165_v58 = vld [vmem:[%s10949_s0 + $0x492] sm:$0xff] }
 0x112   :  { %6714 = vmatmul.mubr.msk.bf16.gmra.mrb[52].mxu1 %vm273_vm2, %v124_v2  ;;  %7010 = vmatmul.mubr.msk.bf16.gmra.mrb[12].mxu0 %vm273_vm2, %v3365_v5  ;;  %v3376_v2 = vpack.c.bf16 %v6145_v62, %v6144_v61  ;;  %v96_v5 = vld [vmem:[%s10949_s0 + $0x270] sm:$0x1f]  ;;  %v1320_v61 = vpack.c.bf16 %v1250_v55, %v1249_v54  ;;  %v3386_v62 = vpack.c.bf16 %v6165_v58, %v6164_v57 }
 0x113   :  { %6717 = vmatprep.mubr.msk.bf16.mxu1 %vm273_vm2, %v125_v6  ;;  %7013 = vmatprep.mubr.msk.bf16.mxu0 %vm273_vm2, %v3366_v7  ;;  %v6146_v6 = vld [vmem:[%s10949_s0 + $0x3fa] sm:$0xff]  ;;  %v6147_v7 = vld [vmem:[%s10949_s0 + $0x402] sm:$0xff]  ;;  %v136_v13 = vpack.c.bf16 %v96_v5, %v96_v5  ;;  %v1253_v5 = vld [vmem:[%s10949_s0 + $0xb1] sm:$0xff] }
 0x114   :  { %v3377_v15 = vpack.c.bf16 %v6147_v7, %v6146_v6  ;;  %v1254_v6 = vld [vmem:[%s10949_s0 + $0xb9] sm:$0xff]  ;;  %v6168_v7 = vld [vmem:[%s10949_s0 + $0x4aa] sm:$0xff] }
 0x115   :  { %v1322_v11 = vpack.c.bf16 %v1254_v6, %v1253_v5 }
 0x11a   :  { %6718 = vmatmul.mubr.msk.bf16.gmra.mrb[56].mxu1 %vm273_vm2, %v126_v18  ;;  %7014 = vmatmul.mubr.msk.bf16.gmra.mrb[16].mxu0 %vm273_vm2, %v3367_v19  ;;  %v1235_v18 = vld [vmem:[%s10949_s0 + $0x21] sm:$0xff]  ;;  %v1236_v19 = vld [vmem:[%s10949_s0 + $0x29] sm:$0xff] }
 0x11b   :  { %6721 = vmatprep.mubr.msk.bf16.mxu1 %vm273_vm2, %v127_v20  ;;  %7017 = vmatprep.mubr.msk.bf16.mxu0 %vm273_vm2, %v3368_v21  ;;  %v6150_v20 = vld [vmem:[%s10949_s0 + $0x41a] sm:$0xff]  ;;  %v6151_v21 = vld [vmem:[%s10949_s0 + $0x422] sm:$0xff]  ;;  %v1313_v26 = vpack.c.bf16 %v1236_v19, %v1235_v18  ;;  %v1257_v19 = vld [vmem:[%s10949_s0 + $0xd1] sm:$0xff] }
 0x11c   :  { %v3379_v28 = vpack.c.bf16 %v6151_v21, %v6150_v20  ;;  %v6171_v18 = vld [vmem:[%s10949_s0 + $0x4c2] sm:$0xff]  ;;  %v1258_v20 = vld [vmem:[%s10949_s0 + $0xd9] sm:$0xff]  ;;  %v6172_v21 = vld [vmem:[%s10949_s0 + $0x4ca] sm:$0xff] }
 0x11d   :  { %v1324_v25 = vpack.c.bf16 %v1258_v20, %v1257_v19 }
 0x122   :  { %6722 = vmatmul.mubr.msk.bf16.gmra.mrb[60].mxu1 %vm273_vm2, %v128_v31  ;;  %7018 = vmatmul.mubr.msk.bf16.gmra.mrb[20].mxu0 %vm273_vm2, %v3369_v32  ;;  %v7657_v31 = vld [vmem:[%s10948_s1 + $0x24] sm:$0xff]  }
 0x123   :  { %6725 = vmatprep.mubr.msk.bf16.mxu1 %vm273_vm2, %v129_v33  ;;  %7021 = vmatprep.mubr.msk.bf16.mxu0 %vm273_vm2, %v3370_v34  ;;  %v1239_v32 = vld [vmem:[%s10949_s0 + $0x41] sm:$0xff]  ;;  %v1240_v33 = vld [vmem:[%s10949_s0 + $0x49] sm:$0xff] }
 0x124   :  { %v6154_v34 = vld [vmem:[%s10949_s0 + $0x43a] sm:$0xff]  ;;  %v1315_v40 = vpack.c.bf16 %v1240_v33, %v1239_v32  ;;  %v1261_v32 = vld [vmem:[%s10949_s0 + $0xf1] sm:$0xff] }
 0x125   :  { %v3381_v4 = vpack.c.bf16 %v6155_v35, %v6154_v34  ;;  %v1262_v33 = vld [vmem:[%s10949_s0 + $0xf9] sm:$0xff]  ;;  %v6176_v34 = vld [vmem:[%s10949_s0 + $0x4ea] sm:$0xff] }
 0x126   :  { %v6177_v35 = vld [vmem:[%s10949_s0 + $0x4f2] sm:$0xff] }
 0x12a   :  { %6726 = vmatmul.mubr.msk.bf16.gmra.mrb[64].mxu1 %vm273_vm2, %v130_v56  ;;  %7022 = vmatmul.mubr.msk.bf16.gmra.mrb[24].mxu0 %vm273_vm2, %v3371_v42  ;;  %v3382_v56 = vpack.c.bf16 %v6157_v39, %v6156_v38  ;;  %v1243_v42 = vld [vmem:[%s10949_s0 + $0x61] sm:$0xff]  ;;  %v1326_v38 = vpack.c.bf16 %v1262_v33, %v1261_v32  ;;  %v3392_v39 = vpack.c.bf16 %v6177_v35, %v6176_v34 }
 0x12b   :  { %6729 = vmatprep.mubr.msk.bf16.mxu1 %vm273_vm2, %v131_v27  ;;  %7025 = vmatprep.mubr.msk.bf16.mxu0 %vm273_vm2, %v3372_v12  ;;  %v1244_v27 = vld [vmem:[%s10949_s0 + $0x69] sm:$0xff]  ;;  %v6158_v12 = vld [vmem:[%s10949_s0 + $0x45a] sm:$0xff] }
 0x12c   :  { %v1317_v47 = vpack.c.bf16 %v1244_v27, %v1243_v42  ;;  %v1265_v42 = vld [vmem:[%s10949_s0 + $0x111] sm:$0xff]  ;;  %v1266_v27 = vld [vmem:[%s10949_s0 + $0x119] sm:$0xff]  ;;  %v1283_v35 = vld [vmem:[%s10949_s0 + $0x1a1] sm:$0xff] }
 0x12d   :  { %v1328_v45 = vpack.c.bf16 %v1266_v27, %v1265_v42 }
 0x132   :  { %6730 = vmatmul.mubr.msk.bf16.gmra.mrb[68].mxu1 %vm273_vm2, %v132_v51  ;;  %7026 = vmatmul.mubr.msk.bf16.gmra.mrb[28].mxu0 %vm273_vm2, %v3373_v3  ;;  %v1247_v51 = vld [vmem:[%s10949_s0 + $0x81] sm:$0xff]  ;;  %v1248_v3 = vld [vmem:[%s10949_s0 + $0x89] sm:$0xff] }
 0x133   :  { %6733 = vmatprep.mubr.msk.bf16.mxu1 %vm273_vm2, %v133_v52  ;;  %7029 = vmatprep.mubr.msk.bf16.mxu0 %vm273_vm2, %v3374_v53  ;;  %v6162_v52 = vld [vmem:[%s10949_s0 + $0x47a] sm:$0xff]  ;;  %v6163_v53 = vld [vmem:[%s10949_s0 + $0x482] sm:$0xff]  ;;  %v1319_v59 = vpack.c.bf16 %v1248_v3, %v1247_v51  ;;  %v1269_v51 = vld [vmem:[%s10949_s0 + $0x131] sm:$0xff] }
 0x134   :  { %v3385_v60 = vpack.c.bf16 %v6163_v53, %v6162_v52  ;;  %v1270_v3 = vld [vmem:[%s10949_s0 + $0x139] sm:$0xff]  ;;  %v6184_v52 = vld [vmem:[%s10949_s0 + $0x52a] sm:$0xff] }
 0x135   :  { %v6185_v53 = vld [vmem:[%s10949_s0 + $0x532] sm:$0xff]  ;;  %v1330_v57 = vpack.c.bf16 %v1270_v3, %v1269_v51 }
 0x136   :  { %v3396_v58 = vpack.c.bf16 %v6185_v53, %v6184_v52  ;;  %v1291_v53 = vld [vmem:[%s10949_s0 + $0x1e1] sm:$0xff] }
 0x13a   :  { %6734 = vmatmul.mubr.msk.bf16.gmra.mrb[72].mxu1 %vm273_vm2, %v134_v63  ;;  %7030 = vmatmul.mubr.msk.bf16.gmra.mrb[32].mxu0 %vm273_vm2, %v3375_v0  ;;  %v1251_v63 = vld [vmem:[%s10949_s0 + $0xa1] sm:$0xff]  ;;  %v1252_v0 = vld [vmem:[%s10949_s0 + $0xa9] sm:$0xff] }
 0x13b   :  { %6737 = vmatprep.mubr.msk.bf16.mxu1 %vm273_vm2, %v135_v1  ;;  %7033 = vmatprep.mubr.msk.bf16.mxu0 %vm273_vm2, %v3376_v2  ;;  %v6166_v1 = vld [vmem:[%s10949_s0 + $0x49a] sm:$0xff]  ;;  %v6167_v2 = vld [vmem:[%s10949_s0 + $0x4a2] sm:$0xff]  ;;  %v1321_v9 = vpack.c.bf16 %v1252_v0, %v1251_v63 }
 0x13c   :  { %v3387_v10 = vpack.c.bf16 %v6167_v2, %v6166_v1  ;;  %v1274_v63 = vld [vmem:[%s10949_s0 + $0x159] sm:$0xff] }
 0x13d   :  { %v3961_v0 = vld [vmem:[%s10949_s0 + $0x33] sm:$0xff]  ;;  %v3962_v1 = vld [vmem:[%s10949_s0 + $0x3b] sm:$0xff] }
 0x142   :  { %6738 = vmatmul.mubr.msk.bf16.gmra.mrb[76].mxu1 %vm273_vm2, %v136_v13  ;;  %7034 = vmatmul.mubr.msk.bf16.gmra.mrb[36].mxu0 %vm273_vm2, %v3377_v15  ;;  %v3388_v13 = vpack.c.bf16 %v6169_v8, %v6168_v7  ;;  %v1255_v15 = vld [vmem:[%s10949_s0 + $0xc1] sm:$0xff]  ;;  %v4040_v7 = vpack.c.bf16 %v3962_v1, %v3961_v0 }
 0x143   :  { %6745 = vmatprep.mubr.msk.bf16.mxu1 %vm273_vm2, %v1312_v16  ;;  %7037 = vmatprep.mubr.msk.bf16.mxu0 %vm273_vm2, %v3378_v17  ;;  %v1256_v16 = vld [vmem:[%s10949_s0 + $0xc9] sm:$0xff]  ;;  %v6170_v17 = vld [vmem:[%s10949_s0 + $0x4ba] sm:$0xff] }
 0x144   :  { %v1323_v23 = vpack.c.bf16 %v1256_v16, %v1255_v15  ;;  %v3389_v24 = vpack.c.bf16 %v6171_v18, %v6170_v17  ;;  %v1275_v8 = vld [vmem:[%s10949_s0 + $0x161] sm:$0xff]  ;;  %v1278_v15 = vld [vmem:[%s10949_s0 + $0x179] sm:$0xff] }
 0x145   :  { %v3965_v16 = vld [vmem:[%s10949_s0 + $0x53] sm:$0xff]  ;;  %v3966_v17 = vld [vmem:[%s10949_s0 + $0x5b] sm:$0xff] }
 0x14a   :  { %6746 = vmatmul.mubr.msk.bf16.vlgmr.msra.gmra.mrb[0].mxu1 %vm273_vm2, %v1313_v26  ;;  %7038 = vmatmul.mubr.msk.bf16.gmra.mrb[40].mxu0 %vm273_vm2, %v3379_v28  ;;  %v3390_v26 = vpack.c.bf16 %v6173_v22, %v6172_v21  ;;  %v1259_v28 = vld [vmem:[%s10949_s0 + $0xe1] sm:$0xff]  ;;  %v4042_v21 = vpack.c.bf16 %v3966_v17, %v3965_v16 }
 0x14b   :  { %7163 = vmatpush3.bf16.msra.mxu1 %v7657_v31  ;;  %6749 = vmatprep.mubr.msk.bf16.mxu1 %vm273_vm2, %v1314_v29  ;;  %v1260_v29 = vld [vmem:[%s10949_s0 + $0xe9] sm:$0xff]  ;;  %v1279_v22 = vld [vmem:[%s10949_s0 + $0x181] sm:$0xff] }
 0x14c   :  { %7041 = vmatprep.mubr.msk.bf16.mxu0 %vm273_vm2, %v3380_v30  ;;  %7162 = vmatprep.subr.bf16.mxu1 %v7721_v14  ;;  %v6174_v30 = vld [vmem:[%s10949_s0 + $0x4da] sm:$0xff]  ;;  %v6175_v31 = vld [vmem:[%s10949_s0 + $0x4e2] sm:$0xff]  ;;  %v1325_v36 = vpack.c.bf16 %v1260_v29, %v1259_v28 }
 0x14d   :  { %v3391_v37 = vpack.c.bf16 %v6175_v31, %v6174_v30  ;;  %v1282_v28 = vld [vmem:[%s10949_s0 + $0x199] sm:$0xff] }
 0x14e   :  { %v3969_v29 = vld [vmem:[%s10949_s0 + $0x73] sm:$0xff]  ;;  %v3970_v30 = vld [vmem:[%s10949_s0 + $0x7b] sm:$0xff] }
 0x14f   :  { %7164 = vmatpush3.bf16.msra.mxu1 %v7721_v14  ;;  %v6159_v14 = vld [vmem:[%s10949_s0 + $0x462] sm:$0xff]  ;;  %v4044_v34 = vpack.c.bf16 %v3970_v30, %v3969_v29 }
 0x150   :  { %v3383_v48 = vpack.c.bf16 %v6159_v14, %v6158_v12  ;;  %v6180_v12 = vld [vmem:[%s10949_s0 + $0x50a] sm:$0xff]  ;;  %v6181_v14 = vld [vmem:[%s10949_s0 + $0x512] sm:$0xff] }
 0x151   :  { %v3394_v46 = vpack.c.bf16 %v6181_v14, %v6180_v12  ;;  %v1287_v14 = vld [vmem:[%s10949_s0 + $0x1c1] sm:$0xff] }
 0x152   :  { %6750 = vmatmul.mubr.msk.bf16.gmra.mrb[4].mxu1 %vm273_vm2, %v1315_v40  ;;  %7042 = vmatmul.mubr.msk.bf16.gmra.mrb[44].mxu0 %vm273_vm2, %v3381_v4  ;;  %v1263_v40 = vld [vmem:[%s10949_s0 + $0x101] sm:$0xff]  ;;  %v1264_v4 = vld [vmem:[%s10949_s0 + $0x109] sm:$0xff] }
 0x153   :  { %6753 = vmatprep.mubr.msk.bf16.mxu1 %vm273_vm2, %v1316_v41  ;;  %7045 = vmatprep.mubr.msk.bf16.mxu0 %vm273_vm2, %v3382_v56  ;;  %v6178_v41 = vld [vmem:[%s10949_s0 + $0x4fa] sm:$0xff]  ;;  %v6179_v56 = vld [vmem:[%s10949_s0 + $0x502] sm:$0xff]  ;;  %v1327_v43 = vpack.c.bf16 %v1264_v4, %v1263_v40 }
 0x154   :  { %v3393_v44 = vpack.c.bf16 %v6179_v56, %v6178_v41  ;;  %v1286_v40 = vld [vmem:[%s10949_s0 + $0x1b9] sm:$0xff] }
 0x155   :  { %v3973_v4 = vld [vmem:[%s10949_s0 + $0x93] sm:$0xff]  ;;  %v3974_v41 = vld [vmem:[%s10949_s0 + $0x9b] sm:$0xff] }
 0x156   :  { %v4046_v12 = vpack.c.bf16 %v3974_v41, %v3973_v4 }
 0x15a   :  { %6754 = vmatmul.mubr.msk.bf16.gmra.mrb[8].mxu1 %vm273_vm2, %v1317_v47  ;;  %7046 = vmatmul.mubr.msk.bf16.gmra.mrb[48].mxu0 %vm273_vm2, %v3383_v48  ;;  %v1267_v47 = vld [vmem:[%s10949_s0 + $0x121] sm:$0xff]  ;;  %v1268_v48 = vld [vmem:[%s10949_s0 + $0x129] sm:$0xff] }
 0x15b   :  { %6757 = vmatprep.mubr.msk.bf16.mxu1 %vm273_vm2, %v1318_v49  ;;  %7049 = vmatprep.mubr.msk.bf16.mxu0 %vm273_vm2, %v3384_v50  ;;  %v6182_v49 = vld [vmem:[%s10949_s0 + $0x51a] sm:$0xff]  ;;  %v6183_v50 = vld [vmem:[%s10949_s0 + $0x522] sm:$0xff]  ;;  %v1329_v54 = vpack.c.bf16 %v1268_v48, %v1267_v47 }
 0x15c   :  { %v3395_v55 = vpack.c.bf16 %v6183_v50, %v6182_v49  ;;  %v1290_v47 = vld [vmem:[%s10949_s0 + $0x1d9] sm:$0xff] }
 0x15d   :  { %v3977_v48 = vld [vmem:[%s10949_s0 + $0xb3] sm:$0xff]  ;;  %v3978_v49 = vld [vmem:[%s10949_s0 + $0xbb] sm:$0xff] }
 0x15e   :  { %v4048_v52 = vpack.c.bf16 %v3978_v49, %v3977_v48 }
 0x162   :  { %6758 = vmatmul.mubr.msk.bf16.gmra.mrb[12].mxu1 %vm273_vm2, %v1319_v59  ;;  %7050 = vmatmul.mubr.msk.bf16.gmra.mrb[52].mxu0 %vm273_vm2, %v3385_v60  ;;  %v1271_v59 = vld [vmem:[%s10949_s0 + $0x141] sm:$0xff]  ;;  %v1272_v60 = vld [vmem:[%s10949_s0 + $0x149] sm:$0xff] }
 0x163   :  { %6761 = vmatprep.mubr.msk.bf16.mxu1 %vm273_vm2, %v1320_v61  ;;  %7053 = vmatprep.mubr.msk.bf16.mxu0 %vm273_vm2, %v3386_v62  ;;  %v6186_v61 = vld [vmem:[%s10949_s0 + $0x53a] sm:$0x1f]  ;;  %v1273_v62 = vld [vmem:[%s10949_s0 + $0x151] sm:$0xff]  ;;  %v1331_v2 = vpack.c.bf16 %v1272_v60, %v1271_v59 }
 0x164   :  { %v3397_v5 = vpack.c.bf16 %v6186_v61, %v6186_v61  ;;  %v1332_v6 = vpack.c.bf16 %v1274_v63, %v1273_v62  ;;  %v1294_v59 = vld [vmem:[%s10949_s0 + $0x1f9] sm:$0xff] }
 0x165   :  { %v3981_v60 = vld [vmem:[%s10949_s0 + $0xd3] sm:$0xff]  ;;  %v3982_v61 = vld [vmem:[%s10949_s0 + $0xdb] sm:$0xff] }
 0x166   :  { %v4050_v1 = vpack.c.bf16 %v3982_v61, %v3981_v60  ;;  %v5981_v61 = vld [vmem:[%s10949_s0 + $0x409] sm:$0xff] }
 0x16a   :  { %6762 = vmatmul.mubr.msk.bf16.gmra.mrb[16].mxu1 %vm273_vm2, %v1321_v9  ;;  %7054 = vmatmul.mubr.msk.bf16.gmra.mrb[56].mxu0 %vm273_vm2, %v3387_v10  ;;  %v1276_v9 = vld [vmem:[%s10949_s0 + $0x169] sm:$0xff] }
 0x16b   :  { %6765 = vmatprep.mubr.msk.bf16.mxu1 %vm273_vm2, %v1322_v11  ;;  %7057 = vmatprep.mubr.msk.bf16.mxu0 %vm273_vm2, %v3388_v13  ;;  %v3963_v10 = vld [vmem:[%s10949_s0 + $0x43] sm:$0xff]  ;;  %v3964_v11 = vld [vmem:[%s10949_s0 + $0x4b] sm:$0xff]  ;;  %v1333_v18 = vpack.c.bf16 %v1276_v9, %v1275_v8  ;;  %v1298_v9 = vld [vmem:[%s10949_s0 + $0x219] sm:$0xff] }
 0x16c   :  { %v1277_v13 = vld [vmem:[%s10949_s0 + $0x171] sm:$0xff]  ;;  %v4041_v19 = vpack.c.bf16 %v3964_v11, %v3963_v10  ;;  %v3986_v11 = vld [vmem:[%s10949_s0 + $0xfb] sm:$0xff] }
 0x16d   :  { %v1334_v20 = vpack.c.bf16 %v1278_v15, %v1277_v13  ;;  %v1297_v8 = vld [vmem:[%s10949_s0 + $0x211] sm:$0xff] }
 0x16e   :  { %v3985_v10 = vld [vmem:[%s10949_s0 + $0xf3] sm:$0xff]  ;;  %v1344_v16 = vpack.c.bf16 %v1298_v9, %v1297_v8 }
 0x16f   :  { %v4052_v17 = vpack.c.bf16 %v3986_v11, %v3985_v10  ;;  %v5985_v11 = vld [vmem:[%s10949_s0 + $0x429] sm:$0xff] }
 0x172   :  { %6766 = vmatmul.mubr.msk.bf16.gmra.mrb[20].mxu1 %vm273_vm2, %v1323_v23  ;;  %7058 = vmatmul.mubr.msk.bf16.gmra.mrb[60].mxu0 %vm273_vm2, %v3389_v24  ;;  %v1280_v23 = vld [vmem:[%s10949_s0 + $0x189] sm:$0xff] }
 0x173   :  { %6769 = vmatprep.mubr.msk.bf16.mxu1 %vm273_vm2, %v1324_v25  ;;  %7061 = vmatprep.mubr.msk.bf16.mxu0 %vm273_vm2, %v3390_v26  ;;  %v3967_v24 = vld [vmem:[%s10949_s0 + $0x63] sm:$0xff]  ;;  %v3968_v25 = vld [vmem:[%s10949_s0 + $0x6b] sm:$0xff]  ;;  %v1335_v31 = vpack.c.bf16 %v1280_v23, %v1279_v22  ;;  %v1302_v23 = vld [vmem:[%s10949_s0 + $0x239] sm:$0xff] }
 0x174   :  { %v1281_v26 = vld [vmem:[%s10949_s0 + $0x191] sm:$0xff]  ;;  %v4043_v32 = vpack.c.bf16 %v3968_v25, %v3967_v24  ;;  %v3990_v25 = vld [vmem:[%s10949_s0 + $0x11b] sm:$0xff] }
 0x175   :  { %v1336_v33 = vpack.c.bf16 %v1282_v28, %v1281_v26  ;;  %v1301_v22 = vld [vmem:[%s10949_s0 + $0x231] sm:$0xff] }
 0x176   :  { %v3989_v24 = vld [vmem:[%s10949_s0 + $0x113] sm:$0xff]  ;;  %v1346_v29 = vpack.c.bf16 %v1302_v23, %v1301_v22 }
 0x177   :  { %v4054_v30 = vpack.c.bf16 %v3990_v25, %v3989_v24  ;;  %v5989_v25 = vld [vmem:[%s10949_s0 + $0x449] sm:$0xff] }
 0x17a   :  { %6770 = vmatmul.mubr.msk.bf16.gmra.mrb[24].mxu1 %vm273_vm2, %v1325_v36  ;;  %7062 = vmatmul.mubr.msk.bf16.gmra.mrb[64].mxu0 %vm273_vm2, %v3391_v37  ;;  %v1284_v36 = vld [vmem:[%s10949_s0 + $0x1a9] sm:$0xff] }
 0x17b   :  { %6773 = vmatprep.mubr.msk.bf16.mxu1 %vm273_vm2, %v1326_v38  ;;  %7065 = vmatprep.mubr.msk.bf16.mxu0 %vm273_vm2, %v3392_v39  ;;  %v3971_v37 = vld [vmem:[%s10949_s0 + $0x83] sm:$0xff]  ;;  %v3972_v38 = vld [vmem:[%s10949_s0 + $0x8b] sm:$0xff]  ;;  %v1337_v56 = vpack.c.bf16 %v1284_v36, %v1283_v35  ;;  %v1306_v36 = vld [vmem:[%s10949_s0 + $0x259] sm:$0xff] }
 0x17c   :  { %v1285_v39 = vld [vmem:[%s10949_s0 + $0x1b1] sm:$0xff]  ;;  %v4045_v42 = vpack.c.bf16 %v3972_v38, %v3971_v37  ;;  %v3994_v38 = vld [vmem:[%s10949_s0 + $0x13b] sm:$0xff] }
 0x17d   :  { %v1338_v27 = vpack.c.bf16 %v1286_v40, %v1285_v39  ;;  %v1305_v35 = vld [vmem:[%s10949_s0 + $0x251] sm:$0xff] }
 0x17e   :  { %v3993_v37 = vld [vmem:[%s10949_s0 + $0x133] sm:$0xff]  ;;  %v1348_v4 = vpack.c.bf16 %v1306_v36, %v1305_v35 }
 0x17f   :  { %v4056_v41 = vpack.c.bf16 %v3994_v38, %v3993_v37  ;;  %v5993_v38 = vld [vmem:[%s10949_s0 + $0x469] sm:$0xff] }
 0x182   :  { %6774 = vmatmul.mubr.msk.bf16.gmra.mrb[28].mxu1 %vm273_vm2, %v1327_v43  ;;  %7066 = vmatmul.mubr.msk.bf16.gmra.mrb[68].mxu0 %vm273_vm2, %v3393_v44  ;;  %v1288_v43 = vld [vmem:[%s10949_s0 + $0x1c9] sm:$0xff] }
 0x183   :  { %6777 = vmatprep.mubr.msk.bf16.mxu1 %vm273_vm2, %v1328_v45  ;;  %7069 = vmatprep.mubr.msk.bf16.mxu0 %vm273_vm2, %v3394_v46  ;;  %v3975_v44 = vld [vmem:[%s10949_s0 + $0xa3] sm:$0xff]  ;;  %v3976_v45 = vld [vmem:[%s10949_s0 + $0xab] sm:$0xff]  ;;  %v1339_v50 = vpack.c.bf16 %v1288_v43, %v1287_v14  ;;  %v1310_v43 = vld [vmem:[%s10949_s0 + $0x279] sm:$0xff] }
 0x184   :  { %v1289_v46 = vld [vmem:[%s10949_s0 + $0x1d1] sm:$0xff]  ;;  %v4047_v51 = vpack.c.bf16 %v3976_v45, %v3975_v44  ;;  %v3998_v45 = vld [vmem:[%s10949_s0 + $0x15b] sm:$0xff] }
 0x185   :  { %v1340_v3 = vpack.c.bf16 %v1290_v47, %v1289_v46  ;;  %v1309_v14 = vld [vmem:[%s10949_s0 + $0x271] sm:$0xff] }
 0x186   :  { %v3997_v44 = vld [vmem:[%s10949_s0 + $0x153] sm:$0xff]  ;;  %v1350_v48 = vpack.c.bf16 %v1310_v43, %v1309_v14 }
 0x187   :  { %v4058_v49 = vpack.c.bf16 %v3998_v45, %v3997_v44  ;;  %v5997_v45 = vld [vmem:[%s10949_s0 + $0x489] sm:$0xff] }
 0x18a   :  { %6778 = vmatmul.mubr.msk.bf16.gmra.mrb[32].mxu1 %vm273_vm2, %v1329_v54  ;;  %7070 = vmatmul.mubr.msk.bf16.gmra.mrb[72].mxu0 %vm273_vm2, %v3395_v55  ;;  %v1292_v54 = vld [vmem:[%s10949_s0 + $0x1e9] sm:$0xff] }
 0x18b   :  { %6781 = vmatprep.mubr.msk.bf16.mxu1 %vm273_vm2, %v1330_v57  ;;  %7073 = vmatprep.mubr.msk.bf16.mxu0 %vm273_vm2, %v3396_v58  ;;  %v3979_v55 = vld [vmem:[%s10949_s0 + $0xc3] sm:$0xff]  ;;  %v3980_v57 = vld [vmem:[%s10949_s0 + $0xcb] sm:$0xff]  ;;  %v1341_v62 = vpack.c.bf16 %v1292_v54, %v1291_v53  ;;  %v4001_v54 = vld [vmem:[%s10949_s0 + $0x173] sm:$0xff] }
 0x18c   :  { %v1293_v58 = vld [vmem:[%s10949_s0 + $0x1f1] sm:$0xff]  ;;  %v4049_v63 = vpack.c.bf16 %v3980_v57, %v3979_v55  ;;  %v5980_v53 = vld [vmem:[%s10949_s0 + $0x401] sm:$0xff] }
 0x18d   :  { %v1342_v0 = vpack.c.bf16 %v1294_v59, %v1293_v58  ;;  %v4002_v55 = vld [vmem:[%s10949_s0 + $0x17b] sm:$0xff] }
 0x18e   :  { %v4060_v60 = vpack.c.bf16 %v4002_v55, %v4001_v54 }
 0x192   :  { %6782 = vmatmul.mubr.msk.bf16.gmra.mrb[36].mxu1 %vm273_vm2, %v1331_v2  ;;  %7074 = vmatmul.mubr.msk.bf16.gmra.mrb[76].mxu0 %vm273_vm2, %v3397_v5  ;;  %v1295_v2 = vld [vmem:[%s10949_s0 + $0x201] sm:$0xff]  ;;  %v1296_v5 = vld [vmem:[%s10949_s0 + $0x209] sm:$0xff] }
 0x193   :  { %6785 = vmatprep.mubr.msk.bf16.mxu1 %vm273_vm2, %v1332_v6  ;;  %7081 = vmatprep.mubr.msk.bf16.mxu0 %vm273_vm2, %v4040_v7  ;;  %v3983_v6 = vld [vmem:[%s10949_s0 + $0xe3] sm:$0xff]  ;;  %v3984_v7 = vld [vmem:[%s10949_s0 + $0xeb] sm:$0xff]  ;;  %v1343_v13 = vpack.c.bf16 %v1296_v5, %v1295_v2  ;;  %v4005_v5 = vld [vmem:[%s10949_s0 + $0x193] sm:$0xff] }
 0x194   :  { %v4051_v15 = vpack.c.bf16 %v3984_v7, %v3983_v6  ;;  %v5984_v2 = vld [vmem:[%s10949_s0 + $0x421] sm:$0xff] }
 0x195   :  { %v4006_v6 = vld [vmem:[%s10949_s0 + $0x19b] sm:$0xff] }
 0x196   :  { %v4062_v10 = vpack.c.bf16 %v4006_v6, %v4005_v5 }
 0x19a   :  { %6786 = vmatmul.mubr.msk.bf16.gmra.mrb[40].mxu1 %vm273_vm2, %v1333_v18  ;;  %7082 = vmatmul.mubr.msk.bf16.vlgmr.msra.gmra.mrb[0].mxu0 %vm273_vm2, %v4041_v19  ;;  %v1299_v18 = vld [vmem:[%s10949_s0 + $0x221] sm:$0xff]  ;;  %v1300_v19 = vld [vmem:[%s10949_s0 + $0x229] sm:$0xff] }
 0x19b   :  { %6789 = vmatprep.mubr.msk.bf16.mxu1 %vm273_vm2, %v1334_v20  ;;  %7085 = vmatprep.mubr.msk.bf16.mxu0 %vm273_vm2, %v4042_v21  ;;  %v3987_v20 = vld [vmem:[%s10949_s0 + $0x103] sm:$0xff]  ;;  %v3988_v21 = vld [vmem:[%s10949_s0 + $0x10b] sm:$0xff]  ;;  %v1345_v26 = vpack.c.bf16 %v1300_v19, %v1299_v18  ;;  %v4009_v19 = vld [vmem:[%s10949_s0 + $0x1b3] sm:$0xff] }
 0x19c   :  { %v4053_v28 = vpack.c.bf16 %v3988_v21, %v3987_v20  ;;  %v5988_v18 = vld [vmem:[%s10949_s0 + $0x441] sm:$0xff] }
 0x19d   :  { %v4010_v20 = vld [vmem:[%s10949_s0 + $0x1bb] sm:$0xff] }
 0x19e   :  { %v4064_v24 = vpack.c.bf16 %v4010_v20, %v4009_v19 }
 0x1a2   :  { %6790 = vmatmul.mubr.msk.bf16.gmra.mrb[44].mxu1 %vm273_vm2, %v1335_v31  ;;  %7086 = vmatmul.mubr.msk.bf16.gmra.mrb[4].mxu0 %vm273_vm2, %v4043_v32  ;;  %v1303_v31 = vld [vmem:[%s10949_s0 + $0x241] sm:$0xff]  ;;  %v1304_v32 = vld [vmem:[%s10949_s0 + $0x249] sm:$0xff] }
 0x1a3   :  { %6793 = vmatprep.mubr.msk.bf16.mxu1 %vm273_vm2, %v1336_v33  ;;  %7089 = vmatprep.mubr.msk.bf16.mxu0 %vm273_vm2, %v4044_v34  ;;  %v3991_v33 = vld [vmem:[%s10949_s0 + $0x123] sm:$0xff]  ;;  %v3992_v34 = vld [vmem:[%s10949_s0 + $0x12b] sm:$0xff]  ;;  %v1347_v39 = vpack.c.bf16 %v1304_v32, %v1303_v31  ;;  %v4013_v32 = vld [vmem:[%s10949_s0 + $0x1d3] sm:$0xff] }
 0x1a4   :  { %v4055_v40 = vpack.c.bf16 %v3992_v34, %v3991_v33  ;;  %v5992_v31 = vld [vmem:[%s10949_s0 + $0x461] sm:$0xff] }
 0x1a5   :  { %v4014_v33 = vld [vmem:[%s10949_s0 + $0x1db] sm:$0xff] }
 0x1a6   :  { %v4066_v37 = vpack.c.bf16 %v4014_v33, %v4013_v32 }
 0x1aa   :  { %6794 = vmatmul.mubr.msk.bf16.gmra.mrb[48].mxu1 %vm273_vm2, %v1337_v56  ;;  %7090 = vmatmul.mubr.msk.bf16.gmra.mrb[8].mxu0 %vm273_vm2, %v4045_v42  ;;  %v1307_v56 = vld [vmem:[%s10949_s0 + $0x261] sm:$0xff]  ;;  %v1308_v42 = vld [vmem:[%s10949_s0 + $0x269] sm:$0xff] }
 0x1ab   :  { %6797 = vmatprep.mubr.msk.bf16.mxu1 %vm273_vm2, %v1338_v27  ;;  %7093 = vmatprep.mubr.msk.bf16.mxu0 %vm273_vm2, %v4046_v12  ;;  %v3995_v27 = vld [vmem:[%s10949_s0 + $0x143] sm:$0xff]  ;;  %v3996_v12 = vld [vmem:[%s10949_s0 + $0x14b] sm:$0xff]  ;;  %v1349_v46 = vpack.c.bf16 %v1308_v42, %v1307_v56  ;;  %v4017_v42 = vld [vmem:[%s10949_s0 + $0x1f3] sm:$0xff] }
 0x1ac   :  { %v4057_v47 = vpack.c.bf16 %v3996_v12, %v3995_v27  ;;  %v5996_v56 = vld [vmem:[%s10949_s0 + $0x481] sm:$0xff] }
 0x1ad   :  { %v4018_v27 = vld [vmem:[%s10949_s0 + $0x1fb] sm:$0xff] }
 0x1ae   :  { %v4068_v44 = vpack.c.bf16 %v4018_v27, %v4017_v42  ;;  %v4037_v27 = vld [vmem:[%s10949_s0 + $0x293] sm:$0xff] }
 0x1b2   :  { %6798 = vmatmul.mubr.msk.bf16.gmra.mrb[52].mxu1 %vm273_vm2, %v1339_v50  ;;  %7094 = vmatmul.mubr.msk.bf16.gmra.mrb[12].mxu0 %vm273_vm2, %v4047_v51  ;;  %v1311_v50 = vld [vmem:[%s10949_s0 + $0x281] sm:$0x1f] }
 0x1b3   :  { %6801 = vmatprep.mubr.msk.bf16.mxu1 %vm273_vm2, %v1340_v3  ;;  %7097 = vmatprep.mubr.msk.bf16.mxu0 %vm273_vm2, %v4048_v52  ;;  %v3999_v51 = vld [vmem:[%s10949_s0 + $0x163] sm:$0xff]  ;;  %v4000_v3 = vld [vmem:[%s10949_s0 + $0x16b] sm:$0xff]  ;;  %v5979_v52 = vld [vmem:[%s10949_s0 + $0x3f9] sm:$0xff]  ;;  %v1351_v57 = vpack.c.bf16 %v1311_v50, %v1311_v50 }
 0x1b4   :  { %v4059_v58 = vpack.c.bf16 %v4000_v3, %v3999_v51  ;;  %v2014_v59 = vpack.c.bf16 %v5980_v53, %v5979_v52  ;;  %v6000_v50 = vld [vmem:[%s10949_s0 + $0x4a1] sm:$0xff]  ;;  %v4021_v51 = vld [vmem:[%s10949_s0 + $0x213] sm:$0xff] }
 0x1b5   :  { %v4022_v3 = vld [vmem:[%s10949_s0 + $0x21b] sm:$0xff] }
 0x1b6   :  { %v4070_v55 = vpack.c.bf16 %v4022_v3, %v4021_v51 }
 0x1ba   :  { %6802 = vmatmul.mubr.msk.bf16.gmra.mrb[56].mxu1 %vm273_vm2, %v1341_v62  ;;  %7098 = vmatmul.mubr.msk.bf16.gmra.mrb[16].mxu0 %vm273_vm2, %v4049_v63  ;;  %v5982_v62 = vld [vmem:[%s10949_s0 + $0x411] sm:$0xff]  ;;  %v4003_v63 = vld [vmem:[%s10949_s0 + $0x183] sm:$0xff] }
 0x1bb   :  { %6805 = vmatprep.mubr.msk.bf16.mxu1 %vm273_vm2, %v1342_v0  ;;  %7101 = vmatprep.mubr.msk.bf16.mxu0 %vm273_vm2, %v4050_v1  ;;  %v4004_v0 = vld [vmem:[%s10949_s0 + $0x18b] sm:$0xff]  ;;  %v5983_v1 = vld [vmem:[%s10949_s0 + $0x419] sm:$0xff]  ;;  %v2015_v7 = vpack.c.bf16 %v5982_v62, %v5981_v61  ;;  %v6004_v62 = vld [vmem:[%s10949_s0 + $0x4c1] sm:$0xff] }
 0x1bc   :  { %v4061_v8 = vpack.c.bf16 %v4004_v0, %v4003_v63  ;;  %v2016_v9 = vpack.c.bf16 %v5984_v2, %v5983_v1  ;;  %v6003_v61 = vld [vmem:[%s10949_s0 + $0x4b9] sm:$0xff] }
 0x1bd   :  { %v4025_v63 = vld [vmem:[%s10949_s0 + $0x233] sm:$0xff]  ;;  %v4026_v0 = vld [vmem:[%s10949_s0 + $0x23b] sm:$0xff]  ;;  %v2026_v5 = vpack.c.bf16 %v6004_v62, %v6003_v61 }
 0x1be   :  { %v4072_v6 = vpack.c.bf16 %v4026_v0, %v4025_v63 }
 0x1c2   :  { %6806 = vmatmul.mubr.msk.bf16.gmra.mrb[60].mxu1 %vm273_vm2, %v1343_v13  ;;  %7102 = vmatmul.mubr.msk.bf16.gmra.mrb[20].mxu0 %vm273_vm2, %v4051_v15  ;;  %v5986_v13 = vld [vmem:[%s10949_s0 + $0x431] sm:$0xff]  ;;  %v4007_v15 = vld [vmem:[%s10949_s0 + $0x1a3] sm:$0xff] }
 0x1c3   :  { %6809 = vmatprep.mubr.msk.bf16.mxu1 %vm273_vm2, %v1344_v16  ;;  %7105 = vmatprep.mubr.msk.bf16.mxu0 %vm273_vm2, %v4052_v17  ;;  %v4008_v16 = vld [vmem:[%s10949_s0 + $0x1ab] sm:$0xff]  ;;  %v5987_v17 = vld [vmem:[%s10949_s0 + $0x439] sm:$0xff]  ;;  %v2017_v21 = vpack.c.bf16 %v5986_v13, %v5985_v11  ;;  %v6008_v13 = vld [vmem:[%s10949_s0 + $0x4e1] sm:$0xff] }
 0x1c4   :  { %v4063_v22 = vpack.c.bf16 %v4008_v16, %v4007_v15  ;;  %v2018_v23 = vpack.c.bf16 %v5988_v18, %v5987_v17  ;;  %v6007_v11 = vld [vmem:[%s10949_s0 + $0x4d9] sm:$0xff] }
 0x1c5   :  { %v4029_v15 = vld [vmem:[%s10949_s0 + $0x253] sm:$0xff]  ;;  %v4030_v16 = vld [vmem:[%s10949_s0 + $0x25b] sm:$0xff]  ;;  %v2028_v19 = vpack.c.bf16 %v6008_v13, %v6007_v11 }
 0x1c6   :  { %v4074_v20 = vpack.c.bf16 %v4030_v16, %v4029_v15 }
 0x1ca   :  { %6810 = vmatmul.mubr.msk.bf16.gmra.mrb[64].mxu1 %vm273_vm2, %v1345_v26  ;;  %7106 = vmatmul.mubr.msk.bf16.gmra.mrb[24].mxu0 %vm273_vm2, %v4053_v28  ;;  %v5990_v26 = vld [vmem:[%s10949_s0 + $0x451] sm:$0xff]  ;;  %v4011_v28 = vld [vmem:[%s10949_s0 + $0x1c3] sm:$0xff] }
 0x1cb   :  { %6813 = vmatprep.mubr.msk.bf16.mxu1 %vm273_vm2, %v1346_v29  ;;  %7109 = vmatprep.mubr.msk.bf16.mxu0 %vm273_vm2, %v4054_v30  ;;  %v4012_v29 = vld [vmem:[%s10949_s0 + $0x1cb] sm:$0xff]  ;;  %v5991_v30 = vld [vmem:[%s10949_s0 + $0x459] sm:$0xff]  ;;  %v2019_v34 = vpack.c.bf16 %v5990_v26, %v5989_v25  ;;  %v6012_v26 = vld [vmem:[%s10949_s0 + $0x501] sm:$0xff] }
 0x1cc   :  { %v4065_v35 = vpack.c.bf16 %v4012_v29, %v4011_v28  ;;  %v2020_v36 = vpack.c.bf16 %v5992_v31, %v5991_v30  ;;  %v6011_v25 = vld [vmem:[%s10949_s0 + $0x4f9] sm:$0xff] }
 0x1cd   :  { %v4033_v29 = vld [vmem:[%s10949_s0 + $0x273] sm:$0xff]  ;;  %v4034_v30 = vld [vmem:[%s10949_s0 + $0x27b] sm:$0xff] }
 0x1d2   :  { %6814 = vmatmul.mubr.msk.bf16.gmra.mrb[68].mxu1 %vm273_vm2, %v1347_v39  ;;  %7110 = vmatmul.mubr.msk.bf16.gmra.mrb[28].mxu0 %vm273_vm2, %v4055_v40  ;;  %v5994_v39 = vld [vmem:[%s10949_s0 + $0x471] sm:$0xff]  ;;  %v4015_v40 = vld [vmem:[%s10949_s0 + $0x1e3] sm:$0xff] }
 0x1d3   :  { %6817 = vmatprep.mubr.msk.bf16.mxu1 %vm273_vm2, %v1348_v4  ;;  %7113 = vmatprep.mubr.msk.bf16.mxu0 %vm273_vm2, %v4056_v41  ;;  %v4016_v4 = vld [vmem:[%s10949_s0 + $0x1eb] sm:$0xff]  ;;  %v5995_v41 = vld [vmem:[%s10949_s0 + $0x479] sm:$0xff]  ;;  %v2021_v12 = vpack.c.bf16 %v5994_v39, %v5993_v38 }
 0x1d4   :  { %v4067_v14 = vpack.c.bf16 %v4016_v4, %v4015_v40  ;;  %v2022_v43 = vpack.c.bf16 %v5996_v56, %v5995_v41  ;;  %v6013_v38 = vld [vmem:[%s10949_s0 + $0x509] sm:$0xff]  ;;  %v6014_v39 = vld [vmem:[%s10949_s0 + $0x511] sm:$0xff]  ;;  %v6015_v41 = vld [vmem:[%s10949_s0 + $0x519] sm:$0xff] }
 0x1d5   :  { %v4035_v40 = vld [vmem:[%s10949_s0 + $0x283] sm:$0xff]  ;;  %v4036_v4 = vld [vmem:[%s10949_s0 + $0x28b] sm:$0xff] }
 0x1d6   :  { %v6016_v56 = vld [vmem:[%s10949_s0 + $0x521] sm:$0xff] }
 0x1da   :  { %6818 = vmatmul.mubr.msk.bf16.gmra.mrb[72].mxu1 %vm273_vm2, %v1349_v46  ;;  %7114 = vmatmul.mubr.msk.bf16.gmra.mrb[32].mxu0 %vm273_vm2, %v4057_v47  ;;  %v5998_v46 = vld [vmem:[%s10949_s0 + $0x491] sm:$0xff]  ;;  %v4019_v47 = vld [vmem:[%s10949_s0 + $0x203] sm:$0xff] }
 0x1db   :  { %6821 = vmatprep.mubr.msk.bf16.mxu1 %vm273_vm2, %v1350_v48  ;;  %7117 = vmatprep.mubr.msk.bf16.mxu0 %vm273_vm2, %v4058_v49  ;;  %v4020_v48 = vld [vmem:[%s10949_s0 + $0x20b] sm:$0xff]  ;;  %v5999_v49 = vld [vmem:[%s10949_s0 + $0x499] sm:$0xff]  ;;  %v2023_v52 = vpack.c.bf16 %v5998_v46, %v5997_v45  ;;  %v4077_v45 = vpack.c.bf16 %v4036_v4, %v4035_v40  ;;  %v2032_v46 = vpack.c.bf16 %v6016_v56, %v6015_v41 }
 0x1dc   :  { %v4069_v53 = vpack.c.bf16 %v4020_v48, %v4019_v47  ;;  %v2024_v54 = vpack.c.bf16 %v6000_v50, %v5999_v49  ;;  %v6017_v49 = vld [vmem:[%s10949_s0 + $0x529] sm:$0x1f]  ;;  %v4039_v50 = vld [vmem:[%s10949_s0 + $0x2a3] sm:$0x1f] }
 0x1e2   :  { %6822 = vmatmul.mubr.msk.bf16.gmra.mrb[76].mxu1 %vm273_vm2, %v1351_v57  ;;  %7118 = vmatmul.mubr.msk.bf16.gmra.mrb[36].mxu0 %vm273_vm2, %v4059_v58  ;;  %v6001_v57 = vld [vmem:[%s10949_s0 + $0x4a9] sm:$0xff]  ;;  %v6002_v58 = vld [vmem:[%s10949_s0 + $0x4b1] sm:$0xff] }
 0x1e3   :  { %6869 = vmatprep.mubr.msk.bf16.mxu1 %vm273_vm2, %v2014_v59  ;;  %7121 = vmatprep.mubr.msk.bf16.mxu0 %vm273_vm2, %v4060_v60  ;;  %v4023_v59 = vld [vmem:[%s10949_s0 + $0x223] sm:$0xff]  ;;  %v4024_v60 = vld [vmem:[%s10949_s0 + $0x22b] sm:$0xff]  ;;  %v2025_v1 = vpack.c.bf16 %v6002_v58, %v6001_v57 }
 0x1e4   :  { %v4071_v2 = vpack.c.bf16 %v4024_v60, %v4023_v59 }
 0x1ea   :  { %6870 = vmatmul.mubr.msk.bf16.vlgmr.msra.gmra.mrb[40].mxu1 %vm273_vm2, %v2015_v7  ;;  %7122 = vmatmul.mubr.msk.bf16.gmra.mrb[40].mxu0 %vm273_vm2, %v4061_v8  ;;  %v6005_v7 = vld [vmem:[%s10949_s0 + $0x4c9] sm:$0xff]  ;;  %v6006_v8 = vld [vmem:[%s10949_s0 + $0x4d1] sm:$0xff] }
 0x1eb   :  { %6873 = vmatprep.mubr.msk.bf16.mxu1 %vm273_vm2, %v2016_v9  ;;  %7125 = vmatprep.mubr.msk.bf16.mxu0 %vm273_vm2, %v4062_v10  ;;  %v4027_v9 = vld [vmem:[%s10949_s0 + $0x243] sm:$0xff]  ;;  %v4028_v10 = vld [vmem:[%s10949_s0 + $0x24b] sm:$0xff]  ;;  %v2027_v17 = vpack.c.bf16 %v6006_v8, %v6005_v7 }
 0x1ec   :  { %v4073_v18 = vpack.c.bf16 %v4028_v10, %v4027_v9 }
 0x1f2   :  { %6874 = vmatmul.mubr.msk.bf16.gmra.mrb[44].mxu1 %vm273_vm2, %v2017_v21  ;;  %7126 = vmatmul.mubr.msk.bf16.gmra.mrb[44].mxu0 %vm273_vm2, %v4063_v22  ;;  %v6009_v21 = vld [vmem:[%s10949_s0 + $0x4e9] sm:$0xff]  ;;  %v6010_v22 = vld [vmem:[%s10949_s0 + $0x4f1] sm:$0xff] }
 0x1f3   :  { %6877 = vmatprep.mubr.msk.bf16.mxu1 %vm273_vm2, %v2018_v23  ;;  %7129 = vmatprep.mubr.msk.bf16.mxu0 %vm273_vm2, %v4064_v24  ;;  %v4031_v23 = vld [vmem:[%s10949_s0 + $0x263] sm:$0xff]  ;;  %v4032_v24 = vld [vmem:[%s10949_s0 + $0x26b] sm:$0xff]  ;;  %v2029_v32 = vpack.c.bf16 %v6010_v22, %v6009_v21 }
 0x1fa   :  { %6878 = vmatmul.mubr.msk.bf16.gmra.mrb[48].mxu1 %vm273_vm2, %v2019_v34  ;;  %7130 = vmatmul.mubr.msk.bf16.gmra.mrb[48].mxu0 %vm273_vm2, %v4065_v35  ;;  %v4075_v34 = vpack.c.bf16 %v4032_v24, %v4031_v23  ;;  %v2030_v35 = vpack.c.bf16 %v6012_v26, %v6011_v25  ;;  %v9785_v26 = vld [vmem:[%s10950_s2] ss:$0 sm:$0xff] }
 0x1fb   :  { %6881 = vmatprep.mubr.msk.bf16.mxu1 %vm273_vm2, %v2020_v36  ;;  %7133 = vmatprep.mubr.msk.bf16.mxu0 %vm273_vm2, %v4066_v37  ;;  %v4076_v37 = vpack.c.bf16 %v4034_v30, %v4033_v29 }
 0x202   :  { %6882 = vmatmul.mubr.msk.bf16.gmra.mrb[52].mxu1 %vm273_vm2, %v2021_v12  ;;  %7134 = vmatmul.mubr.msk.bf16.gmra.mrb[52].mxu0 %vm273_vm2, %v4067_v14  ;;  %v4038_v12 = vld [vmem:[%s10949_s0 + $0x29b] sm:$0xff] }
 0x203   :  { %6885 = vmatprep.mubr.msk.bf16.mxu1 %vm273_vm2, %v2022_v43  ;;  %7137 = vmatprep.mubr.msk.bf16.mxu0 %vm273_vm2, %v4068_v44  ;;  %v2031_v43 = vpack.c.bf16 %v6014_v39, %v6013_v38  ;;  %v4078_v48 = vpack.c.bf16 %v4038_v12, %v4037_v27 }
 0x20a   :  { %6886 = vmatmul.mubr.msk.bf16.gmra.mrb[56].mxu1 %vm273_vm2, %v2023_v52  ;;  %7138 = vmatmul.mubr.msk.bf16.gmra.mrb[56].mxu0 %vm273_vm2, %v4069_v53  ;;  %v2033_v52 = vpack.c.bf16 %v6017_v49, %v6017_v49 }
 0x20b   :  { %6889 = vmatprep.mubr.msk.bf16.mxu1 %vm273_vm2, %v2024_v54  ;;  %7141 = vmatprep.mubr.msk.bf16.mxu0 %vm273_vm2, %v4070_v55  ;;  %v4079_v54 = vpack.c.bf16 %v4039_v50, %v4039_v50 }
 0x212   :  { %6890 = vmatmul.mubr.msk.bf16.gmra.mrb[60].mxu1 %vm273_vm2, %v2025_v1  ;;  %7142 = vmatmul.mubr.msk.bf16.gmra.mrb[60].mxu0 %vm273_vm2, %v4071_v2 }
 0x213   :  { %6893 = vmatprep.mubr.msk.bf16.mxu1 %vm273_vm2, %v2026_v5  ;;  %7145 = vmatprep.mubr.msk.bf16.mxu0 %vm273_vm2, %v4072_v6 }
 0x21a   :  { %6894 = vmatmul.mubr.msk.bf16.gmra.mrb[64].mxu1 %vm273_vm2, %v2027_v17  ;;  %7146 = vmatmul.mubr.msk.bf16.gmra.mrb[64].mxu0 %vm273_vm2, %v4073_v18 }
 0x21b   :  { %6897 = vmatprep.mubr.msk.bf16.mxu1 %vm273_vm2, %v2028_v19  ;;  %7149 = vmatprep.mubr.msk.bf16.mxu0 %vm273_vm2, %v4074_v20 }
 0x21d   :  { %v9656_v28 = vpop.f32.mrb[0].mxu1 }
 0x21e   :  { %v9664_v31 = vpop.f32.mrb[1].mxu1 }
 0x21f   :  { %v9666_v33 = vpop.f32.mrb[2].mxu1 }
 0x220   :  { %v9668_v36 = vpop.f32.mrb[3].mxu1 }
 0x222   :  { %6898 = vmatmul.mubr.msk.bf16.gmra.mrb[68].mxu1 %vm273_vm2, %v2029_v32  ;;  %7150 = vmatmul.mubr.msk.bf16.gmra.mrb[68].mxu0 %vm273_vm2, %v4075_v34  ;;  %v9791_v32 = vld [vmem:[%s10951_s3] ss:$0 sm:$0xff] }
 0x223   :  { %6901 = vmatprep.mubr.msk.bf16.mxu1 %vm273_vm2, %v2030_v35  ;;  %7153 = vmatprep.mubr.msk.bf16.mxu0 %vm273_vm2, %v4076_v37 }
 0x225   :  { %v9692_v42 = vpop.f32.mrb[4].mxu1 }
 0x226   :  { %v9700_v14 = vpop.f32.mrb[5].mxu1 }
 0x227   :  { %v9702_v44 = vpop.f32.mrb[6].mxu1 }
 0x228   :  { %v9704_v47 = vpop.f32.mrb[7].mxu1 }
 0x22a   :  { %6902 = vmatmul.mubr.msk.bf16.gmra.mrb[72].mxu1 %vm273_vm2, %v2031_v43  ;;  %7154 = vmatmul.mubr.msk.bf16.gmra.mrb[72].mxu0 %vm273_vm2, %v4077_v45 }
 0x22b   :  { %6905 = vmatprep.mubr.msk.bf16.mxu1 %vm273_vm2, %v2032_v46  ;;  %7157 = vmatprep.mubr.msk.bf16.mxu0 %vm273_vm2, %v4078_v48 }
 0x22d   :  { %v9716_v51 = vpop.f32.mrb[8].mxu1 }
 0x22e   :  { %v9718_v3 = vpop.f32.mrb[9].mxu1 }
 0x22f   :  { %v9720_v53 = vpop.f32.mrb[10].mxu1 }
 0x230   :  { %v9722_v55 = vpop.f32.mrb[11].mxu1 }
 0x232   :  { %6906 = vmatmul.mubr.msk.bf16.gmra.mrb[76].mxu1 %vm273_vm2, %v2033_v52  ;;  %7158 = vmatmul.mubr.msk.bf16.gmra.mrb[76].mxu0 %vm273_vm2, %v4079_v54 }
 0x235   :  { %v9726_v57 = vpop.f32.mrb[12].mxu1 }
 0x236   :  { %v9728_v58 = vpop.f32.mrb[13].mxu1 }
 0x237   :  { %v9730_v59 = vpop.f32.mrb[14].mxu1 }
 0x238   :  { %v9732_v60 = vpop.f32.mrb[15].mxu1 }
 0x23d   :  { %v9734_v61 = vpop.f32.mrb[16].mxu1 }
 0x23e   :  { %v9736_v62 = vpop.f32.mrb[17].mxu1 }
 0x23f   :  { %v9738_v63 = vpop.f32.mrb[18].mxu1 }
 0x240   :  { %v9740_v0 = vpop.f32.mrb[19].mxu1 }
 0x245   :  { %v9742_v1 = vpop.f32.mrb[20].mxu1 }
 0x246   :  { %v9744_v2 = vpop.f32.mrb[21].mxu1 }
 0x247   :  { %v9746_v5 = vpop.f32.mrb[22].mxu1 }
 0x248   :  { %v9748_v6 = vpop.f32.mrb[23].mxu1 }
 0x24d   :  { %v9750_v7 = vpop.f32.mrb[24].mxu1 }
 0x24e   :  { %v9752_v8 = vpop.f32.mrb[25].mxu1 }
 0x24f   :  { %v9754_v9 = vpop.f32.mrb[26].mxu1 }
 0x250   :  { %v9756_v10 = vpop.f32.mrb[27].mxu1 }
 0x255   :  { %v9758_v11 = vpop.f32.mrb[28].mxu1 }
 0x256   :  { %v9760_v13 = vpop.f32.mrb[29].mxu1 }
 0x257   :  { %v9762_v15 = vpop.f32.mrb[30].mxu1 }
 0x258   :  { %v9764_v16 = vpop.f32.mrb[31].mxu1 }
 0x25d   :  { %v9766_v17 = vpop.f32.mrb[32].mxu1 }
 0x25e   :  { %v9768_v18 = vpop.f32.mrb[33].mxu1 }
 0x25f   :  { %v9770_v19 = vpop.f32.mrb[34].mxu1 }
 0x260   :  { %v9772_v20 = vpop.f32.mrb[35].mxu1 }
 0x265   :  { %v9774_v21 = vpop.f32.mrb[36].mxu1 }
 0x266   :  { %v9776_v22 = vpop.f32.mrb[37].mxu1 }
 0x267   :  { %v9778_v23 = vpop.f32.mrb[38].mxu1 }
 0x268   :  { %v9780_v24 = vpop.f32.mrb[39].mxu1 }
 0x26d   :  { %v7083_v25 = vpop.f32.mrb[0].mxu0 }
 0x26e   :  { %v7165_v29 = vadd.f32 %v7083_v25, %v9656_v28  ;;  %v4250_v30 = vpop.f32.mrb[1].mxu0 }
 0x26f   :  { %v7166_v34 = vadd.f32 %v4250_v30, %v9664_v31  ;;  %v7084_v35 = vpop.f32.mrb[2].mxu0 }
 0x270   :  { %v4652_v37 = vmul.f32 %v7165_v29, %v9785_v26  ;;  %v7167_v38 = vadd.f32 %v7084_v35, %v9666_v33  ;;  %v4253_v39 = vpop.f32.mrb[3].mxu0 }
 0x271   :  { %v4650_v40 = vmul.f32 %v7166_v34, %v9785_v26  ;;  %v7168_v4 = vadd.f32 %v4253_v39, %v9668_v36 }
 0x272   :  { %v4736_v28 = vadd.f32 %v9791_v32, %v4652_v37  ;;  %v4653_v41 = vmul.f32 %v7167_v38, %v9785_v26 }
 0x273   :  { %v4734_v56 = vadd.f32 %v9791_v32, %v4650_v40  ;;  %v4651_v27 = vmul.f32 %v7168_v4, %v9785_v26 }
 0x274   :  { %v4813_v12 = vmax.f32 %v4736_v28, 0.0  ;;  %v4737_v31 = vadd.f32 %v9791_v32, %v4653_v41 }
 0x275   :  { %v4811_v43 = vmax.f32 %v4734_v56, 0.0  ;;  %v4735_v45 = vadd.f32 %v9791_v32, %v4651_v27  ;;  %v7087_v33 = vpop.f32.mrb[4].mxu0 }
 0x276   :  { %v4814_v46 = vmax.f32 %v4737_v31, 0.0  ;;  %v7169_v48 = vadd.f32 %v7087_v33, %v9692_v42  ;;  %v4266_v49 = vpop.f32.mrb[5].mxu0  ;;  %v4967_v54 = vrot.slane %v4813_v12, 1 }
 0x277   :  { %v4812_v36 = vmax.f32 %v4735_v45, 0.0  ;;  %v7170_v50 = vadd.f32 %v4266_v49, %v9700_v14  ;;  %v7088_v52 = vpop.f32.mrb[6].mxu0  ;;  %v4964_v35 = vrot.slane %v4811_v43, 1 }
 0x278   :  { %v4969_v25 = vrot.slane %v4814_v46, 1  ;;  %v4656_v29 = vmul.f32 %v7169_v48, %v9785_v26  ;;  %v7171_v30 = vadd.f32 %v7088_v52, %v9702_v44  ;;  %v4269_v34 = vpop.f32.mrb[7].mxu0 }
 0x279   :  { %v4965_v37 = vrot.slane %v4812_v36, 1  ;;  %v4654_v38 = vmul.f32 %v7170_v50, %v9785_v26  ;;  %v7172_v39 = vadd.f32 %v4269_v34, %v9704_v47 }
 0x27a   :  { %v4970_v42 = vsel %vm4963_vm3, %v4967_v54, %v4969_v25  ;;  %v4740_v40 = vadd.f32 %v9791_v32, %v4656_v29  ;;  %v4657_v14 = vmul.f32 %v7171_v30, %v9785_v26 }
 0x27b   :  { %v9813_v4 = vmax.f32 %v4813_v12, %v4970_v42  ;;  %v4966_v28 = vsel %vm4963_vm3, %v4964_v35, %v4965_v37  ;;  %v4968_v41 = vsel %vm4963_vm3, %v4965_v37, %v4967_v54  ;;  %v4738_v44 = vadd.f32 %v9791_v32, %v4654_v38 }
 0x27c   :  { %v5188_v56 = vmax.f32 %v4811_v43, %v4966_v28  ;;  %v9818_v27 = vmax.f32 %v4812_v36, %v4968_v41  ;;  %v4817_v31 = vmax.f32 %v4740_v40, 0.0  ;;  %v4741_v47 = vadd.f32 %v9791_v32, %v4657_v14 }
 0x27d   :  { %v4815_v45 = vmax.f32 %v4738_v44, 0.0  ;;  %v4655_v33 = vmul.f32 %v7172_v39, %v9785_v26  ;;  %v7091_v48 = vpop.f32.mrb[8].mxu0 }
 0x27e   :  { %v4818_v49 = vmax.f32 %v4741_v47, 0.0  ;;  %v7173_v12 = vadd.f32 %v7091_v48, %v9716_v51  ;;  %v4282_v50 = vpop.f32.mrb[9].mxu0  ;;  %v4975_v43 = vrot.slane %v4817_v31, 1 }
 0x27f   :  { %v4971_v52 = vrot.slane %v4815_v45, 1  ;;  %v4739_v29 = vadd.f32 %v9791_v32, %v4655_v33  ;;  %v7174_v54 = vadd.f32 %v4282_v50, %v9718_v3  ;;  %v7092_v30 = vpop.f32.mrb[10].mxu0 }
 0x280   :  { %v4977_v36 = vrot.slane %v4818_v49, 1  ;;  %v4660_v34 = vmul.f32 %v7173_v12, %v9785_v26  ;;  %v7175_v35 = vadd.f32 %v7092_v30, %v9720_v53  ;;  %v4285_v37 = vpop.f32.mrb[11].mxu0 }
 0x281   :  { %v4972_v38 = vsel %vm4963_vm3, %v4969_v25, %v4971_v52  ;;  %v4816_v39 = vmax.f32 %v4739_v29, 0.0  ;;  %v4658_v42 = vmul.f32 %v7174_v54, %v9785_v26  ;;  %v7176_v51 = vadd.f32 %v4285_v37, %v9722_v55 }
 0x282   :  { %v5191_v40 = vmax.f32 %v4814_v46, %v4972_v38  ;;  %v4978_v14 = vsel %vm4963_vm3, %v4975_v43, %v4977_v36  ;;  %v4744_v3 = vadd.f32 %v9791_v32, %v4660_v34  ;;  %v4661_v28 = vmul.f32 %v7175_v35, %v9785_v26 }
 0x283   :  { %v9833_v41 = vmax.f32 %v4817_v31, %v4978_v14  ;;  %v4973_v44 = vrot.slane %v4816_v39, 1  ;;  %v4742_v53 = vadd.f32 %v9791_v32, %v4658_v42  ;;  %v4659_v47 = vmul.f32 %v7176_v51, %v9785_v26 }
 0x284   :  { %v5350_v25 = vrot.slane %v9813_v4, 1  ;;  %v5351_v33 = vrot.slane %v5191_v40, 1  ;;  %v4821_v48 = vmax.f32 %v4744_v3, 0.0  ;;  %v9839_v55 = vadd.f32 %v9791_v32, %v4661_v28 }
 0x285   :  { %v5357_v46 = vrot.slane %v9833_v41, 1  ;;  %v4974_v12 = vsel %vm4963_vm3, %v4971_v52, %v4973_v44  ;;  %v4976_v50 = vsel %vm4963_vm3, %v4973_v44, %v4975_v43  ;;  %v4819_v31 = vmax.f32 %v4742_v53, 0.0  ;;  %v7095_v29 = vpop.f32.mrb[12].mxu0 }
 0x286   :  { %v5352_v54 = vsel %vm4963_vm3, %v5350_v25, %v5351_v33  ;;  %v5192_v30 = vmax.f32 %v4815_v45, %v4974_v12  ;;  %v9845_v34 = vmax.f32 %v4816_v39, %v4976_v50  ;;  %v4983_v35 = vrot.slane %v4821_v48, 1  ;;  %v4298_v37 = vpop.f32.mrb[13].mxu0 }
 0x287   :  { %v5574_v38 = vmax.f32 %v5188_v56, %v5352_v54  ;;  %v4979_v42 = vrot.slane %v4819_v31, 1  ;;  %v4822_v51 = vmax.f32 %v9839_v55, 0.0  ;;  %v4743_v14 = vadd.f32 %v9791_v32, %v4659_v47  ;;  %v7096_v3 = vpop.f32.mrb[14].mxu0 }
 0x288   :  { %v5353_v28 = vrot.slane %v5192_v30, 1  ;;  %v5355_v52 = vrot.slane %v9845_v34, 1  ;;  %v7177_v43 = vadd.f32 %v7095_v29, %v9726_v57  ;;  %v7178_v44 = vadd.f32 %v4298_v37, %v9728_v58  ;;  %v4301_v53 = vpop.f32.mrb[15].mxu0 }
 0x289   :  { %5649 = vst [vmem:[%s10952_s4] sm:$0xff] %v5574_v38  ;;  %v4980_v56 = vsel %vm4963_vm3, %v4977_v36, %v4979_v42  ;;  %v9858_v45 = vrot.slane %v4822_v51, 1  ;;  %v4820_v39 = vmax.f32 %v4743_v14, 0.0  ;;  %v7179_v47 = vadd.f32 %v7096_v3, %v9730_v59 }
 0x28a   :  { %v5354_v25 = vsel %vm4963_vm3, %v5351_v33, %v5353_v28  ;;  %v5356_v57 = vsel %vm4963_vm3, %v5353_v28, %v5355_v52  ;;  %v5358_v58 = vsel %vm4963_vm3, %v5355_v52, %v5357_v46  ;;  %v5195_v12 = vmax.f32 %v4818_v49, %v4980_v56 }
 0x28b   :  { %v5575_v50 = vmax.f32 %v9818_v27, %v5354_v25  ;;  %v5576_v29 = vmax.f32 %v9813_v4, %v5356_v57  ;;  %v5577_v54 = vmax.f32 %v5191_v40, %v5358_v58  ;;  %v4986_v36 = vsel %vm4963_vm3, %v4983_v35, %v9858_v45 }
 0x28c   :  { %v5359_v37 = vrot.slane %v5195_v12, 1  ;;  %v9868_v38 = vmax.f32 %v4821_v48, %v4986_v36  ;;  %v4981_v14 = vrot.slane %v4820_v39, 1  ;;  %v4664_v59 = vmul.f32 %v7177_v43, %v9785_v26 }
 0x28d   :  { %5650 = vst [vmem:[%s10952_s4 + $0x8] sm:$0xff] %v5575_v50  ;;  %5651 = vst [vmem:[%s10952_s4 + $0x10] sm:$0xff] %v5576_v29  ;;  %v4662_v4 = vmul.f32 %v7178_v44, %v9785_v26  ;;  %v4665_v27 = vmul.f32 %v7179_v47, %v9785_v26  ;;  %v7180_v49 = vadd.f32 %v4301_v53, %v9732_v60  ;;  %v7099_v40 = vpop.f32.mrb[16].mxu0 }
 0x28e   :  { %5652 = vst [vmem:[%s10952_s4 + $0x18] sm:$0xff] %v5577_v54  ;;  %v5360_v33 = vsel %vm4963_vm3, %v5357_v46, %v5359_v37  ;;  %v5365_v48 = vrot.slane %v9868_v38, 1  ;;  %v4982_v3 = vsel %vm4963_vm3, %v4979_v42, %v4981_v14  ;;  %v4984_v28 = vsel %vm4963_vm3, %v4981_v14, %v4983_v35  ;;  %v4314_v52 = vpop.f32.mrb[17].mxu0 }
 0x28f   :  { %v5578_v43 = vmax.f32 %v5192_v30, %v5360_v33  ;;  %v9887_v56 = vmax.f32 %v4819_v31, %v4982_v3  ;;  %v9889_v25 = vmax.f32 %v4820_v39, %v4984_v28  ;;  %v4748_v44 = vadd.f32 %v9791_v32, %v4664_v59  ;;  %v7100_v47 = vpop.f32.mrb[18].mxu0 }
 0x290   :  { %v4746_v60 = vadd.f32 %v9791_v32, %v4662_v4  ;;  %v9894_v53 = vadd.f32 %v9791_v32, %v4665_v27  ;;  %v4663_v46 = vmul.f32 %v7180_v49, %v9785_v26  ;;  %v7181_v42 = vadd.f32 %v7099_v40, %v9734_v61  ;;  %v4317_v57 = vpop.f32.mrb[19].mxu0 }
 0x291   :  { %5653 = vst [vmem:[%s10952_s4 + $0x20] sm:$0xff] %v5578_v43  ;;  %v5361_v31 = vrot.slane %v9887_v56, 1  ;;  %v5363_v30 = vrot.slane %v9889_v25, 1  ;;  %v4825_v35 = vmax.f32 %v4748_v44, 0.0  ;;  %v7182_v39 = vadd.f32 %v4314_v52, %v9736_v62 }
 0x292   :  { %v4823_v58 = vmax.f32 %v4746_v60, 0.0  ;;  %v4826_v50 = vmax.f32 %v9894_v53, 0.0  ;;  %v4747_v29 = vadd.f32 %v9791_v32, %v4663_v46  ;;  %v4668_v54 = vmul.f32 %v7181_v42, %v9785_v26 }
 0x293   :  { %v5362_v61 = vsel %vm4963_vm3, %v5359_v37, %v5361_v31  ;;  %v5364_v36 = vsel %vm4963_vm3, %v5361_v31, %v5363_v30  ;;  %v5366_v14 = vsel %vm4963_vm3, %v5363_v30, %v5365_v48  ;;  %v4991_v59 = vrot.slane %v4825_v35, 1 }
 0x294   :  { %v5579_v4 = vmax.f32 %v9845_v34, %v5362_v61  ;;  %v5580_v27 = vmax.f32 %v9833_v41, %v5364_v36  ;;  %v5581_v49 = vmax.f32 %v5195_v12, %v5366_v14  ;;  %v4987_v62 = vrot.slane %v4823_v58, 1 }
 0x295   :  { %v4993_v40 = vrot.slane %v4826_v50, 1  ;;  %v4824_v33 = vmax.f32 %v4747_v29, 0.0  ;;  %v9915_v3 = vadd.f32 %v9791_v32, %v4668_v54  ;;  %v4666_v37 = vmul.f32 %v7182_v39, %v9785_v26  ;;  %v7103_v28 = vpop.f32.mrb[20].mxu0 }
 0x296   :  { %5654 = vst [vmem:[%s10952_s4 + $0x28] sm:$0xff] %v5579_v4  ;;  %5655 = vst [vmem:[%s10952_s4 + $0x30] sm:$0xff] %v5580_v27  ;;  %v4988_v41 = vsel %vm4963_vm3, %v9858_v45, %v4987_v62  ;;  %v7183_v34 = vadd.f32 %v7100_v47, %v9738_v63  ;;  %v7184_v12 = vadd.f32 %v4317_v57, %v9740_v0  ;;  %v4330_v43 = vpop.f32.mrb[21].mxu0 }
 0x297   :  { %5656 = vst [vmem:[%s10952_s4 + $0x38] sm:$0xff] %v5581_v49  ;;  %v7185_v52 = vadd.f32 %v7103_v28, %v9742_v1  ;;  %v5199_v44 = vmax.f32 %v4822_v51, %v4988_v41  ;;  %v4994_v60 = vsel %vm4963_vm3, %v4991_v59, %v4993_v40  ;;  %v4989_v46 = vrot.slane %v4824_v33, 1  ;;  %v7104_v42 = vpop.f32.mrb[22].mxu0 }
 0x298   :  { %v9935_v31 = vmax.f32 %v4825_v35, %v4994_v60  ;;  %v4750_v30 = vadd.f32 %v9791_v32, %v4666_v37  ;;  %v4669_v45 = vmul.f32 %v7183_v34, %v9785_v26  ;;  %v4667_v63 = vmul.f32 %v7184_v12, %v9785_v26  ;;  %v4333_v47 = vpop.f32.mrb[23].mxu0 }
 0x299   :  { %v5367_v0 = vrot.slane %v5199_v44, 1  ;;  %v4990_v1 = vsel %vm4963_vm3, %v4987_v62, %v4989_v46  ;;  %v4992_v57 = vsel %vm4963_vm3, %v4989_v46, %v4991_v59  ;;  %v4829_v55 = vmax.f32 %v9915_v3, 0.0 }
 0x29a   :  { %v5373_v51 = vrot.slane %v9935_v31, 1  ;;  %v5200_v39 = vmax.f32 %v4823_v58, %v4990_v1  ;;  %v9944_v29 = vmax.f32 %v4824_v33, %v4992_v57  ;;  %v4827_v35 = vmax.f32 %v4750_v30, 0.0 }
 0x29b   :  { %v5368_v54 = vsel %vm4963_vm3, %v5365_v48, %v5367_v0  ;;  %v9948_v61 = vadd.f32 %v9791_v32, %v4669_v45  ;;  %v4751_v36 = vadd.f32 %v9791_v32, %v4667_v63  ;;  %v4672_v14 = vmul.f32 %v7185_v52, %v9785_v26 }
 0x29c   :  { %v5582_v4 = vmax.f32 %v9887_v56, %v5368_v54  ;;  %v5369_v59 = vrot.slane %v5200_v39, 1  ;;  %v5371_v27 = vrot.slane %v9944_v29, 1  ;;  %v4995_v49 = vrot.slane %v4827_v35, 1 }
 0x29d   :  { %v4830_v58 = vmax.f32 %v9948_v61, 0.0  ;;  %v4828_v62 = vmax.f32 %v4751_v36, 0.0  ;;  %v9956_v33 = vadd.f32 %v9791_v32, %v4672_v14  ;;  %v7186_v48 = vadd.f32 %v4330_v43, %v9744_v2  ;;  %v7107_v3 = vpop.f32.mrb[24].mxu0 }
 0x29e   :  { %5657 = vst [vmem:[%s10952_s4 + $0x40] sm:$0xff] %v5582_v4  ;;  %v5370_v37 = vsel %vm4963_vm3, %v5367_v0, %v5369_v59  ;;  %v5372_v56 = vsel %vm4963_vm3, %v5369_v59, %v5371_v27  ;;  %v5374_v28 = vsel %vm4963_vm3, %v5371_v27, %v5373_v51  ;;  %v4996_v41 = vsel %vm4963_vm3, %v4993_v40, %v4995_v49  ;;  %v4346_v34 = vpop.f32.mrb[25].mxu0 }
 0x29f   :  { %v5583_v12 = vmax.f32 %v9889_v25, %v5370_v37  ;;  %v5584_v52 = vmax.f32 %v9868_v38, %v5372_v56  ;;  %v5585_v60 = vmax.f32 %v5199_v44, %v5374_v28  ;;  %v5203_v2 = vmax.f32 %v4826_v50, %v4996_v41  ;;  %v7108_v43 = vpop.f32.mrb[26].mxu0 }
 0x2a0   :  { %v4999_v46 = vrot.slane %v4829_v55, 1  ;;  %v5001_v30 = vrot.slane %v4830_v58, 1  ;;  %v4997_v45 = vrot.slane %v4828_v62, 1  ;;  %v4670_v63 = vmul.f32 %v7186_v48, %v9785_v26  ;;  %v4349_v0 = vpop.f32.mrb[27].mxu0 }
 0x2a1   :  { %5658 = vst [vmem:[%s10952_s4 + $0x48] sm:$0xff] %v5583_v12  ;;  %5659 = vst [vmem:[%s10952_s4 + $0x50] sm:$0xff] %v5584_v52  ;;  %v5375_v38 = vrot.slane %v5203_v2, 1  ;;  %v7187_v25 = vadd.f32 %v7104_v42, %v9746_v5  ;;  %v7188_v53 = vadd.f32 %v4333_v47, %v9748_v6  ;;  %v7189_v50 = vadd.f32 %v7107_v3, %v9750_v7 }
 0x2a2   :  { %5660 = vst [vmem:[%s10952_s4 + $0x58] sm:$0xff] %v5585_v60  ;;  %v5002_v40 = vsel %vm4963_vm3, %v4999_v46, %v5001_v30  ;;  %v4998_v44 = vsel %vm4963_vm3, %v4995_v49, %v4997_v45  ;;  %v5000_v1 = vsel %vm4963_vm3, %v4997_v45, %v4999_v46  ;;  %v4833_v57 = vmax.f32 %v9956_v33, 0.0 }
 0x2a3   :  { %v5376_v54 = vsel %vm4963_vm3, %v5373_v51, %v5375_v38  ;;  %v9990_v36 = vmax.f32 %v4829_v55, %v5002_v40  ;;  %v9992_v14 = vmax.f32 %v4827_v35, %v4998_v44  ;;  %v9994_v4 = vmax.f32 %v4828_v62, %v5000_v1 }
 0x2a4   :  { %v5586_v5 = vmax.f32 %v5200_v39, %v5376_v54  ;;  %v4754_v6 = vadd.f32 %v9791_v32, %v4670_v63  ;;  %v4673_v7 = vmul.f32 %v7187_v25, %v9785_v26  ;;  %v4671_v42 = vmul.f32 %v7188_v53, %v9785_v26 }
 0x2a5   :  { %v5381_v47 = vrot.slane %v9990_v36, 1  ;;  %v5377_v59 = vrot.slane %v9992_v14, 1  ;;  %v5379_v27 = vrot.slane %v9994_v4, 1  ;;  %v4676_v55 = vmul.f32 %v7189_v50, %v9785_v26  ;;  %v7111_v51 = vpop.f32.mrb[28].mxu0 }
 0x2a6   :  { %5661 = vst [vmem:[%s10952_s4 + $0x60] sm:$0xff] %v5586_v5  ;;  %v4831_v39 = vmax.f32 %v4754_v6, 0.0  ;;  %v10007_v35 = vadd.f32 %v9791_v32, %v4673_v7  ;;  %v4755_v49 = vadd.f32 %v9791_v32, %v4671_v42  ;;  %v7190_v62 = vadd.f32 %v4346_v34, %v9752_v8  ;;  %v4362_v33 = vpop.f32.mrb[29].mxu0 }
 0x2a7   :  { %v5378_v48 = vsel %vm4963_vm3, %v5375_v38, %v5377_v59  ;;  %v5380_v3 = vsel %vm4963_vm3, %v5377_v59, %v5379_v27  ;;  %v5382_v37 = vsel %vm4963_vm3, %v5379_v27, %v5381_v47  ;;  %v10015_v56 = vadd.f32 %v9791_v32, %v4676_v55  ;;  %v10017_v28 = vpop.f32.mrb[30].mxu0 }
 0x2a8   :  { %v5587_v41 = vmax.f32 %v9944_v29, %v5378_v48  ;;  %v5588_v12 = vmax.f32 %v9935_v31, %v5380_v3  ;;  %v5589_v52 = vmax.f32 %v5203_v2, %v5382_v37  ;;  %v5003_v60 = vrot.slane %v4831_v39, 1  ;;  %v4365_v46 = vpop.f32.mrb[31].mxu0 }
 0x2a9   :  { %v5007_v8 = vrot.slane %v4833_v57, 1  ;;  %v4834_v34 = vmax.f32 %v10007_v35, 0.0  ;;  %v4832_v45 = vmax.f32 %v4755_v49, 0.0  ;;  %v4674_v63 = vmul.f32 %v7190_v62, %v9785_v26 }
 0x2aa   :  { %5662 = vst [vmem:[%s10952_s4 + $0x68] sm:$0xff] %v5587_v41  ;;  %5663 = vst [vmem:[%s10952_s4 + $0x70] sm:$0xff] %v5588_v12  ;;  %v5004_v31 = vsel %vm4963_vm3, %v5001_v30, %v5003_v60  ;;  %v7191_v29 = vadd.f32 %v7108_v43, %v9754_v9  ;;  %v7192_v2 = vadd.f32 %v4349_v0, %v9756_v10  ;;  %v4837_v40 = vmax.f32 %v10015_v56, 0.0 }
 0x2ab   :  { %5664 = vst [vmem:[%s10952_s4 + $0x78] sm:$0xff] %v5589_v52  ;;  %v7193_v38 = vadd.f32 %v7111_v51, %v9758_v11  ;;  %v5207_v25 = vmax.f32 %v4830_v58, %v5004_v31  ;;  %v5009_v53 = vrot.slane %v4834_v34, 1  ;;  %v5005_v50 = vrot.slane %v4832_v45, 1 }
 0x2ac   :  { %v4758_v44 = vadd.f32 %v9791_v32, %v4674_v63  ;;  %v4677_v1 = vmul.f32 %v7191_v29, %v9785_v26  ;;  %v4675_v54 = vmul.f32 %v7192_v2, %v9785_v26  ;;  %v7194_v12 = vadd.f32 %v4362_v33, %v9760_v13 }
 0x2ad   :  { %v4680_v30 = vmul.f32 %v7193_v38, %v9785_v26  ;;  %v5383_v9 = vrot.slane %v5207_v25, 1  ;;  %v5010_v10 = vsel %vm4963_vm3, %v5007_v8, %v5009_v53  ;;  %v5006_v11 = vsel %vm4963_vm3, %v5003_v60, %v5005_v50  ;;  %v7115_v58 = vpop.f32.mrb[32].mxu0 }
 0x2ae   :  { %v5008_v61 = vsel %vm4963_vm3, %v5005_v50, %v5007_v8  ;;  %v10046_v43 = vmax.f32 %v4833_v57, %v5010_v10  ;;  %v5208_v0 = vmax.f32 %v4831_v39, %v5006_v11  ;;  %v4835_v6 = vmax.f32 %v4758_v44, 0.0  ;;  %v10050_v7 = vpop.f32.mrb[33].mxu0 }
 0x2af   :  { %v10048_v5 = vmax.f32 %v4832_v45, %v5008_v61  ;;  %v5384_v42 = vsel %vm4963_vm3, %v5381_v47, %v5383_v9  ;;  %v10054_v59 = vadd.f32 %v9791_v32, %v4677_v1  ;;  %v4759_v27 = vadd.f32 %v9791_v32, %v4675_v54  ;;  %v10060_v51 = vpop.f32.mrb[34].mxu0 }
 0x2b0   :  { %v10058_v55 = vadd.f32 %v9791_v32, %v4680_v30  ;;  %v5590_v57 = vmax.f32 %v9992_v14, %v5384_v42  ;;  %v5389_v39 = vrot.slane %v10046_v43, 1  ;;  %v5385_v35 = vrot.slane %v5208_v0, 1  ;;  %v10065_v62 = vpop.f32.mrb[35].mxu0 }
 0x2b1   :  { %v5387_v49 = vrot.slane %v10048_v5, 1  ;;  %v5015_v47 = vrot.slane %v4837_v40, 1  ;;  %v5011_v48 = vrot.slane %v4835_v6, 1  ;;  %v4838_v3 = vmax.f32 %v10054_v59, 0.0 }
 0x2b2   :  { %v4836_v37 = vmax.f32 %v4759_v27, 0.0  ;;  %5665 = vst [vmem:[%s10952_s4 + $0x80] sm:$0xff] %v5590_v57  ;;  %v5386_v56 = vsel %vm4963_vm3, %v5383_v9, %v5385_v35  ;;  %v4841_v2 = vmax.f32 %v10058_v55, 0.0  ;;  %v4678_v13 = vmul.f32 %v7194_v12, %v9785_v26 }
 0x2b3   :  { %v5388_v14 = vsel %vm4963_vm3, %v5385_v35, %v5387_v49  ;;  %v5390_v41 = vsel %vm4963_vm3, %v5387_v49, %v5389_v39  ;;  %v5591_v52 = vmax.f32 %v9994_v4, %v5386_v56  ;;  %v5012_v45 = vsel %vm4963_vm3, %v5009_v53, %v5011_v48 }
 0x2b4   :  { %v5592_v60 = vmax.f32 %v9990_v36, %v5388_v14  ;;  %v5593_v8 = vmax.f32 %v5207_v25, %v5390_v41  ;;  %v5211_v63 = vmax.f32 %v4834_v34, %v5012_v45  ;;  %v5017_v31 = vrot.slane %v4838_v3, 1 }
 0x2b5   :  { %v5013_v29 = vrot.slane %v4836_v37, 1  ;;  %5666 = vst [vmem:[%s10952_s4 + $0x88] sm:$0xff] %v5591_v52  ;;  %v7195_v36 = vadd.f32 %v10017_v28, %v9762_v15  ;;  %v7196_v4 = vadd.f32 %v4365_v46, %v9764_v16  ;;  %v7197_v33 = vadd.f32 %v7115_v58, %v9766_v17  ;;  %v7119_v34 = vpop.f32.mrb[36].mxu0 }
 0x2b6   :  { %5667 = vst [vmem:[%s10952_s4 + $0x90] sm:$0xff] %v5592_v60  ;;  %5668 = vst [vmem:[%s10952_s4 + $0x98] sm:$0xff] %v5593_v8  ;;  %v5391_v38 = vrot.slane %v5211_v63, 1  ;;  %v5018_v25 = vsel %vm4963_vm3, %v5015_v47, %v5017_v31  ;;  %v10098_v44 = vpop.f32.mrb[37].mxu0  ;;  %v4762_v15 = vadd.f32 %v9791_v32, %v4678_v13  ;;  %v7198_v49 = vadd.f32 %v10050_v7, %v9768_v18 }
 0x2b7   :  { %v5014_v53 = vsel %vm4963_vm3, %v5011_v48, %v5013_v29  ;;  %v5016_v50 = vsel %vm4963_vm3, %v5013_v29, %v5015_v47  ;;  %v10100_v1 = vmax.f32 %v4837_v40, %v5018_v25  ;;  %v10107_v16 = vpop.f32.mrb[38].mxu0  ;;  %v4681_v28 = vmul.f32 %v7195_v36, %v9785_v26 }
 0x2b8   :  { %v10102_v54 = vmax.f32 %v4835_v6, %v5014_v53  ;;  %v10104_v30 = vmax.f32 %v4836_v37, %v5016_v50  ;;  %v5392_v17 = vsel %vm4963_vm3, %v5389_v39, %v5391_v38  ;;  %v4679_v46 = vmul.f32 %v7196_v4, %v9785_v26  ;;  %v10113_v10 = vpop.f32.mrb[39].mxu0 }
 0x2b9   :  { %v4684_v9 = vmul.f32 %v7197_v33, %v9785_v26  ;;  %v5594_v40 = vmax.f32 %v5208_v0, %v5392_v17  ;;  %v5397_v11 = vrot.slane %v10100_v1, 1  ;;  %v4839_v6 = vmax.f32 %v4762_v15, 0.0 }
 0x2ba   :  { %v5393_v61 = vrot.slane %v10102_v54, 1  ;;  %v5395_v58 = vrot.slane %v10104_v30, 1  ;;  %v10119_v42 = vadd.f32 %v9791_v32, %v4681_v28  ;;  %v4763_v27 = vadd.f32 %v9791_v32, %v4679_v46 }
 0x2bb   :  { %v10123_v57 = vadd.f32 %v9791_v32, %v4684_v9  ;;  %5669 = vst [vmem:[%s10952_s4 + $0xa0] sm:$0xff] %v5594_v40  ;;  %v5019_v56 = vrot.slane %v4839_v6, 1  ;;  %v5023_v41 = vrot.slane %v4841_v2, 1  ;;  %v4682_v60 = vmul.f32 %v7198_v49, %v9785_v26 }
 0x2bc   :  { %v5394_v0 = vsel %vm4963_vm3, %v5391_v38, %v5393_v61  ;;  %v5396_v39 = vsel %vm4963_vm3, %v5393_v61, %v5395_v58  ;;  %v5398_v35 = vsel %vm4963_vm3, %v5395_v58, %v5397_v11  ;;  %v4842_v12 = vmax.f32 %v10119_v42, 0.0 }
 0x2bd   :  { %v5595_v47 = vmax.f32 %v10048_v5, %v5394_v0  ;;  %v5596_v48 = vmax.f32 %v10046_v43, %v5396_v39  ;;  %v5597_v37 = vmax.f32 %v5211_v63, %v5398_v35  ;;  %v10135_v14 = vpop.f32.mrb[40].mxu1  ;;  %v4840_v52 = vmax.f32 %v4763_v27, 0.0  ;;  %v10141_v8 = vpop.f32.mrb[40].mxu0 }
 0x2be   :  { %v10143_v45 = vpop.f32.mrb[41].mxu1  ;;  %v5020_v18 = vsel %vm4963_vm3, %v5017_v31, %v5019_v56  ;;  %v7199_v43 = vadd.f32 %v10060_v51, %v9770_v19  ;;  %v7200_v5 = vadd.f32 %v10065_v62, %v9772_v20  ;;  %v7201_v7 = vadd.f32 %v7119_v34, %v9774_v21  ;;  %v10160_v63 = vpop.f32.mrb[41].mxu0 }
 0x2bf   :  { %5670 = vst [vmem:[%s10952_s4 + $0xa8] sm:$0xff] %v5595_v47  ;;  %5671 = vst [vmem:[%s10952_s4 + $0xb0] sm:$0xff] %v5596_v48  ;;  %v10162_v29 = vpop.f32.mrb[42].mxu1  ;;  %v5215_v13 = vmax.f32 %v4838_v3, %v5020_v18  ;;  %v5025_v36 = vrot.slane %v4842_v12, 1  ;;  %v5021_v4 = vrot.slane %v4840_v52, 1  ;;  %v4845_v33 = vmax.f32 %v10123_v57, 0.0 }
 0x2c0   :  { %5672 = vst [vmem:[%s10952_s4 + $0xb8] sm:$0xff] %v5597_v37  ;;  %v10167_v31 = vpop.f32.mrb[42].mxu0  ;;  %v10169_v38 = vpop.f32.mrb[43].mxu1  ;;  %v4766_v19 = vadd.f32 %v9791_v32, %v4682_v60  ;;  %v4685_v20 = vmul.f32 %v7199_v43, %v9785_v26  ;;  %v4683_v21 = vmul.f32 %v7200_v5, %v9785_v26  ;;  %v4688_v51 = vmul.f32 %v7201_v7, %v9785_v26 }
 0x2c1   :  { %v10175_v62 = vpop.f32.mrb[43].mxu0  ;;  %v5399_v59 = vrot.slane %v5215_v13, 1  ;;  %v5026_v3 = vsel %vm4963_vm3, %v5023_v41, %v5025_v36  ;;  %v5022_v34 = vsel %vm4963_vm3, %v5019_v56, %v5021_v4  ;;  %v5024_v25 = vsel %vm4963_vm3, %v5021_v4, %v5023_v41 }
 0x2c2   :  { %v10182_v53 = vmax.f32 %v4841_v2, %v5026_v3  ;;  %v10184_v50 = vmax.f32 %v4839_v6, %v5022_v34  ;;  %v10186_v15 = vmax.f32 %v4840_v52, %v5024_v25  ;;  %v4843_v17 = vmax.f32 %v4766_v19, 0.0 }
 0x2c3   :  { %v5400_v28 = vsel %vm4963_vm3, %v5397_v11, %v5399_v59  ;;  %v10190_v46 = vadd.f32 %v9791_v32, %v4685_v20  ;;  %v4767_v9 = vadd.f32 %v9791_v32, %v4683_v21  ;;  %v10194_v40 = vadd.f32 %v9791_v32, %v4688_v51 }
 0x2c4   :  { %v5598_v61 = vmax.f32 %v10102_v54, %v5400_v28  ;;  %v5405_v55 = vrot.slane %v10182_v53, 1  ;;  %v5401_v2 = vrot.slane %v10184_v50, 1  ;;  %v5403_v58 = vrot.slane %v10186_v15, 1 }
 0x2c5   :  { %v10200_v6 = vpop.f32.mrb[44].mxu1  ;;  %v5031_v42 = vrot.slane %v4845_v33, 1  ;;  %v5027_v11 = vrot.slane %v4843_v17, 1  ;;  %v4846_v27 = vmax.f32 %v10190_v46, 0.0  ;;  %v4844_v57 = vmax.f32 %v4767_v9, 0.0  ;;  %v10203_v0 = vpop.f32.mrb[44].mxu0 }
 0x2c6   :  { %v10205_v39 = vpop.f32.mrb[45].mxu1  ;;  %5673 = vst [vmem:[%s10952_s4 + $0xc0] sm:$0xff] %v5598_v61  ;;  %v5402_v54 = vsel %vm4963_vm3, %v5399_v59, %v5401_v2  ;;  %v5404_v35 = vsel %vm4963_vm3, %v5401_v2, %v5403_v58  ;;  %v5406_v49 = vsel %vm4963_vm3, %v5403_v58, %v5405_v55  ;;  %v7202_v47 = vadd.f32 %v10098_v44, %v9776_v22  ;;  %v10215_v48 = vpop.f32.mrb[45].mxu0 }
 0x2c7   :  { %v10217_v37 = vpop.f32.mrb[46].mxu1  ;;  %v5599_v56 = vmax.f32 %v10104_v30, %v5402_v54  ;;  %v5600_v41 = vmax.f32 %v10100_v1, %v5404_v35  ;;  %v5601_v52 = vmax.f32 %v5215_v13, %v5406_v49  ;;  %v5028_v60 = vsel %vm4963_vm3, %v5025_v36, %v5027_v11  ;;  %v10222_v18 = vpop.f32.mrb[46].mxu0 }
 0x2c8   :  { %v10224_v43 = vpop.f32.mrb[47].mxu1  ;;  %v5219_v5 = vmax.f32 %v4842_v12, %v5028_v60  ;;  %v5033_v7 = vrot.slane %v4846_v27, 1  ;;  %v5029_v22 = vrot.slane %v4844_v57, 1  ;;  %v4849_v44 = vmax.f32 %v10194_v40, 0.0  ;;  %v10229_v4 = vpop.f32.mrb[47].mxu0 }
 0x2c9   :  { %5674 = vst [vmem:[%s10952_s4 + $0xc8] sm:$0xff] %v5599_v56  ;;  %5675 = vst [vmem:[%s10952_s4 + $0xd0] sm:$0xff] %v5600_v41  ;;  %v4686_v1 = vmul.f32 %v7202_v47, %v9785_v26  ;;  %v7203_v30 = vadd.f32 %v10107_v16, %v9778_v23  ;;  %v7204_v12 = vadd.f32 %v10113_v10, %v9780_v24 }
 0x2ca   :  { %5676 = vst [vmem:[%s10952_s4 + $0xd8] sm:$0xff] %v5601_v52  ;;  %v7205_v13 = vadd.f32 %v10141_v8, %v10135_v14  ;;  %v5407_v36 = vrot.slane %v5219_v5, 1  ;;  %v5034_v19 = vsel %vm4963_vm3, %v5031_v42, %v5033_v7  ;;  %v5030_v20 = vsel %vm4963_vm3, %v5027_v11, %v5029_v22 }
 0x2cb   :  { %v5032_v21 = vsel %vm4963_vm3, %v5029_v22, %v5031_v42  ;;  %v10250_v51 = vmax.f32 %v4845_v33, %v5034_v19  ;;  %v10252_v59 = vmax.f32 %v4843_v17, %v5030_v20  ;;  %v4770_v23 = vadd.f32 %v9791_v32, %v4686_v1 }
 0x2cc   :  { %v10254_v3 = vmax.f32 %v4844_v57, %v5032_v21  ;;  %v5408_v24 = vsel %vm4963_vm3, %v5405_v55, %v5407_v36  ;;  %v4689_v16 = vmul.f32 %v7203_v30, %v9785_v26  ;;  %v4687_v10 = vmul.f32 %v7204_v12, %v9785_v26 }
 0x2cd   :  { %v4692_v14 = vmul.f32 %v7205_v13, %v9785_v26  ;;  %v10261_v8 = vpop.f32.mrb[48].mxu1  ;;  %v5602_v34 = vmax.f32 %v10184_v50, %v5408_v24  ;;  %v5413_v33 = vrot.slane %v10250_v51, 1  ;;  %v5409_v25 = vrot.slane %v10252_v59, 1  ;;  %v10267_v28 = vpop.f32.mrb[48].mxu0 }
 0x2ce   :  { %v5411_v17 = vrot.slane %v10254_v3, 1  ;;  %v10269_v9 = vpop.f32.mrb[49].mxu1  ;;  %v4847_v61 = vmax.f32 %v4770_v23, 0.0  ;;  %v10272_v55 = vadd.f32 %v9791_v32, %v4689_v16  ;;  %v4771_v2 = vadd.f32 %v9791_v32, %v4687_v10  ;;  %v10278_v50 = vpop.f32.mrb[49].mxu0 }
 0x2cf   :  { %v10276_v58 = vadd.f32 %v9791_v32, %v4692_v14  ;;  %v10280_v42 = vpop.f32.mrb[50].mxu1  ;;  %5677 = vst [vmem:[%s10952_s4 + $0xe0] sm:$0xff] %v5602_v34  ;;  %v5410_v11 = vsel %vm4963_vm3, %v5407_v36, %v5409_v25  ;;  %v7206_v35 = vadd.f32 %v10160_v63, %v10143_v45  ;;  %v10290_v49 = vpop.f32.mrb[50].mxu0  ;;  %v5039_v1 = vrot.slane %v4849_v44, 1 }
 0x2d0   :  { %v5412_v57 = vsel %vm4963_vm3, %v5409_v25, %v5411_v17  ;;  %v5414_v54 = vsel %vm4963_vm3, %v5411_v17, %v5413_v33  ;;  %v10292_v47 = vpop.f32.mrb[51].mxu1  ;;  %v5603_v56 = vmax.f32 %v10186_v15, %v5410_v11  ;;  %v5035_v60 = vrot.slane %v4847_v61, 1  ;;  %v10296_v22 = vpop.f32.mrb[51].mxu0 }
 0x2d1   :  { %v5604_v41 = vmax.f32 %v10182_v53, %v5412_v57  ;;  %v5605_v52 = vmax.f32 %v5219_v5, %v5414_v54  ;;  %v4850_v30 = vmax.f32 %v10272_v55, 0.0  ;;  %v4848_v12 = vmax.f32 %v4771_v2, 0.0 }
 0x2d2   :  { %v4690_v45 = vmul.f32 %v7206_v35, %v9785_v26  ;;  %5678 = vst [vmem:[%s10952_s4 + $0xe8] sm:$0xff] %v5603_v56  ;;  %v5036_v63 = vsel %vm4963_vm3, %v5033_v7, %v5035_v60  ;;  %v7207_v53 = vadd.f32 %v10167_v31, %v10162_v29  ;;  %v7208_v15 = vadd.f32 %v10175_v62, %v10169_v38 }
 0x2d3   :  { %5679 = vst [vmem:[%s10952_s4 + $0xf0] sm:$0xff] %v5604_v41  ;;  %5680 = vst [vmem:[%s10952_s4 + $0xf8] sm:$0xff] %v5605_v52  ;;  %v7209_v5 = vadd.f32 %v10203_v0, %v10200_v6  ;;  %v5223_v13 = vmax.f32 %v4846_v27, %v5036_v63  ;;  %v5041_v36 = vrot.slane %v4850_v30, 1  ;;  %v5037_v19 = vrot.slane %v4848_v12, 1 }
 0x2d4   :  { %v4853_v20 = vmax.f32 %v10276_v58, 0.0  ;;  %v10322_v21 = vadd.f32 %v9791_v32, %v4690_v45  ;;  %v4693_v7 = vmul.f32 %v7207_v53, %v9785_v26  ;;  %v4691_v29 = vmul.f32 %v7208_v15, %v9785_v26 }
 0x2d5   :  { %v4696_v31 = vmul.f32 %v7209_v5, %v9785_v26  ;;  %v10327_v38 = vpop.f32.mrb[52].mxu1  ;;  %v5415_v62 = vrot.slane %v5223_v13, 1  ;;  %v5042_v6 = vsel %vm4963_vm3, %v5039_v1, %v5041_v36  ;;  %v5038_v46 = vsel %vm4963_vm3, %v5035_v60, %v5037_v19  ;;  %v10332_v0 = vpop.f32.mrb[52].mxu0 }
 0x2d6   :  { %v5040_v27 = vsel %vm4963_vm3, %v5037_v19, %v5039_v1  ;;  %v10334_v23 = vpop.f32.mrb[53].mxu1  ;;  %v10338_v24 = vmax.f32 %v4849_v44, %v5042_v6  ;;  %v10340_v16 = vmax.f32 %v4847_v61, %v5038_v46  ;;  %v4851_v10 = vmax.f32 %v10322_v21, 0.0  ;;  %v10345_v14 = vpop.f32.mrb[53].mxu0 }
 0x2d7   :  { %v10342_v26 = vmax.f32 %v4848_v12, %v5040_v27  ;;  %v10347_v34 = vpop.f32.mrb[54].mxu1  ;;  %v5416_v25 = vsel %vm4963_vm3, %v5413_v33, %v5415_v62  ;;  %v10351_v17 = vadd.f32 %v9791_v32, %v4693_v7  ;;  %v4775_v55 = vadd.f32 %v9791_v32, %v4691_v29  ;;  %v10357_v44 = vpop.f32.mrb[54].mxu0 }
 0x2d8   :  { %v10355_v40 = vadd.f32 %v9791_v32, %v4696_v31  ;;  %v10359_v61 = vpop.f32.mrb[55].mxu1  ;;  %v5606_v2 = vmax.f32 %v10252_v59, %v5416_v25  ;;  %v5421_v11 = vrot.slane %v10338_v24, 1  ;;  %v5417_v57 = vrot.slane %v10340_v16, 1  ;;  %v10365_v54 = vpop.f32.mrb[55].mxu0 }
 0x2d9   :  { %v5419_v33 = vrot.slane %v10342_v26, 1  ;;  %v5047_v35 = vrot.slane %v4853_v20, 1  ;;  %v5043_v56 = vrot.slane %v4851_v10, 1  ;;  %v4854_v32 = vmax.f32 %v10351_v17, 0.0 }
 0x2da   :  { %v4852_v41 = vmax.f32 %v4775_v55, 0.0  ;;  %5681 = vst [vmem:[%s10952_s4 + $0x100] sm:$0xff] %v5606_v2  ;;  %v5418_v59 = vsel %vm4963_vm3, %v5415_v62, %v5417_v57  ;;  %v7210_v1 = vadd.f32 %v10215_v48, %v10205_v39  ;;  %v4857_v21 = vmax.f32 %v10355_v40, 0.0  ;;  %v10398_v39 = vld [vmem:[%s10950_s2] ss:$0 sm:$0xff] }
 0x2db   :  { %v5420_v52 = vsel %vm4963_vm3, %v5417_v57, %v5419_v33  ;;  %v5422_v60 = vsel %vm4963_vm3, %v5419_v33, %v5421_v11  ;;  %v5607_v12 = vmax.f32 %v10254_v3, %v5418_v59  ;;  %v5044_v53 = vsel %vm4963_vm3, %v5041_v36, %v5043_v56 }
 0x2dc   :  { %v5608_v45 = vmax.f32 %v10250_v51, %v5420_v52  ;;  %v5609_v63 = vmax.f32 %v5223_v13, %v5422_v60  ;;  %v5227_v15 = vmax.f32 %v4850_v30, %v5044_v53  ;;  %v5049_v5 = vrot.slane %v4854_v32, 1 }
 0x2dd   :  { %v5045_v19 = vrot.slane %v4852_v41, 1  ;;  %v10384_v7 = vpop.f32.mrb[56].mxu1  ;;  %5682 = vst [vmem:[%s10952_s4 + $0x108] sm:$0xff] %v5607_v12  ;;  %v4694_v48 = vmul.f32 %v10398_v39, %v7210_v1  ;;  %v7211_v51 = vadd.f32 %v10222_v18, %v10217_v37  ;;  %v7212_v3 = vadd.f32 %v10229_v4, %v10224_v43  ;;  %v10407_v13 = vpop.f32.mrb[56].mxu0 }
 0x2de   :  { %5683 = vst [vmem:[%s10952_s4 + $0x110] sm:$0xff] %v5608_v45  ;;  %5684 = vst [vmem:[%s10952_s4 + $0x118] sm:$0xff] %v5609_v63  ;;  %v7213_v30 = vadd.f32 %v10267_v28, %v10261_v8  ;;  %v10409_v36 = vpop.f32.mrb[57].mxu1  ;;  %v5423_v29 = vrot.slane %v5227_v15, 1  ;;  %v5050_v31 = vsel %vm4963_vm3, %v5047_v35, %v5049_v5  ;;  %v10414_v46 = vpop.f32.mrb[57].mxu0  ;;  %v7214_v12 = vadd.f32 %v10278_v50, %v10269_v9 }
 0x2df   :  { %v5046_v62 = vsel %vm4963_vm3, %v5043_v56, %v5045_v19  ;;  %v5048_v6 = vsel %vm4963_vm3, %v5045_v19, %v5047_v35  ;;  %v10416_v37 = vpop.f32.mrb[58].mxu1  ;;  %v10420_v18 = vmax.f32 %v4853_v20, %v5050_v31  ;;  %v10429_v8 = vld [vmem:[%s10951_s3] ss:$0 sm:$0xff]  ;;  %v10432_v27 = vpop.f32.mrb[58].mxu0  ;;  %v4697_v58 = vmul.f32 %v10398_v39, %v7211_v51 }
 0x2e0   :  { %v10422_v43 = vmax.f32 %v4851_v10, %v5046_v62  ;;  %v10424_v4 = vmax.f32 %v4852_v41, %v5048_v6  ;;  %v4778_v28 = vadd.f32 %v10429_v8, %v4694_v48  ;;  %v10434_v25 = vpop.f32.mrb[59].mxu1  ;;  %v5424_v55 = vsel %vm4963_vm3, %v5421_v11, %v5423_v29  ;;  %v10440_v2 = vpop.f32.mrb[59].mxu0 }
 0x2e1   :  { %v4695_v20 = vmul.f32 %v10398_v39, %v7212_v3  ;;  %v4700_v10 = vmul.f32 %v10398_v39, %v7213_v30  ;;  %v5610_v57 = vmax.f32 %v10340_v16, %v5424_v55  ;;  %v5429_v33 = vrot.slane %v10420_v18, 1 }
 0x2e2   :  { %v5425_v35 = vrot.slane %v10422_v43, 1  ;;  %v5427_v56 = vrot.slane %v10424_v4, 1  ;;  %v4855_v41 = vmax.f32 %v4778_v28, 0.0  ;;  %v10447_v59 = vadd.f32 %v10429_v8, %v4697_v58 }
 0x2e3   :  { %v4779_v11 = vadd.f32 %v10429_v8, %v4695_v20  ;;  %v10451_v52 = vadd.f32 %v10429_v8, %v4700_v10  ;;  %5685 = vst [vmem:[%s10952_s4 + $0x120] sm:$0xff] %v5610_v57  ;;  %v5055_v51 = vrot.slane %v4857_v21, 1  ;;  %v7215_v50 = vadd.f32 %v10290_v49, %v10280_v42 }
 0x2e4   :  { %v5426_v16 = vsel %vm4963_vm3, %v5423_v29, %v5425_v35  ;;  %v5428_v60 = vsel %vm4963_vm3, %v5425_v35, %v5427_v56  ;;  %v5430_v1 = vsel %vm4963_vm3, %v5427_v56, %v5429_v33  ;;  %v5051_v19 = vrot.slane %v4855_v41, 1 }
 0x2e5   :  { %v5611_v45 = vmax.f32 %v10342_v26, %v5426_v16  ;;  %v5612_v63 = vmax.f32 %v10338_v24, %v5428_v60  ;;  %v5613_v53 = vmax.f32 %v5227_v15, %v5430_v1  ;;  %v10463_v48 = vpop.f32.mrb[60].mxu1  ;;  %v4858_v3 = vmax.f32 %v10447_v59, 0.0  ;;  %v10469_v31 = vpop.f32.mrb[60].mxu0 }
 0x2e6   :  { %v4856_v30 = vmax.f32 %v4779_v11, 0.0  ;;  %v4698_v29 = vmul.f32 %v10398_v39, %v7214_v12  ;;  %v10471_v62 = vpop.f32.mrb[61].mxu1  ;;  %v5052_v9 = vsel %vm4963_vm3, %v5049_v5, %v5051_v19  ;;  %v7216_v24 = vadd.f32 %v10296_v22, %v10292_v47  ;;  %v10489_v15 = vpop.f32.mrb[61].mxu0 }
 0x2e7   :  { %5686 = vst [vmem:[%s10952_s4 + $0x128] sm:$0xff] %v5611_v45  ;;  %5687 = vst [vmem:[%s10952_s4 + $0x130] sm:$0xff] %v5612_v63  ;;  %v7217_v26 = vadd.f32 %v10332_v0, %v10327_v38  ;;  %v10491_v6 = vpop.f32.mrb[62].mxu1  ;;  %v5231_v28 = vmax.f32 %v4854_v32, %v5052_v9  ;;  %v5057_v55 = vrot.slane %v4858_v3, 1  ;;  %v4861_v5 = vmax.f32 %v10451_v52, 0.0  ;;  %v10496_v20 = vpop.f32.mrb[62].mxu0 }
 0x2e8   :  { %5688 = vst [vmem:[%s10952_s4 + $0x138] sm:$0xff] %v5613_v53  ;;  %v5053_v58 = vrot.slane %v4856_v30, 1  ;;  %v10498_v42 = vpop.f32.mrb[63].mxu1  ;;  %v4782_v49 = vadd.f32 %v10429_v8, %v4698_v29  ;;  %v4701_v47 = vmul.f32 %v10398_v39, %v7215_v50  ;;  %v4699_v22 = vmul.f32 %v10398_v39, %v7216_v24  ;;  %v10504_v0 = vpop.f32.mrb[63].mxu0 }
 0x2e9   :  { %v4704_v38 = vmul.f32 %v10398_v39, %v7217_v26  ;;  %v5431_v17 = vrot.slane %v5231_v28, 1  ;;  %v5058_v32 = vsel %vm4963_vm3, %v5055_v51, %v5057_v55  ;;  %v5063_v63 = vrot.slane %v4861_v5, 1 }
 0x2ea   :  { %v5054_v10 = vsel %vm4963_vm3, %v5051_v19, %v5053_v58  ;;  %v5056_v57 = vsel %vm4963_vm3, %v5053_v58, %v5055_v51  ;;  %v10511_v35 = vmax.f32 %v4857_v21, %v5058_v32  ;;  %v4859_v11 = vmax.f32 %v4782_v49, 0.0 }
 0x2eb   :  { %v10513_v56 = vmax.f32 %v4855_v41, %v5054_v10  ;;  %v10515_v59 = vmax.f32 %v4856_v30, %v5056_v57  ;;  %v5432_v52 = vsel %vm4963_vm3, %v5429_v33, %v5431_v17  ;;  %v10519_v16 = vadd.f32 %v10429_v8, %v4701_v47 }
 0x2ec   :  { %v4783_v60 = vadd.f32 %v10429_v8, %v4699_v22  ;;  %v10523_v1 = vadd.f32 %v10429_v8, %v4704_v38  ;;  %v5614_v12 = vmax.f32 %v10422_v43, %v5432_v52  ;;  %v5437_v40 = vrot.slane %v10511_v35, 1 }
 0x2ed   :  { %v5433_v21 = vrot.slane %v10513_v56, 1  ;;  %v5435_v41 = vrot.slane %v10515_v59, 1  ;;  %v10529_v45 = vpop.f32.mrb[64].mxu1  ;;  %v5059_v33 = vrot.slane %v4859_v11, 1  ;;  %v4862_v53 = vmax.f32 %v10519_v16, 0.0  ;;  %v10532_v51 = vpop.f32.mrb[64].mxu0 }
 0x2ee   :  { %v4860_v19 = vmax.f32 %v4783_v60, 0.0  ;;  %v10534_v30 = vpop.f32.mrb[65].mxu1  ;;  %5689 = vst [vmem:[%s10952_s4 + $0x140] sm:$0xff] %v5614_v12  ;;  %v7218_v50 = vadd.f32 %v10345_v14, %v10334_v23  ;;  %v10544_v24 = vpop.f32.mrb[65].mxu0  ;;  %v4865_v14 = vmax.f32 %v10523_v1, 0.0 }
 0x2ef   :  { %v5434_v43 = vsel %vm4963_vm3, %v5431_v17, %v5433_v21  ;;  %v5436_v29 = vsel %vm4963_vm3, %v5433_v21, %v5435_v41  ;;  %v5438_v9 = vsel %vm4963_vm3, %v5435_v41, %v5437_v40  ;;  %v10546_v26 = vpop.f32.mrb[66].mxu1  ;;  %v5060_v22 = vsel %vm4963_vm3, %v5057_v55, %v5059_v33  ;;  %v10551_v38 = vpop.f32.mrb[66].mxu0 }
 0x2f0   :  { %v5615_v58 = vmax.f32 %v10424_v4, %v5434_v43  ;;  %v5616_v49 = vmax.f32 %v10420_v18, %v5436_v29  ;;  %v5617_v47 = vmax.f32 %v5231_v28, %v5438_v9  ;;  %v10553_v17 = vpop.f32.mrb[67].mxu1  ;;  %v5235_v32 = vmax.f32 %v4858_v3, %v5060_v22  ;;  %v10558_v57 = vpop.f32.mrb[67].mxu0 }
 0x2f1   :  { %v5065_v10 = vrot.slane %v4862_v53, 1  ;;  %v5061_v23 = vrot.slane %v4860_v19, 1  ;;  %v4702_v18 = vmul.f32 %v10398_v39, %v7218_v50  ;;  %v7219_v4 = vadd.f32 %v10357_v44, %v10347_v34 }
 0x2f2   :  { %5690 = vst [vmem:[%s10952_s4 + $0x148] sm:$0xff] %v5615_v58  ;;  %5691 = vst [vmem:[%s10952_s4 + $0x150] sm:$0xff] %v5616_v49  ;;  %v7220_v3 = vadd.f32 %v10365_v54, %v10359_v61  ;;  %v7221_v28 = vadd.f32 %v10407_v13, %v10384_v7  ;;  %v5439_v55 = vrot.slane %v5235_v32, 1 }
 0x2f3   :  { %5692 = vst [vmem:[%s10952_s4 + $0x158] sm:$0xff] %v5617_v47  ;;  %v5066_v52 = vsel %vm4963_vm3, %v5063_v63, %v5065_v10  ;;  %v5062_v60 = vsel %vm4963_vm3, %v5059_v33, %v5061_v23  ;;  %v5064_v12 = vsel %vm4963_vm3, %v5061_v23, %v5063_v63  ;;  %v4786_v34 = vadd.f32 %v10429_v8, %v4702_v18 }
 0x2f4   :  { %v10579_v21 = vmax.f32 %v4861_v5, %v5066_v52  ;;  %v10581_v41 = vmax.f32 %v4859_v11, %v5062_v60  ;;  %v10583_v43 = vmax.f32 %v4860_v19, %v5064_v12  ;;  %v5440_v44 = vsel %vm4963_vm3, %v5437_v40, %v5439_v55 }
 0x2f5   :  { %v4705_v61 = vmul.f32 %v10398_v39, %v7219_v4  ;;  %v4703_v54 = vmul.f32 %v10398_v39, %v7220_v3  ;;  %v4708_v7 = vmul.f32 %v10398_v39, %v7221_v28  ;;  %v10590_v13 = vpop.f32.mrb[68].mxu1  ;;  %v5618_v63 = vmax.f32 %v10513_v56, %v5440_v44  ;;  %v10596_v19 = vpop.f32.mrb[68].mxu0 }
 0x2f6   :  { %v5445_v5 = vrot.slane %v10579_v21, 1  ;;  %v5441_v11 = vrot.slane %v10581_v41, 1  ;;  %v5443_v33 = vrot.slane %v10583_v43, 1  ;;  %v10598_v29 = vpop.f32.mrb[69].mxu1  ;;  %v4863_v40 = vmax.f32 %v4786_v34, 0.0  ;;  %v10607_v56 = vpop.f32.mrb[69].mxu0 }
 0x2f7   :  { %v10601_v9 = vadd.f32 %v10429_v8, %v4705_v61  ;;  %v4787_v50 = vadd.f32 %v10429_v8, %v4703_v54  ;;  %v10605_v58 = vadd.f32 %v10429_v8, %v4708_v7  ;;  %v10609_v49 = vpop.f32.mrb[70].mxu1  ;;  %5693 = vst [vmem:[%s10952_s4 + $0x160] sm:$0xff] %v5618_v63  ;;  %v7222_v18 = vadd.f32 %v10414_v46, %v10409_v36  ;;  %v10619_v4 = vpop.f32.mrb[70].mxu0 }
 0x2f8   :  { %v5442_v47 = vsel %vm4963_vm3, %v5439_v55, %v5441_v11  ;;  %v5444_v22 = vsel %vm4963_vm3, %v5441_v11, %v5443_v33  ;;  %v5446_v23 = vsel %vm4963_vm3, %v5443_v33, %v5445_v5  ;;  %v10621_v3 = vpop.f32.mrb[71].mxu1  ;;  %v5067_v12 = vrot.slane %v4863_v40, 1  ;;  %v10625_v34 = vpop.f32.mrb[71].mxu0 }
 0x2f9   :  { %v5619_v28 = vmax.f32 %v10515_v59, %v5442_v47  ;;  %v5620_v52 = vmax.f32 %v10511_v35, %v5444_v22  ;;  %v5621_v60 = vmax.f32 %v5235_v32, %v5446_v23  ;;  %v5071_v55 = vrot.slane %v4865_v14, 1 }
 0x2fa   :  { %v4866_v44 = vmax.f32 %v10601_v9, 0.0  ;;  %v4864_v61 = vmax.f32 %v4787_v50, 0.0  ;;  %v4706_v36 = vmul.f32 %v10398_v39, %v7222_v18  ;;  %v5068_v46 = vsel %vm4963_vm3, %v5065_v10, %v5067_v12 }
 0x2fb   :  { %5694 = vst [vmem:[%s10952_s4 + $0x168] sm:$0xff] %v5619_v28  ;;  %5695 = vst [vmem:[%s10952_s4 + $0x170] sm:$0xff] %v5620_v52  ;;  %v7223_v35 = vadd.f32 %v10432_v27, %v10416_v37  ;;  %v7224_v59 = vadd.f32 %v10440_v2, %v10434_v25  ;;  %v7225_v32 = vadd.f32 %v10469_v31, %v10463_v48  ;;  %v4869_v11 = vmax.f32 %v10605_v58, 0.0 }
 0x2fc   :  { %5696 = vst [vmem:[%s10952_s4 + $0x178] sm:$0xff] %v5621_v60  ;;  %v5239_v54 = vmax.f32 %v4862_v53, %v5068_v46  ;;  %v5073_v7 = vrot.slane %v4866_v44, 1  ;;  %v5069_v63 = vrot.slane %v4864_v61, 1  ;;  %v10651_v33 = vadd.f32 %v10429_v8, %v4706_v36 }
 0x2fd   :  { %v4709_v10 = vmul.f32 %v10398_v39, %v7223_v35  ;;  %v4707_v37 = vmul.f32 %v10398_v39, %v7224_v59  ;;  %v4712_v27 = vmul.f32 %v10398_v39, %v7225_v32  ;;  %v10656_v25 = vpop.f32.mrb[72].mxu1  ;;  %v10661_v53 = vpop.f32.mrb[72].mxu0  ;;  %v5079_v46 = vrot.slane %v4869_v11, 1 }
 0x2fe   :  { %v5447_v2 = vrot.slane %v5239_v54, 1  ;;  %v5074_v48 = vsel %vm4963_vm3, %v5071_v55, %v5073_v7  ;;  %v5070_v31 = vsel %vm4963_vm3, %v5067_v12, %v5069_v63  ;;  %v5072_v16 = vsel %vm4963_vm3, %v5069_v63, %v5071_v55  ;;  %v10663_v9 = vpop.f32.mrb[73].mxu1  ;;  %v10674_v23 = vpop.f32.mrb[73].mxu0 }
 0x2ff   :  { %v10667_v50 = vmax.f32 %v4865_v14, %v5074_v48  ;;  %v10669_v58 = vmax.f32 %v4863_v40, %v5070_v31  ;;  %v10671_v47 = vmax.f32 %v4864_v61, %v5072_v16  ;;  %v4867_v22 = vmax.f32 %v10651_v33, 0.0  ;;  %v10676_v18 = vpop.f32.mrb[74].mxu1  ;;  %v10686_v14 = vpop.f32.mrb[74].mxu0 }
 0x300   :  { %v5448_v28 = vsel %vm4963_vm3, %v5445_v5, %v5447_v2  ;;  %v10680_v52 = vadd.f32 %v10429_v8, %v4709_v10  ;;  %v4791_v60 = vadd.f32 %v10429_v8, %v4707_v37  ;;  %v10684_v1 = vadd.f32 %v10429_v8, %v4712_v27  ;;  %v10688_v40 = vpop.f32.mrb[75].mxu1  ;;  %v10694_v36 = vpop.f32.mrb[75].mxu0 }
 0x301   :  { %v5622_v12 = vmax.f32 %v10581_v41, %v5448_v28  ;;  %v5453_v55 = vrot.slane %v10667_v50, 1  ;;  %v5449_v61 = vrot.slane %v10669_v58, 1  ;;  %v5451_v5 = vrot.slane %v10671_v47, 1 }
 0x302   :  { %v5075_v35 = vrot.slane %v4867_v22, 1  ;;  %v4870_v59 = vmax.f32 %v10680_v52, 0.0  ;;  %v4868_v32 = vmax.f32 %v4791_v60, 0.0  ;;  %v7226_v10 = vadd.f32 %v10489_v15, %v10471_v62 }
 0x303   :  { %5697 = vst [vmem:[%s10952_s4 + $0x180] sm:$0xff] %v5622_v12  ;;  %v5450_v63 = vsel %vm4963_vm3, %v5447_v2, %v5449_v61  ;;  %v5452_v41 = vsel %vm4963_vm3, %v5449_v61, %v5451_v5  ;;  %v5454_v33 = vsel %vm4963_vm3, %v5451_v5, %v5453_v55  ;;  %v4873_v2 = vmax.f32 %v10684_v1, 0.0 }
 0x304   :  { %v5623_v37 = vmax.f32 %v10583_v43, %v5450_v63  ;;  %v5624_v27 = vmax.f32 %v10579_v21, %v5452_v41  ;;  %v5625_v48 = vmax.f32 %v5239_v54, %v5454_v33  ;;  %v5076_v31 = vsel %vm4963_vm3, %v5073_v7, %v5075_v35 }
 0x305   :  { %v5243_v16 = vmax.f32 %v4866_v44, %v5076_v31  ;;  %v5081_v28 = vrot.slane %v4870_v59, 1  ;;  %v5077_v60 = vrot.slane %v4868_v32, 1  ;;  %v6907_v12 = vpop.f32.mrb[76].mxu1  ;;  %v4710_v62 = vmul.f32 %v10398_v39, %v7226_v10  ;;  %v7159_v44 = vpop.f32.mrb[76].mxu0 }
 0x306   :  { %5698 = vst [vmem:[%s10952_s4 + $0x188] sm:$0xff] %v5623_v37  ;;  %5699 = vst [vmem:[%s10952_s4 + $0x190] sm:$0xff] %v5624_v27  ;;  %v7227_v15 = vadd.f32 %v10496_v20, %v10491_v6  ;;  %v7228_v21 = vadd.f32 %v10504_v0, %v10498_v42  ;;  %v7229_v43 = vadd.f32 %v10532_v51, %v10529_v45  ;;  %v10727_v54 = vpop.f32.mrb[77].mxu1  ;;  %v10732_v41 = vpop.f32.mrb[77].mxu0 }
 0x307   :  { %5700 = vst [vmem:[%s10952_s4 + $0x198] sm:$0xff] %v5625_v48  ;;  %v5455_v7 = vrot.slane %v5243_v16, 1  ;;  %v5082_v61 = vsel %vm4963_vm3, %v5079_v46, %v5081_v28  ;;  %v5078_v5 = vsel %vm4963_vm3, %v5075_v35, %v5077_v60  ;;  %v5080_v63 = vsel %vm4963_vm3, %v5077_v60, %v5079_v46  ;;  %v6908_v33 = vpop.f32.mrb[78].mxu1  ;;  %v7160_v45 = vpop.f32.mrb[78].mxu0 }
 0x308   :  { %v10734_v6 = vmax.f32 %v4869_v11, %v5082_v61  ;;  %v10736_v20 = vmax.f32 %v4867_v22, %v5078_v5  ;;  %v10738_v42 = vmax.f32 %v4868_v32, %v5080_v63  ;;  %v4794_v0 = vadd.f32 %v10429_v8, %v4710_v62  ;;  %v2511_v51 = vpop.f32.mrb[79].mxu1  ;;  %v4557_v27 = vpop.f32.mrb[79].mxu0 }
 0x309   :  { %v5456_v10 = vsel %vm4963_vm3, %v5453_v55, %v5455_v7  ;;  %v4713_v37 = vmul.f32 %v10398_v39, %v7227_v15  ;;  %v4711_v35 = vmul.f32 %v10398_v39, %v7228_v21  ;;  %v4716_v46 = vmul.f32 %v10398_v39, %v7229_v43 }
 0x30a   :  { %v5626_v11 = vmax.f32 %v10669_v58, %v5456_v10  ;;  %v5461_v22 = vrot.slane %v10734_v6, 1  ;;  %v5457_v32 = vrot.slane %v10736_v20, 1  ;;  %v5459_v48 = vrot.slane %v10738_v42, 1 }
 0x30b   :  { %v4871_v31 = vmax.f32 %v4794_v0, 0.0  ;;  %v4797_v60 = vadd.f32 %v10429_v8, %v4713_v37  ;;  %v4795_v55 = vadd.f32 %v10429_v8, %v4711_v35  ;;  %v10752_v12 = vadd.f32 %v10429_v8, %v4716_v46 }
 0x30c   :  { %5701 = vst [vmem:[%s10952_s4 + $0x1a0] sm:$0xff] %v5626_v11  ;;  %v5458_v58 = vsel %vm4963_vm3, %v5455_v7, %v5457_v32  ;;  %v5460_v62 = vsel %vm4963_vm3, %v5457_v32, %v5459_v48  ;;  %v5462_v15 = vsel %vm4963_vm3, %v5459_v48, %v5461_v22  ;;  %v7230_v21 = vadd.f32 %v10544_v24, %v10534_v30 }
 0x30d   :  { %v5627_v43 = vmax.f32 %v10671_v47, %v5458_v58  ;;  %v5628_v44 = vmax.f32 %v10667_v50, %v5460_v62  ;;  %v5629_v61 = vmax.f32 %v5243_v16, %v5462_v15  ;;  %v5083_v5 = vrot.slane %v4871_v31, 1 }
 0x30e   :  { %v4874_v63 = vmax.f32 %v4797_v60, 0.0  ;;  %v4872_v33 = vmax.f32 %v4795_v55, 0.0  ;;  %v4714_v0 = vmul.f32 %v10398_v39, %v7230_v21  ;;  %v7231_v24 = vadd.f32 %v10551_v38, %v10546_v26 }
 0x30f   :  { %5702 = vst [vmem:[%s10952_s4 + $0x1a8] sm:$0xff] %v5627_v43  ;;  %5703 = vst [vmem:[%s10952_s4 + $0x1b0] sm:$0xff] %v5628_v44  ;;  %v5084_v30 = vsel %vm4963_vm3, %v5081_v28, %v5083_v5  ;;  %v7232_v50 = vadd.f32 %v10558_v57, %v10553_v17  ;;  %v7233_v47 = vadd.f32 %v10596_v19, %v10590_v13  ;;  %v5087_v16 = vrot.slane %v4873_v2, 1 }
 0x310   :  { %5704 = vst [vmem:[%s10952_s4 + $0x1b8] sm:$0xff] %v5629_v61  ;;  %v5247_v7 = vmax.f32 %v4870_v59, %v5084_v30  ;;  %v5089_v45 = vrot.slane %v4874_v63, 1  ;;  %v5085_v51 = vrot.slane %v4872_v33, 1  ;;  %v4877_v10 = vmax.f32 %v10752_v12, 0.0 }
 0x311   :  { %v4798_v28 = vadd.f32 %v10429_v8, %v4714_v0  ;;  %v4717_v26 = vmul.f32 %v10398_v39, %v7231_v24  ;;  %v4715_v38 = vmul.f32 %v10398_v39, %v7232_v50  ;;  %v4720_v32 = vmul.f32 %v10398_v39, %v7233_v47 }
 0x312   :  { %v5463_v17 = vrot.slane %v5247_v7, 1  ;;  %v5090_v57 = vsel %vm4963_vm3, %v5087_v16, %v5089_v45  ;;  %v5086_v13 = vsel %vm4963_vm3, %v5083_v5, %v5085_v51  ;;  %v5088_v19 = vsel %vm4963_vm3, %v5085_v51, %v5087_v16 }
 0x313   :  { %v10794_v52 = vmax.f32 %v4873_v2, %v5090_v57  ;;  %v5248_v59 = vmax.f32 %v4871_v31, %v5086_v13  ;;  %v10796_v37 = vmax.f32 %v4872_v33, %v5088_v19  ;;  %v4875_v35 = vmax.f32 %v4798_v28, 0.0 }
 0x314   :  { %v5464_v46 = vsel %vm4963_vm3, %v5461_v22, %v5463_v17  ;;  %v10800_v27 = vadd.f32 %v10429_v8, %v4717_v26  ;;  %v4799_v11 = vadd.f32 %v10429_v8, %v4715_v38  ;;  %v5095_v31 = vrot.slane %v4877_v10, 1 }
 0x315   :  { %v5630_v48 = vmax.f32 %v10736_v20, %v5464_v46  ;;  %v5469_v60 = vrot.slane %v10794_v52, 1  ;;  %v5465_v1 = vrot.slane %v5248_v59, 1  ;;  %v5467_v2 = vrot.slane %v10796_v37, 1 }
 0x316   :  { %v5091_v55 = vrot.slane %v4875_v35, 1  ;;  %v4878_v12 = vmax.f32 %v10800_v27, 0.0  ;;  %v4876_v58 = vmax.f32 %v4799_v11, 0.0  ;;  %v7234_v15 = vadd.f32 %v10607_v56, %v10598_v29 }
 0x317   :  { %5705 = vst [vmem:[%s10952_s4 + $0x1c0] sm:$0xff] %v5630_v48  ;;  %v5466_v22 = vsel %vm4963_vm3, %v5463_v17, %v5465_v1  ;;  %v5468_v62 = vsel %vm4963_vm3, %v5465_v1, %v5467_v2  ;;  %v5470_v20 = vsel %vm4963_vm3, %v5467_v2, %v5469_v60  ;;  %v4804_v30 = vadd.f32 %v10429_v8, %v4720_v32 }
 0x318   :  { %v5631_v21 = vmax.f32 %v10738_v42, %v5466_v22  ;;  %v5632_v43 = vmax.f32 %v10734_v6, %v5468_v62  ;;  %v5633_v44 = vmax.f32 %v5247_v7, %v5470_v20  ;;  %v5092_v61 = vsel %vm4963_vm3, %v5089_v45, %v5091_v55 }
 0x319   :  { %v5251_v5 = vmax.f32 %v4874_v63, %v5092_v61  ;;  %v5097_v33 = vrot.slane %v4878_v12, 1  ;;  %v5093_v0 = vrot.slane %v4876_v58, 1  ;;  %v4718_v29 = vmul.f32 %v10398_v39, %v7234_v15 }
 0x31a   :  { %5706 = vst [vmem:[%s10952_s4 + $0x1c8] sm:$0xff] %v5631_v21  ;;  %5707 = vst [vmem:[%s10952_s4 + $0x1d0] sm:$0xff] %v5632_v43  ;;  %v7235_v56 = vadd.f32 %v10619_v4, %v10609_v49  ;;  %v7236_v6 = vadd.f32 %v10625_v34, %v10621_v3  ;;  %v7237_v42 = vadd.f32 %v10661_v53, %v10656_v25  ;;  %v4881_v26 = vmax.f32 %v4804_v30, 0.0 }
 0x31b   :  { %5708 = vst [vmem:[%s10952_s4 + $0x1d8] sm:$0xff] %v5633_v44  ;;  %v5471_v63 = vrot.slane %v5251_v5, 1  ;;  %v5098_v24 = vsel %vm4963_vm3, %v5095_v31, %v5097_v33  ;;  %v5094_v50 = vsel %vm4963_vm3, %v5091_v55, %v5093_v0  ;;  %v5096_v47 = vsel %vm4963_vm3, %v5093_v0, %v5095_v31 }
 0x31c   :  { %v10841_v16 = vmax.f32 %v4877_v10, %v5098_v24  ;;  %v10843_v7 = vmax.f32 %v4875_v35, %v5094_v50  ;;  %v10845_v45 = vmax.f32 %v4876_v58, %v5096_v47  ;;  %v4802_v49 = vadd.f32 %v10429_v8, %v4718_v29 }
 0x31d   :  { %v5472_v4 = vsel %vm4963_vm3, %v5469_v60, %v5471_v63  ;;  %v4721_v3 = vmul.f32 %v10398_v39, %v7235_v56  ;;  %v4719_v34 = vmul.f32 %v10398_v39, %v7236_v6  ;;  %v4724_v25 = vmul.f32 %v10398_v39, %v7237_v42 }
 0x31e   :  { %v5634_v53 = vmax.f32 %v5248_v59, %v5472_v4  ;;  %v5477_v51 = vrot.slane %v10841_v16, 1  ;;  %v5473_v10 = vrot.slane %v10843_v7, 1  ;;  %v5475_v28 = vrot.slane %v10845_v45, 1 }
 0x31f   :  { %v4879_v38 = vmax.f32 %v4802_v49, 0.0  ;;  %v4805_v17 = vadd.f32 %v10429_v8, %v4721_v3  ;;  %v4803_v57 = vadd.f32 %v10429_v8, %v4719_v34  ;;  %v7238_v35 = vadd.f32 %v10674_v23, %v10663_v9 }
 0x320   :  { %5709 = vst [vmem:[%s10952_s4 + $0x1e0] sm:$0xff] %v5634_v53  ;;  %v5474_v13 = vsel %vm4963_vm3, %v5471_v63, %v5473_v10  ;;  %v5476_v19 = vsel %vm4963_vm3, %v5473_v10, %v5475_v28  ;;  %v5478_v59 = vsel %vm4963_vm3, %v5475_v28, %v5477_v51  ;;  %v4808_v2 = vadd.f32 %v10429_v8, %v4724_v25 }
 0x321   :  { %v5635_v46 = vmax.f32 %v10796_v37, %v5474_v13  ;;  %v5636_v11 = vmax.f32 %v10794_v52, %v5476_v19  ;;  %v5637_v32 = vmax.f32 %v5251_v5, %v5478_v59  ;;  %v5099_v48 = vrot.slane %v4879_v38, 1 }
 0x322   :  { %v4882_v60 = vmax.f32 %v4805_v17, 0.0  ;;  %v4880_v1 = vmax.f32 %v4803_v57, 0.0  ;;  %v4722_v31 = vmul.f32 %v10398_v39, %v7238_v35  ;;  %v7239_v23 = vadd.f32 %v10686_v14, %v10676_v18 }
 0x323   :  { %5710 = vst [vmem:[%s10952_s4 + $0x1e8] sm:$0xff] %v5635_v46  ;;  %5711 = vst [vmem:[%s10952_s4 + $0x1f0] sm:$0xff] %v5636_v11  ;;  %v5100_v9 = vsel %vm4963_vm3, %v5097_v33, %v5099_v48  ;;  %v7240_v52 = vadd.f32 %v10694_v36, %v10688_v40  ;;  %v7241_v37 = vadd.f32 %v10732_v41, %v10727_v54  ;;  %v5103_v55 = vrot.slane %v4881_v26, 1 }
 0x324   :  { %5712 = vst [vmem:[%s10952_s4 + $0x1f8] sm:$0xff] %v5637_v32  ;;  %v5255_v58 = vmax.f32 %v4878_v12, %v5100_v9  ;;  %v5105_v22 = vrot.slane %v4882_v60, 1  ;;  %v5101_v62 = vrot.slane %v4880_v1, 1  ;;  %v4806_v20 = vadd.f32 %v10429_v8, %v4722_v31 }
 0x325   :  { %v4725_v15 = vmul.f32 %v10398_v39, %v7239_v23  ;;  %v4723_v21 = vmul.f32 %v10398_v39, %v7240_v52  ;;  %v4726_v18 = vmul.f32 %v10398_v39, %v7241_v37  ;;  %v4885_v43 = vmax.f32 %v4808_v2, 0.0 }
 0x326   :  { %v5479_v14 = vrot.slane %v5255_v58, 1  ;;  %v5106_v40 = vsel %vm4963_vm3, %v5103_v55, %v5105_v22  ;;  %v5102_v36 = vsel %vm4963_vm3, %v5099_v48, %v5101_v62  ;;  %v5104_v54 = vsel %vm4963_vm3, %v5101_v62, %v5103_v55 }
 0x327   :  { %v5258_v41 = vmax.f32 %v4881_v26, %v5106_v40  ;;  %v5256_v27 = vmax.f32 %v4879_v38, %v5102_v36  ;;  %v5257_v12 = vmax.f32 %v4880_v1, %v5104_v54  ;;  %v4883_v61 = vmax.f32 %v4806_v20, 0.0 }
 0x328   :  { %v5480_v44 = vsel %vm4963_vm3, %v5477_v51, %v5479_v14  ;;  %v4809_v5 = vadd.f32 %v10429_v8, %v4725_v15  ;;  %v4807_v33 = vadd.f32 %v10429_v8, %v4723_v21  ;;  %v4810_v63 = vadd.f32 %v10429_v8, %v4726_v18 }
 0x329   :  { %v5638_v39 = vmax.f32 %v10843_v7, %v5480_v44  ;;  %v5485_v0 = vrot.slane %v5258_v41, 1  ;;  %v5481_v30 = vrot.slane %v5256_v27, 1  ;;  %v5483_v29 = vrot.slane %v5257_v12, 1 }
 0x32a   :  { %v5107_v56 = vrot.slane %v4883_v61, 1  ;;  %v4886_v6 = vmax.f32 %v4809_v5, 0.0  ;;  %v4884_v42 = vmax.f32 %v4807_v33, 0.0  ;;  %v5111_v49 = vrot.slane %v4885_v43, 1 }
 0x32b   :  { %5713 = vst [vmem:[%s10952_s4 + $0x200] sm:$0xff] %v5638_v39  ;;  %v5482_v24 = vsel %vm4963_vm3, %v5479_v14, %v5481_v30  ;;  %v5484_v50 = vsel %vm4963_vm3, %v5481_v30, %v5483_v29  ;;  %v5486_v47 = vsel %vm4963_vm3, %v5483_v29, %v5485_v0  ;;  %v4887_v51 = vmax.f32 %v4810_v63, 0.0 }
 0x32c   :  { %v5639_v7 = vmax.f32 %v10845_v45, %v5482_v24  ;;  %v5640_v4 = vmax.f32 %v10841_v16, %v5484_v50  ;;  %v5641_v3 = vmax.f32 %v5255_v58, %v5486_v47  ;;  %v5108_v34 = vsel %vm4963_vm3, %v5105_v22, %v5107_v56 }
 0x32d   :  { %v5259_v25 = vmax.f32 %v4882_v60, %v5108_v34  ;;  %v5265_v8 = vrot.slane %v4886_v6, 1  ;;  %v5109_v53 = vrot.slane %v4884_v42, 1  ;;  %v5267_v57 = vrot.slane %v4887_v51, 1 }
 0x32e   :  { %5714 = vst [vmem:[%s10952_s4 + $0x208] sm:$0xff] %v5639_v7  ;;  %5715 = vst [vmem:[%s10952_s4 + $0x210] sm:$0xff] %v5640_v4  ;;  %v5262_v11 = vmax.f32 %v4885_v43, %v5111_v49 }
 0x32f   :  { %5716 = vst [vmem:[%s10952_s4 + $0x218] sm:$0xff] %v5641_v3  ;;  %v5487_v16 = vrot.slane %v5259_v25, 1  ;;  %v5266_v45 = vsel %vm4963_vm3, %v5111_v49, %v5265_v8  ;;  %v5110_v10 = vsel %vm4963_vm3, %v5107_v56, %v5109_v53  ;;  %v5112_v28 = vsel %vm4963_vm3, %v5109_v53, %v5111_v49 }
 0x330   :  { %v5272_v26 = vmax.f32 %v4885_v43, %v5266_v45  ;;  %v5260_v38 = vmax.f32 %v4883_v61, %v5110_v10  ;;  %v5261_v17 = vmax.f32 %v4884_v42, %v5112_v28  ;;  %v5268_v32 = vsel %vm4963_vm3, %v5265_v8, %v5267_v57 }
 0x331   :  { %v5488_v13 = vsel %vm4963_vm3, %v5485_v0, %v5487_v16  ;;  %v5274_v48 = vmax.f32 %v4887_v51, %v5267_v57  ;;  %v5273_v31 = vmax.f32 %v4886_v6, %v5268_v32 }
 0x332   :  { %v5642_v19 = vmax.f32 %v5256_v27, %v5488_v13  ;;  %v5493_v59 = vrot.slane %v5272_v26, 1  ;;  %v5489_v35 = vrot.slane %v5260_v38, 1  ;;  %v5491_v46 = vrot.slane %v5261_v17, 1 }
 0x333   :  { %v5497_v37 = vrot.slane %v5274_v48, 1  ;;  %v5495_v55 = vrot.slane %v5273_v31, 1 }
 0x334   :  { %5717 = vst [vmem:[%s10952_s4 + $0x220] sm:$0xff] %v5642_v19  ;;  %v5490_v60 = vsel %vm4963_vm3, %v5487_v16, %v5489_v35  ;;  %v5492_v1 = vsel %vm4963_vm3, %v5489_v35, %v5491_v46  ;;  %v5494_v2 = vsel %vm4963_vm3, %v5491_v46, %v5493_v59 }
 0x335   :  { %v5643_v9 = vmax.f32 %v5257_v12, %v5490_v60  ;;  %v5644_v23 = vmax.f32 %v5258_v41, %v5492_v1  ;;  %v5645_v52 = vmax.f32 %v5259_v25, %v5494_v2  ;;  %v5648_v58 = vmax.f32 %v5262_v11, %v5497_v37 }
 0x336   :  { %v5496_v22 = vsel %vm4963_vm3, %v5493_v59, %v5495_v55  ;;  %v5498_v62 = vsel %vm4963_vm3, %v5495_v55, %v5497_v37 }
 0x337   :  { %5718 = vst [vmem:[%s10952_s4 + $0x228] sm:$0xff] %v5643_v9  ;;  %5719 = vst [vmem:[%s10952_s4 + $0x230] sm:$0xff] %v5644_v23  ;;  %v5646_v20 = vmax.f32 %v5260_v38, %v5496_v22  ;;  %v5647_v15 = vmax.f32 %v5261_v17, %v5498_v62 }
 0x338   :  { %5720 = vst [vmem:[%s10952_s4 + $0x238] sm:$0xff] %v5645_v52  ;;  %5723 = vst [vmem:[%s10952_s4 + $0x250] sm:$0x1] %v5648_v58 }
 0x339   :  { %5721 = vst [vmem:[%s10952_s4 + $0x240] sm:$0xff] %v5646_v20  ;;  %5722 = vst [vmem:[%s10952_s4 + $0x248] sm:$0xff] %v5647_v15 }

// kernel: rescnn_forward.5
= control target key start
LH: loop header
LB: loop body
LE: loop exit
PB: predicated region body
PF: predicated region fallthrough
CT: control target
= control target key end

     0   :  { %v3867_v1 = vmov 0.0   ;;  %vm3868_vm0 = vmmov 0   ;;  %s4669_s0 = inlined_call_operand.vmem [shape: f32[4,18,128], index: 0, kind: input, shape index: {}]   ;;  %s4670_s1 = inlined_call_operand.vmem [shape: bf16[9,128,128], index: 1, kind: input, shape index: {}]   ;;  %s4671_s2 = inlined_call_operand.vmem [shape: f32[1,128], index: 2, kind: input, shape index: {}]   ;;  %s4672_s3 = inlined_call_operand.vmem [shape: f32[1,128], index: 3, kind: input, shape index: {}]   ;;  %s4673_s4 = inlined_call_operand.vmem [shape: bf16[9,128,128], index: 4, kind: input, shape index: {}]   ;;  %s4674_s5 = inlined_call_operand.vmem [shape: f32[1,128], index: 5, kind: input, shape index: {}]   ;;  %s4675_s6 = inlined_call_operand.vmem [shape: f32[1,128], index: 6, kind: input, shape index: {}]   ;;  %s4676_s7 = inlined_call_operand.vmem [shape: bf16[128,128], index: 7, kind: input, shape index: {}]   ;;  %s4677_s8 = inlined_call_operand.vmem [shape: f32[1,128], index: 8, kind: input, shape index: {}]   ;;  %s4678_s9 = inlined_call_operand.vmem [shape: bf16[128,2], index: 9, kind: input, shape index: {}]   ;;  %s4679_s10 = inlined_call_operand.vmem [shape: f32[1,2], index: 10, kind: input, shape index: {}]   ;;  %s4680_s11 = inlined_call_operand.hbm [shape: f32[2,2], index: 11, kind: output, shape index: {}]  }
   0x1   :  { %v3674_v0 = vld [vmem:[%s4670_s1 + $0x40] sm:$0xff]   ;;  %3187 = vmatprep.subr.bf16.mxu0 %v3867_v1  ;;  %1057 = vst [vmem:[#allocation2] sm:$0xff] %v3867_v1  ;;  %1058 = vst [vmem:[#allocation2 + $0x8] sm:$0xff] %v3867_v1  ;;  %v3675_v2 = vld [vmem:[%s4670_s1 + $0x48] sm:$0xff]   ;;  %3203 = vmatprep.mubr.msk.bf16.mxu0 %vm3868_vm0, %v3867_v1 }
   0x2   :  { %1059 = vst [vmem:[#allocation2 + $0x10] sm:$0xff] %v3867_v1  ;;  %1060 = vst [vmem:[#allocation2 + $0x18] sm:$0xff] %v3867_v1  ;;  %3188 = vmatpush3.bf16.msra.mxu0 %v3674_v0  ;;  %v3676_v3 = vld [vmem:[%s4670_s1 + $0x50] sm:$0xff]   ;;  %v3677_v4 = vld [vmem:[%s4670_s1 + $0x58] sm:$0xff]  }
   0x3   :  { %3189 = vmatprep.subr.bf16.mxu0 %v3867_v1  ;;  %v3678_v5 = vld [vmem:[%s4670_s1 + $0x60] sm:$0xff]   ;;  %v3679_v6 = vld [vmem:[%s4670_s1 + $0x68] sm:$0xff]   ;;  %v3680_v7 = vld [vmem:[%s4670_s1 + $0x70] sm:$0xff]  }
   0x4   :  { %v3681_v8 = vld [vmem:[%s4670_s1 + $0x78] sm:$0xff]   ;;  %v2549_v10 = vld [vmem:[%s4669_s0 + $0x20] sm:$0x3f]  ;;  %v3683_v13 = vld [vmem:[%s4670_s1 + $0x8] sm:$0xff]  }
   0x5   :  { %v2548_v9 = vld [vmem:[%s4669_s0 + $0x18] sm:$0xff]  ;;  %v3682_v12 = vld [vmem:[%s4670_s1] sm:$0xff]   ;;  %v3684_v14 = vld [vmem:[%s4670_s1 + $0x10] sm:$0xff]  }
   0x6   :  { %3190 = vmatpush3.bf16.msra.mxu0 %v3675_v2  ;;  %v62_v11 = vpack.c.bf16 %v2549_v10, %v2548_v9  ;;  %v3685_v15 = vld [vmem:[%s4670_s1 + $0x18] sm:$0xff]   ;;  %v3686_v16 = vld [vmem:[%s4670_s1 + $0x20] sm:$0xff]   ;;  %v3687_v17 = vld [vmem:[%s4670_s1 + $0x28] sm:$0xff]  }
   0x7   :  { %3191 = vmatprep.subr.bf16.mxu0 %v3867_v1  ;;  %v3688_v18 = vld [vmem:[%s4670_s1 + $0x30] sm:$0xff]   ;;  %v3689_v19 = vld [vmem:[%s4670_s1 + $0x38] sm:$0xff]   ;;  %v40_v20 = vld [vmem:[%s4669_s0] sm:$0xff] }
   0x8   :  { %v41_v21 = vld [vmem:[%s4669_s0 + $0x8] sm:$0x3f]  ;;  %v3690_v22 = vld [vmem:[%s4670_s1 + $0x80] sm:$0xff]   ;;  %v3692_v25 = vld [vmem:[%s4670_s1 + $0x90] sm:$0xff]  }
   0x9   :  { %v42_v23 = vpack.c.bf16 %v41_v21, %v40_v20  ;;  %v3691_v24 = vld [vmem:[%s4670_s1 + $0x88] sm:$0xff]   ;;  %v3693_v26 = vld [vmem:[%s4670_s1 + $0x98] sm:$0xff]   ;;  %v3694_v27 = vld [vmem:[%s4670_s1 + $0xa0] sm:$0xff]  }
   0xa   :  { %3192 = vmatpush3.bf16.msra.mxu0 %v3676_v3  ;;  %v3695_v28 = vld [vmem:[%s4670_s1 + $0xa8] sm:$0xff]   ;;  %v3696_v29 = vld [vmem:[%s4670_s1 + $0xb0] sm:$0xff]   ;;  %v3697_v30 = vld [vmem:[%s4670_s1 + $0xb8] sm:$0xff]  }
   0xb   :  { %3193 = vmatprep.subr.bf16.mxu0 %v3867_v1  ;;  %v258_v31 = vld [vmem:[%s4669_s0 + $0x1] sm:$0xff]  ;;  %v259_v32 = vld [vmem:[%s4669_s0 + $0x9] sm:$0x3f]  ;;  %v3700_v36 = vld [vmem:[%s4670_s1 + $0xd0] sm:$0xff]  }
   0xc   :  { %v3698_v33 = vld [vmem:[%s4670_s1 + $0xc0] sm:$0xff]   ;;  %v260_v34 = vpack.c.bf16 %v259_v32, %v258_v31  ;;  %v3699_v35 = vld [vmem:[%s4670_s1 + $0xc8] sm:$0xff]   ;;  %v3701_v37 = vld [vmem:[%s4670_s1 + $0xd8] sm:$0xff]  }
   0xd   :  { %v3702_v38 = vld [vmem:[%s4670_s1 + $0xe0] sm:$0xff]   ;;  %v3703_v39 = vld [vmem:[%s4670_s1 + $0xe8] sm:$0xff]   ;;  %v3704_v40 = vld [vmem:[%s4670_s1 + $0xf0] sm:$0xff]  }
   0xe   :  { %3194 = vmatpush3.bf16.msra.mxu0 %v3677_v4  ;;  %v3705_v41 = vld [vmem:[%s4670_s1 + $0xf8] sm:$0xff]   ;;  %v2606_v42 = vld [vmem:[%s4669_s0 + $0x30] sm:$0xff]  ;;  %v3706_v44 = vld [vmem:[%s4670_s1 + $0x100] sm:$0xff]  }
   0xf   :  { %3195 = vmatprep.subr.bf16.mxu0 %v3867_v1  ;;  %v2607_v43 = vld [vmem:[%s4669_s0 + $0x38] sm:$0x3f]  ;;  %v3707_v46 = vld [vmem:[%s4670_s1 + $0x108] sm:$0xff]   ;;  %v3708_v47 = vld [vmem:[%s4670_s1 + $0x110] sm:$0xff]  }
  0x10   :  { %v372_v45 = vpack.c.bf16 %v2607_v43, %v2606_v42  ;;  %v3709_v48 = vld [vmem:[%s4670_s1 + $0x118] sm:$0xff]  }
  0x12   :  { %3196 = vmatpush3.bf16.msra.mxu0 %v3678_v5 }
  0x13   :  { %3197 = vmatprep.subr.bf16.mxu0 %v3867_v1 }
  0x16   :  { %3198 = vmatpush3.bf16.msra.mxu0 %v3679_v6 }
  0x17   :  { %3199 = vmatprep.subr.bf16.mxu0 %v3867_v1 }
  0x1a   :  { %3200 = vmatpush3.bf16.msra.mxu0 %v3680_v7 }
  0x1b   :  { %3201 = vmatprep.subr.bf16.mxu0 %v3867_v1 }
  0x1e   :  { %3202 = vmatpush3.bf16.msra.mxu0 %v3681_v8 }
  0x1f   :  { %3207 = vmatprep.subr.bf16.mxu0 %v3867_v1 }
  0x21   :  { %3204 = vmatmul.mubr.bf16.vlgmr.msra.gmra.mrb[0].mxu0 %v62_v11 }
  0x22   :  { %3208 = vmatpush3.bf16.msra.mxu0 %v3682_v12  ;;  %3223 = vmatprep.mubr.msk.bf16.mxu0 %vm3868_vm0, %v3867_v1 }
  0x23   :  { %3209 = vmatprep.subr.bf16.mxu0 %v3867_v1 }
  0x26   :  { %3210 = vmatpush3.bf16.msra.mxu0 %v3683_v13 }
  0x27   :  { %3211 = vmatprep.subr.bf16.mxu0 %v3867_v1 }
  0x2a   :  { %3212 = vmatpush3.bf16.msra.mxu0 %v3684_v14 }
  0x2b   :  { %3213 = vmatprep.subr.bf16.mxu0 %v3867_v1 }
  0x2e   :  { %3214 = vmatpush3.bf16.msra.mxu0 %v3685_v15 }
  0x2f   :  { %3215 = vmatprep.subr.bf16.mxu0 %v3867_v1 }
  0x32   :  { %3216 = vmatpush3.bf16.msra.mxu0 %v3686_v16 }
  0x33   :  { %3217 = vmatprep.subr.bf16.mxu0 %v3867_v1 }
  0x36   :  { %3218 = vmatpush3.bf16.msra.mxu0 %v3687_v17 }
  0x37   :  { %3219 = vmatprep.subr.bf16.mxu0 %v3867_v1 }
  0x3a   :  { %3220 = vmatpush3.bf16.msra.mxu0 %v3688_v18 }
  0x3b   :  { %3221 = vmatprep.subr.bf16.mxu0 %v3867_v1 }
  0x3e   :  { %3222 = vmatpush3.bf16.msra.mxu0 %v3689_v19 }
  0x3f   :  { %3227 = vmatprep.subr.bf16.mxu0 %v3867_v1 }
  0x41   :  { %3224 = vmatmul.mubr.bf16.vlgmr.msra.gmra.mrb[0].mxu0 %v42_v23 }
  0x42   :  { %3228 = vmatpush3.bf16.msra.mxu0 %v3690_v22  ;;  %3243 = vmatprep.mubr.msk.bf16.mxu0 %vm3868_vm0, %v3867_v1 }
  0x43   :  { %3229 = vmatprep.subr.bf16.mxu0 %v3867_v1 }
  0x46   :  { %3230 = vmatpush3.bf16.msra.mxu0 %v3691_v24 }
  0x47   :  { %3231 = vmatprep.subr.bf16.mxu0 %v3867_v1 }
  0x4a   :  { %3232 = vmatpush3.bf16.msra.mxu0 %v3692_v25 }
  0x4b   :  { %3233 = vmatprep.subr.bf16.mxu0 %v3867_v1 }
  0x4e   :  { %3234 = vmatpush3.bf16.msra.mxu0 %v3693_v26 }
  0x4f   :  { %3235 = vmatprep.subr.bf16.mxu0 %v3867_v1 }
  0x52   :  { %3236 = vmatpush3.bf16.msra.mxu0 %v3694_v27 }
  0x53   :  { %3237 = vmatprep.subr.bf16.mxu0 %v3867_v1 }
  0x56   :  { %3238 = vmatpush3.bf16.msra.mxu0 %v3695_v28 }
  0x57   :  { %3239 = vmatprep.subr.bf16.mxu0 %v3867_v1 }
  0x5a   :  { %3240 = vmatpush3.bf16.msra.mxu0 %v3696_v29 }
  0x5b   :  { %3241 = vmatprep.subr.bf16.mxu0 %v3867_v1 }
  0x5e   :  { %3242 = vmatpush3.bf16.msra.mxu0 %v3697_v30 }
  0x5f   :  { %3247 = vmatprep.subr.bf16.mxu0 %v3867_v1 }
  0x61   :  { %3244 = vmatmul.mubr.bf16.vlgmr.msra.gmra.mrb[0].mxu0 %v260_v34 }
  0x62   :  { %3248 = vmatpush3.bf16.msra.mxu0 %v3698_v33  ;;  %3263 = vmatprep.mubr.msk.bf16.mxu0 %vm3868_vm0, %v3867_v1 }
  0x63   :  { %3249 = vmatprep.subr.bf16.mxu0 %v3867_v1 }
  0x66   :  { %3250 = vmatpush3.bf16.msra.mxu0 %v3699_v35 }
  0x67   :  { %3251 = vmatprep.subr.bf16.mxu0 %v3867_v1 }
  0x6a   :  { %3252 = vmatpush3.bf16.msra.mxu0 %v3700_v36 }
  0x6b   :  { %3253 = vmatprep.subr.bf16.mxu0 %v3867_v1 }
  0x6e   :  { %3254 = vmatpush3.bf16.msra.mxu0 %v3701_v37 }
  0x6f   :  { %3255 = vmatprep.subr.bf16.mxu0 %v3867_v1 }
  0x72   :  { %3256 = vmatpush3.bf16.msra.mxu0 %v3702_v38 }
  0x73   :  { %3257 = vmatprep.subr.bf16.mxu0 %v3867_v1 }
  0x76   :  { %3258 = vmatpush3.bf16.msra.mxu0 %v3703_v39 }
  0x77   :  { %3259 = vmatprep.subr.bf16.mxu0 %v3867_v1 }
  0x7a   :  { %3260 = vmatpush3.bf16.msra.mxu0 %v3704_v40 }
  0x7b   :  { %3261 = vmatprep.subr.bf16.mxu0 %v3867_v1 }
  0x7e   :  { %3262 = vmatpush3.bf16.msra.mxu0 %v3705_v41 }
  0x7f   :  { %3267 = vmatprep.subr.bf16.mxu0 %v3867_v1 }
  0x81   :  { %3264 = vmatmul.mubr.bf16.vlgmr.msra.gmra.mrb[0].mxu0 %v372_v45 }
  0x82   :  { %3268 = vmatpush3.bf16.msra.mxu0 %v3706_v44  ;;  %3283 = vmatprep.mubr.msk.bf16.mxu0 %vm3868_vm0, %v3867_v1 }
  0x83   :  { %3269 = vmatprep.subr.bf16.mxu0 %v3867_v1 }
  0x86   :  { %3270 = vmatpush3.bf16.msra.mxu0 %v3707_v46 }
  0x87   :  { %3271 = vmatprep.subr.bf16.mxu0 %v3867_v1 }
  0x8a   :  { %3272 = vmatpush3.bf16.msra.mxu0 %v3708_v47 }
  0x8b   :  { %3273 = vmatprep.subr.bf16.mxu0 %v3867_v1 }
  0x8c   :  { %16 = vsyncpa [#allocation4], 0  ;;  %v3710_v49 = vld [vmem:[%s4670_s1 + $0x120] sm:$0xff]   ;;  %v3711_v50 = vld [vmem:[%s4670_s1 + $0x128] sm:$0xff]   ;;  %vm2266_vm1 = vcmask 1041408   ;;  %s3869_s25 = smov [#allocation3]  }
  0x8d   :  { %v3712_v51 = vld [vmem:[%s4670_s1 + $0x130] sm:$0xff]   ;;  %v3713_v52 = vld [vmem:[%s4670_s1 + $0x138] sm:$0xff]   ;;  %v2632_v53 = vld [vmem:[%s4669_s0 + $0x48] sm:$0xff]  ;;  %s2540_s26 = sshll.u32 %s3869_s25, 4  ;;  %vm2398_vm2 = vcmask 8192   ;;  %s2541_s26 = int_to_ptr.vmem [resolvable:$true] %s2540_s26 }
  0x8e   :  { %3274 = vmatpush3.bf16.msra.mxu0 %v3709_v48  ;;  %v2633_v54 = vld [vmem:[%s4669_s0 + $0x50] sm:$0x3f]  ;;  %v3714_v56 = vld [vmem:[%s4670_s1 + $0x140] sm:$0xff]   ;;  %v3747_v58 = vld [vmem:[%s4673_s4 + $0x48] sm:$0xff]   ;;  %p3848_p1 = scmp.lt.s32.totalorder %s2541_s26, %s2541_s26 }
  0x8f   :  { %3275 = vmatprep.subr.bf16.mxu0 %v3867_v1  ;;  %v484_v55 = vpack.c.bf16 %v2633_v54, %v2632_v53  ;;  %v3746_v57 = vld [vmem:[%s4673_s4 + $0x40] sm:$0xff]   ;;  %v3715_v59 = vld [vmem:[%s4670_s1 + $0x148] sm:$0xff]   ;;  %v3748_v60 = vld [vmem:[%s4673_s4 + $0x50] sm:$0xff]  }
  0x90   :  { %3367 = vmatprep.subr.bf16.mxu1 %v3746_v57  ;;  %v3716_v61 = vld [vmem:[%s4670_s1 + $0x150] sm:$0xff]   ;;  %v3749_v62 = vld [vmem:[%s4673_s4 + $0x58] sm:$0xff]   ;;  %v3718_v0 = vld [vmem:[%s4670_s1 + $0x160] sm:$0xff]  }
  0x91   :  { %3368 = vmatpush3.bf16.msra.mxu1 %v3746_v57  ;;  %v3717_v63 = vld [vmem:[%s4670_s1 + $0x158] sm:$0xff]   ;;  %v3719_v2 = vld [vmem:[%s4670_s1 + $0x168] sm:$0xff]   ;;  %v4171_v3 = vld [vmem:[#allocation2] sm:$0xff] }
  0x92   :  { %3276 = vmatpush3.bf16.msra.mxu0 %v3710_v49  ;;  %3369 = vmatprep.subr.bf16.mxu1 %v3747_v58  ;;  %v3720_v4 = vld [vmem:[%s4670_s1 + $0x170] sm:$0xff]   ;;  %v2659_v6 = vld [vmem:[%s4669_s0 + $0x39] sm:$0x3f]  ;;  %v3722_v8 = vld [vmem:[%s4670_s1 + $0x180] sm:$0xff]  }
  0x93   :  { %3277 = vmatprep.subr.bf16.mxu0 %v3867_v1  ;;  %v2658_v5 = vld [vmem:[%s4669_s0 + $0x31] sm:$0xff]  ;;  %v3723_v9 = vld [vmem:[%s4670_s1 + $0x188] sm:$0xff]   ;;  %v3726_v12 = vld [vmem:[%s4670_s1 + $0x1a0] sm:$0xff]  }
  0x94   :  { %v595_v7 = vpack.c.bf16 %v2659_v6, %v2658_v5  ;;  %v3724_v10 = vld [vmem:[%s4670_s1 + $0x190] sm:$0xff]   ;;  %v3725_v11 = vld [vmem:[%s4670_s1 + $0x198] sm:$0xff]   ;;  %v3727_v13 = vld [vmem:[%s4670_s1 + $0x1a8] sm:$0xff]  }
  0x95   :  { %3370 = vmatpush3.bf16.msra.mxu1 %v3747_v58  ;;  %v3728_v14 = vld [vmem:[%s4670_s1 + $0x1b0] sm:$0xff]   ;;  %v3729_v15 = vld [vmem:[%s4670_s1 + $0x1b8] sm:$0xff]   ;;  %v704_v16 = vld [vmem:[%s4669_s0 + $0x3] sm:$0xff] }
  0x96   :  { %3278 = vmatpush3.bf16.msra.mxu0 %v3711_v50  ;;  %3371 = vmatprep.subr.bf16.mxu1 %v3748_v60  ;;  %v705_v17 = vld [vmem:[%s4669_s0 + $0xb] sm:$0x3f]  ;;  %v3730_v19 = vld [vmem:[%s4670_s1 + $0x1c0] sm:$0xff]   ;;  %v3733_v22 = vld [vmem:[%s4670_s1 + $0x1d8] sm:$0xff]  }
  0x97   :  { %3279 = vmatprep.subr.bf16.mxu0 %v3867_v1  ;;  %v706_v18 = vpack.c.bf16 %v705_v17, %v704_v16  ;;  %v3731_v20 = vld [vmem:[%s4670_s1 + $0x1c8] sm:$0xff]   ;;  %v3732_v21 = vld [vmem:[%s4670_s1 + $0x1d0] sm:$0xff]   ;;  %v3734_v23 = vld [vmem:[%s4670_s1 + $0x1e0] sm:$0xff]  }
  0x98   :  { %v3735_v24 = vld [vmem:[%s4670_s1 + $0x1e8] sm:$0xff]   ;;  %v3736_v25 = vld [vmem:[%s4670_s1 + $0x1f0] sm:$0xff]   ;;  %v3737_v26 = vld [vmem:[%s4670_s1 + $0x1f8] sm:$0xff]  }
  0x99   :  { %3372 = vmatpush3.bf16.msra.mxu1 %v3748_v60  ;;  %v2708_v27 = vld [vmem:[%s4669_s0 + $0x1b] sm:$0xff]  ;;  %v2709_v28 = vld [vmem:[%s4669_s0 + $0x23] sm:$0x3f]  ;;  %v3740_v32 = vld [vmem:[%s4670_s1 + $0x210] sm:$0xff]  }
  0x9a   :  { %3280 = vmatpush3.bf16.msra.mxu0 %v3712_v51  ;;  %3373 = vmatprep.subr.bf16.mxu1 %v3749_v62  ;;  %v817_v29 = vpack.c.bf16 %v2709_v28, %v2708_v27  ;;  %v3738_v30 = vld [vmem:[%s4670_s1 + $0x200] sm:$0xff]   ;;  %v3739_v31 = vld [vmem:[%s4670_s1 + $0x208] sm:$0xff]   ;;  %v3741_v33 = vld [vmem:[%s4670_s1 + $0x218] sm:$0xff]  }
  0x9b   :  { %3281 = vmatprep.subr.bf16.mxu0 %v3867_v1  ;;  %v3742_v34 = vld [vmem:[%s4670_s1 + $0x220] sm:$0xff]   ;;  %v3743_v35 = vld [vmem:[%s4670_s1 + $0x228] sm:$0xff]   ;;  %v3744_v36 = vld [vmem:[%s4670_s1 + $0x230] sm:$0xff]  }
  0x9c   :  { %v3745_v37 = vld [vmem:[%s4670_s1 + $0x238] sm:$0xff]   ;;  %v926_v38 = vld [vmem:[%s4669_s0 + $0x4] sm:$0xff]  ;;  %v927_v39 = vld [vmem:[%s4669_s0 + $0xc] sm:$0x3f] }
  0x9d   :  { %3374 = vmatpush3.bf16.msra.mxu1 %v3749_v62  ;;  %v928_v40 = vpack.c.bf16 %v927_v39, %v926_v38  ;;  %v3750_v41 = vld [vmem:[%s4673_s4 + $0x60] sm:$0xff]   ;;  %v3751_v42 = vld [vmem:[%s4673_s4 + $0x68] sm:$0xff]   ;;  %v3752_v43 = vld [vmem:[%s4673_s4 + $0x70] sm:$0xff]  }
  0x9e   :  { %3282 = vmatpush3.bf16.msra.mxu0 %v3713_v52  ;;  %3375 = vmatprep.subr.bf16.mxu1 %v3750_v41  ;;  %v3753_v44 = vld [vmem:[%s4673_s4 + $0x78] sm:$0xff]   ;;  %v3754_v45 = vld [vmem:[%s4673_s4] sm:$0xff]   ;;  %v3764_v17 = vld [vmem:[%s4673_s4 + $0x90] sm:$0xff]  }
  0x9f   :  { %3287 = vmatprep.subr.bf16.mxu0 %v3867_v1  ;;  %v2758_v46 = vld [vmem:[%s4671_s2] ss:$0 sm:$0xff]  ;;  %v3757_v5 = vld [vmem:[%s4673_s4 + $0x18] sm:$0xff]   ;;  %v3771_v28 = vld [vmem:[%s4673_s4 + $0xc8] sm:$0xff]  }
  0xa0   :  { %v2759_v48 = vld [vmem:[%s4672_s3] ss:$0 sm:$0xff]  ;;  %v1537_v39 = vld [vmem:[#allocation2 + $0xd] sm:$0xff] }
  0xa1   :  { %3284 = vmatmul.mubr.bf16.vlgmr.msra.gmra.mrb[0].mxu0 %v484_v55  ;;  %3376 = vmatpush3.bf16.msra.mxu1 %v3750_v41  ;;  %v3758_v6 = vld [vmem:[%s4673_s4 + $0x20] sm:$0xff]  }
  0xa2   :  { %3288 = vmatpush3.bf16.msra.mxu0 %v3714_v56  ;;  %3303 = vmatprep.mubr.msk.bf16.mxu0 %vm3868_vm0, %v3867_v1 }
  0xa3   :  { %3289 = vmatprep.subr.bf16.mxu0 %v3867_v1  ;;  %3377 = vmatprep.subr.bf16.mxu1 %v3751_v42 }
  0xa5   :  { %3378 = vmatpush3.bf16.msra.mxu1 %v3751_v42  ;;  %v3779_v42 = vld [vmem:[%s4673_s4 + $0x108] sm:$0xff]  }
  0xa6   :  { %3290 = vmatpush3.bf16.msra.mxu0 %v3715_v59  ;;  %3379 = vmatprep.subr.bf16.mxu1 %v3752_v43 }
  0xa7   :  { %3291 = vmatprep.subr.bf16.mxu0 %v3867_v1 }
  0xa9   :  { %3380 = vmatpush3.bf16.msra.mxu1 %v3752_v43 }
  0xaa   :  { %3292 = vmatpush3.bf16.msra.mxu0 %v3716_v61  ;;  %3381 = vmatprep.subr.bf16.mxu1 %v3753_v44 }
  0xab   :  { %3293 = vmatprep.subr.bf16.mxu0 %v3867_v1 }
  0xad   :  { %3382 = vmatpush3.bf16.msra.mxu1 %v3753_v44  ;;  %v3812_v44 = vld [vmem:[%s4676_s7 + $0x8] sm:$0xff]  }
  0xae   :  { %3294 = vmatpush3.bf16.msra.mxu0 %v3717_v63  ;;  %3387 = vmatprep.subr.bf16.mxu1 %v3754_v45 }
  0xaf   :  { %3295 = vmatprep.subr.bf16.mxu0 %v3867_v1  ;;  %v3721_v1 = vld [vmem:[%s4670_s1 + $0x178] sm:$0xff]  }
  0xb2   :  { %3296 = vmatpush3.bf16.msra.mxu0 %v3718_v0 }
  0xb3   :  { %3297 = vmatprep.subr.bf16.mxu0 %v4171_v3 }
  0xb6   :  { %3298 = vmatpush3.bf16.msra.mxu0 %v3719_v2  ;;  %v3755_v2 = vld [vmem:[%s4673_s4 + $0x8] sm:$0xff]  }
  0xb7   :  { %3299 = vmatprep.subr.bf16.mxu0 %v4171_v3 }
  0xba   :  { %3300 = vmatpush3.bf16.msra.mxu0 %v3720_v4 }
  0xbb   :  { %3301 = vmatprep.subr.bf16.mxu0 %v4171_v3 }
  0xbe   :  { %3302 = vmatpush3.bf16.msra.mxu0 %v3721_v1  ;;  %v3756_v1 = vld [vmem:[%s4673_s4 + $0x10] sm:$0xff]  }
  0xbf   :  { %3307 = vmatprep.subr.bf16.mxu0 %v4171_v3 }
  0xc1   :  { %3304 = vmatmul.mubr.bf16.vlgmr.msra.gmra.mrb[0].mxu0 %v595_v7  ;;  %v3759_v7 = vld [vmem:[%s4673_s4 + $0x28] sm:$0xff]  }
  0xc2   :  { %3308 = vmatpush3.bf16.msra.mxu0 %v3722_v8  ;;  %3323 = vmatprep.mubr.msk.bf16.mxu0 %vm3868_vm0, %v4171_v3  ;;  %v3760_v8 = vld [vmem:[%s4673_s4 + $0x30] sm:$0xff]  }
  0xc3   :  { %3309 = vmatprep.subr.bf16.mxu0 %v4171_v3 }
  0xc6   :  { %3310 = vmatpush3.bf16.msra.mxu0 %v3723_v9  ;;  %v3761_v9 = vld [vmem:[%s4673_s4 + $0x38] sm:$0xff]  }
  0xc7   :  { %3311 = vmatprep.subr.bf16.mxu0 %v4171_v3 }
  0xca   :  { %3312 = vmatpush3.bf16.msra.mxu0 %v3724_v10  ;;  %v3762_v10 = vld [vmem:[%s4673_s4 + $0x80] sm:$0xff]  }
  0xcb   :  { %3313 = vmatprep.subr.bf16.mxu0 %v4171_v3 }
  0xce   :  { %3314 = vmatpush3.bf16.msra.mxu0 %v3725_v11 }
  0xcf   :  { %3315 = vmatprep.subr.bf16.mxu0 %v4171_v3 }
  0xd2   :  { %3316 = vmatpush3.bf16.msra.mxu0 %v3726_v12 }
  0xd3   :  { %3317 = vmatprep.subr.bf16.mxu0 %v4171_v3 }
  0xd6   :  { %3318 = vmatpush3.bf16.msra.mxu0 %v3727_v13 }
  0xd7   :  { %3319 = vmatprep.subr.bf16.mxu0 %v4171_v3 }
  0xda   :  { %3320 = vmatpush3.bf16.msra.mxu0 %v3728_v14 }
  0xdb   :  { %3321 = vmatprep.subr.bf16.mxu0 %v4171_v3 }
  0xde   :  { %3322 = vmatpush3.bf16.msra.mxu0 %v3729_v15  ;;  %v3763_v15 = vld [vmem:[%s4673_s4 + $0x88] sm:$0xff]  }
  0xdf   :  { %3327 = vmatprep.subr.bf16.mxu0 %v4171_v3 }
  0xe1   :  { %3324 = vmatmul.mubr.bf16.vlgmr.msra.gmra.mrb[0].mxu0 %v706_v18  ;;  %v3765_v18 = vld [vmem:[%s4673_s4 + $0x98] sm:$0xff]  }
  0xe2   :  { %3328 = vmatpush3.bf16.msra.mxu0 %v3730_v19  ;;  %3343 = vmatprep.mubr.msk.bf16.mxu0 %vm3868_vm0, %v4171_v3  ;;  %v3766_v19 = vld [vmem:[%s4673_s4 + $0xa0] sm:$0xff]  }
  0xe3   :  { %3329 = vmatprep.subr.bf16.mxu0 %v4171_v3 }
  0xe6   :  { %3330 = vmatpush3.bf16.msra.mxu0 %v3731_v20  ;;  %v3767_v20 = vld [vmem:[%s4673_s4 + $0xa8] sm:$0xff]  }
  0xe7   :  { %3331 = vmatprep.subr.bf16.mxu0 %v4171_v3 }
  0xea   :  { %3332 = vmatpush3.bf16.msra.mxu0 %v3732_v21  ;;  %v3768_v21 = vld [vmem:[%s4673_s4 + $0xb0] sm:$0xff]  }
  0xeb   :  { %3333 = vmatprep.subr.bf16.mxu0 %v4171_v3 }
  0xee   :  { %3334 = vmatpush3.bf16.msra.mxu0 %v3733_v22  ;;  %v3769_v22 = vld [vmem:[%s4673_s4 + $0xb8] sm:$0xff]  }
  0xef   :  { %3335 = vmatprep.subr.bf16.mxu0 %v4171_v3 }
  0xf2   :  { %3336 = vmatpush3.bf16.msra.mxu0 %v3734_v23  ;;  %v3770_v23 = vld [vmem:[%s4673_s4 + $0xc0] sm:$0xff]  }
  0xf3   :  { %3337 = vmatprep.subr.bf16.mxu0 %v4171_v3 }
  0xf6   :  { %3338 = vmatpush3.bf16.msra.mxu0 %v3735_v24 }
  0xf7   :  { %3339 = vmatprep.subr.bf16.mxu0 %v4171_v3 }
  0xfa   :  { %3340 = vmatpush3.bf16.msra.mxu0 %v3736_v25 }
  0xfb   :  { %3341 = vmatprep.subr.bf16.mxu0 %v4171_v3 }
  0xfe   :  { %3342 = vmatpush3.bf16.msra.mxu0 %v3737_v26  ;;  %v1418_v26 = vld [vmem:[#allocation2 + $0xc] sm:$0xff] }
  0xff   :  { %3347 = vmatprep.subr.bf16.mxu0 %v4171_v3 }
 0x101   :  { %3344 = vmatmul.mubr.bf16.vlgmr.msra.gmra.mrb[0].mxu0 %v817_v29 }
 0x102   :  { %3348 = vmatpush3.bf16.msra.mxu0 %v3738_v30  ;;  %3363 = vmatprep.mubr.msk.bf16.mxu0 %vm3868_vm0, %v4171_v3  ;;  %v3772_v30 = vld [vmem:[%s4673_s4 + $0xd0] sm:$0xff]  }
 0x103   :  { %3349 = vmatprep.subr.bf16.mxu0 %v4171_v3 }
 0x106   :  { %3350 = vmatpush3.bf16.msra.mxu0 %v3739_v31  ;;  %v3773_v31 = vld [vmem:[%s4673_s4 + $0xd8] sm:$0xff]  }
 0x107   :  { %3351 = vmatprep.subr.bf16.mxu0 %v4171_v3 }
 0x10a   :  { %3352 = vmatpush3.bf16.msra.mxu0 %v3740_v32  ;;  %v3774_v32 = vld [vmem:[%s4673_s4 + $0xe0] sm:$0xff]  }
 0x10b   :  { %3353 = vmatprep.subr.bf16.mxu0 %v4171_v3 }
 0x10e   :  { %3354 = vmatpush3.bf16.msra.mxu0 %v3741_v33  ;;  %v3775_v33 = vld [vmem:[%s4673_s4 + $0xe8] sm:$0xff]  }
 0x10f   :  { %3355 = vmatprep.subr.bf16.mxu0 %v4171_v3 }
 0x112   :  { %3356 = vmatpush3.bf16.msra.mxu0 %v3742_v34  ;;  %v3776_v34 = vld [vmem:[%s4673_s4 + $0xf0] sm:$0xff]  }
 0x113   :  { %3357 = vmatprep.subr.bf16.mxu0 %v4171_v3 }
 0x116   :  { %3358 = vmatpush3.bf16.msra.mxu0 %v3743_v35  ;;  %v3777_v35 = vld [vmem:[%s4673_s4 + $0xf8] sm:$0xff]  }
 0x117   :  { %3359 = vmatprep.subr.bf16.mxu0 %v4171_v3 }
 0x11a   :  { %3360 = vmatpush3.bf16.msra.mxu0 %v3744_v36  ;;  %v3778_v36 = vld [vmem:[%s4673_s4 + $0x100] sm:$0xff]  }
 0x11b   :  { %3361 = vmatprep.subr.bf16.mxu0 %v4171_v3 }
 0x11e   :  { %3362 = vmatpush3.bf16.msra.mxu0 %v3745_v37 }
 0x11f   :  { %3547 = vmatprep.subr.bf16.mxu0 %v4171_v3 }
 0x121   :  { %3364 = vmatmul.mubr.bf16.vlgmr.msra.gmra.mrb[0].mxu0 %v928_v40  ;;  %v3810_v40 = vld [vmem:[%s4676_s7] sm:$0xff]  }
 0x122   :  { %3563 = vmatprep.mubr.msk.bf16.mxu0 %vm3868_vm0, %v4171_v3  ;;  %3548 = vmatpush3.bf16.msra.mxu0 %v3810_v40  ;;  %v3813_v40 = vld [vmem:[%s4673_s4 + $0x208] sm:$0xff]  }
 0x123   :  { %3549 = vmatprep.subr.bf16.mxu0 %v4171_v3 }
 0x126   :  { %3550 = vmatpush3.bf16.msra.mxu0 %v3812_v44  ;;  %v3821_v44 = vld [vmem:[%s4673_s4 + $0x228] sm:$0xff]  }
 0x127   :  { %3551 = vmatprep.subr.bf16.mxu0 %v4171_v3 }
 0x1f4   :  { %v1028_v47 = vpop.f32.mrb[0].mxu0 }
 0x1f5   :  { %v1044_v49 = vmul.f32 %v2758_v46, %v1028_v47  ;;  %v3365_v50 = vpop.f32.mrb[1].mxu0  ;;  %v3781_v47 = vld [vmem:[%s4673_s4 + $0x118] sm:$0xff]  }
 0x1f6   :  { %v1031_v51 = vpop.f32.mrb[2].mxu0  ;;  %v3818_v50 = vld [vmem:[%s4676_s7 + $0x20] sm:$0xff]  }
 0x1f7   :  { %v1053_v52 = vadd.f32 %v2759_v48, %v1044_v49  ;;  %v1045_v53 = vmul.f32 %v2758_v46, %v1031_v51  ;;  %v3366_v54 = vpop.f32.mrb[3].mxu0  ;;  %v3814_v46 = vld [vmem:[%s4676_s7 + $0x10] sm:$0xff]   ;;  %v3782_v49 = vld [vmem:[%s4673_s4 + $0x120] sm:$0xff]   ;;  %v3783_v51 = vld [vmem:[%s4673_s4 + $0x128] sm:$0xff]  }
 0x1f8   :  { %3552 = vmatpush3.bf16.msra.mxu0 %v3814_v46  ;;  %v3822_v54 = vld [vmem:[%s4676_s7 + $0x30] sm:$0xff]   ;;  %v3825_v46 = vld [vmem:[%s4673_s4 + $0x238] sm:$0xff]  }
 0x1f9   :  { %v1055_v55 = vmax.f32 %v1053_v52, 0.0  ;;  %v1054_v56 = vadd.f32 %v2759_v48, %v1045_v53  ;;  %3553 = vmatprep.subr.bf16.mxu0 %v4171_v3  ;;  %v3816_v48 = vld [vmem:[%s4676_s7 + $0x18] sm:$0xff]   ;;  %v3820_v52 = vld [vmem:[%s4676_s7 + $0x28] sm:$0xff]   ;;  %v3784_v53 = vld [vmem:[%s4673_s4 + $0x130] sm:$0xff]  }
 0x1fb   :  { %1061 = vst [vmem:[#allocation2 + $0x5] sm:$0x3] %v1055_v55  ;;  %1062 = vst [vmem:[#allocation2 + $0x6] sm:$0x18] %v1055_v55  ;;  %v1056_v57 = vmax.f32 %v1054_v56, 0.0  ;;  %v3785_v55 = vld [vmem:[%s4673_s4 + $0x138] sm:$0xff]  }
 0x1fc   :  { %3554 = vmatpush3.bf16.msra.mxu0 %v3816_v48  ;;  %v3824_v56 = vld [vmem:[%s4676_s7 + $0x38] sm:$0xff]  }
 0x1fd   :  { %1063 = vst [vmem:[#allocation2 + $0x14] ss:$5 sps:$4 sm:$0x36] %v1056_v57   ;;  %3555 = vmatprep.subr.bf16.mxu0 %v4171_v3  ;;  %v3786_v57 = vld [vmem:[%s4673_s4 + $0x140] sm:$0xff]  }
 0x200   :  { %3556 = vmatpush3.bf16.msra.mxu0 %v3818_v50 }
 0x201   :  { %3557 = vmatprep.subr.bf16.mxu0 %v4171_v3 }
 0x202   :  { %v1086_v58 = vld [vmem:[#allocation2 + $0x1] sm:$0xff]  ;;  %v4332_v59 = vld [vmem:[#allocation2 + $0x9] sm:$0xff] }
 0x203   :  { %v1089_v60 = vpack.c.bf16 %v4332_v59, %v1086_v58  ;;  %v1065_v61 = vld [vmem:[#allocation2] sm:$0xff]  ;;  %v4335_v62 = vld [vmem:[#allocation2 + $0x8] sm:$0xff] }
 0x204   :  { %v1088_v63 = vld [vmem:[#allocation2 + $0x11] sm:$0x3f]  ;;  %v1068_v4 = vpack.c.bf16 %v4335_v62, %v1065_v61  ;;  %v1298_v12 = vld [vmem:[#allocation2 + $0x2] sm:$0xff]  ;;  %3558 = vmatpush3.bf16.msra.mxu0 %v3820_v52 }
 0x205   :  { %3383 = vmatprep.mubr.bf16.mxu1 %v1089_v60  ;;  %v1090_v0 = vpack.c.bf16 %v1088_v63, %v1088_v63  ;;  %v1067_v11 = vld [vmem:[#allocation2 + $0x10] sm:$0x3f]  ;;  %v1417_v25 = vld [vmem:[#allocation2 + $0x4] sm:$0xff]  ;;  %3559 = vmatprep.subr.bf16.mxu0 %v4171_v3 }
 0x206   :  { %v4362_v13 = vld [vmem:[#allocation2 + $0xa] sm:$0xff]  ;;  %v1069_v14 = vpack.c.bf16 %v1067_v11, %v1067_v11  ;;  %v1300_v24 = vld [vmem:[#allocation2 + $0x12] sm:$0x3f]  ;;  %v1420_v29 = vpack.c.bf16 %v1418_v26, %v1417_v25  ;;  %v3793_v11 = vld [vmem:[%s4673_s4 + $0x178] sm:$0xff]  }
 0x207   :  { %3384 = vmatmul.mubr.bf16.vlgmr.msra.gmra.mrb[0].mxu1 %v1090_v0  ;;  %v1301_v16 = vpack.c.bf16 %v4362_v13, %v1298_v12  ;;  %v1302_v27 = vpack.c.bf16 %v1300_v24, %v1300_v24  ;;  %v1419_v37 = vld [vmem:[#allocation2 + $0x14] sm:$0x3f]  ;;  %v1536_v38 = vld [vmem:[#allocation2 + $0x5] sm:$0xff] }
 0x208   :  { %3388 = vmatpush3.bf16.msra.mxu1 %v3754_v45  ;;  %3403 = vmatprep.mubr.bf16.mxu1 %v1068_v4  ;;  %v1421_v41 = vpack.c.bf16 %v1419_v37, %v1419_v37  ;;  %v1539_v43 = vpack.c.bf16 %v1537_v39, %v1536_v38  ;;  %v3780_v45 = vld [vmem:[%s4673_s4 + $0x110] sm:$0xff]   ;;  %v2962_v61 = vld [vmem:[%s4669_s0 + $0x48] sm:$0xff]  ;;  %v3794_v12 = vld [vmem:[%s4673_s4 + $0x180] sm:$0xff]  }
 0x209   :  { %3389 = vmatprep.subr.bf16.mxu1 %v3755_v2  ;;  %3560 = vmatpush3.bf16.msra.mxu0 %v3822_v54  ;;  %v1538_v58 = vld [vmem:[#allocation2 + $0x15] sm:$0x3f]  ;;  %v3787_v4 = vld [vmem:[%s4673_s4 + $0x148] sm:$0xff]   ;;  %v3802_v24 = vld [vmem:[%s4673_s4 + $0x1c0] sm:$0xff]  }
 0x20a   :  { %3561 = vmatprep.subr.bf16.mxu0 %v4171_v3  ;;  %v1656_v60 = vld [vmem:[#allocation2 + $0xe] sm:$0xff]  ;;  %v1540_v0 = vpack.c.bf16 %v1538_v58, %v1538_v58  ;;  %v1776_v25 = vld [vmem:[#allocation2 + $0x18] sm:$0x3f] }
 0x20b   :  { %v2963_v63 = vld [vmem:[%s4669_s0 + $0x50] sm:$0x3f]  ;;  %v1895_v37 = vld [vmem:[#allocation2 + $0x19] sm:$0x3f]  ;;  %v3828_v54 = vld [vmem:[%s4678_s9 + $0x8] sm:$0xff]   ;;  %s3843_s0 = scalar_lea.vmem %s2541_s26, 32 }
 0x20c   :  { %3390 = vmatpush3.bf16.msra.mxu1 %v3755_v2  ;;  %v1655_v2 = vld [vmem:[#allocation2 + $0x6] sm:$0xff]  ;;  %v1894_v26 = vld [vmem:[#allocation2 + $0x11] sm:$0xff]  ;;  %v1897_v39 = vpack.c.bf16 %v1895_v37, %v1895_v37  ;;  %p3844_p0 = scmp.ne.s32.totalorder %s2541_s26, %s3843_s0  ;;  %p3849_p2 = scmp.lt.s32.totalorder %s3843_s0, %s3843_s0 }
 0x20d   :  { %3391 = vmatprep.subr.bf16.mxu1 %v3756_v1  ;;  %3562 = vmatpush3.bf16.msra.mxu0 %v3824_v56  ;;  %v2013_v38 = vld [vmem:[#allocation2 + $0x12] sm:$0xff] }
 0x20e   :  { %3587 = vmatprep.subr.bf16.mxu0 %v4171_v3  ;;  %v3830_v56 = vld [vmem:[%s4678_s9 + $0x10] sm:$0xff]   ;;  %v3832_v58 = vld [vmem:[%s4678_s9 + $0x18] sm:$0xff]   ;;  %p3850_p3 = por %p3849_p2, %p3848_p1 }
 0x210   :  { %3392 = vmatpush3.bf16.msra.mxu1 %v3756_v1  ;;  %v2151_v1 = vpack.c.bf16 %v2963_v63, %v2962_v61  ;;  %v3834_v61 = vld [vmem:[%s4678_s9 + $0x20] sm:$0xff]   ;;  %p3851_p4 = pnand %p3850_p3, %p3844_p0 }
 0x211   :  { %3393 = vmatprep.subr.bf16.mxu1 %v3757_v5  ;;  %v3835_v63 = vld [vmem:[%s4678_s9 + $0x20] sm:$0xff]  }
 0x212   :  { %3564 = vmatmul.mubr.bf16.vlgmr.msra.gmra.mrb[4].mxu0 %v2151_v1  ;;  %v3839_v1 = vld [vmem:[%s4678_s9 + $0x30] sm:$0xff]  }
 0x213   :  { %3603 = vmatprep.mubr.msk.bf16.mxu0 %vm3868_vm0, %v4171_v3 }
 0x214   :  { %3394 = vmatpush3.bf16.msra.mxu1 %v3757_v5  ;;  %v1658_v5 = vpack.c.bf16 %v1656_v60, %v1655_v2  ;;  %v3833_v60 = vld [vmem:[%s4678_s9 + $0x18] sm:$0xff]   ;;  %v3837_v2 = vld [vmem:[%s4678_s9 + $0x28] sm:$0xff]  }
 0x215   :  { %3395 = vmatprep.subr.bf16.mxu1 %v3758_v6 }
 0x218   :  { %3396 = vmatpush3.bf16.msra.mxu1 %v3758_v6  ;;  %v3788_v6 = vld [vmem:[%s4673_s4 + $0x150] sm:$0xff]  }
 0x219   :  { %3397 = vmatprep.subr.bf16.mxu1 %v3759_v7 }
 0x21c   :  { %3398 = vmatpush3.bf16.msra.mxu1 %v3759_v7  ;;  %v3789_v7 = vld [vmem:[%s4673_s4 + $0x158] sm:$0xff]  }
 0x21d   :  { %3399 = vmatprep.subr.bf16.mxu1 %v3760_v8 }
 0x220   :  { %3400 = vmatpush3.bf16.msra.mxu1 %v3760_v8  ;;  %v3790_v8 = vld [vmem:[%s4673_s4 + $0x160] sm:$0xff]  }
 0x221   :  { %3401 = vmatprep.subr.bf16.mxu1 %v3761_v9 }
 0x224   :  { %3402 = vmatpush3.bf16.msra.mxu1 %v3761_v9  ;;  %v3791_v9 = vld [vmem:[%s4673_s4 + $0x168] sm:$0xff]  }
 0x225   :  { %3407 = vmatprep.subr.bf16.mxu1 %v3762_v10 }
 0x227   :  { %3404 = vmatmul.mubr.bf16.vlgmr.msra.gmra.mrb[0].mxu1 %v1069_v14  ;;  %v1657_v14 = vld [vmem:[#allocation2 + $0x16] sm:$0x3f] }
 0x228   :  { %3408 = vmatpush3.bf16.msra.mxu1 %v3762_v10  ;;  %3423 = vmatprep.mubr.bf16.mxu1 %v1301_v16  ;;  %v3792_v10 = vld [vmem:[%s4673_s4 + $0x170] sm:$0xff]   ;;  %v1659_v16 = vpack.c.bf16 %v1657_v14, %v1657_v14 }
 0x229   :  { %3409 = vmatprep.subr.bf16.mxu1 %v3763_v15 }
 0x22c   :  { %3410 = vmatpush3.bf16.msra.mxu1 %v3763_v15  ;;  %v1775_v15 = vld [vmem:[#allocation2 + $0x10] sm:$0xff] }
 0x22d   :  { %3411 = vmatprep.subr.bf16.mxu1 %v3764_v17 }
 0x230   :  { %3412 = vmatpush3.bf16.msra.mxu1 %v3764_v17  ;;  %v3795_v17 = vld [vmem:[%s4673_s4 + $0x188] sm:$0xff]  }
 0x231   :  { %3413 = vmatprep.subr.bf16.mxu1 %v3765_v18 }
 0x234   :  { %3414 = vmatpush3.bf16.msra.mxu1 %v3765_v18  ;;  %v1777_v18 = vpack.c.bf16 %v1775_v15, %v4335_v62  ;;  %v3798_v62 = vld [vmem:[%s4673_s4 + $0x1a0] sm:$0xff]  }
 0x235   :  { %3415 = vmatprep.subr.bf16.mxu1 %v3766_v19 }
 0x238   :  { %3416 = vmatpush3.bf16.msra.mxu1 %v3766_v19  ;;  %v3796_v19 = vld [vmem:[%s4673_s4 + $0x190] sm:$0xff]  }
 0x239   :  { %3417 = vmatprep.subr.bf16.mxu1 %v3767_v20 }
 0x23c   :  { %3418 = vmatpush3.bf16.msra.mxu1 %v3767_v20  ;;  %v3797_v20 = vld [vmem:[%s4673_s4 + $0x198] sm:$0xff]  }
 0x23d   :  { %3419 = vmatprep.subr.bf16.mxu1 %v3768_v21 }
 0x240   :  { %3420 = vmatpush3.bf16.msra.mxu1 %v3768_v21  ;;  %v3799_v21 = vld [vmem:[%s4673_s4 + $0x1a8] sm:$0xff]  }
 0x241   :  { %3421 = vmatprep.subr.bf16.mxu1 %v3769_v22 }
 0x244   :  { %3422 = vmatpush3.bf16.msra.mxu1 %v3769_v22  ;;  %v3800_v22 = vld [vmem:[%s4673_s4 + $0x1b0] sm:$0xff]  }
 0x245   :  { %3427 = vmatprep.subr.bf16.mxu1 %v3770_v23 }
 0x247   :  { %3424 = vmatmul.mubr.bf16.vlgmr.msra.gmra.mrb[0].mxu1 %v1302_v27  ;;  %v1778_v27 = vpack.c.bf16 %v1776_v25, %v1776_v25 }
 0x248   :  { %3428 = vmatpush3.bf16.msra.mxu1 %v3770_v23  ;;  %3443 = vmatprep.mubr.bf16.mxu1 %v1420_v29  ;;  %v3801_v23 = vld [vmem:[%s4673_s4 + $0x1b8] sm:$0xff]   ;;  %v1896_v29 = vpack.c.bf16 %v1894_v26, %v4332_v59  ;;  %v3806_v59 = vld [vmem:[%s4673_s4 + $0x1e0] sm:$0xff]  }
 0x249   :  { %3429 = vmatprep.subr.bf16.mxu1 %v3771_v28 }
 0x24c   :  { %3430 = vmatpush3.bf16.msra.mxu1 %v3771_v28  ;;  %v3803_v28 = vld [vmem:[%s4673_s4 + $0x1c8] sm:$0xff]  }
 0x24d   :  { %3431 = vmatprep.subr.bf16.mxu1 %v3772_v30 }
 0x250   :  { %3432 = vmatpush3.bf16.msra.mxu1 %v3772_v30  ;;  %v3804_v30 = vld [vmem:[%s4673_s4 + $0x1d0] sm:$0xff]  }
 0x251   :  { %3433 = vmatprep.subr.bf16.mxu1 %v3773_v31 }
 0x254   :  { %3434 = vmatpush3.bf16.msra.mxu1 %v3773_v31  ;;  %v3805_v31 = vld [vmem:[%s4673_s4 + $0x1d8] sm:$0xff]  }
 0x255   :  { %3435 = vmatprep.subr.bf16.mxu1 %v3774_v32 }
 0x258   :  { %3436 = vmatpush3.bf16.msra.mxu1 %v3774_v32  ;;  %v3807_v32 = vld [vmem:[%s4673_s4 + $0x1e8] sm:$0xff]  }
 0x259   :  { %3437 = vmatprep.subr.bf16.mxu1 %v3775_v33 }
 0x25c   :  { %3438 = vmatpush3.bf16.msra.mxu1 %v3775_v33  ;;  %v3808_v33 = vld [vmem:[%s4673_s4 + $0x1f0] sm:$0xff]  }
 0x25d   :  { %3439 = vmatprep.subr.bf16.mxu1 %v3776_v34 }
 0x260   :  { %3440 = vmatpush3.bf16.msra.mxu1 %v3776_v34  ;;  %v3809_v34 = vld [vmem:[%s4673_s4 + $0x1f8] sm:$0xff]  }
 0x261   :  { %3441 = vmatprep.subr.bf16.mxu1 %v3777_v35 }
 0x264   :  { %3442 = vmatpush3.bf16.msra.mxu1 %v3777_v35  ;;  %v3826_v35 = vld [vmem:[%s4678_s9] sm:$0xff]  }
 0x265   :  { %3447 = vmatprep.subr.bf16.mxu1 %v3778_v36  ;;  %3588 = vmatpush3.bf16.msra.mxu0 %v3826_v35 }
 0x266   :  { %3589 = vmatprep.subr.bf16.mxu0 %v4171_v3 }
 0x267   :  { %3444 = vmatmul.mubr.bf16.vlgmr.msra.gmra.mrb[0].mxu1 %v1421_v41  ;;  %v2015_v41 = vpack.c.bf16 %v2013_v38, %v4362_v13  ;;  %v3819_v13 = vld [vmem:[%s4673_s4 + $0x220] sm:$0xff]  }
 0x268   :  { %3448 = vmatpush3.bf16.msra.mxu1 %v3778_v36  ;;  %3463 = vmatprep.mubr.bf16.mxu1 %v1539_v43  ;;  %v3811_v36 = vld [vmem:[%s4673_s4 + $0x200] sm:$0xff]   ;;  %v3817_v43 = vld [vmem:[%s4673_s4 + $0x218] sm:$0xff]  }
 0x269   :  { %3449 = vmatprep.subr.bf16.mxu1 %v3779_v42  ;;  %3590 = vmatpush3.bf16.msra.mxu0 %v3828_v54 }
 0x26a   :  { %3591 = vmatprep.subr.bf16.mxu0 %v4171_v3 }
 0x26c   :  { %3450 = vmatpush3.bf16.msra.mxu1 %v3779_v42  ;;  %v3815_v42 = vld [vmem:[%s4673_s4 + $0x210] sm:$0xff]  }
 0x26d   :  { %3451 = vmatprep.subr.bf16.mxu1 %v3780_v45  ;;  %3592 = vmatpush3.bf16.msra.mxu0 %v3830_v56 }
 0x26e   :  { %3593 = vmatprep.subr.bf16.mxu0 %v4171_v3 }
 0x270   :  { %3452 = vmatpush3.bf16.msra.mxu1 %v3780_v45  ;;  %v3823_v45 = vld [vmem:[%s4673_s4 + $0x230] sm:$0xff]  }
 0x271   :  { %3453 = vmatprep.subr.bf16.mxu1 %v3781_v47  ;;  %3594 = vmatpush3.bf16.msra.mxu0 %v3832_v58 }
 0x272   :  { %3595 = vmatprep.subr.bf16.mxu0 %v4171_v3 }
 0x274   :  { %3454 = vmatpush3.bf16.msra.mxu1 %v3781_v47  ;;  %v2014_v47 = vld [vmem:[#allocation2 + $0x1a] sm:$0x3f] }
 0x275   :  { %3455 = vmatprep.subr.bf16.mxu1 %v3782_v49  ;;  %v2016_v48 = vpack.c.bf16 %v2014_v47, %v2014_v47  ;;  %3596 = vmatpush3.bf16.msra.mxu0 %v3834_v61 }
 0x276   :  { %3597 = vmatprep.subr.bf16.mxu0 %v4171_v3 }
 0x278   :  { %3456 = vmatpush3.bf16.msra.mxu1 %v3782_v49 }
 0x279   :  { %3457 = vmatprep.subr.bf16.mxu1 %v3783_v51 }
 0x27c   :  { %3458 = vmatpush3.bf16.msra.mxu1 %v3783_v51  ;;  %v3827_v51 = vld [vmem:[%s4678_s9] sm:$0xff]  }
 0x27d   :  { %3459 = vmatprep.subr.bf16.mxu1 %v3784_v53 }
 0x280   :  { %3460 = vmatpush3.bf16.msra.mxu1 %v3784_v53 }
 0x281   :  { %3461 = vmatprep.subr.bf16.mxu1 %v3785_v55 }
 0x284   :  { %3462 = vmatpush3.bf16.msra.mxu1 %v3785_v55  ;;  %v3829_v55 = vld [vmem:[%s4678_s9 + $0x8] sm:$0xff]  }
 0x285   :  { %3467 = vmatprep.subr.bf16.mxu1 %v3786_v57 }
 0x287   :  { %3464 = vmatmul.mubr.bf16.vlgmr.msra.gmra.mrb[0].mxu1 %v1540_v0  ;;  %v3836_v0 = vld [vmem:[%s4678_s9 + $0x28] sm:$0xff]  }
 0x288   :  { %3468 = vmatpush3.bf16.msra.mxu1 %v3786_v57  ;;  %3483 = vmatprep.mubr.bf16.mxu1 %v1658_v5  ;;  %v3831_v57 = vld [vmem:[%s4678_s9 + $0x10] sm:$0xff]   ;;  %v3840_v5 = vld [vmem:[%s4678_s9 + $0x38] sm:$0xff]  }
 0x289   :  { %3469 = vmatprep.subr.bf16.mxu1 %v3787_v4  ;;  %3598 = vmatpush3.bf16.msra.mxu0 %v3836_v0 }
 0x28a   :  { %3599 = vmatprep.subr.bf16.mxu0 %v4171_v3 }
 0x28c   :  { %3470 = vmatpush3.bf16.msra.mxu1 %v3787_v4  ;;  %v3838_v4 = vld [vmem:[%s4678_s9 + $0x30] sm:$0xff]  }
 0x28d   :  { %3471 = vmatprep.subr.bf16.mxu1 %v3788_v6  ;;  %3600 = vmatpush3.bf16.msra.mxu0 %v3838_v4  ;;  %v2309_v4 = vld [vmem:[%s4679_s10] sm:$0x1] }
 0x28e   :  { %3601 = vmatprep.subr.bf16.mxu0 %v4171_v3 }
 0x290   :  { %3472 = vmatpush3.bf16.msra.mxu1 %v3788_v6  ;;  %v3841_v6 = vld [vmem:[%s4678_s9 + $0x38] sm:$0xff]  }
 0x291   :  { %3473 = vmatprep.subr.bf16.mxu1 %v3789_v7  ;;  %3602 = vmatpush3.bf16.msra.mxu0 %v3840_v5 }
 0x294   :  { %3474 = vmatpush3.bf16.msra.mxu1 %v3789_v7  ;;  %v2964_v7 = vld [vmem:[%s4677_s8] ss:$0 sm:$0xff] }
 0x295   :  { %3475 = vmatprep.subr.bf16.mxu1 %v3790_v8 }
 0x298   :  { %3476 = vmatpush3.bf16.msra.mxu1 %v3790_v8 }
 0x299   :  { %3477 = vmatprep.subr.bf16.mxu1 %v3791_v9 }
 0x29c   :  { %3478 = vmatpush3.bf16.msra.mxu1 %v3791_v9 }
 0x29d   :  { %3479 = vmatprep.subr.bf16.mxu1 %v3792_v10 }
 0x2a0   :  { %3480 = vmatpush3.bf16.msra.mxu1 %v3792_v10  ;;  %v2960_v10 = vld [vmem:[%s4674_s5] ss:$0 sm:$0xff] }
 0x2a1   :  { %3481 = vmatprep.subr.bf16.mxu1 %v3793_v11 }
 0x2a4   :  { %3482 = vmatpush3.bf16.msra.mxu1 %v3793_v11 }
 0x2a5   :  { %3487 = vmatprep.subr.bf16.mxu1 %v3794_v12 }
 0x2a7   :  { %3484 = vmatmul.mubr.bf16.vlgmr.msra.gmra.mrb[0].mxu1 %v1659_v16 }
 0x2a8   :  { %3488 = vmatpush3.bf16.msra.mxu1 %v3794_v12  ;;  %3503 = vmatprep.mubr.bf16.mxu1 %v1777_v18  ;;  %v2961_v12 = vld [vmem:[%s4675_s6] ss:$0 sm:$0xff] }
 0x2a9   :  { %3489 = vmatprep.subr.bf16.mxu1 %v3795_v17 }
 0x2ac   :  { %3490 = vmatpush3.bf16.msra.mxu1 %v3795_v17 }
 0x2ad   :  { %3491 = vmatprep.subr.bf16.mxu1 %v3796_v19 }
 0x2b0   :  { %3492 = vmatpush3.bf16.msra.mxu1 %v3796_v19 }
 0x2b1   :  { %3493 = vmatprep.subr.bf16.mxu1 %v3797_v20 }
 0x2b4   :  { %3494 = vmatpush3.bf16.msra.mxu1 %v3797_v20 }
 0x2b5   :  { %3495 = vmatprep.subr.bf16.mxu1 %v3798_v62 }
 0x2b8   :  { %3496 = vmatpush3.bf16.msra.mxu1 %v3798_v62 }
 0x2b9   :  { %3497 = vmatprep.subr.bf16.mxu1 %v3799_v21 }
 0x2bc   :  { %3498 = vmatpush3.bf16.msra.mxu1 %v3799_v21 }
 0x2bd   :  { %3499 = vmatprep.subr.bf16.mxu1 %v3800_v22 }
 0x2c0   :  { %3500 = vmatpush3.bf16.msra.mxu1 %v3800_v22 }
 0x2c1   :  { %3501 = vmatprep.subr.bf16.mxu1 %v3801_v23 }
 0x2c4   :  { %3502 = vmatpush3.bf16.msra.mxu1 %v3801_v23 }
 0x2c5   :  { %3507 = vmatprep.subr.bf16.mxu1 %v3802_v24 }
 0x2c7   :  { %3504 = vmatmul.mubr.bf16.vlgmr.msra.gmra.mrb[0].mxu1 %v1778_v27 }
 0x2c8   :  { %3508 = vmatpush3.bf16.msra.mxu1 %v3802_v24  ;;  %3523 = vmatprep.mubr.bf16.mxu1 %v1896_v29 }
 0x2c9   :  { %3509 = vmatprep.subr.bf16.mxu1 %v3803_v28 }
 0x2cc   :  { %3510 = vmatpush3.bf16.msra.mxu1 %v3803_v28 }
 0x2cd   :  { %3511 = vmatprep.subr.bf16.mxu1 %v3804_v30 }
 0x2d0   :  { %3512 = vmatpush3.bf16.msra.mxu1 %v3804_v30 }
 0x2d1   :  { %3513 = vmatprep.subr.bf16.mxu1 %v3805_v31 }
 0x2d4   :  { %3514 = vmatpush3.bf16.msra.mxu1 %v3805_v31 }
 0x2d5   :  { %3515 = vmatprep.subr.bf16.mxu1 %v3806_v59 }
 0x2d8   :  { %3516 = vmatpush3.bf16.msra.mxu1 %v3806_v59 }
 0x2d9   :  { %3517 = vmatprep.subr.bf16.mxu1 %v3807_v32 }
 0x2dc   :  { %3518 = vmatpush3.bf16.msra.mxu1 %v3807_v32 }
 0x2dd   :  { %3519 = vmatprep.subr.bf16.mxu1 %v3808_v33 }
 0x2e0   :  { %3520 = vmatpush3.bf16.msra.mxu1 %v3808_v33 }
 0x2e1   :  { %3521 = vmatprep.subr.bf16.mxu1 %v3809_v34 }
 0x2e4   :  { %3522 = vmatpush3.bf16.msra.mxu1 %v3809_v34 }
 0x2e5   :  { %3527 = vmatprep.subr.bf16.mxu1 %v3811_v36  ;;  %v2257_v49 = vpop.f32.mrb[4].mxu0 }
 0x2e6   :  { %v3565_v50 = vpop.f32.mrb[5].mxu0  ;;  %v2258_v9 = vadd.f32 %v2964_v7, %v2257_v49 }
 0x2e7   :  { %3524 = vmatmul.mubr.bf16.vlgmr.msra.gmra.mrb[0].mxu1 %v1897_v39  ;;  %v2260_v52 = vpop.f32.mrb[6].mxu0 }
 0x2e8   :  { %3528 = vmatpush3.bf16.msra.mxu1 %v3811_v36  ;;  %3543 = vmatprep.mubr.bf16.mxu1 %v2015_v41  ;;  %v3566_v53 = vpop.f32.mrb[7].mxu0  ;;  %v2261_v8 = vadd.f32 %v2964_v7, %v2260_v52  ;;  %v2276_v16 = vrot.slane %v2258_v9, 7 }
 0x2e9   :  { %3529 = vmatprep.subr.bf16.mxu1 %v3813_v40 }
 0x2ea   :  { %v2401_v15 = vrot.slane %v2261_v8, 1 }
 0x2ec   :  { %3530 = vmatpush3.bf16.msra.mxu1 %v3813_v40 }
 0x2ed   :  { %3531 = vmatprep.subr.bf16.mxu1 %v3815_v42 }
 0x2f0   :  { %3532 = vmatpush3.bf16.msra.mxu1 %v3815_v42 }
 0x2f1   :  { %3533 = vmatprep.subr.bf16.mxu1 %v3817_v43 }
 0x2f4   :  { %3534 = vmatpush3.bf16.msra.mxu1 %v3817_v43 }
 0x2f5   :  { %3535 = vmatprep.subr.bf16.mxu1 %v3819_v13 }
 0x2f8   :  { %3536 = vmatpush3.bf16.msra.mxu1 %v3819_v13 }
 0x2f9   :  { %3537 = vmatprep.subr.bf16.mxu1 %v3821_v44 }
 0x2fc   :  { %3538 = vmatpush3.bf16.msra.mxu1 %v3821_v44 }
 0x2fd   :  { %3539 = vmatprep.subr.bf16.mxu1 %v3823_v45 }
 0x300   :  { %3540 = vmatpush3.bf16.msra.mxu1 %v3823_v45 }
 0x301   :  { %3541 = vmatprep.subr.bf16.mxu1 %v3825_v46 }
 0x304   :  { %3542 = vmatpush3.bf16.msra.mxu1 %v3825_v46 }
 0x305   :  { %3567 = vmatprep.subr.bf16.mxu1 %v4171_v3 }
 0x307   :  { %3544 = vmatmul.mubr.bf16.vlgmr.msra.gmra.mrb[0].mxu1 %v2016_v48 }
 0x308   :  { %3583 = vmatprep.mubr.msk.bf16.mxu1 %vm3868_vm0, %v4171_v3  ;;  %3568 = vmatpush3.bf16.msra.mxu1 %v3827_v51 }
 0x309   :  { %3569 = vmatprep.subr.bf16.mxu1 %v4171_v3 }
 0x30c   :  { %3570 = vmatpush3.bf16.msra.mxu1 %v3829_v55 }
 0x30d   :  { %3571 = vmatprep.subr.bf16.mxu1 %v4171_v3 }
 0x310   :  { %3572 = vmatpush3.bf16.msra.mxu1 %v3831_v57 }
 0x311   :  { %3573 = vmatprep.subr.bf16.mxu1 %v4171_v3 }
 0x314   :  { %3574 = vmatpush3.bf16.msra.mxu1 %v3833_v60 }
 0x315   :  { %3575 = vmatprep.subr.bf16.mxu1 %v4171_v3 }
 0x318   :  { %3576 = vmatpush3.bf16.msra.mxu1 %v3835_v63 }
 0x319   :  { %3577 = vmatprep.subr.bf16.mxu1 %v4171_v3 }
 0x31c   :  { %3578 = vmatpush3.bf16.msra.mxu1 %v3837_v2  ;;  %v2444_v2 = vld [vmem:[%s4679_s10] sm:$0x1] }
 0x31d   :  { %3579 = vmatprep.subr.bf16.mxu1 %v4171_v3 }
 0x320   :  { %3580 = vmatpush3.bf16.msra.mxu1 %v3839_v1 }
 0x321   :  { %3581 = vmatprep.subr.bf16.mxu1 %v4171_v3 }
 0x324   :  { %3582 = vmatpush3.bf16.msra.mxu1 %v3841_v6 }
 0x3da   :  { %v3545_v11 = vpop.f32.mrb[0].mxu1 }
 0x3db   :  { %v2139_v14 = vmul.f32 %v3545_v11, %v2960_v10  ;;  %v2116_v3 = vpop.f32.mrb[1].mxu1 }
 0x3dc   :  { %v2138_v17 = vmul.f32 %v2960_v10, %v2116_v3  ;;  %v3546_v18 = vpop.f32.mrb[2].mxu1 }
 0x3dd   :  { %v2148_v19 = vadd.f32 %v2961_v12, %v2139_v14  ;;  %v2119_v20 = vpop.f32.mrb[3].mxu1 }
 0x3de   :  { %v2147_v62 = vadd.f32 %v2961_v12, %v2138_v17 }
 0x3df   :  { %v2403_v21 = vadd.f32 %v2401_v15, %v2148_v19  ;;  %v2413_v22 = vadd.f32 %v2261_v8, %v2148_v19 }
 0x3e0   :  { %v2264_v23 = vadd.f32 %v2258_v9, %v2147_v62  ;;  %v2278_v24 = vadd.f32 %v2276_v16, %v2147_v62 }
 0x3e1   :  { %v2404_v25 = vmax.f32 %v2403_v21, 0.0  ;;  %v2414_v26 = vmax.f32 %v2413_v22, 0.0 }
 0x3e2   :  { %v2265_v27 = vmax.f32 %v2264_v23, 0.0  ;;  %v2279_v28 = vmax.f32 %v2278_v24, 0.0 }
 0x3e3   :  { %v2405_v29 = vsel %vm2266_vm1, %v2404_v25, 0.0  ;;  %v2416_v30 = vrot.slane %v2414_v26, 4 }
 0x3e4   :  { %v2406_v31 = vrot.slane %v2405_v29, 4  ;;  %v2267_v59 = vsel %vm2266_vm1, %v2265_v27, 0.0  ;;  %v2281_v32 = vrot.slane %v2279_v28, 4 }
 0x3e5   :  { %v2418_v33 = vsel %vm2266_vm1, %v2416_v30, 0.0  ;;  %v2268_v34 = vrot.slane %v2267_v59, 4 }
 0x3e6   :  { %v2407_v35 = vadd.f32 %v2406_v31, %v2405_v29  ;;  %v2419_v36 = vrot.slane %v2418_v33, 4  ;;  %v2283_v37 = vsel %vm2266_vm1, %v2281_v32, 0.0 }
 0x3e7   :  { %v2269_v38 = vadd.f32 %v2268_v34, %v2267_v59  ;;  %v2284_v39 = vrot.slane %v2283_v37, 4 }
 0x3e8   :  { %v2408_v40 = vrot.slane %v2407_v35, 2  ;;  %v2420_v41 = vadd.f32 %v2419_v36, %v2418_v33 }
 0x3e9   :  { %v2270_v42 = vrot.slane %v2269_v38, 2  ;;  %v2285_v43 = vadd.f32 %v2284_v39, %v2283_v37 }
 0x3ea   :  { %v2409_v13 = vadd.f32 %v2408_v40, %v2407_v35  ;;  %v2421_v44 = vrot.slane %v2420_v41, 2 }
 0x3eb   :  { %v2271_v45 = vadd.f32 %v2270_v42, %v2269_v38  ;;  %v2286_v46 = vrot.slane %v2285_v43, 2 }
 0x3ec   :  { %v2410_v47 = vrot.slane %v2409_v13, 1  ;;  %v2422_v48 = vadd.f32 %v2421_v44, %v2420_v41 }
 0x3ed   :  { %v2272_v49 = vrot.slane %v2271_v45, 1  ;;  %v2287_v50 = vadd.f32 %v2286_v46, %v2285_v43 }
 0x3ee   :  { %v2423_v51 = vrot.slane %v2422_v48, 1  ;;  %v2411_v53 = vadd.f32 %v2410_v47, %v2409_v13 }
 0x3ef   :  { %v2288_v52 = vrot.slane %v2287_v50, 1  ;;  %v2273_v55 = vadd.f32 %v2272_v49, %v2271_v45 }
 0x3f0   :  { %v2424_v54 = vadd.f32 %v2423_v51, %v2422_v48 }
 0x3f1   :  { %v2289_v56 = vadd.f32 %v2288_v52, %v2287_v50 }
 0x3f2   :  { %v2425_v57 = vadd.f32 %v2424_v54, %v2411_v53 }
 0x3f3   :  { %v2290_v58 = vadd.f32 %v2289_v56, %v2273_v55 }
 0x3f4   :  { %v2426_v60 = vmul.f32 0.25, %v2425_v57 }
 0x3f5   :  { %v2291_v61 = vmul.f32 0.25, %v2290_v58 }
 0x3f6   :  { %v2427_v63 = vpack.c.bf16 %v2426_v60, %v2426_v60 }
 0x3f7   :  { %v2292_v0 = vpack.c.bf16 %v2291_v61, %v2291_v61 }
 0x3f8   :  { %3604 = vmatmul.mubr.bf16.vlgmr.msra.gmra.mrb[8].mxu0 %v2427_v63 }
 0x3f9   :  { %3584 = vmatmul.mubr.bf16.vlgmr.msra.gmra.mrb[4].mxu1 %v2292_v0 }
 0x4cb   :  { %v2527_v1 = vpop.f32.mrb[8].mxu0 }
 0x4cc   :  { %v2528_v5 = vadd.f32 %v2527_v1, %v2444_v2  ;;  %v2392_v6 = vpop.f32.mrb[4].mxu1  ;;  %v3605_v7 = vpop.f32.mrb[9].mxu0 }
 0x4cd   :  { %v2393_v8 = vadd.f32 %v2392_v6, %v2309_v4  ;;  %v3585_v9 = vpop.f32.mrb[5].mxu1  ;;  %v2530_v10 = vpop.f32.mrb[10].mxu0 }
 0x4ce   :  { %2533 = vst.msk [vmem:[#allocation3 + $0x1] sm:$0x1] %vm2398_vm2, %v2528_v5  ;;  %v2395_v11 = vpop.f32.mrb[6].mxu1  ;;  %v3606_v12 = vpop.f32.mrb[11].mxu0 }
 0x4cf   :  { %2399 = vst.msk [vmem:[#allocation3] sm:$0x1] %vm2398_vm2, %v2393_v8  ;;  %v3586_v14 = vpop.f32.mrb[7].mxu1 }
 0x4d0   :  { %3854 = shalt.err (!%p3851_p4)
}
 0x4d1   :  { %s3855_s2 = scalar_lea.hbm %s4680_s11, 32 }
 0x4d2   :  { %p3856_p5 = scmp.ne.s32.totalorder %s4680_s11, %s3855_s2  ;;  %p3859_p6 = scmp.lt.u32.totalorder %s3855_s2, %s4680_s11 }
 0x4d4   :  { %p3861_p7 = pnand %p3859_p6, %p3856_p5 }
 0x4d6   :  { %3864 = shalt.err (!%p3861_p7)
}
 0x4d7   :  { %2543 = dma.vmem_to_hbm [thread:$0]  %s2541_s26, 32, %s4680_s11, [#allocation4]  }
 0x4d8   :  { %3865 = dma.done.wait [#allocation4], 32  }
 0x4d9   :  { %3866 = vsyncadd [#allocation4], 4294967264 }
 0x4da   :  { %2547 = vsyncpa [#allocation4], 1 }

</bundles_post_ra>
